<compile_context>
chip_gen: v7x
topology: tpu7x:2x2x1
jax: 0.10.0
libtpu: 0.0.40
codegen_flags: <defaults>
</compile_context>

<pallas_src>
import numpy as np
import jax
import jax.numpy as jnp
from jax import lax
from jax.experimental import pallas as pl
from jax.experimental.pallas import tpu as pltpu


# -----------------------------------------------------------------------------
# align_corners=True bilinear interpolation matrix (trace-time constant)
# -----------------------------------------------------------------------------
def interp_matrix_np(n_in, n_out):
    if n_in == 1:
        return np.ones((n_out, 1), np.float32)
    if n_out == 1:
        m = np.zeros((1, n_in), np.float32)
        m[0, 0] = 1.0
        return m
    src = np.arange(n_out, dtype=np.float64) * (n_in - 1) / (n_out - 1)
    lo = np.clip(np.floor(src).astype(np.int64), 0, n_in - 2)
    frac = (src - lo).astype(np.float32)
    U = np.zeros((n_out, n_in), np.float32)
    U[np.arange(n_out), lo] += 1.0 - frac
    U[np.arange(n_out), lo + 1] += frac
    return U


# -----------------------------------------------------------------------------
# In-kernel helper: [H, W, C] -> [H+2, W+2, C] zero border (3x3 conv halo)
# -----------------------------------------------------------------------------
def _zero_pad_hw(t):
    H, W, C = t.shape
    zr = jnp.zeros((1, W, C), t.dtype)
    t = jnp.concatenate([zr, t, zr], axis=0)
    zc = jnp.zeros((H + 2, 1, C), t.dtype)
    return jnp.concatenate([zc, t, zc], axis=1)


# -----------------------------------------------------------------------------
# Generation-keyed VMEM budget (v5e/v6e: 128 MiB cores, v7x: 64 MiB cores)
# -----------------------------------------------------------------------------
def _vmem_limit_bytes():
    try:
        cap = int(pltpu.get_tpu_info().vmem_capacity_bytes)
    except Exception:
        cap = 64 * 2 ** 20          # assume the smallest (v7x-class) core
    return int(min(max(cap - 16 * 2 ** 20, 32 * 2 ** 20), 100 * 2 ** 20))


# -----------------------------------------------------------------------------
# One-time weight/constant packing into the kernel layout (bf16, tap-merged)
# -----------------------------------------------------------------------------
def pack_decoder(params, x_shape, low_shape):
    B, Cx, h, w = x_shape
    _, Cl, H, W = low_shape
    S = 4 * w                      # F.interpolate(x, size=[x.shape[3]*4]*2)
    assert H == S and W == S, "low_level_feature spatial must equal 4 * x width"

    c1, c2, c3, c4 = params["c1"], params["c2"], params["c3"], params["c4"]
    Cm = c1["W"].shape[0]          # 16
    C2 = c2["W"].shape[0]          # 128
    nc = c4["W"].shape[0]
    assert c1["W"].shape[1] == Cl
    # PyTorch concatenates [low_f(16) | x_up(256)]; the kernel concatenates
    # [x_up | low_f] so the 256-ch block stays lane-aligned.  Reorder c2's
    # input channels to match (explicit coupling, asserted here).
    assert c2["W"].shape[1] == Cm + Cx
    W2 = jnp.concatenate([c2["W"][:, Cm:], c2["W"][:, :Cm]], axis=1)

    bf16 = jnp.bfloat16
    return {
        # first 4x bilinear upsample as one matrix:
        # xup[(s*W+t), c] = sum_{k,l} Uh[s,k] * Uw[t,l] * x[(k*w+l), c]
        "U2": jnp.asarray(np.kron(interp_matrix_np(h, S),
                                  interp_matrix_np(w, S)), bf16),    # [H*W, h*w]
        "w1": c1["W"].reshape(Cm, Cl).T.astype(bf16),                # [Cl, Cm]
        "s1": c1["scale"].reshape(1, Cm), "b1": c1["bias"].reshape(1, Cm),
        # 3x3 conv #1: per-tap weights [9, Cx+Cm, C2], tap index = kh*3+kw
        "w2": jnp.transpose(W2, (2, 3, 1, 0)).reshape(9, Cx + Cm, C2).astype(bf16),
        "s2": c2["scale"].reshape(1, C2), "b2": c2["bias"].reshape(1, C2),
        # 3x3 conv #2: kw-merged weights [3, 3*C2, C2] (row index = kw*C2 + c)
        "w3": jnp.transpose(c3["W"], (2, 3, 1, 0)).reshape(3, 3 * C2, C2).astype(bf16),
        "s3": c3["scale"].reshape(1, C2), "b3": c3["bias"].reshape(1, C2),
        "w4": c4["W"].reshape(nc, C2).T.astype(bf16),                # [C2, nc]
        "s4": c4["scale"].reshape(1, nc), "b4": c4["bias"].reshape(1, nc),
        # final 4x upsample matrices (f32, consumed by an XLA einsum)
        "Uh2": jnp.asarray(interp_matrix_np(H, 4 * W)),              # [4W, H]
        "Uw2": jnp.asarray(interp_matrix_np(W, 4 * W)),              # [4W, W]
    }


# -----------------------------------------------------------------------------
# The single fused pallas_call: conv1x1(low) + 4x upsample(x) + concat +
# 3x3 conv + 3x3 conv + 1x1 conv, all BN+ReLU folded, all in VMEM.
# -----------------------------------------------------------------------------
def _fused_decoder_call(x_flat, low_flat, pk, H, W):
    B, hw, Cx = x_flat.shape
    _, HW, Cl = low_flat.shape
    Cm = pk["w1"].shape[1]
    C2 = pk["w3"].shape[2]
    nc = pk["w4"].shape[1]
    Ct = Cx + Cm
    assert HW == H * W

    def kernel(x_ref, low_ref, u2_ref, w1_ref, s1_ref, b1_ref,
               w2_ref, s2_ref, b2_ref, w3_ref, s3_ref, b3_ref,
               w4_ref, s4_ref, b4_ref, o_ref):
        bf16, f32 = jnp.bfloat16, jnp.float32

        # conv_1x1(low) + folded BN + ReLU   ([HW, Cl] @ [Cl, Cm])
        lowf = jnp.dot(low_ref[0].astype(bf16), w1_ref[...],
                       preferred_element_type=f32)
        lowf = jnp.maximum(lowf * s1_ref[...] + b1_ref[...], 0.0)    # [HW, Cm]

        # 4x bilinear upsample (align_corners=True) of x: one MXU dot
        xup = jnp.dot(u2_ref[...], x_ref[0].astype(bf16),
                      preferred_element_type=f32)                    # [HW, Cx]

        # channel concat [x_up | low_f]; Cx is a multiple of 128 -> aligned
        feat = jnp.concatenate([xup, lowf], axis=-1).reshape(H, W, Ct)

        # 3x3 conv #1 (Ct -> C2) + BN + ReLU: 9 tap dots with K = Ct (272)
        pad1 = _zero_pad_hw(feat)
        acc = jnp.zeros((HW, C2), f32)
        for kh in range(3):
            for kw in range(3):
                tap = pad1[kh:kh + H, kw:kw + W, :].reshape(HW, Ct)
                acc = acc + jnp.dot(tap.astype(bf16), w2_ref[kh * 3 + kw],
                                    preferred_element_type=f32)
        y2 = jnp.maximum(acc * s2_ref[...] + b2_ref[...], 0.0)       # [HW, C2]

        # 3x3 conv #2 (C2 -> C2) + BN + ReLU: kw taps merged -> 3 dots, K=3*C2
        pad2 = _zero_pad_hw(y2.reshape(H, W, C2))
        acc2 = jnp.zeros((HW, C2), f32)
        for kh in range(3):
            slab = jnp.concatenate(
                [pad2[kh:kh + H, kw:kw + W, :].reshape(HW, C2)
                 for kw in range(3)], axis=-1)                       # [HW, 3*C2]
            acc2 = acc2 + jnp.dot(slab.astype(bf16), w3_ref[kh],
                                  preferred_element_type=f32)
        y3 = jnp.maximum(acc2 * s3_ref[...] + b3_ref[...], 0.0)      # [HW, C2]

        # 1x1 conv (C2 -> num_classes) + BN + ReLU
        y4 = jnp.dot(y3.astype(bf16), w4_ref[...], preferred_element_type=f32)
        o_ref[0] = jnp.maximum(y4 * s4_ref[...] + b4_ref[...],
                               0.0).astype(o_ref.dtype)

    def batch_spec(arr):
        return pl.BlockSpec((1,) + tuple(arr.shape[1:]), lambda b: (b, 0, 0))

    def const_spec(arr):
        # TODO(synk): pipeline_mode=pl.Buffered(1) would skip double-buffering
        #             these constant-index blocks on v7x; default kept here.
        if arr.ndim == 3:
            return pl.BlockSpec(arr.shape, lambda b: (0, 0, 0))
        return pl.BlockSpec(arr.shape, lambda b: (0, 0))

    consts = [pk["U2"], pk["w1"], pk["s1"], pk["b1"],
              pk["w2"], pk["s2"], pk["b2"],
              pk["w3"], pk["s3"], pk["b3"],
              pk["w4"], pk["s4"], pk["b4"]]
    in_specs = ([batch_spec(x_flat), batch_spec(low_flat)]
                + [const_spec(c) for c in consts])
    out_specs = pl.BlockSpec((1, HW, nc), lambda b: (b, 0, 0))

    return pl.pallas_call(
        kernel,
        out_shape=jax.ShapeDtypeStruct((B, HW, nc), jnp.float32),
        grid_spec=pltpu.PrefetchScalarGridSpec(
            num_scalar_prefetch=0, grid=(B,),
            in_specs=in_specs, out_specs=out_specs),
        compiler_params=pltpu.CompilerParams(
            dimension_semantics=("parallel",),
            vmem_limit_bytes=_vmem_limit_bytes()),
    )(x_flat, low_flat, *consts)


# -----------------------------------------------------------------------------
# Decoder forward (Pallas path)
# -----------------------------------------------------------------------------
def decoder_forward(packed, x_nchw, low_nchw):
    B, Cx, h, w = x_nchw.shape
    _, Cl, H, W = low_nchw.shape

    # NCHW -> channels-last flats (channels onto the 128-lane axis), tiny ops
    x_flat = jnp.transpose(x_nchw, (0, 2, 3, 1)).reshape(B, h * w, Cx)
    low_flat = jnp.transpose(low_nchw, (0, 2, 3, 1)).reshape(B, H * W, Cl)

    y4 = _fused_decoder_call(x_flat, low_flat, packed, H, W)         # [B,HW,nc]
    y4 = y4.reshape(B, H, W, y4.shape[-1])

    # Final 4x bilinear upsample + NHWC->NCHW as a tiny XLA einsum: with only
    # num_classes channels this is lane-sparse / MXU-hostile as a Pallas
    # kernel, and the y4 round trip is a few KB.
    return jnp.einsum("Hh,bhwc,Ww->bcHW", packed["Uh2"], y4, packed["Uw2"])


# -----------------------------------------------------------------------------
# Deterministic parameter init (Conv weight/bias + eval-mode BN folded)
# -----------------------------------------------------------------------------
def make_conv_bn(key, cout, cin, k):
    k1, k2, k3, k4, k5, k6 = jax.random.split(key, 6)
    W = jax.random.normal(k1, (cout, cin, k, k), jnp.float32) * 0.05
    b = jax.random.normal(k2, (cout,), jnp.float32) * 0.1
    gamma = 1.0 + 0.1 * jax.random.normal(k3, (cout,), jnp.float32)
    beta = 0.1 * jax.random.normal(k4, (cout,), jnp.float32)
    mu = 0.1 * jax.random.normal(k5, (cout,), jnp.float32)
    var = 0.5 + jax.random.uniform(k6, (cout,), jnp.float32)
    eps = 1e-5
    scale = gamma / jnp.sqrt(var + eps)
    bias = beta + scale * (b - mu)
    return {"W": W, "scale": scale, "bias": bias}


def init_params(key, num_classes):
    k1, k2, k3, k4 = jax.random.split(key, 4)
    return {
        "c1": make_conv_bn(k1, 16, 64, 1),
        "c2": make_conv_bn(k2, 128, 272, 3),
        "c3": make_conv_bn(k3, 128, 128, 3),
        "c4": make_conv_bn(k4, num_classes, 128, 1),
    }


# -----------------------------------------------------------------------------
# Pure-JAX reference (for the sanity check)
# -----------------------------------------------------------------------------
def _ref_conv_bn_relu(x, layer, pad):
    y = lax.conv_general_dilated(
        x, layer["W"], (1, 1), [(pad, pad), (pad, pad)],
        dimension_numbers=("NCHW", "OIHW", "NCHW"))
    y = y * layer["scale"][None, :, None, None] + layer["bias"][None, :, None, None]
    return jnp.maximum(y, 0.0)


def _ref_upsample(x, oh, ow):
    Uh = jnp.asarray(interp_matrix_np(x.shape[2], oh))
    Uw = jnp.asarray(interp_matrix_np(x.shape[3], ow))
    return jnp.einsum("Hh,bchw,Ww->bcHW", Uh, x, Uw)


def decoder_reference(params, x, low):
    low_f = _ref_conv_bn_relu(low, params["c1"], 0)
    s = x.shape[3] * 4
    x_up = _ref_upsample(x, s, s)
    feat = jnp.concatenate([low_f, x_up], axis=1)
    y = _ref_conv_bn_relu(feat, params["c2"], 1)
    y = _ref_conv_bn_relu(y, params["c3"], 1)
    y = _ref_conv_bn_relu(y, params["c4"], 0)
    s2 = y.shape[3] * 4
    return _ref_upsample(y, s2, s2)


# -----------------------------------------------------------------------------
if __name__ == "__main__":
    key = jax.random.PRNGKey(0)
    k_x, k_low, k_p = jax.random.split(key, 3)

    B = 2
    num_classes = 8
    h = w = 4                     # x spatial (high-level ASPP output)
    H = W = 4 * w                 # low_level_feature spatial = 4x upsampled x

    x = jax.random.normal(k_x, (B, 256, h, w), jnp.float32)
    low = jax.random.normal(k_low, (B, 64, H, W), jnp.float32)
    params = init_params(k_p, num_classes)

    packed = pack_decoder(params, x.shape, low.shape)   # one-time weight prep
    fwd = jax.jit(decoder_forward)
    out = jax.block_until_ready(fwd(packed, x, low))
    assert out.shape == (B, num_classes, 4 * W, 4 * W), out.shape

    ref = decoder_reference(params, x, low)
    max_ref = float(jnp.max(jnp.abs(ref)))
    max_err = float(jnp.max(jnp.abs(out - ref)))
    mean_err = float(jnp.mean(jnp.abs(out - ref)))
    # MXU operands are bf16 (f32 accumulation), so each dot carries ~2^-9
    # relative error and three chained convs land below ~1-2% of the output
    # range.  5% (max) / 1.5% (mean) of the range cleanly separates this
    # precision noise from genuine layout/tap bugs (O(10-100%) of the range).
    scale = max(1.0, max_ref)
    assert max_err < 5e-2 * scale, (max_err, max_ref)
    assert mean_err < 1.5e-2 * scale, (mean_err, max_ref)

    print("KERNEL_OK")
</pallas_src>

<mosaic_0001>
module attributes {stable_mosaic.version = 11 : i64} {
  func.func @kernel(%arg0: i32, %arg1: memref<1x16x256xf32, #tpu.memory_space<vmem>>, %arg2: memref<1x256x64xf32, #tpu.memory_space<vmem>>, %arg3: memref<256x16xbf16, #tpu.memory_space<vmem>>, %arg4: memref<64x16xbf16, #tpu.memory_space<vmem>>, %arg5: memref<1x16xf32, #tpu.memory_space<vmem>>, %arg6: memref<1x16xf32, #tpu.memory_space<vmem>>, %arg7: memref<9x272x128xbf16, #tpu.memory_space<vmem>>, %arg8: memref<1x128xf32, #tpu.memory_space<vmem>>, %arg9: memref<1x128xf32, #tpu.memory_space<vmem>>, %arg10: memref<3x384x128xbf16, #tpu.memory_space<vmem>>, %arg11: memref<1x128xf32, #tpu.memory_space<vmem>>, %arg12: memref<1x128xf32, #tpu.memory_space<vmem>>, %arg13: memref<128x8xbf16, #tpu.memory_space<vmem>>, %arg14: memref<1x8xf32, #tpu.memory_space<vmem>>, %arg15: memref<1x8xf32, #tpu.memory_space<vmem>>, %arg16: memref<1x256x8xf32, #tpu.memory_space<vmem>>) attributes {dimension_semantics = [#tpu.dimension_semantics<parallel>], iteration_bounds = array<i64: 2>, scalar_prefetch = 0 : i64, scratch_operands = 0 : i64, tpu.core_type = #tpu.core_type<tc>, window_params = [{transform_indices = @transform_0, window_bounds = array<i64: 1, 16, 256>}, {transform_indices = @transform_1, window_bounds = array<i64: 1, 256, 64>}, {pipeline_mode = #tpu.pipeline_mode<synchronous>, transform_indices = @transform_2, window_bounds = array<i64: 256, 16>}, {pipeline_mode = #tpu.pipeline_mode<synchronous>, transform_indices = @transform_3, window_bounds = array<i64: 64, 16>}, {pipeline_mode = #tpu.pipeline_mode<synchronous>, transform_indices = @transform_4, window_bounds = array<i64: 1, 16>}, {pipeline_mode = #tpu.pipeline_mode<synchronous>, transform_indices = @transform_5, window_bounds = array<i64: 1, 16>}, {pipeline_mode = #tpu.pipeline_mode<synchronous>, transform_indices = @transform_6, window_bounds = array<i64: 9, 272, 128>}, {pipeline_mode = #tpu.pipeline_mode<synchronous>, transform_indices = @transform_7, window_bounds = array<i64: 1, 128>}, {pipeline_mode = #tpu.pipeline_mode<synchronous>, transform_indices = @transform_8, window_bounds = array<i64: 1, 128>}, {pipeline_mode = #tpu.pipeline_mode<synchronous>, transform_indices = @transform_9, window_bounds = array<i64: 3, 384, 128>}, {pipeline_mode = #tpu.pipeline_mode<synchronous>, transform_indices = @transform_10, window_bounds = array<i64: 1, 128>}, {pipeline_mode = #tpu.pipeline_mode<synchronous>, transform_indices = @transform_11, window_bounds = array<i64: 1, 128>}, {pipeline_mode = #tpu.pipeline_mode<synchronous>, transform_indices = @transform_12, window_bounds = array<i64: 128, 8>}, {pipeline_mode = #tpu.pipeline_mode<synchronous>, transform_indices = @transform_13, window_bounds = array<i64: 1, 8>}, {pipeline_mode = #tpu.pipeline_mode<synchronous>, transform_indices = @transform_14, window_bounds = array<i64: 1, 8>}, {transform_indices = @transform_15, window_bounds = array<i64: 1, 256, 8>}]} {
    %c0 = arith.constant 0 : index
    %c0_0 = arith.constant 0 : index
    %c0_1 = arith.constant 0 : index
    %0 = vector.load %arg2[%c0, %c0_0, %c0_1] : memref<1x256x64xf32, #tpu.memory_space<vmem>>, vector<1x256x64xf32>
    %1 = vector.shape_cast %0 : vector<1x256x64xf32> to vector<256x64xf32>
    %2 = arith.truncf %1 : vector<256x64xf32> to vector<256x64xbf16>
    %c0_2 = arith.constant 0 : index
    %c0_3 = arith.constant 0 : index
    %3 = vector.load %arg4[%c0_2, %c0_3] : memref<64x16xbf16, #tpu.memory_space<vmem>>, vector<64x16xbf16>
    %cst = arith.constant dense<0.000000e+00> : vector<256x16xf32>
    %4 = tpu.matmul %2, %3, %cst {dimension_numbers = #tpu.dot_dimension_numbers<[1], [0], [0], [1], [0, 0, 1, 1], [], []>} : vector<256x64xbf16>, vector<64x16xbf16>, vector<256x16xf32> -> vector<256x16xf32>
    %c0_4 = arith.constant 0 : index
    %c0_5 = arith.constant 0 : index
    %5 = vector.load %arg5[%c0_4, %c0_5] : memref<1x16xf32, #tpu.memory_space<vmem>>, vector<1x16xf32>
    %6 = vector.broadcast %5 : vector<1x16xf32> to vector<256x16xf32>
    %7 = arith.mulf %4, %6 : vector<256x16xf32>
    %c0_6 = arith.constant 0 : index
    %c0_7 = arith.constant 0 : index
    %8 = vector.load %arg6[%c0_6, %c0_7] : memref<1x16xf32, #tpu.memory_space<vmem>>, vector<1x16xf32>
    %9 = vector.broadcast %8 : vector<1x16xf32> to vector<256x16xf32>
    %10 = arith.addf %7, %9 : vector<256x16xf32>
    %cst_8 = arith.constant 0.000000e+00 : f32
    %11 = vector.broadcast %cst_8 : f32 to vector<256x16xf32>
    %12 = arith.maximumf %10, %11 : vector<256x16xf32>
    %c0_9 = arith.constant 0 : index
    %c0_10 = arith.constant 0 : index
    %13 = vector.load %arg3[%c0_9, %c0_10] : memref<256x16xbf16, #tpu.memory_space<vmem>>, vector<256x16xbf16>
    %c0_11 = arith.constant 0 : index
    %c0_12 = arith.constant 0 : index
    %c0_13 = arith.constant 0 : index
    %14 = vector.load %arg1[%c0_11, %c0_12, %c0_13] : memref<1x16x256xf32, #tpu.memory_space<vmem>>, vector<1x16x256xf32>
    %15 = vector.shape_cast %14 : vector<1x16x256xf32> to vector<16x256xf32>
    %16 = arith.truncf %15 : vector<16x256xf32> to vector<16x256xbf16>
    %cst_14 = arith.constant dense<0.000000e+00> : vector<256x256xf32>
    %17 = tpu.matmul %13, %16, %cst_14 {dimension_numbers = #tpu.dot_dimension_numbers<[1], [0], [0], [1], [0, 0, 1, 1], [], []>} : vector<256x16xbf16>, vector<16x256xbf16>, vector<256x256xf32> -> vector<256x256xf32>
    %18 = tpu.concatenate %17, %12 in 1 : vector<256x256xf32>, vector<256x16xf32> -> vector<256x272xf32>
    %19 = vector.shape_cast %18 : vector<256x272xf32> to vector<16x16x272xf32>
    %cst_15 = arith.constant 0.000000e+00 : f32
    %20 = vector.broadcast %cst_15 : f32 to vector<1x16x272xf32>
    %21 = tpu.concatenate %20, %19, %20 in 0 : vector<1x16x272xf32>, vector<16x16x272xf32>, vector<1x16x272xf32> -> vector<18x16x272xf32>
    %cst_16 = arith.constant 0.000000e+00 : f32
    %22 = vector.broadcast %cst_16 : f32 to vector<18x1x272xf32>
    %23 = tpu.concatenate %22, %21, %22 in 1 : vector<18x1x272xf32>, vector<18x16x272xf32>, vector<18x1x272xf32> -> vector<18x18x272xf32>
    %cst_17 = arith.constant 0.000000e+00 : f32
    %24 = vector.broadcast %cst_17 : f32 to vector<256x128xf32>
    %25 = vector.extract_strided_slice %23 {offsets = [0, 0, 0], sizes = [16, 16, 272], strides = [1, 1, 1]} : vector<18x18x272xf32> to vector<16x16x272xf32>
    %26 = vector.shape_cast %25 : vector<16x16x272xf32> to vector<256x272xf32>
    %27 = arith.truncf %26 : vector<256x272xf32> to vector<256x272xbf16>
    %c0_18 = arith.constant 0 : index
    %c0_19 = arith.constant 0 : index
    %c0_20 = arith.constant 0 : index
    %28 = vector.load %arg7[%c0_18, %c0_19, %c0_20] : memref<9x272x128xbf16, #tpu.memory_space<vmem>>, vector<1x272x128xbf16>
    %29 = vector.shape_cast %28 : vector<1x272x128xbf16> to vector<272x128xbf16>
    %cst_21 = arith.constant dense<0.000000e+00> : vector<256x128xf32>
    %30 = tpu.matmul %27, %29, %cst_21 {dimension_numbers = #tpu.dot_dimension_numbers<[1], [0], [0], [1], [0, 0, 1, 1], [], []>} : vector<256x272xbf16>, vector<272x128xbf16>, vector<256x128xf32> -> vector<256x128xf32>
    %31 = arith.addf %24, %30 : vector<256x128xf32>
    %32 = vector.extract_strided_slice %23 {offsets = [0, 1, 0], sizes = [16, 16, 272], strides = [1, 1, 1]} : vector<18x18x272xf32> to vector<16x16x272xf32>
    %33 = vector.shape_cast %32 : vector<16x16x272xf32> to vector<256x272xf32>
    %34 = arith.truncf %33 : vector<256x272xf32> to vector<256x272xbf16>
    %c1 = arith.constant 1 : index
    %c0_22 = arith.constant 0 : index
    %c0_23 = arith.constant 0 : index
    %35 = vector.load %arg7[%c1, %c0_22, %c0_23] : memref<9x272x128xbf16, #tpu.memory_space<vmem>>, vector<1x272x128xbf16>
    %36 = vector.shape_cast %35 : vector<1x272x128xbf16> to vector<272x128xbf16>
    %cst_24 = arith.constant dense<0.000000e+00> : vector<256x128xf32>
    %37 = tpu.matmul %34, %36, %cst_24 {dimension_numbers = #tpu.dot_dimension_numbers<[1], [0], [0], [1], [0, 0, 1, 1], [], []>} : vector<256x272xbf16>, vector<272x128xbf16>, vector<256x128xf32> -> vector<256x128xf32>
    %38 = arith.addf %31, %37 : vector<256x128xf32>
    %39 = vector.extract_strided_slice %23 {offsets = [0, 2, 0], sizes = [16, 16, 272], strides = [1, 1, 1]} : vector<18x18x272xf32> to vector<16x16x272xf32>
    %40 = vector.shape_cast %39 : vector<16x16x272xf32> to vector<256x272xf32>
    %41 = arith.truncf %40 : vector<256x272xf32> to vector<256x272xbf16>
    %c2 = arith.constant 2 : index
    %c0_25 = arith.constant 0 : index
    %c0_26 = arith.constant 0 : index
    %42 = vector.load %arg7[%c2, %c0_25, %c0_26] : memref<9x272x128xbf16, #tpu.memory_space<vmem>>, vector<1x272x128xbf16>
    %43 = vector.shape_cast %42 : vector<1x272x128xbf16> to vector<272x128xbf16>
    %cst_27 = arith.constant dense<0.000000e+00> : vector<256x128xf32>
    %44 = tpu.matmul %41, %43, %cst_27 {dimension_numbers = #tpu.dot_dimension_numbers<[1], [0], [0], [1], [0, 0, 1, 1], [], []>} : vector<256x272xbf16>, vector<272x128xbf16>, vector<256x128xf32> -> vector<256x128xf32>
    %45 = arith.addf %38, %44 : vector<256x128xf32>
    %46 = vector.extract_strided_slice %23 {offsets = [1, 0, 0], sizes = [16, 16, 272], strides = [1, 1, 1]} : vector<18x18x272xf32> to vector<16x16x272xf32>
    %47 = vector.shape_cast %46 : vector<16x16x272xf32> to vector<256x272xf32>
    %48 = arith.truncf %47 : vector<256x272xf32> to vector<256x272xbf16>
    %c3 = arith.constant 3 : index
    %c0_28 = arith.constant 0 : index
    %c0_29 = arith.constant 0 : index
    %49 = vector.load %arg7[%c3, %c0_28, %c0_29] : memref<9x272x128xbf16, #tpu.memory_space<vmem>>, vector<1x272x128xbf16>
    %50 = vector.shape_cast %49 : vector<1x272x128xbf16> to vector<272x128xbf16>
    %cst_30 = arith.constant dense<0.000000e+00> : vector<256x128xf32>
    %51 = tpu.matmul %48, %50, %cst_30 {dimension_numbers = #tpu.dot_dimension_numbers<[1], [0], [0], [1], [0, 0, 1, 1], [], []>} : vector<256x272xbf16>, vector<272x128xbf16>, vector<256x128xf32> -> vector<256x128xf32>
    %52 = arith.addf %45, %51 : vector<256x128xf32>
    %53 = vector.extract_strided_slice %23 {offsets = [1, 1, 0], sizes = [16, 16, 272], strides = [1, 1, 1]} : vector<18x18x272xf32> to vector<16x16x272xf32>
    %54 = vector.shape_cast %53 : vector<16x16x272xf32> to vector<256x272xf32>
    %55 = arith.truncf %54 : vector<256x272xf32> to vector<256x272xbf16>
    %c4 = arith.constant 4 : index
    %c0_31 = arith.constant 0 : index
    %c0_32 = arith.constant 0 : index
    %56 = vector.load %arg7[%c4, %c0_31, %c0_32] : memref<9x272x128xbf16, #tpu.memory_space<vmem>>, vector<1x272x128xbf16>
    %57 = vector.shape_cast %56 : vector<1x272x128xbf16> to vector<272x128xbf16>
    %cst_33 = arith.constant dense<0.000000e+00> : vector<256x128xf32>
    %58 = tpu.matmul %55, %57, %cst_33 {dimension_numbers = #tpu.dot_dimension_numbers<[1], [0], [0], [1], [0, 0, 1, 1], [], []>} : vector<256x272xbf16>, vector<272x128xbf16>, vector<256x128xf32> -> vector<256x128xf32>
    %59 = arith.addf %52, %58 : vector<256x128xf32>
    %60 = vector.extract_strided_slice %23 {offsets = [1, 2, 0], sizes = [16, 16, 272], strides = [1, 1, 1]} : vector<18x18x272xf32> to vector<16x16x272xf32>
    %61 = vector.shape_cast %60 : vector<16x16x272xf32> to vector<256x272xf32>
    %62 = arith.truncf %61 : vector<256x272xf32> to vector<256x272xbf16>
    %c5 = arith.constant 5 : index
    %c0_34 = arith.constant 0 : index
    %c0_35 = arith.constant 0 : index
    %63 = vector.load %arg7[%c5, %c0_34, %c0_35] : memref<9x272x128xbf16, #tpu.memory_space<vmem>>, vector<1x272x128xbf16>
    %64 = vector.shape_cast %63 : vector<1x272x128xbf16> to vector<272x128xbf16>
    %cst_36 = arith.constant dense<0.000000e+00> : vector<256x128xf32>
    %65 = tpu.matmul %62, %64, %cst_36 {dimension_numbers = #tpu.dot_dimension_numbers<[1], [0], [0], [1], [0, 0, 1, 1], [], []>} : vector<256x272xbf16>, vector<272x128xbf16>, vector<256x128xf32> -> vector<256x128xf32>
    %66 = arith.addf %59, %65 : vector<256x128xf32>
    %67 = vector.extract_strided_slice %23 {offsets = [2, 0, 0], sizes = [16, 16, 272], strides = [1, 1, 1]} : vector<18x18x272xf32> to vector<16x16x272xf32>
    %68 = vector.shape_cast %67 : vector<16x16x272xf32> to vector<256x272xf32>
    %69 = arith.truncf %68 : vector<256x272xf32> to vector<256x272xbf16>
    %c6 = arith.constant 6 : index
    %c0_37 = arith.constant 0 : index
    %c0_38 = arith.constant 0 : index
    %70 = vector.load %arg7[%c6, %c0_37, %c0_38] : memref<9x272x128xbf16, #tpu.memory_space<vmem>>, vector<1x272x128xbf16>
    %71 = vector.shape_cast %70 : vector<1x272x128xbf16> to vector<272x128xbf16>
    %cst_39 = arith.constant dense<0.000000e+00> : vector<256x128xf32>
    %72 = tpu.matmul %69, %71, %cst_39 {dimension_numbers = #tpu.dot_dimension_numbers<[1], [0], [0], [1], [0, 0, 1, 1], [], []>} : vector<256x272xbf16>, vector<272x128xbf16>, vector<256x128xf32> -> vector<256x128xf32>
    %73 = arith.addf %66, %72 : vector<256x128xf32>
    %74 = vector.extract_strided_slice %23 {offsets = [2, 1, 0], sizes = [16, 16, 272], strides = [1, 1, 1]} : vector<18x18x272xf32> to vector<16x16x272xf32>
    %75 = vector.shape_cast %74 : vector<16x16x272xf32> to vector<256x272xf32>
    %76 = arith.truncf %75 : vector<256x272xf32> to vector<256x272xbf16>
    %c7 = arith.constant 7 : index
    %c0_40 = arith.constant 0 : index
    %c0_41 = arith.constant 0 : index
    %77 = vector.load %arg7[%c7, %c0_40, %c0_41] : memref<9x272x128xbf16, #tpu.memory_space<vmem>>, vector<1x272x128xbf16>
    %78 = vector.shape_cast %77 : vector<1x272x128xbf16> to vector<272x128xbf16>
    %cst_42 = arith.constant dense<0.000000e+00> : vector<256x128xf32>
    %79 = tpu.matmul %76, %78, %cst_42 {dimension_numbers = #tpu.dot_dimension_numbers<[1], [0], [0], [1], [0, 0, 1, 1], [], []>} : vector<256x272xbf16>, vector<272x128xbf16>, vector<256x128xf32> -> vector<256x128xf32>
    %80 = arith.addf %73, %79 : vector<256x128xf32>
    %81 = vector.extract_strided_slice %23 {offsets = [2, 2, 0], sizes = [16, 16, 272], strides = [1, 1, 1]} : vector<18x18x272xf32> to vector<16x16x272xf32>
    %82 = vector.shape_cast %81 : vector<16x16x272xf32> to vector<256x272xf32>
    %83 = arith.truncf %82 : vector<256x272xf32> to vector<256x272xbf16>
    %c8 = arith.constant 8 : index
    %c0_43 = arith.constant 0 : index
    %c0_44 = arith.constant 0 : index
    %84 = vector.load %arg7[%c8, %c0_43, %c0_44] : memref<9x272x128xbf16, #tpu.memory_space<vmem>>, vector<1x272x128xbf16>
    %85 = vector.shape_cast %84 : vector<1x272x128xbf16> to vector<272x128xbf16>
    %cst_45 = arith.constant dense<0.000000e+00> : vector<256x128xf32>
    %86 = tpu.matmul %83, %85, %cst_45 {dimension_numbers = #tpu.dot_dimension_numbers<[1], [0], [0], [1], [0, 0, 1, 1], [], []>} : vector<256x272xbf16>, vector<272x128xbf16>, vector<256x128xf32> -> vector<256x128xf32>
    %87 = arith.addf %80, %86 : vector<256x128xf32>
    %c0_46 = arith.constant 0 : index
    %c0_47 = arith.constant 0 : index
    %88 = vector.load %arg8[%c0_46, %c0_47] : memref<1x128xf32, #tpu.memory_space<vmem>>, vector<1x128xf32>
    %89 = vector.broadcast %88 : vector<1x128xf32> to vector<256x128xf32>
    %90 = arith.mulf %87, %89 : vector<256x128xf32>
    %c0_48 = arith.constant 0 : index
    %c0_49 = arith.constant 0 : index
    %91 = vector.load %arg9[%c0_48, %c0_49] : memref<1x128xf32, #tpu.memory_space<vmem>>, vector<1x128xf32>
    %92 = vector.broadcast %91 : vector<1x128xf32> to vector<256x128xf32>
    %93 = arith.addf %90, %92 : vector<256x128xf32>
    %cst_50 = arith.constant 0.000000e+00 : f32
    %94 = vector.broadcast %cst_50 : f32 to vector<256x128xf32>
    %95 = arith.maximumf %93, %94 : vector<256x128xf32>
    %96 = vector.shape_cast %95 : vector<256x128xf32> to vector<16x16x128xf32>
    %cst_51 = arith.constant 0.000000e+00 : f32
    %97 = vector.broadcast %cst_51 : f32 to vector<1x16x128xf32>
    %98 = tpu.concatenate %97, %96, %97 in 0 : vector<1x16x128xf32>, vector<16x16x128xf32>, vector<1x16x128xf32> -> vector<18x16x128xf32>
    %cst_52 = arith.constant 0.000000e+00 : f32
    %99 = vector.broadcast %cst_52 : f32 to vector<18x1x128xf32>
    %100 = tpu.concatenate %99, %98, %99 in 1 : vector<18x1x128xf32>, vector<18x16x128xf32>, vector<18x1x128xf32> -> vector<18x18x128xf32>
    %cst_53 = arith.constant 0.000000e+00 : f32
    %101 = vector.broadcast %cst_53 : f32 to vector<256x128xf32>
    %102 = vector.extract_strided_slice %100 {offsets = [0, 0, 0], sizes = [16, 16, 128], strides = [1, 1, 1]} : vector<18x18x128xf32> to vector<16x16x128xf32>
    %103 = vector.shape_cast %102 : vector<16x16x128xf32> to vector<256x128xf32>
    %104 = vector.extract_strided_slice %100 {offsets = [0, 1, 0], sizes = [16, 16, 128], strides = [1, 1, 1]} : vector<18x18x128xf32> to vector<16x16x128xf32>
    %105 = vector.shape_cast %104 : vector<16x16x128xf32> to vector<256x128xf32>
    %106 = vector.extract_strided_slice %100 {offsets = [0, 2, 0], sizes = [16, 16, 128], strides = [1, 1, 1]} : vector<18x18x128xf32> to vector<16x16x128xf32>
    %107 = vector.shape_cast %106 : vector<16x16x128xf32> to vector<256x128xf32>
    %108 = tpu.concatenate %103, %105, %107 in 1 : vector<256x128xf32>, vector<256x128xf32>, vector<256x128xf32> -> vector<256x384xf32>
    %109 = arith.truncf %108 : vector<256x384xf32> to vector<256x384xbf16>
    %c0_54 = arith.constant 0 : index
    %c0_55 = arith.constant 0 : index
    %c0_56 = arith.constant 0 : index
    %110 = vector.load %arg10[%c0_54, %c0_55, %c0_56] : memref<3x384x128xbf16, #tpu.memory_space<vmem>>, vector<1x384x128xbf16>
    %111 = vector.shape_cast %110 : vector<1x384x128xbf16> to vector<384x128xbf16>
    %cst_57 = arith.constant dense<0.000000e+00> : vector<256x128xf32>
    %112 = tpu.matmul %109, %111, %cst_57 {dimension_numbers = #tpu.dot_dimension_numbers<[1], [0], [0], [1], [0, 0, 1, 1], [], []>} : vector<256x384xbf16>, vector<384x128xbf16>, vector<256x128xf32> -> vector<256x128xf32>
    %113 = arith.addf %101, %112 : vector<256x128xf32>
    %114 = vector.extract_strided_slice %100 {offsets = [1, 0, 0], sizes = [16, 16, 128], strides = [1, 1, 1]} : vector<18x18x128xf32> to vector<16x16x128xf32>
    %115 = vector.shape_cast %114 : vector<16x16x128xf32> to vector<256x128xf32>
    %116 = vector.extract_strided_slice %100 {offsets = [1, 1, 0], sizes = [16, 16, 128], strides = [1, 1, 1]} : vector<18x18x128xf32> to vector<16x16x128xf32>
    %117 = vector.shape_cast %116 : vector<16x16x128xf32> to vector<256x128xf32>
    %118 = vector.extract_strided_slice %100 {offsets = [1, 2, 0], sizes = [16, 16, 128], strides = [1, 1, 1]} : vector<18x18x128xf32> to vector<16x16x128xf32>
    %119 = vector.shape_cast %118 : vector<16x16x128xf32> to vector<256x128xf32>
    %120 = tpu.concatenate %115, %117, %119 in 1 : vector<256x128xf32>, vector<256x128xf32>, vector<256x128xf32> -> vector<256x384xf32>
    %121 = arith.truncf %120 : vector<256x384xf32> to vector<256x384xbf16>
    %c1_58 = arith.constant 1 : index
    %c0_59 = arith.constant 0 : index
    %c0_60 = arith.constant 0 : index
    %122 = vector.load %arg10[%c1_58, %c0_59, %c0_60] : memref<3x384x128xbf16, #tpu.memory_space<vmem>>, vector<1x384x128xbf16>
    %123 = vector.shape_cast %122 : vector<1x384x128xbf16> to vector<384x128xbf16>
    %cst_61 = arith.constant dense<0.000000e+00> : vector<256x128xf32>
    %124 = tpu.matmul %121, %123, %cst_61 {dimension_numbers = #tpu.dot_dimension_numbers<[1], [0], [0], [1], [0, 0, 1, 1], [], []>} : vector<256x384xbf16>, vector<384x128xbf16>, vector<256x128xf32> -> vector<256x128xf32>
    %125 = arith.addf %113, %124 : vector<256x128xf32>
    %126 = vector.extract_strided_slice %100 {offsets = [2, 0, 0], sizes = [16, 16, 128], strides = [1, 1, 1]} : vector<18x18x128xf32> to vector<16x16x128xf32>
    %127 = vector.shape_cast %126 : vector<16x16x128xf32> to vector<256x128xf32>
    %128 = vector.extract_strided_slice %100 {offsets = [2, 1, 0], sizes = [16, 16, 128], strides = [1, 1, 1]} : vector<18x18x128xf32> to vector<16x16x128xf32>
    %129 = vector.shape_cast %128 : vector<16x16x128xf32> to vector<256x128xf32>
    %130 = vector.extract_strided_slice %100 {offsets = [2, 2, 0], sizes = [16, 16, 128], strides = [1, 1, 1]} : vector<18x18x128xf32> to vector<16x16x128xf32>
    %131 = vector.shape_cast %130 : vector<16x16x128xf32> to vector<256x128xf32>
    %132 = tpu.concatenate %127, %129, %131 in 1 : vector<256x128xf32>, vector<256x128xf32>, vector<256x128xf32> -> vector<256x384xf32>
    %133 = arith.truncf %132 : vector<256x384xf32> to vector<256x384xbf16>
    %c2_62 = arith.constant 2 : index
    %c0_63 = arith.constant 0 : index
    %c0_64 = arith.constant 0 : index
    %134 = vector.load %arg10[%c2_62, %c0_63, %c0_64] : memref<3x384x128xbf16, #tpu.memory_space<vmem>>, vector<1x384x128xbf16>
    %135 = vector.shape_cast %134 : vector<1x384x128xbf16> to vector<384x128xbf16>
    %cst_65 = arith.constant dense<0.000000e+00> : vector<256x128xf32>
    %136 = tpu.matmul %133, %135, %cst_65 {dimension_numbers = #tpu.dot_dimension_numbers<[1], [0], [0], [1], [0, 0, 1, 1], [], []>} : vector<256x384xbf16>, vector<384x128xbf16>, vector<256x128xf32> -> vector<256x128xf32>
    %137 = arith.addf %125, %136 : vector<256x128xf32>
    %c0_66 = arith.constant 0 : index
    %c0_67 = arith.constant 0 : index
    %138 = vector.load %arg11[%c0_66, %c0_67] : memref<1x128xf32, #tpu.memory_space<vmem>>, vector<1x128xf32>
    %139 = vector.broadcast %138 : vector<1x128xf32> to vector<256x128xf32>
    %140 = arith.mulf %137, %139 : vector<256x128xf32>
    %c0_68 = arith.constant 0 : index
    %c0_69 = arith.constant 0 : index
    %141 = vector.load %arg12[%c0_68, %c0_69] : memref<1x128xf32, #tpu.memory_space<vmem>>, vector<1x128xf32>
    %142 = vector.broadcast %141 : vector<1x128xf32> to vector<256x128xf32>
    %143 = arith.addf %140, %142 : vector<256x128xf32>
    %cst_70 = arith.constant 0.000000e+00 : f32
    %144 = vector.broadcast %cst_70 : f32 to vector<256x128xf32>
    %145 = arith.maximumf %143, %144 : vector<256x128xf32>
    %146 = arith.truncf %145 : vector<256x128xf32> to vector<256x128xbf16>
    %c0_71 = arith.constant 0 : index
    %c0_72 = arith.constant 0 : index
    %147 = vector.load %arg13[%c0_71, %c0_72] : memref<128x8xbf16, #tpu.memory_space<vmem>>, vector<128x8xbf16>
    %cst_73 = arith.constant dense<0.000000e+00> : vector<256x8xf32>
    %148 = tpu.matmul %146, %147, %cst_73 {dimension_numbers = #tpu.dot_dimension_numbers<[1], [0], [0], [1], [0, 0, 1, 1], [], []>} : vector<256x128xbf16>, vector<128x8xbf16>, vector<256x8xf32> -> vector<256x8xf32>
    %c0_74 = arith.constant 0 : index
    %c0_75 = arith.constant 0 : index
    %149 = vector.load %arg14[%c0_74, %c0_75] : memref<1x8xf32, #tpu.memory_space<vmem>>, vector<1x8xf32>
    %150 = vector.broadcast %149 : vector<1x8xf32> to vector<256x8xf32>
    %151 = arith.mulf %148, %150 : vector<256x8xf32>
    %c0_76 = arith.constant 0 : index
    %c0_77 = arith.constant 0 : index
    %152 = vector.load %arg15[%c0_76, %c0_77] : memref<1x8xf32, #tpu.memory_space<vmem>>, vector<1x8xf32>
    %153 = vector.broadcast %152 : vector<1x8xf32> to vector<256x8xf32>
    %154 = arith.addf %151, %153 : vector<256x8xf32>
    %cst_78 = arith.constant 0.000000e+00 : f32
    %155 = vector.broadcast %cst_78 : f32 to vector<256x8xf32>
    %156 = arith.maximumf %154, %155 : vector<256x8xf32>
    %c0_79 = arith.constant 0 : index
    %c0_80 = arith.constant 0 : index
    %c0_81 = arith.constant 0 : index
    %157 = vector.load %arg16[%c0_79, %c0_80, %c0_81] : memref<1x256x8xf32, #tpu.memory_space<vmem>>, vector<1x256x8xf32>
    %158 = vector.shape_cast %157 : vector<1x256x8xf32> to vector<256x8xf32>
    %159 = vector.shape_cast %156 : vector<256x8xf32> to vector<1x256x8xf32>
    tpu.vector_store %arg16[%c0_79, %c0_80, %c0_81], %159 {strides = array<i32>} : memref<1x256x8xf32, #tpu.memory_space<vmem>>, vector<1x256x8xf32>,
    return
  }
  func.func @transform_0(%arg0: i32) -> (i32, i32, i32) {
    %c0_i32 = arith.constant 0 : i32
    %c0_i32_0 = arith.constant 0 : i32
    %c0_i32_1 = arith.constant 0 : i32
    return %arg0, %c0_i32, %c0_i32_0 : i32, i32, i32
  }
  func.func @transform_1(%arg0: i32) -> (i32, i32, i32) {
    %c0_i32 = arith.constant 0 : i32
    %c0_i32_0 = arith.constant 0 : i32
    %c0_i32_1 = arith.constant 0 : i32
    return %arg0, %c0_i32, %c0_i32_0 : i32, i32, i32
  }
  func.func @transform_2(%arg0: i32) -> (i32, i32) {
    %c0_i32 = arith.constant 0 : i32
    %c0_i32_0 = arith.constant 0 : i32
    %c0_i32_1 = arith.constant 0 : i32
    return %c0_i32, %c0_i32_0 : i32, i32
  }
  func.func @transform_3(%arg0: i32) -> (i32, i32) {
    %c0_i32 = arith.constant 0 : i32
    %c0_i32_0 = arith.constant 0 : i32
    %c0_i32_1 = arith.constant 0 : i32
    return %c0_i32, %c0_i32_0 : i32, i32
  }
  func.func @transform_4(%arg0: i32) -> (i32, i32) {
    %c0_i32 = arith.constant 0 : i32
    %c0_i32_0 = arith.constant 0 : i32
    %c0_i32_1 = arith.constant 0 : i32
    return %c0_i32, %c0_i32_0 : i32, i32
  }
  func.func @transform_5(%arg0: i32) -> (i32, i32) {
    %c0_i32 = arith.constant 0 : i32
    %c0_i32_0 = arith.constant 0 : i32
    %c0_i32_1 = arith.constant 0 : i32
    return %c0_i32, %c0_i32_0 : i32, i32
  }
  func.func @transform_6(%arg0: i32) -> (i32, i32, i32) {
    %c0_i32 = arith.constant 0 : i32
    %c0_i32_0 = arith.constant 0 : i32
    %c0_i32_1 = arith.constant 0 : i32
    %c0_i32_2 = arith.constant 0 : i32
    return %c0_i32, %c0_i32_0, %c0_i32_1 : i32, i32, i32
  }
  func.func @transform_7(%arg0: i32) -> (i32, i32) {
    %c0_i32 = arith.constant 0 : i32
    %c0_i32_0 = arith.constant 0 : i32
    %c0_i32_1 = arith.constant 0 : i32
    return %c0_i32, %c0_i32_0 : i32, i32
  }
  func.func @transform_8(%arg0: i32) -> (i32, i32) {
    %c0_i32 = arith.constant 0 : i32
    %c0_i32_0 = arith.constant 0 : i32
    %c0_i32_1 = arith.constant 0 : i32
    return %c0_i32, %c0_i32_0 : i32, i32
  }
  func.func @transform_9(%arg0: i32) -> (i32, i32, i32) {
    %c0_i32 = arith.constant 0 : i32
    %c0_i32_0 = arith.constant 0 : i32
    %c0_i32_1 = arith.constant 0 : i32
    %c0_i32_2 = arith.constant 0 : i32
    return %c0_i32, %c0_i32_0, %c0_i32_1 : i32, i32, i32
  }
  func.func @transform_10(%arg0: i32) -> (i32, i32) {
    %c0_i32 = arith.constant 0 : i32
    %c0_i32_0 = arith.constant 0 : i32
    %c0_i32_1 = arith.constant 0 : i32
    return %c0_i32, %c0_i32_0 : i32, i32
  }
  func.func @transform_11(%arg0: i32) -> (i32, i32) {
    %c0_i32 = arith.constant 0 : i32
    %c0_i32_0 = arith.constant 0 : i32
    %c0_i32_1 = arith.constant 0 : i32
    return %c0_i32, %c0_i32_0 : i32, i32
  }
  func.func @transform_12(%arg0: i32) -> (i32, i32) {
    %c0_i32 = arith.constant 0 : i32
    %c0_i32_0 = arith.constant 0 : i32
    %c0_i32_1 = arith.constant 0 : i32
    return %c0_i32, %c0_i32_0 : i32, i32
  }
  func.func @transform_13(%arg0: i32) -> (i32, i32) {
    %c0_i32 = arith.constant 0 : i32
    %c0_i32_0 = arith.constant 0 : i32
    %c0_i32_1 = arith.constant 0 : i32
    return %c0_i32, %c0_i32_0 : i32, i32
  }
  func.func @transform_14(%arg0: i32) -> (i32, i32) {
    %c0_i32 = arith.constant 0 : i32
    %c0_i32_0 = arith.constant 0 : i32
    %c0_i32_1 = arith.constant 0 : i32
    return %c0_i32, %c0_i32_0 : i32, i32
  }
  func.func @transform_15(%arg0: i32) -> (i32, i32, i32) {
    %c0_i32 = arith.constant 0 : i32
    %c0_i32_0 = arith.constant 0 : i32
    %c0_i32_1 = arith.constant 0 : i32
    return %arg0, %c0_i32, %c0_i32_0 : i32, i32, i32
  }
}

</mosaic_0001>

<bundles_post_ra>
// kernel: decoder_forward.1
= control target key start
LH: loop header
LB: loop body
LE: loop exit
PB: predicated region body
PF: predicated region fallthrough
CT: control target
= control target key end

     0   :  { %s19653_s0 = inlined_call_operand.vmem [shape: f32[2,16,256], index: 0, kind: input, shape index: {}]   ;;  %s19654_s1 = inlined_call_operand.hbm [shape: f32[2,256,64], index: 1, kind: input, shape index: {}]   ;;  %s19655_s2 = inlined_call_operand.vmem [shape: bf16[256,16], index: 2, kind: input, shape index: {}]   ;;  %s19656_s3 = inlined_call_operand.vmem [shape: bf16[64,16], index: 3, kind: input, shape index: {}]   ;;  %s19657_s4 = inlined_call_operand.vmem [shape: f32[1,16], index: 4, kind: input, shape index: {}]   ;;  %s19658_s5 = inlined_call_operand.vmem [shape: f32[1,16], index: 5, kind: input, shape index: {}]   ;;  %s19659_s6 = inlined_call_operand.hbm [shape: bf16[9,272,128], index: 6, kind: input, shape index: {}]   ;;  %s19660_s7 = inlined_call_operand.vmem [shape: f32[1,128], index: 7, kind: input, shape index: {}]   ;;  %s19661_s8 = inlined_call_operand.vmem [shape: f32[1,128], index: 8, kind: input, shape index: {}]   ;;  %s19662_s9 = inlined_call_operand.hbm [shape: bf16[3,384,128], index: 9, kind: input, shape index: {}]   ;;  %s19663_s10 = inlined_call_operand.vmem [shape: f32[1,128], index: 10, kind: input, shape index: {}]   ;;  %s19664_s11 = inlined_call_operand.vmem [shape: f32[1,128], index: 11, kind: input, shape index: {}]   ;;  %s19665_s12 = inlined_call_operand.vmem [shape: bf16[128,8], index: 12, kind: input, shape index: {}]   ;;  %s19666_s13 = inlined_call_operand.vmem [shape: f32[1,8], index: 13, kind: input, shape index: {}]   ;;  %s19667_s14 = inlined_call_operand.vmem [shape: f32[1,8], index: 14, kind: input, shape index: {}]   ;;  %s19668_s15 = inlined_call_operand.vmem [shape: f32[2,256,8], index: 15, kind: output, shape index: {}]  }
   0x1   :  { %20142 = sst [smem:[#allocation198_spill]] %s19663_s10 }
   0x2   :  { %20143 = sst [smem:[#allocation199_spill]] %s19664_s11 }
   0x3   :  { %20144 = sst [smem:[#allocation200_spill]] %s19666_s13 }
   0x4   :  { %20145 = sst [smem:[#allocation201_spill]] %s19667_s14 }
   0x5   :  { %20146 = sst [smem:[#allocation202_spill]] %s19668_s15 }
   0x6   :  { %20 = vsyncpa [#allocation3], 0 }
   0x7   :  { %22 = vsyncpa [#allocation3 + $0x1], 0 }
   0x8   :  { %23 = vsyncpa [#allocation5], 0  ;;  %s14424_s18 = smov 0   ;;  %s14426_s19 = smov 0  }
   0x9   :  { %s14428_s20 = smov 0   ;;  %s14430_s21 = smov 0  }
   0xa LB: > { %s14443_s22 = sadd.s32 4294967295, %s14332_s21   ;;  %p75_p0 = scmp.ne.s32.totalorder %s14324_s19, %s14320_s18  ;;  %s14332_s21 = sphi %s14430_s21, %s21041_s21   ;;  %s14328_s20 = sphi %s14428_s20, %s21040_s20   ;;  %s14324_s19 = sphi %s14426_s19, %s21039_s19   ;;  %s14320_s18 = sphi %s14424_s18, %s21038_s18  }
   0xb   : > { %p19669_p1 = scmp.eq.s32.totalorder %s14443_s22, 0  ;;  %p9996_p2 = scmp.ge.s32.totalorder %s14332_s21, 1 }
   0xc   : > { %p385_p3 = scmp.lt.s32.totalorder %s14332_s21, 3  ;;  %s14334_s25 = smov [#allocation4]  }
   0xd   : > { %p14451_p4 = por %p19669_p1, %p75_p0  ;;  %s409_s26 = sshll.u32 %s14334_s25, 4  ;;  %s410_s26 = int_to_ptr.vmem [resolvable:$true] %s409_s26 }
   0xe   : > { %p14455_p5 = pnand %p9996_p2, %p385_p3  ;;  %s14335_s28 = smov [#allocation6]  }
   0xf   : > { %s20147_s23 = scalar_select %p14451_p4, 1, 0 }
  0x10   : > { %s20148_s24 = scalar_select %p14455_p5, 1, 0 }
  0x11   : > { %p13894_p6 = pneg %p14455_p5  ;;  %s428_s29 = sshll.u32 %s14335_s28, 4  ;;  %s14467_s29 = int_to_ptr.vmem [resolvable:$true] %s428_s29 }
  0x12   : > { %s14208_s17 = scalar_lea.hbm %s19659_s6, 19584 }
  0x13   : > { %p14463_p7 = pnand %p13894_p6, %p19669_p1  ;;  %p14209_p8 = scmp.ne.s32.totalorder %s19659_s6, %s14208_s17 }
  0x14   : > { %p14215_p12 = scmp.lt.u32.totalorder %s14208_s17, %s19659_s6 }
  0x15   : > { %p14210_p9 = pneg %p14463_p7 }
  0x17   : > { %p14211_p10 = pnand %p14210_p9, %p14209_p8 }
  0x19   : > { %p14212_p11 = pneg %p14211_p10 }
  0x1b   : > { %p14217_p13 = pnand %p14215_p12, %p14212_p11 }
  0x1d   : > { %14220 = shalt.err (!%p14217_p13)
}
  0x1e   : > { %s14221_s28 = scalar_lea.vmem %s410_s26, 19584  ;;  %p14229_p6 = scmp.lt.s32.totalorder %s410_s26, %s410_s26 }
  0x1f   : > { %p14222_p0 = scmp.ne.s32.totalorder %s410_s26, %s14221_s28  ;;  %p14230_p1 = scmp.lt.s32.totalorder %s14221_s28, %s14221_s28 }
  0x21   : > { %p14224_p2 = pnand %p14222_p0, %p14210_p9  ;;  %p14231_p4 = por %p14230_p1, %p14229_p6 }
  0x23   : > { %p14225_p3 = pneg %p14224_p2 }
  0x25   : > { %p14232_p5 = pnand %p14231_p4, %p14225_p3 }
  0x27   : > { %14235 = shalt.err (!%p14232_p5)
}
  0x28   : > { %s14336_s30 = smov 64   ;;  %s14337_s16 = smov 4  }
  0x29   : > { %13897 = dma.hbm_to_vmem [thread:$0]  (!%p14463_p7), %s19659_s6, 19584, %s410_s26, [#allocation5], %s14336_s30, %s14336_s30, %s14337_s16  }
  0x2a   : > { %s14236_s25 = scalar_lea.hbm %s19662_s9, 9216 }
  0x2b   : > { %p14237_p8 = scmp.ne.s32.totalorder %s19662_s9, %s14236_s25  ;;  %p14243_p5 = scmp.lt.u32.totalorder %s14236_s25, %s19662_s9 }
  0x2d   : > { %p14239_p1 = pnand %p14237_p8, %p14210_p9 }
  0x2f   : > { %p14240_p4 = pneg %p14239_p1 }
  0x31   : > { %p14245_p10 = pnand %p14243_p5, %p14240_p4 }
  0x33   : > { %14248 = shalt.err (!%p14245_p10)
}
  0x34   : > { %s14249_s26 = scalar_lea.vmem %s14467_s29, 9216  ;;  %p14257_p0 = scmp.lt.s32.totalorder %s14467_s29, %s14467_s29 }
  0x35   : > { %p14250_p11 = scmp.ne.s32.totalorder %s14467_s29, %s14249_s26  ;;  %p14258_p2 = scmp.lt.s32.totalorder %s14249_s26, %s14249_s26 }
  0x37   : > { %p14252_p12 = pnand %p14250_p11, %p14210_p9  ;;  %p14259_p3 = por %p14258_p2, %p14257_p0 }
  0x39   : > { %p14253_p13 = pneg %p14252_p12 }
  0x3b   : > { %p14260_p6 = pnand %p14259_p3, %p14253_p13 }
  0x3d   : > { %14263 = shalt.err (!%p14260_p6)
}
  0x3e   : > { %13900 = dma.hbm_to_vmem [thread:$0]  (!%p14463_p7), %s19662_s9, 9216, %s14467_s29, [#allocation5], %s14336_s30, %s14336_s30, %s14337_s16  }
  0x3f   : > { %s14517_s13 = sadd.s32 1, %s14332_s21   ;;  %s62_s14 = sadd.s32 1, %s14328_s20 }
  0x40   : > { %s59_s27 = ssub.s32 %s14332_s21, %s14517_s13  ;;  %p69_p9 = scmp.ne.s32.totalorder %s14328_s20, %s14324_s19 }
  0x41   : > { %p60_p8 = scmp.eq.s32.totalorder %s59_s27, 0  ;;  %p70_p1 = scmp.eq.s32.totalorder %s14332_s21, 0 }
  0x42   : > { %p13907_p4 = scmp.lt.s32.totalorder %s14332_s21, 2  ;;  %s465_s15 = sand.u32 1, %s14328_s20  }
  0x43   : > { %s14528_s17 = scalar_select %p60_p8, %s14328_s20, %s62_s14  }
  0x44   : > { %p71_p5 = por %p70_p1, %p69_p9  ;;  %s10000_s18 = sshll.u32 %s465_s15, 8 }
  0x45   : > { %s11026_s25 = sshll.u32 %s14332_s21, 12  ;;  %s469_s29 = scalar_lea.vmem [#allocation2], %s10000_s18 }
  0x46   : > { %s14534_s10 = scalar_lea.hbm %s19654_s1, %s11026_s25  ;;  %s476_s30 = sshll.u32 %s469_s29, 4  ;;  %s14540_s30 = int_to_ptr.vmem [resolvable:$true] %s476_s30 }
  0x47   : > { %p14536_p7 = pnand %p13907_p4, %p71_p5  ;;  %s14542_s21 = scalar_lea.sflag [#allocation3], %s465_s15 }
  0x48   : > { %s14264_s11 = scalar_lea.hbm %s14534_s10, 4096  ;;  %s14269_s18 = scalar_lea.hbm %s19654_s1, 8192 }
  0x49   : > { %p14265_p10 = scmp.ne.s32.totalorder %s14534_s10, %s14264_s11  ;;  %p14266_p11 = pneg %p14536_p7 }
  0x4a   : > { %p14270_p0 = scmp.lt.u32.totalorder %s14534_s10, %s19654_s1  ;;  %p14271_p2 = scmp.lt.u32.totalorder %s14269_s18, %s14264_s11 }
  0x4b   : > { %p14267_p12 = pnand %p14266_p11, %p14265_p10  ;;  %p14273_p6 = scmp.lt.u32.totalorder %s14264_s11, %s14534_s10 }
  0x4c   : > { %p14272_p3 = por %p14271_p2, %p14270_p0 }
  0x4d   : > { %p14268_p13 = pneg %p14267_p12 }
  0x4e   : > { %p14274_p9 = por %p14273_p6, %p14272_p3 }
  0x50   : > { %p14275_p8 = pnand %p14274_p9, %p14268_p13 }
  0x52   : > { %14278 = shalt.err (!%p14275_p8)
}
  0x53   : > { %s14279_s15 = scalar_lea.vmem %s14540_s30, 4096  ;;  %s14338_s26 = smov [#allocation2]  }
  0x54   : > { %p14280_p1 = scmp.ne.s32.totalorder %s14540_s30, %s14279_s15  ;;  %s14284_s29 = sshll.u32 %s14338_s26, 4  ;;  %s14285_s29 = int_to_ptr.vmem [resolvable:$false] %s14284_s29 }
  0x55   : > { %s14286_s14 = scalar_lea.vmem %s14285_s29, 8192  ;;  %p14287_p10 = scmp.lt.s32.totalorder %s14540_s30, %s14285_s29 }
  0x56   : > { %p14282_p4 = pnand %p14280_p1, %p14266_p11  ;;  %p14288_p12 = scmp.lt.s32.totalorder %s14286_s14, %s14279_s15 }
  0x58   : > { %p14283_p5 = pneg %p14282_p4  ;;  %p14289_p0 = por %p14288_p12, %p14287_p10 }
  0x5a   : > { %p14290_p2 = pnand %p14289_p0, %p14283_p5 }
  0x5c   : > { %14293 = shalt.err (!%p14290_p2)
}
  0x5d   : > { %s14339_s11 = smov 128   ;;  %s14340_s27 = smov 8  }
  0x5e   : > { %13904 = dma.hbm_to_vmem [thread:$0]  (!%p14536_p7), %s14534_s10, 4096, %s14540_s30, %s14542_s21, %s14339_s11, %s14339_s11, %s14340_s27  }
  0x5f   : > { %p20151_p11 = scmp.ne.s32.totalorder %s20148_s24, 0 }
  0x61   : > { %488 = sbr.rel (%p20151_p11) target bundleno = 2243 (0x8c3), region = 80 }
  0x68   : > { %s490_s18 = sand.u32 1, %s14324_s19   ;;  %p20152_p13 = scmp.ne.s32.totalorder %s20147_s23, 0 }
  0x69   : > { %s10004_s25 = sshll.u32 %s490_s18, 8  ;;  %s491_s28 = scalar_lea.sflag [#allocation3], %s490_s18 }
  0x6a   : > { %s14573_s15 = scalar_lea.vmem [#allocation2], %s10004_s25 }
  0x6b   : > { %14311 = dma.done.wait (%p20152_p13), %s491_s28, 4096  }
  0x6c   : > { %14313 = vsyncadd (%p20152_p13), %s491_s28, 4294963200  ;;  %p20153_p3 = scmp.eq.s32.totalorder %s14443_s22, 0 }
  0x6e   : > { %14315 = dma.done.wait (%p20153_p3), [#allocation5], 28800   ;;  %p20154_p7 = pmov %p20153_p3 }
  0x6f   : > { %p554_p6 = scmp.lt.s32.totalorder %s14443_s22, 1  ;;  %v14341_v0 = vmov 0   ;;  %v13951_v1 = vld [vmem:[%s19656_s3] sm:$0xff]   ;;  %v13952_v8 = vld [vmem:[%s19656_s3 + $0x8] sm:$0xff]   ;;  %vm1083_vm0 = vcmask 130048   ;;  %v13954_v10 = vld [vmem:[%s19656_s3 + $0x10] sm:$0xff]  }
  0x70   : > { %14317 = vsyncadd (%p20154_p7), [#allocation5], 4294938496  ;;  %1164 = vmatprep.mubr.bf16.mxu1 %v14341_v0  ;;  %12642 = vmatprep.subr.bf16.mxu0 %v13951_v1  ;;  %v13953_v9 = vld [vmem:[%s19655_s2] sm:$0xff]   ;;  %v566_v12 = vld [vmem:[%s14573_s15 + $0x8] sm:$0xff]  ;;  %vm645_vm1 = vcmask 523264   ;;  %vm1422_vm2 = vcmask 1040384  }
  0x71   : > { %s21043_s22 = smov (!%p554_p6, %s14443_s22), 1  ;;  %12643 = vmatpush3.bf16.msra.mxu0 %v13951_v1  ;;  %v565_v11 = vld [vmem:[%s14573_s15] sm:$0xff]  ;;  %v13955_v13 = vld [vmem:[%s19656_s3 + $0x18] sm:$0xff]   ;;  %v567_v15 = vld [vmem:[%s14573_s15 + $0x10] sm:$0xff]  ;;  %vm1985_vm3 = vcmask 1046528   ;;  %vm3333_vm4 = vcmask 1045504  }
  0x72   : > { %s11027_s24 = sshll.u32 %s21043_s22, 5  ;;  %12644 = vmatprep.subr.bf16.mxu0 %v13952_v8  ;;  %v597_v14 = vpack.c.bf16 %v566_v12, %v565_v11  ;;  %v568_v16 = vld [vmem:[%s14573_s15 + $0x18] sm:$0xff]  ;;  %v13956_v17 = vld [vmem:[%s19655_s2 + $0x8] sm:$0xff]   ;;  %v569_v18 = vld [vmem:[%s14573_s15 + $0x20] sm:$0xff]  ;;  %vm14343_vm6 = vmmov 1   ;;  %s21033_s16 = sld [smem:[#allocation198_spill]] }
  0x73   : > { %s558_s23 = scalar_lea.vmem %s19653_s0, %s11027_s24  ;;  %v570_v19 = vld [vmem:[%s14573_s15 + $0x28] sm:$0xff]  ;;  %v598_v20 = vpack.c.bf16 %v568_v16, %v567_v15  ;;  %v13957_v22 = vld [vmem:[%s19655_s2 + $0x10] sm:$0xff]   ;;  %v572_v24 = vld [vmem:[%s14573_s15 + $0x38] sm:$0xff]  ;;  %s21034_s29 = sld [smem:[#allocation199_spill]]  ;;  %vm9864_vm8 = vcmask 64512  }
  0x74   : > { %v998_v2 = vld [vmem:[%s558_s23 + $0x8] sm:$0xff]  ;;  %v1000_v3 = vld [vmem:[%s558_s23 + $0x18] sm:$0xff]  ;;  %v997_v4 = vld [vmem:[%s558_s23] sm:$0xff]  ;;  %12650 = vmatprep.mubr.msk.bf16.mxu0 %vm645_vm1, %v597_v14  ;;  %v599_v21 = vpack.c.bf16 %v570_v19, %v569_v18  ;;  %s21035_s27 = sld [smem:[#allocation200_spill]]  ;;  %s21036_s28 = sld [smem:[#allocation201_spill]] }
  0x75   : > { %v1002_v5 = vpack.c.bf16 %v1000_v3, %v998_v2  ;;  %v999_v6 = vld [vmem:[%s558_s23 + $0x10] sm:$0xff]  ;;  %12645 = vmatpush3.bf16.msra.mxu0 %v13952_v8  ;;  %v573_v25 = vld [vmem:[%s14573_s15 + $0x40] sm:$0xff]  ;;  %v574_v26 = vld [vmem:[%s14573_s15 + $0x48] sm:$0xff]  ;;  %s11028_s24 = sshll.u32 %s21043_s22, 8  ;;  %s21037_s23 = sld [smem:[#allocation202_spill]] }
  0x76   : > { %v1001_v7 = vpack.c.bf16 %v999_v6, %v997_v4  ;;  %12646 = vmatprep.subr.bf16.mxu0 %v13954_v10  ;;  %v571_v23 = vld [vmem:[%s14573_s15 + $0x30] sm:$0xff]  ;;  %v601_v28 = vpack.c.bf16 %v574_v26, %v573_v25  ;;  %v13958_v30 = vld [vmem:[%s19655_s2 + $0x18] sm:$0xff]   ;;  %v577_v32 = vld [vmem:[%s14573_s15 + $0x60] sm:$0xff] }
  0x77   : > { %1132 = vmatprep.subr.bf16.mxu1 %v1002_v5  ;;  %v600_v27 = vpack.c.bf16 %v572_v24, %v571_v23  ;;  %v575_v29 = vld [vmem:[%s14573_s15 + $0x50] sm:$0xff]  ;;  %v576_v31 = vld [vmem:[%s14573_s15 + $0x58] sm:$0xff]  ;;  %v578_v33 = vld [vmem:[%s14573_s15 + $0x68] sm:$0xff]  ;;  %v14342_v24 = vmov 0.0  }
  0x78   : > { %1133 = vmatpush1.bf16.msra.mxu1 %v1001_v7  ;;  %v602_v34 = vpack.c.bf16 %v576_v31, %v575_v29  ;;  %v603_v35 = vpack.c.bf16 %v578_v33, %v577_v32  ;;  %v13970_v36 = vld [vmem:[#allocation4 + $0xc8] sm:$0xff]   ;;  %v579_v38 = vld [vmem:[%s14573_s15 + $0x70] sm:$0xff]  ;;  %v580_v39 = vld [vmem:[%s14573_s15 + $0x78] sm:$0xff]  ;;  %v14705_v25 = vrot.slane %v14342_v24, 7 }
  0x79   : > { %12647 = vmatpush3.bf16.msra.mxu0 %v13954_v10  ;;  %v13971_v37 = vld [vmem:[#allocation4 + $0x88] sm:$0xff]   ;;  %v13959_v41 = vld [vmem:[%s19655_s2 + $0x20] sm:$0xff]   ;;  %v13973_v44 = vld [vmem:[#allocation4 + $0xd0] sm:$0xff]   ;;  %v604_v47 = vpack.c.bf16 %v580_v39, %v579_v38 }
  0x7a   : > { %12648 = vmatprep.subr.bf16.mxu0 %v13955_v13  ;;  %v13972_v40 = vld [vmem:[#allocation4 + $0x108] sm:$0xff]   ;;  %v581_v42 = vld [vmem:[%s14573_s15 + $0x80] sm:$0xff]  ;;  %v13974_v45 = vld [vmem:[#allocation4 + $0x90] sm:$0xff]   ;;  %20155 = vst [vmem:[#allocation9_spill] sm:$0xff] %v14705_v25  ;;  %v14709_v26 = vsel %vm1422_vm2, 0.0, %v14705_v25  ;;  %v1987_v29 = vrot.slane %v14705_v25, 1 }
  0x7b   : > { %10049 = vmatmul.mubr.msk.bf16.vlgmr.msra.gmra.mrb[0].mxu1 %vm1083_vm0, %v13953_v9  ;;  %v582_v43 = vld [vmem:[%s14573_s15 + $0x88] sm:$0xff]  ;;  %12682 = vmatprep.subr.bf16.mxu1 %v13972_v40  ;;  %v13975_v46 = vld [vmem:[#allocation4 + $0xd8] sm:$0xff]   ;;  %v13977_v50 = vld [vmem:[#allocation4 + $0xe0] sm:$0xff]   ;;  %20156 = vst [vmem:[#allocation10_spill] sm:$0xff] %v14709_v26 }
  0x7c   : > { %1174 = vmatprep.mubr.bf16.mxu1 %v14341_v0  ;;  %12683 = vmatpush3.bf16.msra.mxu1 %v13972_v40  ;;  %v605_v48 = vpack.c.bf16 %v582_v43, %v581_v42  ;;  %v13976_v49 = vld [vmem:[#allocation4 + $0x98] sm:$0xff]   ;;  %v583_v51 = vld [vmem:[%s14573_s15 + $0x90] sm:$0xff]  ;;  %v13960_v53 = vld [vmem:[%s19655_s2 + $0x28] sm:$0xff]  }
  0x7d   : > { %12649 = vmatpush3.bf16.msra.mxu0 %v13955_v13  ;;  %v584_v52 = vld [vmem:[%s14573_s15 + $0x98] sm:$0xff]  ;;  %v585_v54 = vld [vmem:[%s14573_s15 + $0xa0] sm:$0xff]  ;;  %v586_v55 = vld [vmem:[%s14573_s15 + $0xa8] sm:$0xff] }
  0x7e   : > { %11049 = vmatprep.subr.bf16.mxu0 %v13970_v36  ;;  %v13978_v56 = vld [vmem:[#allocation4 + $0xa0] sm:$0xff]   ;;  %v13979_v57 = vld [vmem:[#allocation4 + $0xe8] sm:$0xff]   ;;  %v606_v58 = vpack.c.bf16 %v584_v52, %v583_v51  ;;  %v607_v60 = vpack.c.bf16 %v586_v55, %v585_v54  ;;  %v13981_v61 = vld [vmem:[#allocation4 + $0xf0] sm:$0xff]  }
  0x7f   : > { %v13980_v59 = vld [vmem:[#allocation4 + $0xa8] sm:$0xff]   ;;  %v587_v62 = vld [vmem:[%s14573_s15 + $0xb0] sm:$0xff]  ;;  %v588_v63 = vld [vmem:[%s14573_s15 + $0xb8] sm:$0xff] }
  0x80   : > { %12651 = vmatmul.mubr.msk.bf16.vlgmr.msra.gmra.mrb[0].mxu0 %vm645_vm1, %v598_v20  ;;  %v13982_v1 = vld [vmem:[#allocation4 + $0xb0] sm:$0xff]   ;;  %v589_v3 = vld [vmem:[%s14573_s15 + $0xc0] sm:$0xff]  ;;  %v590_v4 = vld [vmem:[%s14573_s15 + $0xc8] sm:$0xff]  ;;  %v608_v7 = vpack.c.bf16 %v588_v63, %v587_v62 }
  0x81   : > { %12654 = vmatprep.mubr.msk.bf16.mxu0 %vm645_vm1, %v599_v21  ;;  %11050 = vmatpush3.bf16.msra.mxu0 %v13971_v37  ;;  %v13961_v2 = vld [vmem:[%s19655_s2 + $0x30] sm:$0xff]   ;;  %v13983_v5 = vld [vmem:[#allocation4 + $0xf8] sm:$0xff]   ;;  %v13985_v8 = vld [vmem:[#allocation4 + $0x100] sm:$0xff]   ;;  %v609_v9 = vpack.c.bf16 %v590_v4, %v589_v3 }
  0x82   : > { %11051 = vmatprep.subr.bf16.mxu0 %v13973_v44  ;;  %v13984_v6 = vld [vmem:[#allocation4 + $0xb8] sm:$0xff]   ;;  %v591_v10 = vld [vmem:[%s14573_s15 + $0xd0] sm:$0xff]  ;;  %v13986_v12 = vld [vmem:[#allocation4 + $0xc0] sm:$0xff]  }
  0x83   : > { %10050 = vmatmul.mubr.msk.bf16.gmra.mrb[4].mxu1 %vm1083_vm0, %v13956_v17  ;;  %v592_v11 = vld [vmem:[%s14573_s15 + $0xd8] sm:$0xff]  ;;  %v593_v14 = vld [vmem:[%s14573_s15 + $0xe0] sm:$0xff]  ;;  %v594_v15 = vld [vmem:[%s14573_s15 + $0xe8] sm:$0xff] }
  0x84   : > { %1184 = vmatprep.mubr.bf16.mxu1 %v14341_v0  ;;  %v13962_v13 = vld [vmem:[%s19655_s2 + $0x38] sm:$0xff]   ;;  %v610_v16 = vpack.c.bf16 %v592_v11, %v591_v10  ;;  %v611_v17 = vpack.c.bf16 %v594_v15, %v593_v14  ;;  %v595_v18 = vld [vmem:[%s14573_s15 + $0xf0] sm:$0xff]  ;;  %v13963_v20 = vld [vmem:[%s19655_s2 + $0x40] sm:$0xff]  }
  0x85   : > { %11052 = vmatpush3.bf16.msra.mxu0 %v13974_v45  ;;  %v596_v19 = vld [vmem:[%s14573_s15 + $0xf8] sm:$0xff]  ;;  %v13965_v23 = vld [vmem:[%s19655_s2 + $0x50] sm:$0xff]   ;;  %v13967_v37 = vld [vmem:[%s19655_s2 + $0x60] sm:$0xff]   ;;  %s19514_s15 = scalar_lea.vmem %s21037_s23, %s11028_s24 }
  0x86   : > { %11053 = vmatprep.subr.bf16.mxu0 %v13975_v46  ;;  %v612_v21 = vpack.c.bf16 %v596_v19, %v595_v18  ;;  %v13966_v33 = vld [vmem:[%s19655_s2 + $0x58] sm:$0xff]   ;;  %v13988_v36 = vld [vmem:[#allocation4 + $0x110] sm:$0xff]   ;;  %v13968_v38 = vld [vmem:[%s19655_s2 + $0x68] sm:$0xff]  }
  0x87   : > { %v13969_v39 = vld [vmem:[%s19655_s2 + $0x70] sm:$0xff]   ;;  %v13991_v40 = vld [vmem:[%s19655_s2 + $0x78] sm:$0xff]   ;;  %v13992_v43 = vld [vmem:[#allocation4 + $0x160] sm:$0xff]  }
  0x88   : > { %12655 = vmatmul.mubr.msk.bf16.gmra.mrb[4].mxu0 %vm645_vm1, %v600_v27  ;;  %v14713_v27 = vsel %vm1422_vm2, %v14705_v25, 0.0  ;;  %v13990_v42 = vld [vmem:[#allocation4 + $0x118] sm:$0xff]   ;;  %v13993_v44 = vld [vmem:[#allocation4 + $0x120] sm:$0xff]   ;;  %v13994_v45 = vld [vmem:[#allocation4 + $0x168] sm:$0xff]  }
  0x89   : > { %12658 = vmatprep.mubr.msk.bf16.mxu0 %vm645_vm1, %v601_v28  ;;  %11054 = vmatpush3.bf16.msra.mxu0 %v13976_v49  ;;  %20157 = vst [vmem:[#allocation11_spill] sm:$0xff] %v14713_v27  ;;  %v1986_v28 = vrot.slane %v14709_v26, 1  ;;  %v13996_v46 = vld [vmem:[#allocation4 + $0x40] sm:$0xff]   ;;  %vm15931_vm5 = vmneg %vm1422_vm2 }
  0x8a   : > { %11055 = vmatprep.subr.bf16.mxu0 %v13977_v50  ;;  %11178 = vmatprep.subr.bf16.mxu1 %v13996_v46  ;;  %v14000_v50 = vld [vmem:[#allocation4 + $0x170] sm:$0xff]   ;;  %vm15964_vm7 = vmpackc.low %vm14343_vm6, %vm15931_vm5 }
  0x8b   : > { %10051 = vmatmul.mubr.msk.bf16.gmra.mrb[8].mxu1 %vm1083_vm0, %v13957_v22  ;;  %v13964_v22 = vld [vmem:[%s19655_s2 + $0x48] sm:$0xff]   ;;  %v1988_v31 = vsel %vm1985_vm3, %v1986_v28, %v1987_v29  ;;  %v14809_v28 = vld [vmem:[%s19658_s5] ss:$0 sm:$0xff] }
  0x8c   : > { %1194 = vmatprep.mubr.bf16.mxu1 %v14341_v0 }
  0x8d   : > { %11056 = vmatpush3.bf16.msra.mxu0 %v13978_v56  ;;  %v14001_v56 = vld [vmem:[#allocation4 + $0x130] sm:$0xff]  }
  0x8e   : > { %11057 = vmatprep.subr.bf16.mxu0 %v13979_v57 }
  0x90   : > { %12659 = vmatmul.mubr.msk.bf16.gmra.mrb[8].mxu0 %vm645_vm1, %v602_v34 }
  0x91   : > { %12662 = vmatprep.mubr.msk.bf16.mxu0 %vm645_vm1, %v603_v35  ;;  %11058 = vmatpush3.bf16.msra.mxu0 %v13980_v59  ;;  %v13987_v35 = vld [vmem:[#allocation4 + $0x150] sm:$0xff]  }
  0x92   : > { %11059 = vmatprep.subr.bf16.mxu0 %v13981_v61 }
  0x93   : > { %10052 = vmatmul.mubr.msk.bf16.gmra.mrb[12].mxu1 %vm1083_vm0, %v13958_v30  ;;  %v1989_v30 = vrot.slane %v14713_v27, 1 }
  0x94   : > { %1204 = vmatprep.mubr.bf16.mxu1 %v14341_v0 }
  0x95   : > { %11060 = vmatpush3.bf16.msra.mxu0 %v13982_v1  ;;  %v1990_v32 = vsel %vm1985_vm3, %v1987_v29, %v1989_v30 }
  0x96   : > { %11061 = vmatprep.subr.bf16.mxu0 %v13983_v5  ;;  %v14725_v34 = vpack.c.bf16 %v1990_v32, %v1988_v31 }
  0x98   : > { %12663 = vmatmul.mubr.msk.bf16.gmra.mrb[12].mxu0 %vm645_vm1, %v604_v47  ;;  %20158 = vst [vmem:[#allocation12_spill] sm:$0xff] %v14725_v34 }
  0x99   : > { %12666 = vmatprep.mubr.msk.bf16.mxu0 %vm645_vm1, %v605_v48  ;;  %11062 = vmatpush3.bf16.msra.mxu0 %v13984_v6 }
  0x9a   : > { %11063 = vmatprep.subr.bf16.mxu0 %v13985_v8 }
  0x9b   : > { %10053 = vmatmul.mubr.msk.bf16.gmra.mrb[16].mxu1 %vm1083_vm0, %v13959_v41  ;;  %v13989_v41 = vld [vmem:[#allocation4 + $0x158] sm:$0xff]  }
  0x9c   : > { %1214 = vmatprep.mubr.bf16.mxu1 %v14341_v0 }
  0x9d   : > { %11064 = vmatpush3.bf16.msra.mxu0 %v13986_v12 }
  0x9e   : > { %11307 = vmatprep.subr.bf16.mxu0 %v13987_v35 }
  0xa0   : > { %12667 = vmatmul.mubr.msk.bf16.gmra.mrb[16].mxu0 %vm645_vm1, %v606_v58 }
  0xa1   : > { %12670 = vmatprep.mubr.msk.bf16.mxu0 %vm645_vm1, %v607_v60 }
  0xa3   : > { %10054 = vmatmul.mubr.msk.bf16.gmra.mrb[20].mxu1 %vm1083_vm0, %v13960_v53 }
  0xa4   : > { %1224 = vmatprep.mubr.bf16.mxu1 %v14341_v0 }
  0xa8   : > { %12671 = vmatmul.mubr.msk.bf16.gmra.mrb[20].mxu0 %vm645_vm1, %v608_v7 }
  0xa9   : > { %12674 = vmatprep.mubr.msk.bf16.mxu0 %vm645_vm1, %v609_v9 }
  0xab   : > { %10055 = vmatmul.mubr.msk.bf16.gmra.mrb[24].mxu1 %vm1083_vm0, %v13961_v2 }
  0xac   : > { %1234 = vmatprep.mubr.bf16.mxu1 %v14341_v0 }
  0xb0   : > { %12675 = vmatmul.mubr.msk.bf16.gmra.mrb[24].mxu0 %vm645_vm1, %v610_v16 }
  0xb1   : > { %12678 = vmatprep.mubr.msk.bf16.mxu0 %vm645_vm1, %v611_v17 }
  0xb3   : > { %10056 = vmatmul.mubr.msk.bf16.gmra.mrb[28].mxu1 %vm1083_vm0, %v13962_v13  ;;  %v14790_v13 = vld [vmem:[%s19657_s4] ss:$0 sm:$0xff] }
  0xb4   : > { %1244 = vmatprep.mubr.bf16.mxu1 %v14341_v0 }
  0xb8   : > { %12679 = vmatmul.mubr.msk.bf16.gmra.mrb[28].mxu0 %vm645_vm1, %v612_v21 }
  0xb9   : > { %2571 = vmatprep.mubr.bf16.mxu0 %v14725_v34 }
  0xbb   : > { %10057 = vmatmul.mubr.msk.bf16.gmra.mrb[32].mxu1 %vm1083_vm0, %v13963_v20 }
  0xbc   : > { %1254 = vmatprep.mubr.bf16.mxu1 %v14341_v0 }
  0xc0   : > { %2572 = vmatmul.mubr.bf16.vlgmr.msra.gmra.mrb[32].mxu0 %v14725_v34 }
  0xc1   : > { %11308 = vmatpush3.bf16.msra.mxu0 %v13988_v36 }
  0xc2   : > { %11309 = vmatprep.subr.bf16.mxu0 %v13989_v41 }
  0xc3   : > { %10058 = vmatmul.mubr.msk.bf16.gmra.mrb[36].mxu1 %vm1083_vm0, %v13964_v22 }
  0xc4   : > { %1264 = vmatprep.mubr.bf16.mxu1 %v14341_v0 }
  0xc5   : > { %11310 = vmatpush3.bf16.msra.mxu0 %v13990_v42 }
  0xc6   : > { %11311 = vmatprep.subr.bf16.mxu0 %v13992_v43 }
  0xc9   : > { %11312 = vmatpush3.bf16.msra.mxu0 %v13993_v44 }
  0xca   : > { %11313 = vmatprep.subr.bf16.mxu0 %v13994_v45 }
  0xcb   : > { %10059 = vmatmul.mubr.msk.bf16.gmra.mrb[40].mxu1 %vm1083_vm0, %v13965_v23 }
  0xcc   : > { %1274 = vmatprep.mubr.bf16.mxu1 %v14341_v0 }
  0xd3   : > { %10060 = vmatmul.mubr.msk.bf16.gmra.mrb[44].mxu1 %vm1083_vm0, %v13966_v33 }
  0xd4   : > { %1284 = vmatprep.mubr.bf16.mxu1 %v14341_v0 }
  0xdb   : > { %10061 = vmatmul.mubr.msk.bf16.gmra.mrb[48].mxu1 %vm1083_vm0, %v13967_v37 }
  0xdc   : > { %1294 = vmatprep.mubr.bf16.mxu1 %v14341_v0 }
  0xe3   : > { %10062 = vmatmul.mubr.msk.bf16.gmra.mrb[52].mxu1 %vm1083_vm0, %v13968_v38 }
  0xe4   : > { %1304 = vmatprep.mubr.bf16.mxu1 %v14341_v0 }
  0xeb   : > { %10063 = vmatmul.mubr.msk.bf16.gmra.mrb[56].mxu1 %vm1083_vm0, %v13969_v39 }
  0xec   : > { %1314 = vmatprep.mubr.bf16.mxu1 %v14341_v0  ;;  %v13995_v0 = vld [vmem:[#allocation4 + $0x128] sm:$0xff]  }
  0xed   : > { %11314 = vmatpush3.bf16.msra.mxu0 %v13995_v0 }
  0xee   : > { %11315 = vmatprep.subr.bf16.mxu0 %v14000_v50 }
  0xf1   : > { %11316 = vmatpush3.bf16.msra.mxu0 %v14001_v56 }
  0xf3   : > { %10064 = vmatmul.mubr.msk.bf16.gmra.mrb[60].mxu1 %vm1083_vm0, %v13991_v40 }
  0xf4   : > { %12684 = vmatprep.mubr.msk.bf16.mxu1 %vm1083_vm0, %v14725_v34 }
 0x14e   : > { %v1166_v47 = vpop.f32.mrb[0].mxu1 }
 0x14f   : > { %v14752_v48 = vrot.slane %v1166_v47, 7  ;;  %v1168_v49 = vpop.f32.mrb[1].mxu1 }
 0x150   : > { %v14754_v51 = vrot.slane %v1168_v49, 7  ;;  %v1170_v52 = vpop.f32.mrb[2].mxu1 }
 0x151   : > { %v14758_v53 = vsel %vm1422_vm2, 0.0, %v14752_v48  ;;  %v1428_v54 = vrot.slane %v1170_v52, 7  ;;  %v1172_v55 = vpop.f32.mrb[3].mxu1 }
 0x152   : > { %20159 = vst [vmem:[#allocation13_spill] sm:$0xff] %v14758_v53  ;;  %v14762_v57 = vsel %vm1422_vm2, 0.0, %v14754_v51  ;;  %v1430_v58 = vrot.slane %v1172_v55, 7  ;;  %v1991_v61 = vrot.slane %v14758_v53, 1 }
 0x153   : > { %20160 = vst [vmem:[#allocation14_spill] sm:$0xff] %v14762_v57  ;;  %v14766_v59 = vsel %vm1422_vm2, %v14752_v48, %v1428_v54  ;;  %v14769_v60 = vsel %vm1422_vm2, %v1428_v54, 0.0  ;;  %v1994_v2 = vrot.slane %v14762_v57, 1  ;;  %v12652_v12 = vpop.f32.mrb[0].mxu0 }
 0x154   : > { %20161 = vst [vmem:[#allocation15_spill] sm:$0xff] %v14766_v59  ;;  %20162 = vst [vmem:[#allocation16_spill] sm:$0xff] %v14769_v60  ;;  %v2000_v62 = vrot.slane %v14769_v60, 1  ;;  %v14775_v63 = vsel %vm1422_vm2, %v14754_v51, %v1430_v58  ;;  %v14778_v1 = vsel %vm1422_vm2, %v1430_v58, 0.0  ;;  %v1992_v5 = vrot.slane %v14766_v59, 1  ;;  %v728_v18 = vpop.f32.mrb[1].mxu0 }
 0x155   : > { %20163 = vst [vmem:[#allocation17_spill] sm:$0xff] %v14775_v63  ;;  %20164 = vst [vmem:[#allocation18_spill] sm:$0xff] %v14778_v1  ;;  %v2002_v3 = vrot.slane %v14778_v1, 1  ;;  %v1995_v4 = vrot.slane %v14775_v63, 1  ;;  %v864_v17 = vmul.f32 %v12652_v12, %v14790_v13  ;;  %v12653_v22 = vpop.f32.mrb[2].mxu0  ;;  %v862_v30 = vmul.f32 %v14790_v13, %v728_v18 }
 0x156   : > { %v1176_v6 = vpop.f32.mrb[4].mxu1  ;;  %v1993_v10 = vsel %vm1985_vm3, %v1991_v61, %v1992_v5  ;;  %v2001_v15 = vsel %vm1985_vm3, %v1992_v5, %v2000_v62  ;;  %v731_v23 = vpop.f32.mrb[3].mxu0  ;;  %v865_v31 = vmul.f32 %v12653_v22, %v14790_v13  ;;  %v14010_v61 = vld [vmem:[#allocation4 + $0x178] sm:$0xff]  }
 0x157   : > { %v1178_v7 = vpop.f32.mrb[5].mxu1  ;;  %v1996_v8 = vsel %vm1985_vm3, %v1994_v2, %v1995_v4  ;;  %v2003_v9 = vsel %vm1985_vm3, %v1995_v4, %v2002_v3  ;;  %v14796_v19 = vpack.c.bf16 %v2001_v15, %v1993_v10  ;;  %v903_v29 = vadd.f32 %v14809_v28, %v864_v17  ;;  %v14011_v5 = vld [vmem:[#allocation4 + $0x138] sm:$0xff]   ;;  %11317 = vmatprep.subr.bf16.mxu0 %v14010_v61 }
 0x158   : > { %v1180_v11 = vpop.f32.mrb[6].mxu1  ;;  %v14792_v14 = vpack.c.bf16 %v2003_v9, %v1996_v8  ;;  %v14798_v20 = vrot.slane %v1178_v7, 7  ;;  %v863_v32 = vmul.f32 %v14790_v13, %v731_v23  ;;  %v901_v36 = vadd.f32 %v14809_v28, %v862_v30  ;;  %11318 = vmatpush3.bf16.msra.mxu0 %v14011_v5 }
 0x159   : > { %v1182_v16 = vpop.f32.mrb[7].mxu1  ;;  %20166 = vst [vmem:[#allocation20_spill] sm:$0xff] %v14796_v19  ;;  %v935_v35 = vmax.f32 %v903_v29, 0.0  ;;  %v904_v38 = vadd.f32 %v14809_v28, %v865_v31  ;;  %v14824_v42 = vrot.slane %v1176_v6, 7  ;;  %v1437_v43 = vrot.slane %v1180_v11, 7 }
 0x15a   : > { %20165 = vst [vmem:[#allocation19_spill] sm:$0xff] %v14792_v14  ;;  %v1439_v21 = vrot.slane %v1182_v16, 7  ;;  %2579 = vmatprep.mubr.bf16.mxu0 %v14792_v14  ;;  %v902_v39 = vadd.f32 %v14809_v28, %v863_v32  ;;  %v933_v44 = vmax.f32 %v901_v36, 0.0  ;;  %v14832_v55 = vsel %vm1422_vm2, 0.0, %v14798_v20 }
 0x15b   : > { %2580 = vmatmul.mubr.bf16.gmra.mrb[36].mxu0 %v14796_v19  ;;  %v12656_v41 = vpop.f32.mrb[4].mxu0  ;;  %20168 = vst [vmem:[#allocation22_spill] sm:$0xff] %v14824_v42  ;;  %v14828_v46 = vrot.slane %v935_v35, 7  ;;  %v936_v47 = vmax.f32 %v904_v38, 0.0  ;;  %20169 = vst [vmem:[#allocation23_spill] sm:$0xff] %v14832_v55  ;;  %v14838_v62 = vsel %vm1422_vm2, 0.0, %v14824_v42  ;;  %v14842_v2 = vsel %vm1422_vm2, %v14824_v42, %v1437_v43 }
 0x15c   : > { %v14804_v24 = vsel %vm1422_vm2, %v14798_v20, %v1439_v21  ;;  %v744_v0 = vpop.f32.mrb[5].mxu0  ;;  %v934_v49 = vmax.f32 %v902_v39, 0.0  ;;  %v1427_v52 = vrot.slane %v933_v44, 7  ;;  %20170 = vst [vmem:[#allocation24_spill] sm:$0xff] %v14838_v62  ;;  %20171 = vst [vmem:[#allocation25_spill] sm:$0xff] %v14842_v2  ;;  %v14845_v3 = vsel %vm1422_vm2, %v1437_v43, 0.0 }
 0x15d   : > { %20167 = vst [vmem:[#allocation21_spill] sm:$0xff] %v14804_v24  ;;  %v12657_v50 = vpop.f32.mrb[6].mxu0  ;;  %v14834_v56 = vrot.slane %v936_v47, 7  ;;  %20172 = vst [vmem:[#allocation26_spill] sm:$0xff] %v14845_v3  ;;  %v14849_v6 = vsel %vm1422_vm2, %v1439_v21, 0.0  ;;  %v2009_v11 = vrot.slane %v14832_v55, 1 }
 0x15e   : > { %v14815_v33 = vpop.f32.mrb[8].mxu1  ;;  %v747_v54 = vpop.f32.mrb[7].mxu0  ;;  %v1432_v58 = vrot.slane %v934_v49, 7  ;;  %v1718_v4 = vsel %vm1422_vm2, 0.0, %v1427_v52  ;;  %20173 = vst [vmem:[#allocation27_spill] sm:$0xff] %v14849_v6  ;;  %v2010_v16 = vrot.slane %v14804_v24, 1  ;;  %v868_v49 = vmul.f32 %v12656_v41, %v14790_v13 }
 0x15f   : > { %v14818_v37 = vpop.f32.mrb[9].mxu1  ;;  %v1997_v7 = vrot.slane %v1718_v4, 1  ;;  %v3345_v8 = vrot.slane %v1718_v4, 2  ;;  %v14854_v9 = vsel %vm1422_vm2, %v14828_v46, %v14834_v56  ;;  %v2015_v31 = vrot.slane %v14845_v3, 1 }
 0x160   : > { %v14822_v40 = vpop.f32.mrb[10].mxu1  ;;  %20174 = vst [vmem:[#allocation28_spill] sm:$0xff] %v14854_v9  ;;  %v1433_v12 = vsel %vm1422_vm2, %v1427_v52, %v1432_v58  ;;  %v1767_v15 = vsel %vm1422_vm2, %v1432_v58, 0.0  ;;  %v2017_v32 = vrot.slane %v14849_v6, 1  ;;  %v2007_v36 = vrot.slane %v14842_v2, 1  ;;  %v13997_v58 = vld [vmem:[#allocation4] sm:$0xff]  }
 0x161   : > { %v14826_v45 = vpop.f32.mrb[11].mxu1  ;;  %v14864_v18 = vpack.c.bf16 %v1433_v12, %v1718_v4  ;;  %v1998_v21 = vrot.slane %v1433_v12, 1  ;;  %v2004_v22 = vrot.slane %v1767_v15, 1  ;;  %v3346_v23 = vrot.slane %v1433_v12, 2 }
 0x162   : > { %v3352_v35 = vrot.slane %v1767_v15, 2  ;;  %v2006_v61 = vrot.slane %v14838_v62, 1  ;;  %v2011_v12 = vsel %vm1985_vm3, %v2009_v11, %v2010_v16  ;;  %v2018_v41 = vsel %vm1985_vm3, %v2010_v16, %v2017_v32  ;;  %v14019_v62 = vld [vmem:[#allocation4 + $0x148] sm:$0xff]  }
 0x163   : > { %20175 = vst [vmem:[#allocation29_spill] sm:$0xff] %v14864_v18  ;;  %v14868_v30 = vpop.f32.mrb[8].mxu0  ;;  %v1999_v43 = vsel %vm1985_vm3, %v1997_v7, %v1998_v21  ;;  %v2005_v44 = vsel %vm1985_vm3, %v1998_v21, %v2004_v22  ;;  %v3347_v47 = vsel %vm3333_vm4, %v3345_v8, %v3346_v23  ;;  %v13998_v7 = vld [vmem:[#allocation4 + $0x48] sm:$0xff]   ;;  %v907_v8 = vadd.f32 %v14809_v28, %v868_v49 }
 0x164   : > { %v14875_v39 = vpop.f32.mrb[9].mxu0  ;;  %v14884_v4 = vpack.c.bf16 %v2005_v44, %v1999_v43  ;;  %v3353_v5 = vsel %vm3333_vm4, %v3346_v23, %v3352_v35  ;;  %v866_v21 = vmul.f32 %v14790_v13, %v744_v0  ;;  %v2008_v22 = vsel %vm1985_vm3, %v2006_v61, %v2007_v36 }
 0x165   : > { %v14881_v52 = vpop.f32.mrb[10].mxu0  ;;  %v14890_v34 = vpack.c.bf16 %v3353_v5, %v3347_v47  ;;  %v2016_v43 = vsel %vm1985_vm3, %v2007_v36, %v2015_v31  ;;  %v939_v23 = vmax.f32 %v907_v8, 0.0  ;;  %v14899_v11 = vpack.c.bf16 %v2018_v41, %v2011_v12  ;;  %v13999_v47 = vld [vmem:[#allocation4 + $0x8] sm:$0xff]   ;;  %v14002_v31 = vld [vmem:[#allocation4 + $0x50] sm:$0xff]  }
 0x166   : > { %v14856_v10 = vpop.f32.mrb[12].mxu1  ;;  %20176 = vst [vmem:[#allocation30_spill] sm:$0xff] %v14884_v4  ;;  %v14888_v15 = vpop.f32.mrb[11].mxu0  ;;  %12685 = vmatmul.mubr.msk.bf16.vlgmr.msra.gmra.mrb[64].mxu1 %vm1083_vm0, %v14884_v4  ;;  %v869_v35 = vmul.f32 %v12657_v50, %v14790_v13  ;;  %v905_v16 = vadd.f32 %v14809_v28, %v866_v21  ;;  %v14905_v32 = vpack.c.bf16 %v2016_v43, %v2008_v22  ;;  %v1448_v36 = vrot.slane %v14826_v45, 7  ;;  %v14003_v43 = vld [vmem:[#allocation4 + $0x10] sm:$0xff]   ;;  %v14004_v4 = vld [vmem:[#allocation4 + $0x58] sm:$0xff]  }
 0x167   : > { %v14862_v17 = vpop.f32.mrb[13].mxu1  ;;  %20177 = vst [vmem:[#allocation31_spill] sm:$0xff] %v14890_v34  ;;  %20178 = vst [vmem:[#allocation32_spill] sm:$0xff] %v14899_v11  ;;  %11179 = vmatpush3.bf16.msra.mxu1 %v13997_v58  ;;  %v867_v0 = vmul.f32 %v14790_v13, %v747_v54  ;;  %2587 = vmatprep.mubr.bf16.mxu0 %v14899_v11  ;;  %v1446_v5 = vrot.slane %v14822_v40, 7  ;;  %v14925_v45 = vrot.slane %v14818_v37, 7  ;;  %v14927_v41 = vrot.slane %v939_v23, 7 }
 0x168   : > { %v14866_v29 = vpop.f32.mrb[14].mxu1  ;;  %20179 = vst [vmem:[#allocation33_spill] sm:$0xff] %v14905_v32  ;;  %11180 = vmatprep.subr.bf16.mxu1 %v13998_v7  ;;  %v908_v50 = vadd.f32 %v14809_v28, %v869_v35  ;;  %v937_v12 = vmax.f32 %v905_v16, 0.0  ;;  %2588 = vmatmul.mubr.bf16.gmra.mrb[40].mxu0 %v14905_v32  ;;  %v14932_v40 = vrot.slane %v14815_v33, 7  ;;  %v14016_v32 = vld [vmem:[#allocation4 + $0x180] sm:$0xff]   ;;  %v14939_v37 = vsel %vm1422_vm2, %v1448_v36, 0.0 }
 0x169   : > { %v14873_v38 = vpop.f32.mrb[15].mxu1  ;;  %v906_v54 = vadd.f32 %v14809_v28, %v867_v0  ;;  %20180 = vst [vmem:[#allocation34_spill] sm:$0xff] %v14925_v45  ;;  %20182 = vst [vmem:[#allocation36_spill] sm:$0xff] %v14939_v37  ;;  %11319 = vmatprep.subr.bf16.mxu0 %v14016_v32  ;;  %v14017_v33 = vld [vmem:[#allocation4 + $0x140] sm:$0xff]   ;;  %v873_v25 = vmul.f32 %v14881_v52, %v14790_v13 }
 0x16a   : > { %v940_v21 = vmax.f32 %v908_v50, 0.0  ;;  %20181 = vst [vmem:[#allocation35_spill] sm:$0xff] %v14932_v40  ;;  %v14934_v35 = vrot.slane %v937_v12, 7  ;;  %v14944_v50 = vsel %vm1422_vm2, %v1446_v5, 0.0  ;;  %v14950_v12 = vsel %vm1422_vm2, 0.0, %v14925_v45  ;;  %11320 = vmatpush3.bf16.msra.mxu0 %v14017_v33 }
 0x16b   : > { %v14915_v58 = vpop.f32.mrb[12].mxu0  ;;  %11181 = vmatpush3.bf16.msra.mxu1 %v13999_v47  ;;  %v938_v16 = vmax.f32 %v906_v54, 0.0  ;;  %20183 = vst [vmem:[#allocation37_spill] sm:$0xff] %v14944_v50  ;;  %20184 = vst [vmem:[#allocation38_spill] sm:$0xff] %v14950_v12  ;;  %v14965_v32 = vsel %vm1422_vm2, 0.0, %v14932_v40  ;;  %v14969_v11 = vsel %vm1422_vm2, %v14932_v40, %v1446_v5  ;;  %v2030_v34 = vrot.slane %v14944_v50, 1 }
 0x16c   : > { %v14922_v7 = vpop.f32.mrb[13].mxu0  ;;  %11182 = vmatprep.subr.bf16.mxu1 %v14002_v31  ;;  %v14941_v23 = vrot.slane %v940_v21, 7  ;;  %v14954_v31 = vsel %vm1422_vm2, %v14925_v45, %v1448_v36  ;;  %20188 = vst [vmem:[#allocation42_spill] sm:$0xff] %v14965_v32  ;;  %20189 = vst [vmem:[#allocation43_spill] sm:$0xff] %v14969_v11  ;;  %v2032_v36 = vrot.slane %v14939_v37, 1  ;;  %v2024_v5 = vrot.slane %v14950_v12, 1 }
 0x16d   : > { %v14929_v22 = vpop.f32.mrb[14].mxu0  ;;  %v14946_v47 = vrot.slane %v938_v16, 7  ;;  %20185 = vst [vmem:[#allocation39_spill] sm:$0xff] %v14954_v31  ;;  %v14005_v16 = vld [vmem:[#allocation4 + $0x18] sm:$0xff]   ;;  %v872_v40 = vmul.f32 %v14868_v30, %v14790_v13  ;;  %v2025_v26 = vrot.slane %v14954_v31, 1  ;;  %v870_v45 = vmul.f32 %v14790_v13, %v14875_v39  ;;  %v14007_v30 = vld [vmem:[#allocation4 + $0x20] sm:$0xff]  }
 0x16e   : > { %v14902_v44 = vpop.f32.mrb[16].mxu1  ;;  %v14936_v0 = vpop.f32.mrb[15].mxu0  ;;  %v14959_v54 = vsel %vm1422_vm2, %v14927_v41, %v14941_v23  ;;  %v2021_v33 = vrot.slane %v14965_v32, 1  ;;  %v2022_v42 = vrot.slane %v14969_v11, 1  ;;  %v15278_v12 = vld [vmem:[#allocation4 + $0x80] sm:$0xff]  }
 0x16f   : > { %v14908_v49 = vpop.f32.mrb[17].mxu1  ;;  %20186 = vst [vmem:[#allocation40_spill] sm:$0xff] %v14959_v54  ;;  %11183 = vmatpush3.bf16.msra.mxu1 %v14003_v43  ;;  %v14975_v19 = vsel %vm1422_vm2, %v14934_v35, %v14946_v47  ;;  %v14006_v43 = vld [vmem:[#allocation4 + $0x60] sm:$0xff]   ;;  %v911_v31 = vadd.f32 %v14809_v28, %v872_v40  ;;  %v2033_v39 = vsel %vm1985_vm3, %v2025_v26, %v2032_v36  ;;  %v14008_v54 = vld [vmem:[#allocation4 + $0x68] sm:$0xff]   ;;  %v1457_v36 = vrot.slane %v14873_v38, 7  ;;  %v14012_v38 = vld [vmem:[#allocation4 + $0x70] sm:$0xff]  }
 0x170   : > { %v14913_v61 = vpop.f32.mrb[18].mxu1  ;;  %20190 = vst [vmem:[#allocation44_spill] sm:$0xff] %v14975_v19  ;;  %11184 = vmatprep.subr.bf16.mxu1 %v14004_v4  ;;  %v2023_v52 = vsel %vm1985_vm3, %v2021_v33, %v2022_v42  ;;  %v15033_v33 = vrot.slane %v14862_v17, 7  ;;  %v15054_v17 = vsel %vm1422_vm2, 0.0, %v14828_v46 }
 0x171   : > { %v14920_v8 = vpop.f32.mrb[19].mxu1  ;;  %20202 = vst [vmem:[#allocation56_spill] sm:$0xff] %v15054_v17 }
 0x172   : > { %20200 = vst [vmem:[#allocation54_spill] sm:$0xff] %v15033_v33  ;;  %v15096_v53 = vsel %vm1422_vm2, %v15033_v33, %v1457_v36 }
 0x173   : > { %v14982_v27 = vpop.f32.mrb[16].mxu0  ;;  %11185 = vmatpush3.bf16.msra.mxu1 %v14005_v16  ;;  %v912_v16 = vadd.f32 %v14809_v28, %v873_v25  ;;  %v15021_v25 = vrot.slane %v14856_v10, 7  ;;  %20211 = vst [vmem:[#allocation65_spill] sm:$0xff] %v15096_v53 }
 0x174   : > { %20193 = vst [vmem:[#allocation47_spill] sm:$0xff] %v14982_v27  ;;  %v14992_v4 = vpop.f32.mrb[17].mxu0  ;;  %11186 = vmatprep.subr.bf16.mxu1 %v14006_v43 }
 0x175   : > { %20195 = vst [vmem:[#allocation49_spill] sm:$0xff] %v14992_v4  ;;  %v943_v4 = vmax.f32 %v911_v31, 0.0  ;;  %20199 = vst [vmem:[#allocation53_spill] sm:$0xff] %v15021_v25  ;;  %v15071_v46 = vsel %vm1422_vm2, 0.0, %v15021_v25 }
 0x176   : > { %v14961_v21 = vpop.f32.mrb[20].mxu1  ;;  %20206 = vst [vmem:[#allocation60_spill] sm:$0xff] %v15071_v46  ;;  %v2036_v1 = vrot.slane %v15071_v46, 1 }
 0x177   : > { %20187 = vst [vmem:[#allocation41_spill] sm:$0xff] %v14961_v21  ;;  %v14977_v14 = vpop.f32.mrb[21].mxu1  ;;  %v14998_v21 = vpop.f32.mrb[18].mxu0  ;;  %11187 = vmatpush3.bf16.msra.mxu1 %v14007_v30 }
 0x178   : > { %20191 = vst [vmem:[#allocation45_spill] sm:$0xff] %v14977_v14  ;;  %v14980_v18 = vpop.f32.mrb[22].mxu1  ;;  %20196 = vst [vmem:[#allocation50_spill] sm:$0xff] %v14998_v21  ;;  %v909_v14 = vadd.f32 %v14809_v28, %v870_v45  ;;  %v2031_v21 = vsel %vm1985_vm3, %v2022_v42, %v2030_v34  ;;  %v14009_v34 = vld [vmem:[#allocation4 + $0x28] sm:$0xff]   ;;  %v15024_v42 = vrot.slane %v943_v4, 7  ;;  %11188 = vmatprep.subr.bf16.mxu1 %v14008_v54 }
 0x179   : > { %20192 = vst [vmem:[#allocation46_spill] sm:$0xff] %v14980_v18  ;;  %v14990_v2 = vpop.f32.mrb[23].mxu1  ;;  %v2026_v18 = vsel %vm1985_vm3, %v2024_v5, %v2025_v26  ;;  %v15011_v27 = vpack.c.bf16 %v2031_v21, %v2023_v52  ;;  %v871_v26 = vmul.f32 %v14790_v13, %v14888_v15  ;;  %v14013_v5 = vld [vmem:[#allocation4 + $0x30] sm:$0xff]   ;;  %v15067_v45 = vpack.c.bf16 %v14766_v59, %v14752_v48  ;;  %v14014_v48 = vld [vmem:[#allocation4 + $0x78] sm:$0xff]  }
 0x17a   : > { %20194 = vst [vmem:[#allocation48_spill] sm:$0xff] %v14990_v2  ;;  %v15004_v2 = vpop.f32.mrb[19].mxu0  ;;  %v15006_v11 = vpack.c.bf16 %v2033_v39, %v2026_v18  ;;  %v941_v40 = vmax.f32 %v909_v14, 0.0  ;;  %v944_v18 = vmax.f32 %v912_v16, 0.0  ;;  %v1455_v14 = vrot.slane %v14866_v29, 7 }
 0x17b   : > { %20198 = vst [vmem:[#allocation52_spill] sm:$0xff] %v15011_v27  ;;  %v910_v15 = vadd.f32 %v14809_v28, %v871_v26  ;;  %v15039_v4 = vpop.f32.mrb[20].mxu0  ;;  %v15050_v26 = vpack.c.bf16 %v14775_v63, %v14754_v51  ;;  %11189 = vmatpush3.bf16.msra.mxu1 %v14009_v34  ;;  %20205 = vst [vmem:[#allocation59_spill] sm:$0xff] %v15067_v45  ;;  %v14018_v51 = vld [vmem:[#allocation4 + $0x188] sm:$0xff]   ;;  %v876_v59 = vmul.f32 %v14915_v58, %v14790_v13 }
 0x17c   : > { %20197 = vst [vmem:[#allocation51_spill] sm:$0xff] %v15006_v11  ;;  %2595 = vmatprep.mubr.bf16.mxu0 %v15006_v11  ;;  %v15035_v10 = vrot.slane %v944_v18, 7  ;;  %v15042_v39 = vrot.slane %v941_v40, 7  ;;  %v15046_v16 = vpop.f32.mrb[21].mxu0  ;;  %v15058_v18 = vsel %vm1422_vm2, %v14834_v56, 0.0  ;;  %v15061_v40 = vsel %vm1422_vm2, %v1457_v36, 0.0  ;;  %11190 = vmatprep.subr.bf16.mxu1 %v14012_v38 }
 0x17d   : > { %2596 = vmatmul.mubr.bf16.gmra.mrb[44].mxu0 %v15011_v27  ;;  %v942_v52 = vmax.f32 %v910_v15, 0.0  ;;  %20201 = vst [vmem:[#allocation55_spill] sm:$0xff] %v15050_v26  ;;  %20203 = vst [vmem:[#allocation57_spill] sm:$0xff] %v15058_v18  ;;  %v15063_v15 = vpop.f32.mrb[22].mxu0  ;;  %v15074_v30 = vsel %vm1422_vm2, %v1455_v14, 0.0  ;;  %v15088_v11 = vsel %vm1422_vm2, 0.0, %v15033_v33  ;;  %v15092_v60 = vsel %vm1422_vm2, %v15021_v25, %v1455_v14  ;;  %11321 = vmatprep.subr.bf16.mxu0 %v14018_v51 }
 0x17e   : > { %v15018_v43 = vpop.f32.mrb[24].mxu1  ;;  %20204 = vst [vmem:[#allocation58_spill] sm:$0xff] %v15061_v40  ;;  %20207 = vst [vmem:[#allocation61_spill] sm:$0xff] %v15074_v30  ;;  %v15079_v56 = vsel %vm1422_vm2, %v15024_v42, %v15035_v10  ;;  %v15083_v34 = vpop.f32.mrb[23].mxu0  ;;  %v15104_v38 = vsel %vm1422_vm2, %v14946_v47, 0.0  ;;  %v2047_v27 = vrot.slane %v15061_v40, 1  ;;  %11322 = vmatpush3.bf16.msra.mxu0 %v14019_v62 }
 0x17f   : > { %v15028_v31 = vpop.f32.mrb[25].mxu1  ;;  %20208 = vst [vmem:[#allocation62_spill] sm:$0xff] %v15079_v56  ;;  %v15081_v21 = vrot.slane %v942_v52, 7  ;;  %20209 = vst [vmem:[#allocation63_spill] sm:$0xff] %v15088_v11  ;;  %v15100_v52 = vsel %vm1422_vm2, 0.0, %v14934_v35  ;;  %v2012_v36 = vrot.slane %v15054_v17, 1  ;;  %11191 = vmatpush3.bf16.msra.mxu1 %v14013_v5  ;;  %v874_v17 = vmul.f32 %v14790_v13, %v14922_v7 }
 0x180   : > { %v15037_v29 = vpop.f32.mrb[26].mxu1  ;;  %20210 = vst [vmem:[#allocation64_spill] sm:$0xff] %v15092_v60  ;;  %20212 = vst [vmem:[#allocation66_spill] sm:$0xff] %v15100_v52  ;;  %v2019_v51 = vrot.slane %v15058_v18, 1  ;;  %v2045_v35 = vrot.slane %v15074_v30, 1  ;;  %v14015_v47 = vld [vmem:[#allocation4 + $0x38] sm:$0xff]   ;;  %11192 = vmatprep.subr.bf16.mxu1 %v14014_v48 }
 0x181   : > { %v15044_v54 = vpop.f32.mrb[27].mxu1  ;;  %20213 = vst [vmem:[#allocation67_spill] sm:$0xff] %v15104_v38  ;;  %v15110_v14 = vsel %vm1422_vm2, %v15042_v39, %v15081_v21  ;;  %v2039_v25 = vrot.slane %v15088_v11, 1  ;;  %v2040_v63 = vrot.slane %v15096_v53, 1  ;;  %v2027_v18 = vrot.slane %v15100_v52, 1  ;;  %v20244_v3 = vld [vmem:[#allocation49_spill] sm:$0xff] }
 0x182   : > { %20214 = vst [vmem:[#allocation68_spill] sm:$0xff] %v15110_v14  ;;  %v2034_v45 = vrot.slane %v15104_v38, 1  ;;  %v2037_v5 = vrot.slane %v15092_v60, 1  ;;  %v2013_v26 = vrot.slane %v14854_v9, 1  ;;  %v915_v53 = vadd.f32 %v14809_v28, %v876_v59 }
 0x183   : > { %v15132_v58 = vpop.f32.mrb[24].mxu0  ;;  %v2041_v7 = vsel %vm1985_vm3, %v2039_v25, %v2040_v63  ;;  %v913_v62 = vadd.f32 %v14809_v28, %v874_v17  ;;  %11193 = vmatpush3.bf16.msra.mxu1 %v14015_v47  ;;  %v15241_v59 = vsel %vm1422_vm2, %v15081_v21, 0.0  ;;  %v878_v6 = vmul.f32 %v14790_v13, %v20244_v3 }
 0x184   : > { %20218 = vst [vmem:[#allocation72_spill] sm:$0xff] %v15132_v58  ;;  %v15140_v52 = vpop.f32.mrb[25].mxu0  ;;  %v2038_v9 = vsel %vm1985_vm3, %v2036_v1, %v2037_v5  ;;  %v2046_v60 = vsel %vm1985_vm3, %v2037_v5, %v2045_v35  ;;  %v2020_v25 = vsel %vm1985_vm3, %v2013_v26, %v2019_v51  ;;  %v875_v35 = vmul.f32 %v14790_v13, %v14936_v0 }
 0x185   : > { %v15147_v58 = vpop.f32.mrb[26].mxu0  ;;  %20235 = vst [vmem:[#allocation89_spill] sm:$0xff] %v15241_v59  ;;  %12716 = vmatprep.subr.bf16.mxu1 %v15278_v12 }
 0x186   : > { %v15116_v57 = vpop.f32.mrb[28].mxu1  ;;  %v15154_v17 = vpop.f32.mrb[27].mxu0  ;;  %v914_v0 = vadd.f32 %v14809_v28, %v875_v35 }
 0x187   : > { %20215 = vst [vmem:[#allocation69_spill] sm:$0xff] %v15116_v57  ;;  %v15124_v33 = vpop.f32.mrb[29].mxu1 }
 0x188   : > { %20216 = vst [vmem:[#allocation70_spill] sm:$0xff] %v15124_v33  ;;  %v15130_v57 = vpop.f32.mrb[30].mxu1  ;;  %v2048_v33 = vsel %vm1985_vm3, %v2040_v63, %v2047_v27  ;;  %v15151_v63 = vpack.c.bf16 %v2046_v60, %v2038_v9  ;;  %v15166_v60 = vrot.slane %v14902_v44, 7  ;;  %v947_v9 = vmax.f32 %v915_v53, 0.0 }
 0x189   : > { %20217 = vst [vmem:[#allocation71_spill] sm:$0xff] %v15130_v57  ;;  %v15138_v48 = vpop.f32.mrb[31].mxu1  ;;  %v15142_v38 = vpack.c.bf16 %v2048_v33, %v2041_v7  ;;  %v2014_v57 = vsel %vm1985_vm3, %v2012_v36, %v2013_v26  ;;  %v877_v33 = vmul.f32 %v14929_v22, %v14790_v13  ;;  %v2028_v36 = vrot.slane %v14975_v19, 1 }
 0x18a   : > { %20220 = vst [vmem:[#allocation74_spill] sm:$0xff] %v15151_v63  ;;  %v15157_v1 = vpack.c.bf16 %v2020_v25, %v2014_v57  ;;  %20222 = vst [vmem:[#allocation76_spill] sm:$0xff] %v15166_v60  ;;  %v945_v26 = vmax.f32 %v913_v62, 0.0  ;;  %v15178_v44 = vrot.slane %v14908_v49, 7  ;;  %v1466_v53 = vrot.slane %v14920_v8, 7 }
 0x18b   : > { %20219 = vst [vmem:[#allocation73_spill] sm:$0xff] %v15142_v38  ;;  %2603 = vmatprep.mubr.bf16.mxu0 %v15142_v38  ;;  %v916_v57 = vadd.f32 %v14809_v28, %v877_v33  ;;  %v2029_v22 = vsel %vm1985_vm3, %v2027_v18, %v2028_v36  ;;  %v2035_v51 = vsel %vm1985_vm3, %v2028_v36, %v2034_v45  ;;  %v14020_v18 = vld [vmem:[#allocation4 + $0x1d8] sm:$0xff]   ;;  %v1464_v49 = vrot.slane %v14913_v61, 7  ;;  %v15195_v8 = vpop.f32.mrb[28].mxu0 }
 0x18c   : > { %20221 = vst [vmem:[#allocation75_spill] sm:$0xff] %v15157_v1  ;;  %2604 = vmatmul.mubr.bf16.gmra.mrb[48].mxu0 %v15151_v63  ;;  %12688 = vmatprep.mubr.msk.bf16.mxu1 %vm1083_vm0, %v15157_v1  ;;  %20223 = vst [vmem:[#allocation77_spill] sm:$0xff] %v15178_v44  ;;  %v15181_v7 = vpack.c.bf16 %v2035_v51, %v2029_v22  ;;  %v15187_v25 = vpack.c.bf16 %v14804_v24, %v14798_v20  ;;  %v15197_v22 = vrot.slane %v947_v9, 7  ;;  %v15205_v33 = vpop.f32.mrb[29].mxu0  ;;  %v20237_v1 = vld [vmem:[#allocation47_spill] sm:$0xff]  ;;  %v20247_v24 = vld [vmem:[#allocation50_spill] sm:$0xff] }
 0x18d   : > { %20226 = vst [vmem:[#allocation80_spill] sm:$0xff] %v15195_v8  ;;  %v15199_v51 = vrot.slane %v945_v26, 7  ;;  %v948_v27 = vmax.f32 %v916_v57, 0.0  ;;  %v946_v20 = vmax.f32 %v914_v0, 0.0  ;;  %11436 = vmatprep.subr.bf16.mxu0 %v14020_v18  ;;  %v15210_v36 = vsel %vm1422_vm2, 0.0, %v14927_v41  ;;  %v15220_v57 = vpop.f32.mrb[30].mxu0 }
 0x18e   : > { %v15175_v5 = vpop.f32.mrb[32].mxu1  ;;  %20224 = vst [vmem:[#allocation78_spill] sm:$0xff] %v15181_v7  ;;  %20225 = vst [vmem:[#allocation79_spill] sm:$0xff] %v15187_v25  ;;  %12689 = vmatmul.mubr.msk.bf16.gmra.mrb[68].mxu1 %vm1083_vm0, %v15181_v7  ;;  %v15214_v9 = vsel %vm1422_vm2, %v14941_v23, 0.0  ;;  %v15218_v26 = vsel %vm1422_vm2, 0.0, %v15166_v60  ;;  %v15224_v0 = vsel %vm1422_vm2, 0.0, %v15178_v44  ;;  %v880_v63 = vmul.f32 %v20237_v1, %v14790_v13 }
 0x18f   : > { %v15183_v62 = vpop.f32.mrb[33].mxu1  ;;  %20228 = vst [vmem:[#allocation82_spill] sm:$0xff] %v15210_v36  ;;  %20229 = vst [vmem:[#allocation83_spill] sm:$0xff] %v15214_v9  ;;  %v15227_v18 = vsel %vm1422_vm2, %v1466_v53, 0.0  ;;  %v15229_v61 = vrot.slane %v948_v27, 7  ;;  %v15231_v41 = vrot.slane %v946_v20, 7  ;;  %v15250_v27 = vsel %vm1422_vm2, %v15166_v60, %v1464_v49 }
 0x190   : > { %v15193_v35 = vpop.f32.mrb[34].mxu1  ;;  %20230 = vst [vmem:[#allocation84_spill] sm:$0xff] %v15218_v26  ;;  %20231 = vst [vmem:[#allocation85_spill] sm:$0xff] %v15220_v57  ;;  %v15233_v47 = vpop.f32.mrb[31].mxu0  ;;  %v15237_v23 = vsel %vm1422_vm2, 0.0, %v15042_v39  ;;  %v15244_v7 = vsel %vm1422_vm2, %v1464_v49, 0.0  ;;  %v15254_v20 = vsel %vm1422_vm2, %v15178_v44, %v1466_v53  ;;  %v881_v44 = vmul.f32 %v20247_v24, %v14790_v13 }
 0x191   : > { %v15203_v45 = vpop.f32.mrb[35].mxu1  ;;  %20232 = vst [vmem:[#allocation86_spill] sm:$0xff] %v15224_v0  ;;  %20233 = vst [vmem:[#allocation87_spill] sm:$0xff] %v15227_v18  ;;  %v15259_v39 = vsel %vm1422_vm2, %v15197_v22, %v15229_v61  ;;  %v15264_v21 = vsel %vm1422_vm2, %v15199_v51, %v15231_v41  ;;  %v2042_v1 = vrot.slane %v15210_v36, 1  ;;  %v2049_v38 = vrot.slane %v15214_v9, 1 }
 0x192   : > { %20227 = vst [vmem:[#allocation81_spill] sm:$0xff] %v15203_v45  ;;  %20234 = vst [vmem:[#allocation88_spill] sm:$0xff] %v15237_v23  ;;  %v2051_v49 = vrot.slane %v15218_v26, 1  ;;  %v2062_v19 = vrot.slane %v15227_v18, 1  ;;  %v2057_v57 = vrot.slane %v15237_v23, 1  ;;  %v2064_v8 = vrot.slane %v15241_v59, 1 }
 0x193   : > { %20236 = vst [vmem:[#allocation90_spill] sm:$0xff] %v15244_v7  ;;  %20238 = vst [vmem:[#allocation47_spill] sm:$0xff] %v15250_v27  ;;  %v2054_v50 = vrot.slane %v15224_v0, 1  ;;  %v2060_v32 = vrot.slane %v15244_v7, 1  ;;  %v919_v9 = vadd.f32 %v14809_v28, %v880_v63  ;;  %v2055_v36 = vrot.slane %v15254_v20, 1  ;;  %v20246_v59 = vld [vmem:[#allocation40_spill] sm:$0xff] }
 0x194   : > { %20239 = vst [vmem:[#allocation91_spill] sm:$0xff] %v15254_v20  ;;  %20240 = vst [vmem:[#allocation92_spill] sm:$0xff] %v15259_v39  ;;  %v2052_v55 = vrot.slane %v15250_v27, 1  ;;  %v2043_v60 = vrot.slane %v20246_v59, 1  ;;  %v2058_v25 = vrot.slane %v15110_v14, 1  ;;  %v2073_v7 = vrot.slane %v15079_v56, 1 }
 0x195   : > { %20241 = vst [vmem:[#allocation93_spill] sm:$0xff] %v15264_v21  ;;  %v951_v20 = vmax.f32 %v919_v9, 0.0  ;;  %v2056_v3 = vsel %vm1985_vm3, %v2054_v50, %v2055_v36  ;;  %v2063_v27 = vsel %vm1985_vm3, %v2055_v36, %v2062_v19  ;;  %v15415_v26 = vsel %vm1422_vm2, 0.0, %v15197_v22 }
 0x196   : > { %v15270_v53 = vpop.f32.mrb[36].mxu1  ;;  %v15299_v59 = vpack.c.bf16 %v2063_v27, %v2056_v3  ;;  %v2053_v24 = vsel %vm1985_vm3, %v2051_v49, %v2052_v55  ;;  %v2061_v14 = vsel %vm1985_vm3, %v2052_v55, %v2060_v32  ;;  %v2050_v9 = vsel %vm1985_vm3, %v2043_v60, %v2049_v38  ;;  %v20253_v32 = vld [vmem:[#allocation48_spill] sm:$0xff]  ;;  %v20255_v27 = vld [vmem:[#allocation45_spill] sm:$0xff]  ;;  %20269 = vst [vmem:[#allocation108_spill] sm:$0xff] %v15415_v26 }
 0x197   : > { %20242 = vst [vmem:[#allocation94_spill] sm:$0xff] %v15270_v53  ;;  %v15276_v37 = vpop.f32.mrb[37].mxu1  ;;  %v2044_v53 = vsel %vm1985_vm3, %v2042_v1, %v2043_v60  ;;  %v15305_v45 = vpack.c.bf16 %v2061_v14, %v2053_v24  ;;  %v2059_v50 = vsel %vm1985_vm3, %v2057_v57, %v2058_v25  ;;  %v2065_v36 = vsel %vm1985_vm3, %v2058_v25, %v2064_v8  ;;  %v20256_v57 = vld [vmem:[#allocation46_spill] sm:$0xff] }
 0x198   : > { %20243 = vst [vmem:[#allocation95_spill] sm:$0xff] %v15276_v37  ;;  %v15285_v23 = vpop.f32.mrb[38].mxu1  ;;  %v879_v37 = vmul.f32 %v14790_v13, %v15004_v2  ;;  %20249 = vst [vmem:[#allocation96_spill] sm:$0xff] %v15299_v59  ;;  %2611 = vmatprep.mubr.bf16.mxu0 %v15299_v59  ;;  %v15309_v19 = vpack.c.bf16 %v2050_v9, %v2044_v53  ;;  %v15316_v55 = vsel %vm1422_vm2, 0.0, %v15024_v42  ;;  %v1473_v1 = vrot.slane %v20256_v57, 7 }
 0x199   : > { %20245 = vst [vmem:[#allocation49_spill] sm:$0xff] %v15285_v23  ;;  %v15293_v63 = vpop.f32.mrb[39].mxu1  ;;  %v917_v23 = vadd.f32 %v14809_v28, %v878_v6  ;;  %20250 = vst [vmem:[#allocation97_spill] sm:$0xff] %v15305_v45  ;;  %v920_v6 = vadd.f32 %v14809_v28, %v881_v44  ;;  %2612 = vmatmul.mubr.bf16.gmra.mrb[52].mxu0 %v15305_v45  ;;  %v15320_v14 = vpack.c.bf16 %v2065_v36, %v2059_v50 }
 0x19a   : > { %20248 = vst [vmem:[#allocation50_spill] sm:$0xff] %v15293_v63  ;;  %20251 = vst [vmem:[#allocation98_spill] sm:$0xff] %v15309_v19  ;;  %v918_v38 = vadd.f32 %v14809_v28, %v879_v37  ;;  %v15326_v44 = vrot.slane %v20255_v27, 7  ;;  %v15329_v25 = vrot.slane %v951_v20, 7  ;;  %12692 = vmatprep.mubr.msk.bf16.mxu1 %vm1083_vm0, %v15309_v19  ;;  %v15338_v37 = vsel %vm1422_vm2, %v15035_v10, 0.0 }
 0x19b   : > { %v949_v63 = vmax.f32 %v917_v23, 0.0  ;;  %20252 = vst [vmem:[#allocation99_spill] sm:$0xff] %v15316_v55  ;;  %v1475_v23 = vrot.slane %v20253_v32, 7  ;;  %20254 = vst [vmem:[#allocation48_spill] sm:$0xff] %v15320_v14  ;;  %v952_v42 = vmax.f32 %v920_v6, 0.0  ;;  %12693 = vmatmul.mubr.msk.bf16.gmra.mrb[72].mxu1 %vm1083_vm0, %v15320_v14  ;;  %v20258_v6 = vld [vmem:[#allocation41_spill] sm:$0xff]  ;;  %v884_v59 = vmul.f32 %v15039_v4, %v14790_v13 }
 0x19c   : > { %20257 = vst [vmem:[#allocation45_spill] sm:$0xff] %v15338_v37  ;;  %v950_v3 = vmax.f32 %v918_v38, 0.0  ;;  %v15349_v50 = vrot.slane %v20258_v6, 7  ;;  %v2072_v10 = vrot.slane %v15316_v55, 1  ;;  %v2079_v57 = vrot.slane %v15338_v37, 1 }
 0x19d   : > { %v15340_v53 = vrot.slane %v949_v63, 7  ;;  %v15351_v36 = vrot.slane %v952_v42, 7  ;;  %v15358_v27 = vsel %vm1422_vm2, %v1475_v23, 0.0  ;;  %v15365_v24 = vsel %vm1422_vm2, 0.0, %v15326_v44 }
 0x19e   : > { %v15323_v60 = vpop.f32.mrb[40].mxu1  ;;  %20259 = vst [vmem:[#allocation46_spill] sm:$0xff] %v15349_v50  ;;  %20260 = vst [vmem:[#allocation41_spill] sm:$0xff] %v15358_v27  ;;  %v15360_v38 = vrot.slane %v950_v3, 7  ;;  %v15368_v42 = vsel %vm1422_vm2, %v1473_v1, 0.0  ;;  %v15378_v3 = vsel %vm1422_vm2, %v15349_v50, %v1473_v1  ;;  %v15382_v2 = vsel %vm1422_vm2, %v15326_v44, %v1475_v23 }
 0x19f   : > { %v15333_v8 = vpop.f32.mrb[41].mxu1  ;;  %20261 = vst [vmem:[#allocation100_spill] sm:$0xff] %v15365_v24  ;;  %20262 = vst [vmem:[#allocation101_spill] sm:$0xff] %v15368_v42  ;;  %v15373_v6 = vsel %vm1422_vm2, %v15329_v25, %v15351_v36  ;;  %v15393_v63 = vsel %vm1422_vm2, 0.0, %v15349_v50  ;;  %v2077_v1 = vrot.slane %v15358_v27, 1  ;;  %v15398_v19 = vsel %vm1422_vm2, 0.0, %v15199_v51 }
 0x1a0   : > { %v15344_v20 = vpop.f32.mrb[42].mxu1  ;;  %20263 = vst [vmem:[#allocation102_spill] sm:$0xff] %v15373_v6  ;;  %20264 = vst [vmem:[#allocation103_spill] sm:$0xff] %v15378_v3  ;;  %v15387_v9 = vsel %vm1422_vm2, %v15340_v53, %v15360_v38  ;;  %v2069_v23 = vrot.slane %v15365_v24, 1  ;;  %v2075_v45 = vrot.slane %v15368_v42, 1  ;;  %v2070_v14 = vrot.slane %v15382_v2, 1 }
 0x1a1   : > { %v15353_v32 = vpop.f32.mrb[43].mxu1  ;;  %20265 = vst [vmem:[#allocation104_spill] sm:$0xff] %v15382_v2  ;;  %20266 = vst [vmem:[#allocation105_spill] sm:$0xff] %v15387_v9  ;;  %v882_v37 = vmul.f32 %v14790_v13, %v15046_v16  ;;  %v2067_v55 = vrot.slane %v15378_v3, 1  ;;  %v2066_v18 = vrot.slane %v15393_v63, 1  ;;  %v923_v4 = vadd.f32 %v14809_v28, %v884_v59 }
 0x1a2   : > { %20267 = vst [vmem:[#allocation106_spill] sm:$0xff] %v15393_v63  ;;  %20268 = vst [vmem:[#allocation107_spill] sm:$0xff] %v15398_v19  ;;  %v885_v0 = vmul.f32 %v15063_v15, %v14790_v13  ;;  %v2087_v16 = vrot.slane %v15398_v19, 1  ;;  %v15426_v56 = vsel %vm1422_vm2, %v15231_v41, 0.0  ;;  %v2071_v46 = vsel %vm1985_vm3, %v2069_v23, %v2070_v14 }
 0x1a3   : > { %20270 = vst [vmem:[#allocation109_spill] sm:$0xff] %v15426_v56  ;;  %v2078_v22 = vsel %vm1985_vm3, %v2070_v14, %v2077_v1  ;;  %v955_v11 = vmax.f32 %v923_v4, 0.0  ;;  %v921_v59 = vadd.f32 %v14809_v28, %v882_v37  ;;  %v2068_v15 = vsel %vm1985_vm3, %v2066_v18, %v2067_v55 }
 0x1a4   : > { %v15432_v3 = vpack.c.bf16 %v2078_v22, %v2071_v46  ;;  %v2076_v50 = vsel %vm1985_vm3, %v2067_v55, %v2075_v45  ;;  %v2074_v19 = vsel %vm1985_vm3, %v2072_v10, %v2073_v7  ;;  %v2080_v41 = vsel %vm1985_vm3, %v2073_v7, %v2079_v57 }
 0x1a5   : > { %v924_v2 = vadd.f32 %v14809_v28, %v885_v0  ;;  %v2094_v23 = vrot.slane %v15426_v56, 1  ;;  %v15442_v14 = vrot.slane %v15028_v31, 7  ;;  %v15445_v46 = vpack.c.bf16 %v2076_v50, %v2068_v15 }
 0x1a6   : > { %v15404_v49 = vpop.f32.mrb[44].mxu1  ;;  %20271 = vst [vmem:[#allocation110_spill] sm:$0xff] %v15432_v3  ;;  %2619 = vmatprep.mubr.bf16.mxu0 %v15432_v3  ;;  %v15447_v37 = vpack.c.bf16 %v2080_v41, %v2074_v19  ;;  %v15449_v18 = vrot.slane %v955_v11, 7  ;;  %v2088_v55 = vrot.slane %v15264_v21, 1  ;;  %v883_v7 = vmul.f32 %v14790_v13, %v15083_v34 }
 0x1a7   : > { %v15411_v51 = vpop.f32.mrb[45].mxu1  ;;  %20272 = vst [vmem:[#allocation111_spill] sm:$0xff] %v15442_v14  ;;  %20273 = vst [vmem:[#allocation112_spill] sm:$0xff] %v15445_v46  ;;  %v956_v45 = vmax.f32 %v924_v2, 0.0  ;;  %v15457_v31 = vsel %vm1422_vm2, %v15229_v61, 0.0  ;;  %v1484_v10 = vrot.slane %v15044_v54, 7  ;;  %2620 = vmatmul.mubr.bf16.gmra.mrb[56].mxu0 %v15445_v46 }
 0x1a8   : > { %v15421_v30 = vpop.f32.mrb[46].mxu1  ;;  %20274 = vst [vmem:[#allocation113_spill] sm:$0xff] %v15447_v37  ;;  %20275 = vst [vmem:[#allocation114_spill] sm:$0xff] %v15457_v31  ;;  %v953_v50 = vmax.f32 %v921_v59, 0.0  ;;  %12696 = vmatprep.mubr.msk.bf16.mxu1 %vm1083_vm0, %v15447_v37  ;;  %v15468_v34 = vsel %vm1422_vm2, 0.0, %v15329_v25  ;;  %v2089_v61 = vsel %vm1985_vm3, %v2087_v16, %v2088_v55  ;;  %v15476_v54 = vrot.slane %v15018_v43, 7 }
 0x1a9   : > { %v15430_v40 = vpop.f32.mrb[47].mxu1  ;;  %20276 = vst [vmem:[#allocation115_spill] sm:$0xff] %v15468_v34  ;;  %v15470_v19 = vrot.slane %v956_v45, 7  ;;  %v1482_v1 = vrot.slane %v15037_v29, 7  ;;  %v2095_v4 = vsel %vm1985_vm3, %v2088_v55, %v2094_v23  ;;  %v922_v22 = vadd.f32 %v14809_v28, %v883_v7  ;;  %v20286_v7 = vld [vmem:[#allocation72_spill] sm:$0xff] }
 0x1aa   : > { %20277 = vst [vmem:[#allocation116_spill] sm:$0xff] %v15476_v54  ;;  %v2109_v25 = vrot.slane %v15457_v31, 1  ;;  %v15487_v16 = vsel %vm1422_vm2, 0.0, %v15442_v14  ;;  %v15497_v41 = vsel %vm1422_vm2, %v1484_v10, 0.0  ;;  %v15499_v23 = vrot.slane %v953_v50, 7 }
 0x1ab   : > { %v15492_v43 = vsel %vm1422_vm2, %v15449_v18, %v15470_v19  ;;  %20279 = vst [vmem:[#allocation118_spill] sm:$0xff] %v15497_v41  ;;  %v15501_v45 = vpack.c.bf16 %v2095_v4, %v2089_v61  ;;  %v954_v55 = vmax.f32 %v922_v22, 0.0  ;;  %v15508_v0 = vsel %vm1422_vm2, %v15442_v14, %v1484_v10 }
 0x1ac   : > { %20278 = vst [vmem:[#allocation117_spill] sm:$0xff] %v15492_v43  ;;  %20281 = vst [vmem:[#allocation120_spill] sm:$0xff] %v15508_v0  ;;  %v15512_v37 = vsel %vm1422_vm2, 0.0, %v15340_v53  ;;  %v15516_v50 = vsel %vm1422_vm2, 0.0, %v15476_v54  ;;  %v15519_v61 = vsel %vm1422_vm2, %v1482_v1, 0.0  ;;  %v15527_v10 = vsel %vm1422_vm2, %v15360_v38, 0.0 }
 0x1ad   : > { %20280 = vst [vmem:[#allocation119_spill] sm:$0xff] %v15501_v45  ;;  %20282 = vst [vmem:[#allocation121_spill] sm:$0xff] %v15512_v37  ;;  %12697 = vmatmul.mubr.msk.bf16.gmra.mrb[76].mxu1 %vm1083_vm0, %v15501_v45  ;;  %v15523_v4 = vrot.slane %v954_v55, 7  ;;  %v2084_v22 = vrot.slane %v15487_v16, 1  ;;  %v2092_v53 = vrot.slane %v15497_v41, 1  ;;  %v888_v2 = vmul.f32 %v20286_v7, %v14790_v13 }
 0x1ae   : > { %v15463_v11 = vpop.f32.mrb[48].mxu1  ;;  %20283 = vst [vmem:[#allocation122_spill] sm:$0xff] %v15516_v50  ;;  %20284 = vst [vmem:[#allocation123_spill] sm:$0xff] %v15519_v61  ;;  %v15535_v15 = vsel %vm1422_vm2, %v15476_v54, %v1482_v1  ;;  %v2085_v45 = vrot.slane %v15508_v0, 1  ;;  %v886_v38 = vmul.f32 %v14790_v13, %v15140_v52  ;;  %v2117_v3 = vrot.slane %v15512_v37, 1 }
 0x1af   : > { %v15473_v57 = vpop.f32.mrb[49].mxu1  ;;  %20285 = vst [vmem:[#allocation124_spill] sm:$0xff] %v15527_v10  ;;  %20287 = vst [vmem:[#allocation72_spill] sm:$0xff] %v15535_v15  ;;  %v15540_v55 = vsel %vm1422_vm2, %v15499_v23, %v15523_v4  ;;  %v2081_v7 = vrot.slane %v15516_v50, 1  ;;  %v2090_v1 = vrot.slane %v15519_v61, 1  ;;  %v15555_v21 = vsel %vm1422_vm2, %v15351_v36, 0.0 }
 0x1b0   : > { %v15481_v59 = vpop.f32.mrb[50].mxu1  ;;  %20288 = vst [vmem:[#allocation125_spill] sm:$0xff] %v15540_v55  ;;  %20289 = vst [vmem:[#allocation126_spill] sm:$0xff] %v15555_v21  ;;  %v2124_v54 = vrot.slane %v15527_v10, 1  ;;  %v927_v52 = vadd.f32 %v14809_v28, %v888_v2  ;;  %v2086_v42 = vsel %vm1985_vm3, %v2084_v22, %v2085_v45  ;;  %v2093_v37 = vsel %vm1985_vm3, %v2085_v45, %v2092_v53 }
 0x1b1   : > { %v15494_v29 = vpop.f32.mrb[51].mxu1  ;;  %v925_v31 = vadd.f32 %v14809_v28, %v886_v38  ;;  %v2082_v50 = vrot.slane %v15535_v15, 1  ;;  %v2103_v27 = vrot.slane %v15259_v39, 1  ;;  %v15568_v0 = vpack.c.bf16 %v2093_v37, %v2086_v42  ;;  %v20292_v15 = vld [vmem:[#allocation69_spill] sm:$0xff] }
 0x1b2   : > { %v959_v36 = vmax.f32 %v927_v52, 0.0  ;;  %v889_v2 = vmul.f32 %v15147_v58, %v14790_v13  ;;  %v2118_v22 = vrot.slane %v15387_v9, 1  ;;  %v20291_v38 = vrot.slane %v15415_v26, 1 }
 0x1b3   : > { %20290 = vst [vmem:[#allocation127_spill] sm:$0xff] %v15568_v0  ;;  %v2083_v45 = vsel %vm1985_vm3, %v2081_v7, %v2082_v50  ;;  %v2091_v53 = vsel %vm1985_vm3, %v2082_v50, %v2090_v1  ;;  %v15580_v14 = vrot.slane %v20292_v15, 7  ;;  %2627 = vmatprep.mubr.bf16.mxu0 %v15568_v0  ;;  %v2110_v13 = vsel %vm1985_vm3, %v2103_v27, %v2109_v25 }
 0x1b4   : > { %v2104_v39 = vsel %vm1985_vm3, %v20291_v38, %v2103_v27  ;;  %v15583_v42 = vpack.c.bf16 %v2091_v53, %v2083_v45  ;;  %v928_v58 = vadd.f32 %v14809_v28, %v889_v2  ;;  %v957_v37 = vmax.f32 %v925_v31, 0.0  ;;  %v15597_v45 = vld [vmem:[%s19657_s4] ss:$0 sm:$0xff] }
 0x1b5   : > { %20293 = vst [vmem:[#allocation69_spill] sm:$0xff] %v15580_v14  ;;  %v15587_v52 = vpack.c.bf16 %v2110_v13, %v2104_v39  ;;  %v2119_v50 = vsel %vm1985_vm3, %v2117_v3, %v2118_v22  ;;  %v2125_v7 = vsel %vm1985_vm3, %v2118_v22, %v2124_v54  ;;  %v1544_v1 = vrot.slane %v959_v36, 7  ;;  %20297 = vst [vmem:[#allocation131_spill] sm:$0xff] %v15597_v45  ;;  %v20299_v3 = vld [vmem:[#allocation70_spill] sm:$0xff]  ;;  %v20301_v54 = vld [vmem:[#allocation71_spill] sm:$0xff] }
 0x1b6   : > { %v15545_v46 = vpop.f32.mrb[52].mxu1  ;;  %20294 = vst [vmem:[#allocation128_spill] sm:$0xff] %v15583_v42  ;;  %2628 = vmatmul.mubr.bf16.gmra.mrb[60].mxu0 %v15583_v42  ;;  %v960_v15 = vmax.f32 %v928_v58, 0.0  ;;  %v15592_v38 = vpack.c.bf16 %v2125_v7, %v2119_v50  ;;  %v887_v28 = vmul.f32 %v15597_v45, %v15154_v17  ;;  %v15605_v27 = vsel %vm1422_vm2, 0.0, %v15449_v18 }
 0x1b7   : > { %v15551_v56 = vpop.f32.mrb[53].mxu1  ;;  %20295 = vst [vmem:[#allocation129_spill] sm:$0xff] %v15587_v52  ;;  %20298 = vst [vmem:[#allocation132_spill] sm:$0xff] %v15605_v27  ;;  %v15608_v31 = vrot.slane %v20299_v3, 7  ;;  %v1491_v25 = vrot.slane %v20301_v54, 7  ;;  %v1493_v36 = vrot.slane %v15138_v48, 7  ;;  %12700 = vmatprep.mubr.msk.bf16.mxu1 %vm1083_vm0, %v15587_v52 }
 0x1b8   : > { %v15560_v63 = vpop.f32.mrb[54].mxu1  ;;  %20296 = vst [vmem:[#allocation130_spill] sm:$0xff] %v15592_v38  ;;  %v15618_v17 = vsel %vm1422_vm2, 0.0, %v15499_v23  ;;  %v15622_v18 = vsel %vm1422_vm2, %v15470_v19, 0.0  ;;  %v1549_v22 = vrot.slane %v960_v15, 7  ;;  %12701 = vmatmul.mubr.msk.bf16.gmra.mrb[80].mxu1 %vm1083_vm0, %v15592_v38  ;;  %v2139_v23 = vrot.slane %v15555_v21, 1 }
 0x1b9   : > { %v15566_v24 = vpop.f32.mrb[55].mxu1  ;;  %20300 = vst [vmem:[#allocation70_spill] sm:$0xff] %v15608_v31  ;;  %20302 = vst [vmem:[#allocation71_spill] sm:$0xff] %v15618_v17  ;;  %v15629_v48 = vld [vmem:[%s19658_s5] ss:$0 sm:$0xff]  ;;  %v15639_v50 = vsel %vm1422_vm2, 0.0, %v15580_v14  ;;  %v15667_v38 = vsel %vm1422_vm2, %v15580_v14, %v1491_v25  ;;  %v15671_v0 = vsel %vm1422_vm2, %v15608_v31, %v1493_v36 }
 0x1ba   : > { %20303 = vst [vmem:[#allocation133_spill] sm:$0xff] %v15622_v18  ;;  %20304 = vst [vmem:[#allocation134_spill] sm:$0xff] %v15629_v48  ;;  %v926_v53 = vadd.f32 %v15629_v48, %v887_v28  ;;  %v1535_v3 = vrot.slane %v957_v37, 7  ;;  %v15645_v54 = vsel %vm1422_vm2, %v1544_v1, %v1549_v22  ;;  %v2147_v10 = vrot.slane %v15618_v17, 1 }
 0x1bb   : > { %20305 = vst [vmem:[#allocation135_spill] sm:$0xff] %v15639_v50  ;;  %20306 = vst [vmem:[#allocation136_spill] sm:$0xff] %v15645_v54  ;;  %v15651_v58 = vsel %vm1422_vm2, 0.0, %v15608_v31  ;;  %v15654_v19 = vsel %vm1422_vm2, %v1493_v36, 0.0  ;;  %v15658_v52 = vsel %vm1422_vm2, %v15523_v4, 0.0  ;;  %v2096_v37 = vrot.slane %v15639_v50, 1 }
 0x1bc   : > { %v958_v28 = vmax.f32 %v926_v53, 0.0  ;;  %20307 = vst [vmem:[#allocation137_spill] sm:$0xff] %v15651_v58  ;;  %20308 = vst [vmem:[#allocation138_spill] sm:$0xff] %v15658_v52  ;;  %v15662_v15 = vsel %vm1422_vm2, %v1491_v25, 0.0  ;;  %v15674_v21 = vrot.slane %v15175_v5, 7  ;;  %v2099_v4 = vrot.slane %v15651_v58, 1 }
 0x1bd   : > { %20309 = vst [vmem:[#allocation139_spill] sm:$0xff] %v15662_v15  ;;  %20310 = vst [vmem:[#allocation140_spill] sm:$0xff] %v15667_v38  ;;  %v2107_v9 = vrot.slane %v15654_v19, 1  ;;  %v2154_v42 = vrot.slane %v15658_v52, 1  ;;  %v2105_v25 = vrot.slane %v15662_v15, 1  ;;  %v15686_v36 = vsel %vm1422_vm2, 0.0, %v1544_v1 }
 0x1be   : > { %v15601_v39 = vpop.f32.mrb[56].mxu1  ;;  %v1540_v53 = vrot.slane %v958_v28, 7  ;;  %20311 = vst [vmem:[#allocation141_spill] sm:$0xff] %v15671_v0  ;;  %20312 = vst [vmem:[#allocation142_spill] sm:$0xff] %v15674_v21  ;;  %v15689_v5 = vsel %vm1422_vm2, 0.0, %v1535_v3  ;;  %v2100_v14 = vrot.slane %v15671_v0, 1  ;;  %v890_v17 = vmul.f32 %v15597_v45, %v15205_v33 }
 0x1bf   : > { %v15614_v2 = vpop.f32.mrb[57].mxu1  ;;  %20314 = vst [vmem:[#allocation144_spill] sm:$0xff] %v15686_v36  ;;  %20315 = vst [vmem:[#allocation145_spill] sm:$0xff] %v15689_v5  ;;  %v2097_v31 = vrot.slane %v15667_v38, 1  ;;  %v15697_v52 = vsel %vm1422_vm2, 0.0, %v15674_v21  ;;  %v15700_v50 = vrot.slane %v15183_v62, 7  ;;  %v891_v33 = vmul.f32 %v15597_v45, %v15233_v47 }
 0x1c0   : > { %v15632_v13 = vpop.f32.mrb[58].mxu1  ;;  %v15680_v28 = vsel %vm1422_vm2, %v1535_v3, %v1540_v53  ;;  %20316 = vst [vmem:[#allocation146_spill] sm:$0xff] %v15697_v52  ;;  %v2133_v1 = vrot.slane %v15373_v6, 1  ;;  %v2148_v26 = vrot.slane %v15540_v55, 1  ;;  %v2101_v3 = vsel %vm1985_vm3, %v2099_v4, %v2100_v14 }
 0x1c1   : > { %v15641_v7 = vpop.f32.mrb[59].mxu1  ;;  %20313 = vst [vmem:[#allocation143_spill] sm:$0xff] %v15680_v28  ;;  %20317 = vst [vmem:[#allocation147_spill] sm:$0xff] %v15700_v50  ;;  %v2108_v15 = vsel %vm1985_vm3, %v2100_v14, %v2107_v9  ;;  %v929_v58 = vadd.f32 %v15629_v48, %v890_v17  ;;  %v2098_v61 = vsel %vm1985_vm3, %v2096_v37, %v2097_v31  ;;  %v20319_v0 = vrot.slane %v15468_v34, 1  ;;  %v20321_v14 = vld [vmem:[#allocation81_spill] sm:$0xff] }
 0x1c2   : > { %v15709_v38 = vpack.c.bf16 %v2108_v15, %v2101_v3  ;;  %v2106_v62 = vsel %vm1985_vm3, %v2097_v31, %v2105_v25  ;;  %v1500_v55 = vrot.slane %v15193_v35, 7  ;;  %v2140_v9 = vsel %vm1985_vm3, %v2133_v1, %v2139_v23  ;;  %v20332_v23 = vld [vmem:[#allocation95_spill] sm:$0xff] }
 0x1c3   : > { %v2134_v6 = vsel %vm1985_vm3, %v20319_v0, %v2133_v1  ;;  %v961_v4 = vmax.f32 %v929_v58, 0.0  ;;  %v15717_v41 = vpack.c.bf16 %v2106_v62, %v2098_v61  ;;  %v1502_v17 = vrot.slane %v20321_v14, 7  ;;  %v20325_v58 = vld [vmem:[#allocation94_spill] sm:$0xff]  ;;  %v20326_v1 = vld [vmem:[#allocation49_spill] sm:$0xff] }
 0x1c4   : > { %20318 = vst [vmem:[#allocation148_spill] sm:$0xff] %v15709_v38  ;;  %2635 = vmatprep.mubr.bf16.mxu0 %v15709_v38  ;;  %v15722_v47 = vpack.c.bf16 %v2140_v9, %v2134_v6  ;;  %v2149_v15 = vsel %vm1985_vm3, %v2147_v10, %v2148_v26  ;;  %v2155_v31 = vsel %vm1985_vm3, %v2148_v26, %v2154_v42  ;;  %v15728_v0 = vsel %vm1422_vm2, %v1549_v22, 0.0 }
 0x1c5   : > { %20320 = vst [vmem:[#allocation149_spill] sm:$0xff] %v15717_v41  ;;  %20323 = vst [vmem:[#allocation150_spill] sm:$0xff] %v15728_v0  ;;  %2636 = vmatmul.mubr.bf16.gmra.mrb[64].mxu0 %v15717_v41  ;;  %v15731_v35 = vpack.c.bf16 %v2155_v31, %v2149_v15  ;;  %v930_v61 = vadd.f32 %v15629_v48, %v891_v33  ;;  %v2177_v6 = vrot.slane %v15689_v5, 1  ;;  %v15738_v10 = vsel %vm1422_vm2, 0.0, %v15700_v50 }
 0x1c6   : > { %20322 = vst [vmem:[#allocation81_spill] sm:$0xff] %v15722_v47  ;;  %v1553_v26 = vrot.slane %v961_v4, 7  ;;  %12704 = vmatprep.mubr.msk.bf16.mxu1 %vm1083_vm0, %v15722_v47  ;;  %v2111_v42 = vrot.slane %v15697_v52, 1  ;;  %v15746_v25 = vrot.slane %v20325_v58, 7  ;;  %v1509_v3 = vrot.slane %v20326_v1, 7  ;;  %v20333_v47 = vld [vmem:[#allocation50_spill] sm:$0xff] }
 0x1c7   : > { %20324 = vst [vmem:[#allocation151_spill] sm:$0xff] %v15731_v35  ;;  %12705 = vmatmul.mubr.msk.bf16.gmra.mrb[84].mxu1 %vm1083_vm0, %v15731_v35  ;;  %v962_v22 = vmax.f32 %v930_v61, 0.0  ;;  %v15752_v4 = vsel %vm1422_vm2, %v1500_v55, 0.0  ;;  %v15755_v9 = vsel %vm1422_vm2, %v1502_v17, 0.0  ;;  %v15758_v14 = vsel %vm1422_vm2, %v1540_v53, 0.0 }
 0x1c8   : > { %20327 = vst [vmem:[#allocation94_spill] sm:$0xff] %v15752_v4  ;;  %20328 = vst [vmem:[#allocation49_spill] sm:$0xff] %v15758_v14  ;;  %v2114_v15 = vrot.slane %v15738_v10, 1  ;;  %v15764_v58 = vsel %vm1422_vm2, %v15674_v21, %v1500_v55  ;;  %v15768_v1 = vsel %vm1422_vm2, %v15700_v50, %v1502_v17  ;;  %v15771_v62 = vsel %vm1422_vm2, 0.0, %v1553_v26 }
 0x1c9   : > { %v1558_v61 = vrot.slane %v962_v22, 7  ;;  %20329 = vst [vmem:[#allocation152_spill] sm:$0xff] %v15771_v62  ;;  %v15775_v53 = vsel %vm1422_vm2, %v15746_v25, %v1509_v3  ;;  %v2120_v37 = vrot.slane %v15752_v4, 1  ;;  %v2122_v31 = vrot.slane %v15755_v9, 1 }
 0x1ca   : > { %v15784_v55 = vsel %vm1422_vm2, 0.0, %v15746_v25  ;;  %v2184_v17 = vrot.slane %v15758_v14, 1  ;;  %v15789_v35 = vrot.slane %v20332_v23, 7  ;;  %v1511_v41 = vrot.slane %v20333_v47, 7 }
 0x1cb   : > { %v15780_v22 = vsel %vm1422_vm2, %v1553_v26, %v1558_v61  ;;  %20331 = vst [vmem:[#allocation154_spill] sm:$0xff] %v15784_v55  ;;  %v2207_v5 = vrot.slane %v15771_v62, 1  ;;  %v2115_v26 = vrot.slane %v15768_v1, 1  ;;  %v2112_v34 = vrot.slane %v15764_v58, 1 }
 0x1cc   : > { %20330 = vst [vmem:[#allocation153_spill] sm:$0xff] %v15780_v22  ;;  %v2126_v21 = vrot.slane %v15784_v55, 1  ;;  %v15799_v14 = vsel %vm1422_vm2, %v15789_v35, %v1511_v41  ;;  %v2163_v33 = vrot.slane %v15492_v43, 1  ;;  %v2178_v23 = vrot.slane %v15680_v28, 1 }
 0x1cd   : > { %v15804_v47 = vsel %vm1422_vm2, %v1509_v3, 0.0  ;;  %v15807_v38 = vsel %vm1422_vm2, %v1511_v41, 0.0  ;;  %v2116_v62 = vsel %vm1985_vm3, %v2114_v15, %v2115_v26  ;;  %v2123_v50 = vsel %vm1985_vm3, %v2115_v26, %v2122_v31 }
 0x1ce   : > { %20334 = vst [vmem:[#allocation95_spill] sm:$0xff] %v15804_v47  ;;  %20335 = vst [vmem:[#allocation50_spill] sm:$0xff] %v15807_v38  ;;  %v15811_v48 = vpack.c.bf16 %v2123_v50, %v2116_v62  ;;  %v2113_v45 = vsel %vm1985_vm3, %v2111_v42, %v2112_v34  ;;  %v2121_v4 = vsel %vm1985_vm3, %v2112_v34, %v2120_v37  ;;  %v20337_v43 = vrot.slane %v15605_v27, 1 }
 0x1cf   : > { %v15818_v52 = vpack.c.bf16 %v2121_v4, %v2113_v45  ;;  %v20339_v3 = vrot.slane %v15622_v18, 1  ;;  %v2179_v15 = vsel %vm1985_vm3, %v2177_v6, %v2178_v23  ;;  %v2185_v31 = vsel %vm1985_vm3, %v2178_v23, %v2184_v17 }
 0x1d0   : > { %20336 = vst [vmem:[#allocation155_spill] sm:$0xff] %v15811_v48  ;;  %v2164_v28 = vsel %vm1985_vm3, %v20337_v43, %v2163_v33  ;;  %v15826_v50 = vsel %vm1422_vm2, %v1558_v61, 0.0  ;;  %v15830_v34 = vsel %vm1422_vm2, 0.0, %v15789_v35  ;;  %2643 = vmatprep.mubr.bf16.mxu0 %v15811_v48  ;;  %v15835_v45 = vpack.c.bf16 %v2185_v31, %v2179_v15 }
 0x1d1   : > { %20338 = vst [vmem:[#allocation156_spill] sm:$0xff] %v15818_v52  ;;  %v2170_v41 = vsel %vm1985_vm3, %v2163_v33, %v20339_v3  ;;  %20340 = vst [vmem:[#allocation157_spill] sm:$0xff] %v15826_v50  ;;  %2644 = vmatmul.mubr.bf16.gmra.mrb[68].mxu0 %v15818_v52  ;;  %v15839_v37 = vrot.slane %v15323_v60, 7  ;;  %v15842_v6 = vrot.slane %v15333_v8, 7  ;;  %v1518_v42 = vrot.slane %v15344_v20, 7 }
 0x1d2   : > { %20341 = vst [vmem:[#allocation158_spill] sm:$0xff] %v15830_v34  ;;  %v15833_v43 = vpack.c.bf16 %v2170_v41, %v2164_v28  ;;  %20343 = vst [vmem:[#allocation160_spill] sm:$0xff] %v15835_v45  ;;  %v1520_v33 = vrot.slane %v15353_v32, 7  ;;  %v2135_v62 = vrot.slane %v15804_v47, 1  ;;  %v2137_v4 = vrot.slane %v15807_v38, 1  ;;  %v15868_v41 = vpop.f32.mrb[32].mxu0 }
 0x1d3   : > { %v2130_v28 = vrot.slane %v15799_v14, 1  ;;  %v2127_v61 = vrot.slane %v15775_v53, 1  ;;  %v2129_v8 = vrot.slane %v15830_v34, 1  ;;  %v2193_v20 = vrot.slane %v15645_v54, 1  ;;  %v20414_v38 = vld [vmem:[#allocation91_spill] sm:$0xff] }
 0x1d4   : > { %20342 = vst [vmem:[#allocation159_spill] sm:$0xff] %v15833_v43  ;;  %12708 = vmatprep.mubr.msk.bf16.mxu1 %vm1083_vm0, %v15833_v43  ;;  %v2214_v32 = vrot.slane %v15826_v50, 1  ;;  %v15861_v26 = vsel %vm1422_vm2, %v15839_v37, %v1518_v42  ;;  %v15865_v23 = vsel %vm1422_vm2, %v15842_v6, %v1520_v33  ;;  %v2208_v3 = vrot.slane %v15780_v22, 1 }
 0x1d5   : > { %12709 = vmatmul.mubr.msk.bf16.gmra.mrb[88].mxu1 %vm1083_vm0, %v15835_v45  ;;  %v15873_v31 = vsel %vm1422_vm2, 0.0, %v15839_v37  ;;  %v15877_v60 = vsel %vm1422_vm2, 0.0, %v15842_v6  ;;  %v15880_v17 = vsel %vm1422_vm2, %v1520_v33, 0.0  ;;  %v2131_v45 = vsel %vm1985_vm3, %v2129_v8, %v2130_v28 }
 0x1d6   : > { %20344 = vst [vmem:[#allocation161_spill] sm:$0xff] %v15873_v31  ;;  %20345 = vst [vmem:[#allocation162_spill] sm:$0xff] %v15877_v60  ;;  %v2138_v43 = vsel %vm1985_vm3, %v2130_v28, %v2137_v4  ;;  %v2128_v52 = vsel %vm1985_vm3, %v2126_v21, %v2127_v61  ;;  %v2136_v48 = vsel %vm1985_vm3, %v2127_v61, %v2135_v62  ;;  %v20349_v18 = vrot.slane %v15686_v36, 1 }
 0x1d7   : > { %20346 = vst [vmem:[#allocation163_spill] sm:$0xff] %v15880_v17  ;;  %v15886_v15 = vpack.c.bf16 %v2138_v43, %v2131_v45  ;;  %v15888_v50 = vpack.c.bf16 %v2136_v48, %v2128_v52  ;;  %v20350_v54 = vrot.slane %v15728_v0, 1  ;;  %v15897_v8 = vsel %vm1422_vm2, %v1518_v42, 0.0 }
 0x1d8   : > { %v2194_v22 = vsel %vm1985_vm3, %v20349_v18, %v2193_v20  ;;  %20351 = vst [vmem:[#allocation166_spill] sm:$0xff] %v15897_v8  ;;  %v2209_v21 = vsel %vm1985_vm3, %v2207_v5, %v2208_v3  ;;  %v2215_v43 = vsel %vm1985_vm3, %v2208_v3, %v2214_v32  ;;  %v15907_v48 = vrot.slane %v15404_v49, 7  ;;  %v15920_v49 = vpop.f32.mrb[33].mxu0 }
 0x1d9   : > { %20347 = vst [vmem:[#allocation164_spill] sm:$0xff] %v15886_v15  ;;  %20348 = vst [vmem:[#allocation165_spill] sm:$0xff] %v15888_v50  ;;  %v2200_v33 = vsel %vm1985_vm3, %v2193_v20, %v20350_v54  ;;  %2651 = vmatprep.mubr.bf16.mxu0 %v15886_v15  ;;  %v15904_v52 = vpack.c.bf16 %v2215_v43, %v2209_v21  ;;  %v1527_v18 = vrot.slane %v15421_v30, 7  ;;  %v1529_v54 = vrot.slane %v15430_v40, 7  ;;  %v15935_v28 = vpop.f32.mrb[34].mxu0 }
 0x1da   : > { %v15899_v4 = vpack.c.bf16 %v2200_v33, %v2194_v22  ;;  %v2152_v45 = vrot.slane %v15880_v17, 1  ;;  %2652 = vmatmul.mubr.bf16.gmra.mrb[72].mxu0 %v15888_v50  ;;  %v15916_v5 = vrot.slane %v15411_v51, 7  ;;  %v2145_v22 = vrot.slane %v15865_v23, 1  ;;  %20356 = vst [vmem:[#allocation169_spill] sm:$0xff] %v15935_v28  ;;  %v15944_v33 = vpop.f32.mrb[35].mxu0 }
 0x1db   : > { %20353 = vst [vmem:[#allocation168_spill] sm:$0xff] %v15904_v52  ;;  %v2142_v42 = vrot.slane %v15861_v26, 1  ;;  %v2144_v30 = vrot.slane %v15877_v60, 1  ;;  %v2150_v40 = vrot.slane %v15897_v8, 1  ;;  %v15928_v62 = vsel %vm1422_vm2, %v15907_v48, %v1527_v18  ;;  %20357 = vst [vmem:[#allocation170_spill] sm:$0xff] %v15944_v33 }
 0x1dc   : > { %20352 = vst [vmem:[#allocation167_spill] sm:$0xff] %v15899_v4  ;;  %12712 = vmatprep.mubr.msk.bf16.mxu1 %vm1083_vm0, %v15899_v4  ;;  %v2141_v20 = vrot.slane %v15873_v31, 1  ;;  %v15942_v3 = vsel %vm1422_vm2, %v15916_v5, %v1529_v54  ;;  %v15955_v4 = vsel %vm1422_vm2, 0.0, %v15916_v5  ;;  %v15958_v32 = vsel %vm1422_vm2, %v1529_v54, 0.0  ;;  %v20366_v54 = vld [vmem:[#allocation9_spill] sm:$0xff] }
 0x1dd   : > { %12713 = vmatmul.mubr.msk.bf16.gmra.mrb[92].mxu1 %vm1083_vm0, %v15904_v52  ;;  %v15950_v52 = vsel %vm1422_vm2, 0.0, %v15907_v48  ;;  %v2146_v61 = vsel %vm1985_vm3, %v2144_v30, %v2145_v22  ;;  %20359 = vst [vmem:[#allocation172_spill] sm:$0xff] %v15955_v4  ;;  %20360 = vst [vmem:[#allocation173_spill] sm:$0xff] %v15958_v32  ;;  %v2153_v50 = vsel %vm1985_vm3, %v2145_v22, %v2152_v45  ;;  %v20361_v43 = vmov 0 }
 0x1de   : > { %20358 = vst [vmem:[#allocation171_spill] sm:$0xff] %v15950_v52  ;;  %v2143_v15 = vsel %vm1985_vm3, %v2141_v20, %v2142_v42  ;;  %v20362_v43 = vsel %vm15964_vm7, 4294967295, %v20361_v43  ;;  %v15969_v30 = vsel %vm1422_vm2, %v1527_v18, 0.0  ;;  %v15971_v21 = vpack.c.bf16 %v2153_v50, %v2146_v61 }
 0x1df   : > { %20363 = vst [vmem:[#allocation174_spill] sm:$0xff] %v20362_v43  ;;  %20364 = vst [vmem:[#allocation175_spill] sm:$0xff] %v15969_v30  ;;  %v2151_v0 = vsel %vm1985_vm3, %v2142_v42, %v2150_v40  ;;  %v15976_v36 = vpack.c.bf16 %v20366_v54, %v20366_v54  ;;  %v15981_v22 = vrot.slane %v15463_v11, 7  ;;  %v1536_v51 = vrot.slane %v15481_v59, 7 }
 0x1e0   : > { %20365 = vst [vmem:[#allocation176_spill] sm:$0xff] %v15971_v21  ;;  %v15978_v45 = vpack.c.bf16 %v2151_v0, %v2143_v15  ;;  %v1538_v20 = vrot.slane %v15494_v29, 7  ;;  %v2167_v18 = vrot.slane %v15958_v32, 1  ;;  %2659 = vmatprep.mubr.bf16.mxu0 %v15971_v21  ;;  %v15991_v50 = vrot.slane %v15473_v57, 7  ;;  %v20369_v21 = vld [vmem:[#allocation55_spill] sm:$0xff] }
 0x1e1   : > { %20367 = vst [vmem:[#allocation177_spill] sm:$0xff] %v15976_v36  ;;  %10118 = vmatprep.mubr.msk.bf16.mxu1 %vm15964_vm7, %v15976_v36  ;;  %v2160_v0 = vrot.slane %v15942_v3, 1  ;;  %v2157_v11 = vrot.slane %v15928_v62, 1  ;;  %v2159_v59 = vrot.slane %v15955_v4, 1  ;;  %v2165_v29 = vrot.slane %v15969_v30, 1 }
 0x1e2   : > { %20368 = vst [vmem:[#allocation178_spill] sm:$0xff] %v15978_v45  ;;  %2660 = vmatmul.mubr.bf16.gmra.mrb[76].mxu0 %v15978_v45  ;;  %v16001_v42 = vsel %vm1422_vm2, %v15981_v22, %v1536_v51  ;;  %v2156_v40 = vrot.slane %v15950_v52, 1  ;;  %v16011_v15 = vsel %vm1422_vm2, %v15991_v50, %v1538_v20  ;;  %v16018_v27 = vsel %vm1422_vm2, %v1536_v51, 0.0 }
 0x1e3   : > { %20370 = vst [vmem:[#allocation179_spill] sm:$0xff] %v16018_v27  ;;  %v16021_v57 = vsel %vm1422_vm2, %v1538_v20, 0.0  ;;  %v2161_v61 = vsel %vm1985_vm3, %v2159_v59, %v2160_v0  ;;  %v16028_v52 = vsel %vm1422_vm2, 0.0, %v15981_v22  ;;  %v2168_v45 = vsel %vm1985_vm3, %v2160_v0, %v2167_v18 }
 0x1e4   : > { %20371 = vst [vmem:[#allocation180_spill] sm:$0xff] %v16021_v57  ;;  %20372 = vst [vmem:[#allocation181_spill] sm:$0xff] %v16028_v52  ;;  %v16034_v51 = vsel %vm1422_vm2, 0.0, %v15991_v50  ;;  %v16036_v20 = vpack.c.bf16 %v2168_v45, %v2161_v61  ;;  %v2166_v59 = vsel %vm1985_vm3, %v2157_v11, %v2165_v29  ;;  %v2182_v30 = vrot.slane %v16021_v57, 1  ;;  %v20379_v61 = vld [vmem:[#allocation79_spill] sm:$0xff] }
 0x1e5   : > { %10122 = vmatmul.mubr.msk.bf16.vlgmr.msra.gmra.mrb[96].mxu1 %vm15964_vm7, %v15976_v36  ;;  %20373 = vst [vmem:[#allocation182_spill] sm:$0xff] %v16034_v51  ;;  %v2180_v36 = vrot.slane %v16018_v27, 1  ;;  %v1545_v18 = vrot.slane %v15560_v63, 7  ;;  %v16049_v0 = vrot.slane %v15551_v56, 7  ;;  %v1547_v45 = vrot.slane %v15566_v24, 7 }
 0x1e6   : > { %10126 = vmatprep.mubr.msk.bf16.mxu1 %vm15964_vm7, %v20369_v21  ;;  %12717 = vmatpush3.bf16.msra.mxu1 %v15278_v12  ;;  %v2158_v21 = vsel %vm1985_vm3, %v2156_v40, %v2157_v11  ;;  %20374 = vst [vmem:[#allocation183_spill] sm:$0xff] %v16036_v20  ;;  %v16040_v12 = vrot.slane %v15545_v46, 7  ;;  %v2175_v11 = vrot.slane %v16011_v15, 1  ;;  %v2172_v46 = vrot.slane %v16001_v42, 1 }
 0x1e7   : > { %v16044_v32 = vpack.c.bf16 %v2166_v59, %v2158_v21  ;;  %2667 = vmatprep.mubr.bf16.mxu0 %v16036_v20  ;;  %v2171_v29 = vrot.slane %v16028_v52, 1  ;;  %v2174_v21 = vrot.slane %v16034_v51, 1  ;;  %v16067_v59 = vsel %vm1422_vm2, %v16049_v0, %v1547_v45  ;;  %v20376_v20 = vld [vmem:[#allocation59_spill] sm:$0xff] }
 0x1e8   : > { %v16059_v63 = vsel %vm1422_vm2, %v16040_v12, %v1545_v18  ;;  %v16073_v40 = vsel %vm1422_vm2, %v1545_v18, 0.0  ;;  %v16076_v52 = vsel %vm1422_vm2, %v1547_v45, 0.0  ;;  %v2183_v24 = vsel %vm1985_vm3, %v2175_v11, %v2182_v30  ;;  %v20391_v51 = vld [vmem:[#allocation39_spill] sm:$0xff] }
 0x1e9   : > { %20375 = vst [vmem:[#allocation184_spill] sm:$0xff] %v16044_v32  ;;  %20377 = vst [vmem:[#allocation185_spill] sm:$0xff] %v16073_v40  ;;  %v2176_v56 = vsel %vm1985_vm3, %v2174_v21, %v2175_v11  ;;  %v2173_v18 = vsel %vm1985_vm3, %v2171_v29, %v2172_v46  ;;  %v16093_v45 = vsel %vm1422_vm2, 0.0, %v16049_v0  ;;  %v16098_v30 = vrot.slane %v15601_v39, 7 }
 0x1ea   : > { %2668 = vmatmul.mubr.bf16.gmra.mrb[80].mxu0 %v16044_v32  ;;  %20378 = vst [vmem:[#allocation186_spill] sm:$0xff] %v16076_v52  ;;  %v16085_v32 = vsel %vm1422_vm2, 0.0, %v16040_v12  ;;  %v16087_v27 = vpack.c.bf16 %v2183_v24, %v2176_v56  ;;  %20382 = vst [vmem:[#allocation189_spill] sm:$0xff] %v16093_v45  ;;  %v16101_v11 = vrot.slane %v15614_v2, 7  ;;  %v2197_v56 = vrot.slane %v16076_v52, 1 }
 0x1eb   : > { %20380 = vst [vmem:[#allocation187_spill] sm:$0xff] %v16085_v32  ;;  %20384 = vst [vmem:[#allocation191_spill] sm:$0xff] %v16098_v30  ;;  %v2190_v2 = vrot.slane %v16067_v59, 1  ;;  %v2187_v29 = vrot.slane %v16059_v63, 1  ;;  %v2186_v24 = vrot.slane %v16085_v32, 1 }
 0x1ec   : > { %20381 = vst [vmem:[#allocation188_spill] sm:$0xff] %v16087_v27  ;;  %2675 = vmatprep.mubr.bf16.mxu0 %v16087_v27  ;;  %v16114_v39 = vsel %vm1422_vm2, 0.0, %v16101_v11  ;;  %v20387_v27 = vld [vmem:[#allocation22_spill] sm:$0xff] }
 0x1ed   : > { %10130 = vmatmul.mubr.msk.bf16.gmra.mrb[100].mxu1 %vm15964_vm7, %v20376_v20  ;;  %v2181_v20 = vsel %vm1985_vm3, %v2172_v46, %v2180_v36  ;;  %v1554_v36 = vrot.slane %v15632_v13, 7  ;;  %v1556_v46 = vrot.slane %v15641_v7, 7  ;;  %20386 = vst [vmem:[#allocation193_spill] sm:$0xff] %v16114_v39  ;;  %v20388_v13 = vld [vmem:[#allocation25_spill] sm:$0xff]  ;;  %v20390_v7 = vld [vmem:[#allocation34_spill] sm:$0xff]  ;;  %v2198_v55 = vsel %vm1985_vm3, %v2190_v2, %v2197_v56 }
 0x1ee   : > { %10134 = vmatprep.mubr.msk.bf16.mxu1 %vm15964_vm7, %v20379_v61  ;;  %v16095_v21 = vpack.c.bf16 %v2181_v20, %v2173_v18  ;;  %v2195_v61 = vrot.slane %v16073_v40, 1  ;;  %v16110_v20 = vsel %vm1422_vm2, 0.0, %v16098_v30  ;;  %v2189_v18 = vrot.slane %v16093_v45, 1 }
 0x1ef   : > { %20385 = vst [vmem:[#allocation192_spill] sm:$0xff] %v16110_v20  ;;  %v16122_v57 = vpack.c.bf16 %v20388_v13, %v20387_v27  ;;  %v16126_v4 = vpack.c.bf16 %v20391_v51, %v20390_v7  ;;  %v16130_v8 = vsel %vm1422_vm2, %v16098_v30, %v1554_v36  ;;  %v16133_v31 = vsel %vm1422_vm2, %v1554_v36, 0.0 }
 0x1f0   : > { %20383 = vst [vmem:[#allocation190_spill] sm:$0xff] %v16095_v21  ;;  %20393 = vst [vmem:[#allocation34_spill] sm:$0xff] %v16130_v8  ;;  %v16137_v52 = vsel %vm1422_vm2, %v16101_v11, %v1556_v46  ;;  %v16140_v17 = vsel %vm1422_vm2, %v1556_v46, 0.0  ;;  %v2201_v27 = vrot.slane %v16110_v20, 1  ;;  %v2204_v7 = vrot.slane %v16114_v39, 1  ;;  %v20409_v20 = vld [vmem:[#allocation15_spill] sm:$0xff] }
 0x1f1   : > { %20389 = vst [vmem:[#allocation22_spill] sm:$0xff] %v16122_v57  ;;  %20392 = vst [vmem:[#allocation25_spill] sm:$0xff] %v16126_v4  ;;  %v2210_v60 = vrot.slane %v16133_v31, 1  ;;  %v2212_v47 = vrot.slane %v16140_v17, 1  ;;  %v2191_v36 = vsel %vm1985_vm3, %v2189_v18, %v2190_v2  ;;  %v2188_v46 = vsel %vm1985_vm3, %v2186_v24, %v2187_v29  ;;  %v20398_v2 = vld [vmem:[#allocation10_spill] sm:$0xff]  ;;  %v20400_v18 = vld [vmem:[#allocation43_spill] sm:$0xff] }
 0x1f2   : > { %20394 = vst [vmem:[#allocation39_spill] sm:$0xff] %v16133_v31  ;;  %20395 = vst [vmem:[#allocation194_spill] sm:$0xff] %v16140_v17  ;;  %2676 = vmatmul.mubr.bf16.gmra.mrb[84].mxu0 %v16095_v21  ;;  %v2196_v21 = vsel %vm1985_vm3, %v2187_v29, %v2195_v61  ;;  %v16157_v39 = vpack.c.bf16 %v2198_v55, %v2191_v36  ;;  %v2205_v17 = vrot.slane %v16137_v52, 1  ;;  %v3334_v24 = vrot.slane %v20398_v2, 2 }
 0x1f3   : > { %v16159_v31 = vpack.c.bf16 %v2196_v21, %v2188_v46  ;;  %v3335_v61 = vrot.slane %v20366_v54, 2  ;;  %v20404_v54 = vld [vmem:[#allocation54_spill] sm:$0xff]  ;;  %v20411_v46 = vld [vmem:[#allocation64_spill] sm:$0xff] }
 0x1f4   : > { %20396 = vst [vmem:[#allocation195_spill] sm:$0xff] %v16157_v39  ;;  %2683 = vmatprep.mubr.bf16.mxu0 %v16157_v39  ;;  %v2206_v29 = vsel %vm1985_vm3, %v2204_v7, %v2205_v17  ;;  %v2213_v55 = vsel %vm1985_vm3, %v2205_v17, %v2212_v47  ;;  %v20405_v39 = vld [vmem:[#allocation65_spill] sm:$0xff]  ;;  %v20407_v7 = vld [vmem:[#allocation11_spill] sm:$0xff] }
 0x1f5   : > { %10138 = vmatmul.mubr.msk.bf16.gmra.mrb[104].mxu1 %vm15964_vm7, %v16122_v57  ;;  %20397 = vst [vmem:[#allocation196_spill] sm:$0xff] %v16159_v31  ;;  %v2202_v57 = vrot.slane %v16130_v8, 1  ;;  %v16177_v56 = vpack.c.bf16 %v2213_v55, %v2206_v29  ;;  %v16183_v45 = vpack.c.bf16 %v20405_v39, %v20404_v54  ;;  %v3337_v47 = vrot.slane %v20407_v7, 2  ;;  %v20408_v17 = vld [vmem:[#allocation17_spill] sm:$0xff]  ;;  %v20417_v54 = vld [vmem:[#allocation76_spill] sm:$0xff]  ;;  %v20418_v7 = vld [vmem:[#allocation47_spill] sm:$0xff] }
 0x1f6   : > { %10142 = vmatprep.mubr.msk.bf16.mxu1 %vm15964_vm7, %v16126_v4  ;;  %v20399_v4 = vld [vmem:[#allocation35_spill] sm:$0xff]  ;;  %v3336_v55 = vsel %vm3333_vm4, %v3334_v24, %v3335_v61  ;;  %v16201_v34 = vpack.c.bf16 %v20418_v7, %v20417_v54  ;;  %v20427_v54 = vld [vmem:[#allocation16_spill] sm:$0xff] }
 0x1f7   : > { %v2203_v21 = vsel %vm1985_vm3, %v2201_v27, %v2202_v57  ;;  %v2211_v36 = vsel %vm1985_vm3, %v2202_v57, %v2210_v60  ;;  %v16175_v32 = vpack.c.bf16 %v20400_v18, %v20399_v4  ;;  %20402 = vst [vmem:[#allocation43_spill] sm:$0xff] %v16177_v56  ;;  %20406 = vst [vmem:[#allocation54_spill] sm:$0xff] %v16183_v45  ;;  %v3343_v27 = vrot.slane %v20408_v17, 2  ;;  %v20410_v57 = vld [vmem:[#allocation53_spill] sm:$0xff]  ;;  %v20420_v17 = vld [vmem:[#allocation14_spill] sm:$0xff] }
 0x1f8   : > { %v16179_v2 = vpack.c.bf16 %v2211_v36, %v2203_v21  ;;  %v3340_v60 = vrot.slane %v20409_v20, 2  ;;  %v16190_v40 = vpack.c.bf16 %v20411_v46, %v20410_v57  ;;  %v20413_v4 = vld [vmem:[#allocation77_spill] sm:$0xff]  ;;  %20419 = vst [vmem:[#allocation17_spill] sm:$0xff] %v16201_v34  ;;  %v20421_v20 = vrot.slane %v20420_v17, 2  ;;  %v20422_v57 = vld [vmem:[#allocation18_spill] sm:$0xff] }
 0x1f9   : > { %20401 = vst [vmem:[#allocation35_spill] sm:$0xff] %v16175_v32  ;;  %v16194_v29 = vpack.c.bf16 %v20414_v38, %v20413_v4  ;;  %v20416_v21 = vld [vmem:[#allocation21_spill] sm:$0xff]  ;;  %v20423_v28 = vrot.slane %v20422_v57, 2  ;;  %v20428_v17 = vrot.slane %v20427_v54, 2 }
 0x1fa   : > { %20403 = vst [vmem:[#allocation197_spill] sm:$0xff] %v16179_v2  ;;  %20412 = vst [vmem:[#allocation65_spill] sm:$0xff] %v16190_v40  ;;  %v3358_v36 = vrot.slane %v20416_v21, 2  ;;  %2684 = vmatmul.mubr.bf16.gmra.mrb[88].mxu0 %v16159_v31  ;;  %v3344_v33 = vsel %vm3333_vm4, %v20421_v20, %v3343_v27  ;;  %v20424_v4 = vld [vmem:[#allocation13_spill] sm:$0xff]  ;;  %v20429_v31 = vld [vmem:[#allocation23_spill] sm:$0xff] }
 0x1fb   : > { %20415 = vst [vmem:[#allocation11_spill] sm:$0xff] %v16194_v29  ;;  %v3351_v8 = vsel %vm3333_vm4, %v3343_v27, %v20423_v28  ;;  %v20425_v30 = vrot.slane %v20424_v4, 2  ;;  %2691 = vmatprep.mubr.bf16.mxu0 %v16177_v56  ;;  %v3349_v20 = vsel %vm3333_vm4, %v3340_v60, %v20428_v17  ;;  %v20430_v57 = vrot.slane %v20429_v31, 2  ;;  %v20434_v31 = vld [vmem:[#allocation104_spill] sm:$0xff] }
 0x1fc   : > { %v16216_v21 = vpack.c.bf16 %v3351_v8, %v3344_v33  ;;  %v3355_v27 = vrot.slane %v20388_v13, 2  ;;  %v20432_v8 = vld [vmem:[#allocation27_spill] sm:$0xff]  ;;  %v16237_v17 = vpack.c.bf16 %v20434_v31, %v15326_v44  ;;  %v20437_v13 = vld [vmem:[#allocation24_spill] sm:$0xff] }
 0x1fd   : > { %v3341_v24 = vsel %vm3333_vm4, %v20425_v30, %v3340_v60  ;;  %10146 = vmatmul.mubr.msk.bf16.gmra.mrb[108].mxu1 %vm15964_vm7, %v16175_v32  ;;  %v3359_v28 = vsel %vm3333_vm4, %v20430_v57, %v3358_v36  ;;  %v3338_v30 = vsel %vm3333_vm4, %v3335_v61, %v3337_v47  ;;  %v20433_v33 = vrot.slane %v20432_v8, 2  ;;  %v20439_v32 = vld [vmem:[#allocation26_spill] sm:$0xff]  ;;  %v20444_v8 = vld [vmem:[#allocation36_spill] sm:$0xff] }
 0x1fe   : > { %20426 = vst [vmem:[#allocation15_spill] sm:$0xff] %v16216_v21  ;;  %10150 = vmatprep.mubr.msk.bf16.mxu1 %vm15964_vm7, %v16183_v45  ;;  %v16229_v4 = vpack.c.bf16 %v3349_v20, %v3341_v24  ;;  %v3373_v60 = vrot.slane %v20391_v51, 2  ;;  %20435 = vst [vmem:[#allocation64_spill] sm:$0xff] %v16237_v17  ;;  %v20438_v56 = vrot.slane %v20437_v13, 2  ;;  %v20440_v61 = vrot.slane %v20439_v32, 2  ;;  %v20442_v20 = vld [vmem:[#allocation38_spill] sm:$0xff] }
 0x1ff   : > { %v3366_v54 = vsel %vm3333_vm4, %v3358_v36, %v20433_v33  ;;  %v20443_v36 = vrot.slane %v20442_v20, 2  ;;  %v20445_v33 = vrot.slane %v20444_v8, 2  ;;  %v20447_v13 = vld [vmem:[#allocation46_spill] sm:$0xff]  ;;  %v20456_v8 = vld [vmem:[#allocation37_spill] sm:$0xff] }
 0x200   : > { %20431 = vst [vmem:[#allocation53_spill] sm:$0xff] %v16229_v4  ;;  %v16239_v57 = vpack.c.bf16 %v3366_v54, %v3359_v28  ;;  %v3356_v45 = vsel %vm3333_vm4, %v20438_v56, %v3355_v27  ;;  %v3364_v47 = vsel %vm3333_vm4, %v3355_v27, %v20440_v61  ;;  %v3370_v28 = vrot.slane %v20400_v18, 2  ;;  %v20448_v56 = vld [vmem:[#allocation103_spill] sm:$0xff]  ;;  %v20452_v61 = vld [vmem:[#allocation120_spill] sm:$0xff]  ;;  %v20454_v20 = vld [vmem:[#allocation42_spill] sm:$0xff] }
 0x201   : > { %v16247_v24 = vpack.c.bf16 %v3364_v47, %v3356_v45  ;;  %v3374_v51 = vsel %vm3333_vm4, %v20443_v36, %v3373_v60  ;;  %v3381_v44 = vsel %vm3333_vm4, %v3373_v60, %v20445_v33  ;;  %v16256_v54 = vpack.c.bf16 %v3338_v30, %v3336_v55  ;;  %v20451_v27 = vld [vmem:[#allocation111_spill] sm:$0xff] }
 0x202   : > { %20436 = vst [vmem:[#allocation77_spill] sm:$0xff] %v16239_v57  ;;  %v16260_v57 = vpack.c.bf16 %v20448_v56, %v20447_v13  ;;  %v16262_v32 = vpack.c.bf16 %v3381_v44, %v3374_v51  ;;  %v3388_v45 = vrot.slane %v20405_v39, 2  ;;  %v16267_v47 = vpack.c.bf16 %v20452_v61, %v20451_v27  ;;  %v20459_v51 = vld [vmem:[#allocation63_spill] sm:$0xff]  ;;  %v20461_v13 = vld [vmem:[#allocation58_spill] sm:$0xff]  ;;  %2692 = vmatmul.mubr.bf16.gmra.mrb[92].mxu0 %v16179_v2  ;;  %v20487_v2 = vld [vmem:[#allocation101_spill] sm:$0xff] }
 0x203   : > { %20441 = vst [vmem:[#allocation91_spill] sm:$0xff] %v16247_v24  ;;  %20446 = vst [vmem:[#allocation21_spill] sm:$0xff] %v16256_v54  ;;  %v20455_v36 = vrot.slane %v20454_v20, 2  ;;  %v20457_v18 = vrot.slane %v20456_v8, 2  ;;  %v3385_v30 = vrot.slane %v20411_v46, 2  ;;  %v20460_v44 = vrot.slane %v20459_v51, 2  ;;  %3919 = vmatprep.mubr.bf16.mxu0 %v16256_v54 }
 0x204   : > { %20449 = vst [vmem:[#allocation76_spill] sm:$0xff] %v16260_v57  ;;  %20450 = vst [vmem:[#allocation47_spill] sm:$0xff] %v16262_v32  ;;  %v20462_v32 = vrot.slane %v20461_v13, 2  ;;  %v3403_v20 = vrot.slane %v20414_v38, 2  ;;  %v20464_v8 = vld [vmem:[#allocation60_spill] sm:$0xff]  ;;  %v16296_v51 = vpack.c.bf16 %v15799_v14, %v15789_v35 }
 0x205   : > { %20453 = vst [vmem:[#allocation14_spill] sm:$0xff] %v16267_v47  ;;  %v3371_v60 = vsel %vm3333_vm4, %v20455_v36, %v3370_v28  ;;  %v3379_v55 = vsel %vm3333_vm4, %v3370_v28, %v20457_v18  ;;  %v3389_v39 = vsel %vm3333_vm4, %v20460_v44, %v3388_v45  ;;  %v20465_v28 = vrot.slane %v20464_v8, 2  ;;  %10154 = vmatmul.mubr.msk.bf16.gmra.mrb[112].mxu1 %vm15964_vm7, %v16190_v40 }
 0x206   : > { %v16276_v33 = vpack.c.bf16 %v3379_v55, %v3371_v60  ;;  %v3396_v27 = vsel %vm3333_vm4, %v3388_v45, %v20462_v32  ;;  %v20466_v60 = vld [vmem:[#allocation61_spill] sm:$0xff]  ;;  %v20469_v32 = vld [vmem:[#allocation86_spill] sm:$0xff]  ;;  %10158 = vmatprep.mubr.msk.bf16.mxu1 %vm15964_vm7, %v16194_v29  ;;  %v16318_v8 = vpack.c.bf16 %v15775_v53, %v15746_v25  ;;  %v16334_v25 = vpack.c.bf16 %v15861_v26, %v15839_v37 }
 0x207   : > { %v16286_v36 = vpack.c.bf16 %v3396_v27, %v3389_v39  ;;  %v3386_v46 = vsel %vm3333_vm4, %v20465_v28, %v3385_v30  ;;  %v20467_v18 = vrot.slane %v20466_v60, 2  ;;  %v20470_v45 = vrot.slane %v20469_v32, 2  ;;  %v20471_v39 = vld [vmem:[#allocation87_spill] sm:$0xff]  ;;  %v20474_v60 = vld [vmem:[#allocation84_spill] sm:$0xff] }
 0x208   : > { %20458 = vst [vmem:[#allocation18_spill] sm:$0xff] %v16276_v33  ;;  %v20472_v13 = vrot.slane %v20471_v39, 2  ;;  %v3400_v27 = vrot.slane %v20418_v7, 2  ;;  %v3418_v28 = vrot.slane %v20434_v31, 2  ;;  %20478 = vst [vmem:[#allocation27_spill] sm:$0xff] %v16334_v25  ;;  %v20480_v31 = vld [vmem:[#allocation100_spill] sm:$0xff] }
 0x209   : > { %20463 = vst [vmem:[#allocation13_spill] sm:$0xff] %v16286_v36  ;;  %v3394_v55 = vsel %vm3333_vm4, %v3385_v30, %v20467_v18  ;;  %v3404_v44 = vsel %vm3333_vm4, %v20470_v45, %v3403_v20  ;;  %v20476_v18 = vld [vmem:[#allocation90_spill] sm:$0xff]  ;;  %v3415_v45 = vrot.slane %v20448_v56, 2  ;;  %v20481_v39 = vrot.slane %v20480_v31, 2 }
 0x20a   : > { %v16302_v38 = vpack.c.bf16 %v3394_v55, %v3386_v46  ;;  %v3411_v30 = vsel %vm3333_vm4, %v3403_v20, %v20472_v13  ;;  %v16323_v46 = vpack.c.bf16 %v15865_v23, %v15842_v6  ;;  %v20475_v20 = vrot.slane %v20474_v60, 2  ;;  %v20482_v13 = vld [vmem:[#allocation41_spill] sm:$0xff]  ;;  %v20485_v56 = vld [vmem:[#allocation106_spill] sm:$0xff]  ;;  %3920 = vmatmul.mubr.bf16.vlgmr.msra.gmra.mrb[96].mxu0 %v16256_v54  ;;  %v20540_v54 = vld [vmem:[#allocation95_spill] sm:$0xff] }
 0x20b   : > { %v16314_v35 = vpack.c.bf16 %v3411_v30, %v3404_v44  ;;  %v20477_v55 = vrot.slane %v20476_v18, 2  ;;  %v3419_v6 = vsel %vm3333_vm4, %v20481_v39, %v3418_v28  ;;  %v20483_v30 = vrot.slane %v20482_v13, 2  ;;  %v14021_v18 = vld [vmem:[#allocation4 + $0x198] sm:$0xff]   ;;  %3927 = vmatprep.mubr.bf16.mxu0 %v16216_v21 }
 0x20c   : > { %20468 = vst [vmem:[#allocation16_spill] sm:$0xff] %v16302_v38  ;;  %v3401_v7 = vsel %vm3333_vm4, %v20475_v20, %v3400_v27  ;;  %v3433_v20 = vrot.slane %v20452_v61, 2  ;;  %v16355_v31 = vpack.c.bf16 %v15942_v3, %v15916_v5  ;;  %v20497_v5 = vld [vmem:[#allocation141_spill] sm:$0xff]  ;;  %11437 = vmatpush3.bf16.msra.mxu0 %v14021_v18  ;;  %v3463_v40 = vrot.slane %v15768_v1, 2 }
 0x20d   : > { %20473 = vst [vmem:[#allocation23_spill] sm:$0xff] %v16314_v35  ;;  %v3409_v32 = vsel %vm3333_vm4, %v3400_v27, %v20477_v55  ;;  %v3426_v60 = vsel %vm3333_vm4, %v3418_v28, %v20483_v30  ;;  %v20486_v55 = vrot.slane %v20485_v56, 2  ;;  %v20491_v28 = vrot.slane %v15487_v16, 2  ;;  %10162 = vmatmul.mubr.msk.bf16.gmra.mrb[116].mxu1 %vm15964_vm7, %v16201_v34 }
 0x20e   : > { %v16336_v44 = vpack.c.bf16 %v3409_v32, %v3401_v7  ;;  %v16345_v27 = vpack.c.bf16 %v3426_v60, %v3419_v6  ;;  %v20488_v7 = vrot.slane %v20487_v2, 2  ;;  %20489 = vst [vmem:[#allocation26_spill] sm:$0xff] %v16355_v31  ;;  %v20492_v6 = vld [vmem:[#allocation118_spill] sm:$0xff]  ;;  %v20494_v60 = vld [vmem:[#allocation72_spill] sm:$0xff]  ;;  %v16375_v16 = vpack.c.bf16 %v16011_v15, %v15991_v50  ;;  %10166 = vmatprep.mubr.msk.bf16.mxu1 %vm15964_vm7, %v16237_v17 }
 0x20f   : > { %v3416_v37 = vsel %vm3333_vm4, %v20486_v55, %v3415_v45  ;;  %v3434_v61 = vsel %vm3333_vm4, %v20491_v28, %v3433_v20  ;;  %v20493_v13 = vrot.slane %v20492_v6, 2  ;;  %v3430_v56 = vrot.slane %v20494_v60, 2  ;;  %v14023_v55 = vld [vmem:[#allocation4 + $0x1e0] sm:$0xff]   ;;  %v20501_v28 = vld [vmem:[#allocation123_spill] sm:$0xff] }
 0x210   : > { %20479 = vst [vmem:[#allocation104_spill] sm:$0xff] %v16336_v44  ;;  %20484 = vst [vmem:[#allocation24_spill] sm:$0xff] %v16345_v27  ;;  %v3424_v32 = vsel %vm3333_vm4, %v3415_v45, %v20488_v7  ;;  %v16370_v45 = vpack.c.bf16 %v15928_v62, %v15907_v48  ;;  %v20499_v7 = vld [vmem:[#allocation122_spill] sm:$0xff]  ;;  %v20502_v6 = vrot.slane %v20501_v28, 2  ;;  %v16387_v48 = vpack.c.bf16 %v16001_v42, %v15981_v22  ;;  %v14024_v50 = vld [vmem:[#allocation4 + $0x1a0] sm:$0xff]  }
 0x211   : > { %v16357_v39 = vpack.c.bf16 %v3424_v32, %v3416_v37  ;;  %v3441_v30 = vsel %vm3333_vm4, %v3433_v20, %v20493_v13  ;;  %v3448_v37 = vrot.slane %v20497_v5, 2  ;;  %20498 = vst [vmem:[#allocation103_spill] sm:$0xff] %v16375_v16  ;;  %v20500_v32 = vrot.slane %v20499_v7, 2  ;;  %v20503_v13 = vld [vmem:[#allocation140_spill] sm:$0xff]  ;;  %v20506_v7 = vld [vmem:[#allocation137_spill] sm:$0xff]  ;;  %11438 = vmatprep.subr.bf16.mxu0 %v14023_v55 }
 0x212   : > { %v16366_v2 = vpack.c.bf16 %v3441_v30, %v3434_v61  ;;  %20496 = vst [vmem:[#allocation46_spill] sm:$0xff] %v16370_v45  ;;  %v3439_v61 = vsel %vm3333_vm4, %v3430_v56, %v20502_v6  ;;  %v3445_v30 = vrot.slane %v20503_v13, 2  ;;  %20504 = vst [vmem:[#allocation111_spill] sm:$0xff] %v16387_v48  ;;  %v14025_v22 = vld [vmem:[#allocation4 + $0x1e8] sm:$0xff]   ;;  %v20516_v17 = vrot.slane %v15738_v10, 2  ;;  %11439 = vmatpush3.bf16.msra.mxu0 %v14024_v50 }
 0x213   : > { %20490 = vst [vmem:[#allocation38_spill] sm:$0xff] %v16357_v39  ;;  %v3431_v20 = vsel %vm3333_vm4, %v20500_v32, %v3430_v56  ;;  %v20507_v32 = vrot.slane %v20506_v7, 2  ;;  %v20508_v56 = vrot.slane %v15654_v19, 2  ;;  %11440 = vmatprep.subr.bf16.mxu0 %v14025_v22  ;;  %v3493_v50 = vrot.slane %v15865_v23, 2  ;;  %v20536_v22 = vld [vmem:[#allocation50_spill] sm:$0xff]  ;;  %3928 = vmatmul.mubr.bf16.gmra.mrb[100].mxu0 %v16229_v4  ;;  %v20559_v4 = vld [vmem:[#allocation172_spill] sm:$0xff] }
 0x214   : > { %20495 = vst [vmem:[#allocation36_spill] sm:$0xff] %v16366_v2  ;;  %v16392_v29 = vpack.c.bf16 %v3439_v61, %v3431_v20  ;;  %v20510_v20 = vld [vmem:[#allocation135_spill] sm:$0xff] }
 0x215   : > { %v3449_v28 = vsel %vm3333_vm4, %v20507_v32, %v3448_v37  ;;  %v3456_v6 = vsel %vm3333_vm4, %v3448_v37, %v20508_v56  ;;  %v20511_v61 = vrot.slane %v20510_v20, 2  ;;  %v20512_v32 = vld [vmem:[#allocation139_spill] sm:$0xff]  ;;  %v3460_v37 = vrot.slane %v15764_v58, 2  ;;  %v16414_v56 = vld [vmem:[#allocation4 + $0x190] sm:$0xff]   ;;  %10170 = vmatmul.mubr.msk.bf16.gmra.mrb[120].mxu1 %vm15964_vm7, %v16260_v57  ;;  %v20561_v57 = vld [vmem:[#allocation173_spill] sm:$0xff] }
 0x216   : > { %20505 = vst [vmem:[#allocation120_spill] sm:$0xff] %v16392_v29  ;;  %v16405_v18 = vpack.c.bf16 %v3456_v6, %v3449_v28  ;;  %v20513_v34 = vrot.slane %v20512_v32, 2  ;;  %20514 = vst [vmem:[#allocation37_spill] sm:$0xff] %v16414_v56  ;;  %v3464_v28 = vsel %vm3333_vm4, %v20516_v17, %v3463_v40  ;;  %v20517_v6 = vrot.slane %v15755_v9, 2  ;;  %12750 = vmatprep.subr.bf16.mxu1 %v16414_v56 }
 0x217   : > { %v3446_v7 = vsel %vm3333_vm4, %v20511_v61, %v3445_v30  ;;  %v16426_v61 = vpack.c.bf16 %v16067_v59, %v16049_v0  ;;  %v16438_v17 = vpack.c.bf16 %v16059_v63, %v16040_v12  ;;  %v3478_v0 = vrot.slane %v15799_v14, 2  ;;  %v20528_v12 = vld [vmem:[#allocation191_spill] sm:$0xff]  ;;  %v20532_v14 = vld [vmem:[#allocation170_spill] sm:$0xff]  ;;  %10174 = vmatprep.mubr.msk.bf16.mxu1 %vm15964_vm7, %v16267_v47 }
 0x218   : > { %20509 = vst [vmem:[#allocation42_spill] sm:$0xff] %v16405_v18  ;;  %v3454_v19 = vsel %vm3333_vm4, %v3445_v30, %v20513_v34  ;;  %v3471_v20 = vsel %vm3333_vm4, %v3463_v40, %v20517_v6  ;;  %v20520_v30 = vld [vmem:[#allocation146_spill] sm:$0xff]  ;;  %v16446_v40 = vpack.c.bf16 %v16137_v52, %v16101_v11  ;;  %v14026_v6 = vld [vmem:[#allocation4 + $0x1a8] sm:$0xff]   ;;  %v20541_v56 = vrot.slane %v20540_v54, 2 }
 0x219   : > { %v16416_v21 = vpack.c.bf16 %v3454_v19, %v3446_v7  ;;  %20518 = vst [vmem:[#allocation58_spill] sm:$0xff] %v16426_v61  ;;  %v16428_v34 = vpack.c.bf16 %v3471_v20, %v3464_v28  ;;  %v20521_v32 = vrot.slane %v20520_v30, 2  ;;  %v20522_v7 = vld [vmem:[#allocation94_spill] sm:$0xff]  ;;  %20524 = vst [vmem:[#allocation61_spill] sm:$0xff] %v16438_v17  ;;  %v3475_v28 = vrot.slane %v15775_v53, 2  ;;  %v20549_v54 = vld [vmem:[#allocation77_spill] sm:$0xff]  ;;  %11441 = vmatpush3.bf16.msra.mxu0 %v14026_v6 }
 0x21a   : > { %v20523_v19 = vrot.slane %v20522_v7, 2  ;;  %20526 = vst [vmem:[#allocation87_spill] sm:$0xff] %v16446_v40  ;;  %v20529_v20 = vld [vmem:[#allocation34_spill] sm:$0xff]  ;;  %3935 = vmatprep.mubr.bf16.mxu0 %v20549_v54  ;;  %v20560_v47 = vrot.slane %v20559_v4, 2 }
 0x21b   : > { %20515 = vst [vmem:[#allocation63_spill] sm:$0xff] %v16416_v21  ;;  %20519 = vst [vmem:[#allocation60_spill] sm:$0xff] %v16428_v34  ;;  %v3461_v55 = vsel %vm3333_vm4, %v20521_v32, %v3460_v37  ;;  %v16455_v30 = vpack.c.bf16 %v20529_v20, %v20528_v12  ;;  %v20531_v32 = vld [vmem:[#allocation169_spill] sm:$0xff]  ;;  %v14027_v11 = vld [vmem:[#allocation4 + $0x1f0] sm:$0xff]   ;;  %v3484_v23 = vsel %vm3333_vm4, %v3475_v28, %v20541_v56  ;;  %3936 = vmatmul.mubr.bf16.gmra.mrb[104].mxu0 %v16247_v24 }
 0x21c   : > { %v3469_v10 = vsel %vm3333_vm4, %v3460_v37, %v20523_v19  ;;  %v16451_v37 = vadd.f32 %v15920_v49, %v15868_v41  ;;  %v20534_v7 = vld [vmem:[#allocation158_spill] sm:$0xff]  ;;  %11442 = vmatprep.subr.bf16.mxu0 %v14027_v11 }
 0x21d   : > { %v16441_v9 = vpack.c.bf16 %v3469_v10, %v3461_v55  ;;  %20530 = vst [vmem:[#allocation90_spill] sm:$0xff] %v16455_v30  ;;  %v16460_v55 = vadd.f32 %v20532_v14, %v20531_v32  ;;  %v20535_v19 = vrot.slane %v20534_v7, 2  ;;  %v20537_v10 = vrot.slane %v20536_v22, 2  ;;  %v20538_v49 = vld [vmem:[#allocation154_spill] sm:$0xff] }
 0x21e   : > { %20527 = vst [vmem:[#allocation84_spill] sm:$0xff] %v16451_v37  ;;  %v20539_v37 = vrot.slane %v20538_v49, 2  ;;  %v20544_v7 = vld [vmem:[#allocation162_spill] sm:$0xff] }
 0x21f   : > { %20525 = vst [vmem:[#allocation86_spill] sm:$0xff] %v16441_v9  ;;  %20533 = vst [vmem:[#allocation100_spill] sm:$0xff] %v16460_v55  ;;  %v3479_v53 = vsel %vm3333_vm4, %v20535_v19, %v3478_v0  ;;  %v3486_v41 = vsel %vm3333_vm4, %v3478_v0, %v20537_v10  ;;  %v20545_v19 = vrot.slane %v20544_v7, 2  ;;  %v20546_v55 = vld [vmem:[#allocation163_spill] sm:$0xff]  ;;  %v20548_v49 = vld [vmem:[#allocation186_spill] sm:$0xff] }
 0x220   : > { %v3476_v12 = vsel %vm3333_vm4, %v20539_v37, %v3475_v28  ;;  %v16475_v32 = vpack.c.bf16 %v3486_v41, %v3479_v53  ;;  %v20547_v0 = vrot.slane %v20546_v55, 2  ;;  %v3545_v37 = vrot.slane %v20548_v49, 2  ;;  %v16494_v41 = vpop.f32.mrb[60].mxu1  ;;  %v14028_v7 = vld [vmem:[#allocation4 + $0x1b0] sm:$0xff]  }
 0x221   : > { %v16477_v14 = vpack.c.bf16 %v3484_v23, %v3476_v12  ;;  %v3494_v22 = vsel %vm3333_vm4, %v20545_v19, %v3493_v50  ;;  %v3490_v28 = vrot.slane %v15861_v26, 2  ;;  %v3508_v53 = vrot.slane %v15942_v3, 2  ;;  %20551 = vst [vmem:[#allocation118_spill] sm:$0xff] %v16494_v41  ;;  %v20552_v12 = vld [vmem:[#allocation192_spill] sm:$0xff]  ;;  %v20553_v23 = vld [vmem:[#allocation193_spill] sm:$0xff]  ;;  %v14029_v26 = vld [vmem:[#allocation4 + $0x1f8] sm:$0xff]   ;;  %11443 = vmatpush3.bf16.msra.mxu0 %v14028_v7 }
 0x222   : > { %20542 = vst [vmem:[#allocation41_spill] sm:$0xff] %v16475_v32  ;;  %v3501_v10 = vsel %vm3333_vm4, %v3493_v50, %v20547_v0  ;;  %v3549_v55 = vrot.slane %v20552_v12, 2  ;;  %v3552_v50 = vrot.slane %v20553_v23, 2  ;;  %v3505_v19 = vrot.slane %v15928_v62, 2  ;;  %v16503_v0 = vpop.f32.mrb[61].mxu1  ;;  %v20555_v3 = vld [vmem:[#allocation161_spill] sm:$0xff]  ;;  %11444 = vmatprep.subr.bf16.mxu0 %v14029_v26 }
 0x223   : > { %20543 = vst [vmem:[#allocation106_spill] sm:$0xff] %v16477_v14  ;;  %v16490_v56 = vpack.c.bf16 %v3501_v10, %v3494_v22  ;;  %v3523_v22 = vrot.slane %v16011_v15, 2  ;;  %20554 = vst [vmem:[#allocation72_spill] sm:$0xff] %v16503_v0  ;;  %v20556_v10 = vrot.slane %v20555_v3, 2  ;;  %v20557_v12 = vld [vmem:[#allocation166_spill] sm:$0xff]  ;;  %v3509_v6 = vsel %vm3333_vm4, %v20560_v47, %v3508_v53  ;;  %v16517_v41 = vpop.f32.mrb[62].mxu1 }
 0x224   : > { %v20558_v23 = vrot.slane %v20557_v12, 2  ;;  %v20562_v62 = vrot.slane %v20561_v57, 2  ;;  %20563 = vst [vmem:[#allocation141_spill] sm:$0xff] %v16517_v41  ;;  %v20566_v3 = vld [vmem:[#allocation171_spill] sm:$0xff]  ;;  %v3553_v7 = vrot.slane %v16137_v52, 2 }
 0x225   : > { %20550 = vst [vmem:[#allocation101_spill] sm:$0xff] %v16490_v56  ;;  %v3491_v49 = vsel %vm3333_vm4, %v20556_v10, %v3490_v28  ;;  %v20567_v10 = vrot.slane %v20566_v3, 2  ;;  %v20568_v56 = vld [vmem:[#allocation175_spill] sm:$0xff]  ;;  %v20576_v3 = vld [vmem:[#allocation194_spill] sm:$0xff] }
 0x226   : > { %v3499_v54 = vsel %vm3333_vm4, %v3490_v28, %v20558_v23  ;;  %v3516_v15 = vsel %vm3333_vm4, %v3508_v53, %v20562_v62  ;;  %v20569_v28 = vrot.slane %v20568_v56, 2  ;;  %v16529_v23 = vpop.f32.mrb[63].mxu1  ;;  %v20570_v47 = vld [vmem:[#allocation39_spill] sm:$0xff]  ;;  %v20572_v53 = vld [vmem:[#allocation182_spill] sm:$0xff] }
 0x227   : > { %v16519_v11 = vpack.c.bf16 %v3499_v54, %v3491_v49  ;;  %v16521_v0 = vpack.c.bf16 %v3516_v15, %v3509_v6  ;;  %v3506_v12 = vsel %vm3333_vm4, %v20567_v10, %v3505_v19  ;;  %v3558_v57 = vrot.slane %v20570_v47, 2  ;;  %v20574_v49 = vld [vmem:[#allocation180_spill] sm:$0xff]  ;;  %v14030_v56 = vld [vmem:[#allocation4 + $0x1b8] sm:$0xff]   ;;  %v20579_v47 = vld [vmem:[#allocation70_spill] sm:$0xff] }
 0x228   : > { %v3514_v4 = vsel %vm3333_vm4, %v3505_v19, %v20569_v28  ;;  %v20573_v62 = vrot.slane %v20572_v53, 2  ;;  %v20575_v6 = vrot.slane %v20574_v49, 2  ;;  %v3560_v10 = vrot.slane %v20576_v3, 2  ;;  %v20582_v49 = vld [vmem:[#allocation179_spill] sm:$0xff]  ;;  %11445 = vmatpush3.bf16.msra.mxu0 %v14030_v56 }
 0x229   : > { %20564 = vst [vmem:[#allocation122_spill] sm:$0xff] %v16519_v11  ;;  %20565 = vst [vmem:[#allocation123_spill] sm:$0xff] %v16521_v0  ;;  %v16532_v30 = vpack.c.bf16 %v3514_v4, %v3506_v12  ;;  %v3520_v19 = vrot.slane %v16001_v42, 2  ;;  %v3538_v28 = vrot.slane %v16067_v59, 2  ;;  %v20578_v12 = vld [vmem:[#allocation116_spill] sm:$0xff]  ;;  %v16551_v53 = vpack.c.bf16 %v20497_v5, %v20579_v47  ;;  %v20586_v52 = vld [vmem:[#allocation47_spill] sm:$0xff] }
 0x22a   : > { %v3524_v54 = vsel %vm3333_vm4, %v20573_v62, %v3523_v22  ;;  %v3531_v15 = vsel %vm3333_vm4, %v3523_v22, %v20575_v6  ;;  %v16547_v4 = vpack.c.bf16 %v20494_v60, %v20578_v12  ;;  %v14031_v22 = vld [vmem:[#allocation4 + $0x200] sm:$0xff]   ;;  %v3535_v62 = vrot.slane %v16059_v63, 2  ;;  %3943 = vmatprep.mubr.bf16.mxu0 %v20586_v52  ;;  %v20589_v47 = vld [vmem:[#allocation187_spill] sm:$0xff] }
 0x22b   : > { %20571 = vst [vmem:[#allocation140_spill] sm:$0xff] %v16532_v30  ;;  %v16541_v41 = vpack.c.bf16 %v3531_v15, %v3524_v54  ;;  %v20580_v54 = vld [vmem:[#allocation181_spill] sm:$0xff]  ;;  %v20583_v6 = vrot.slane %v20582_v49, 2  ;;  %v3546_v26 = vsel %vm3333_vm4, %v3538_v28, %v3545_v37  ;;  %v14032_v37 = vld [vmem:[#allocation4 + $0x1c0] sm:$0xff]   ;;  %11446 = vmatprep.subr.bf16.mxu0 %v14031_v22  ;;  %3944 = vmatmul.mubr.bf16.gmra.mrb[108].mxu0 %v16276_v33 }
 0x22c   : > { %v20581_v42 = vrot.slane %v20580_v54, 2  ;;  %v20584_v15 = vld [vmem:[#allocation189_spill] sm:$0xff]  ;;  %10178 = vmatmul.mubr.msk.bf16.gmra.mrb[124].mxu1 %vm15964_vm7, %v16547_v4  ;;  %v20590_v54 = vrot.slane %v20589_v47, 2  ;;  %v20596_v47 = vld [vmem:[#allocation131_spill] sm:$0xff]  ;;  %11447 = vmatpush3.bf16.msra.mxu0 %v14032_v37  ;;  %v20636_v33 = vld [vmem:[#allocation108_spill] sm:$0xff] }
 0x22d   : > { %20577 = vst [vmem:[#allocation137_spill] sm:$0xff] %v16541_v41  ;;  %v3529_v60 = vsel %vm3333_vm4, %v3520_v19, %v20583_v6  ;;  %v20585_v3 = vrot.slane %v20584_v15, 2  ;;  %10182 = vmatprep.mubr.msk.bf16.mxu1 %vm15964_vm7, %v16551_v53  ;;  %v14033_v15 = vld [vmem:[#allocation4 + $0x208] sm:$0xff]   ;;  %3951 = vmatprep.mubr.bf16.mxu0 %v16286_v36  ;;  %v20637_v52 = vld [vmem:[#allocation92_spill] sm:$0xff] }
 0x22e   : > { %v3521_v59 = vsel %vm3333_vm4, %v20581_v42, %v3520_v19  ;;  %v3536_v19 = vsel %vm3333_vm4, %v20590_v54, %v3535_v62  ;;  %v3550_v42 = vrot.slane %v20529_v20, 2  ;;  %v20597_v54 = vld [vmem:[#allocation85_spill] sm:$0xff]  ;;  %11448 = vmatprep.subr.bf16.mxu0 %v14033_v15  ;;  %v16769_v24 = vpack.c.bf16 %v20637_v52, %v20636_v33 }
 0x22f   : > { %v3539_v5 = vsel %vm3333_vm4, %v20585_v3, %v3538_v28  ;;  %v16570_v63 = vpack.c.bf16 %v3529_v60, %v3521_v59  ;;  %v20591_v28 = vld [vmem:[#allocation185_spill] sm:$0xff]  ;;  %v3554_v59 = vsel %vm3333_vm4, %v3552_v50, %v3553_v7  ;;  %v3561_v60 = vsel %vm3333_vm4, %v3553_v7, %v3560_v10  ;;  %v14035_v7 = vld [vmem:[#allocation4 + $0x210] sm:$0xff]  }
 0x230   : > { %v16572_v12 = vpack.c.bf16 %v3546_v26, %v3539_v5  ;;  %v20592_v49 = vrot.slane %v20591_v28, 2  ;;  %v16588_v5 = vpack.c.bf16 %v3561_v60, %v3554_v59  ;;  %v3551_v20 = vsel %vm3333_vm4, %v3549_v55, %v3550_v42  ;;  %v20595_v26 = vld [vmem:[#allocation80_spill] sm:$0xff]  ;;  %v14034_v50 = vld [vmem:[#allocation4 + $0x1c8] sm:$0xff]   ;;  %v20601_v59 = vld [vmem:[#allocation147_spill] sm:$0xff]  ;;  %20638 = vst [vmem:[#allocation173_spill] sm:$0xff] %v16769_v24 }
 0x231   : > { %20587 = vst [vmem:[#allocation135_spill] sm:$0xff] %v16570_v63  ;;  %v892_v56 = vmul.f32 %v20596_v47, %v20595_v26  ;;  %v893_v28 = vmul.f32 %v20596_v47, %v20597_v54  ;;  %v20599_v10 = vld [vmem:[#allocation69_spill] sm:$0xff]  ;;  %v16607_v60 = vpack.c.bf16 %v15768_v1, %v20601_v59  ;;  %11449 = vmatpush3.bf16.msra.mxu0 %v14034_v50  ;;  %v14037_v1 = vld [vmem:[#allocation4 + $0x260] sm:$0xff]   ;;  %v20602_v54 = vld [vmem:[#allocation142_spill] sm:$0xff] }
 0x232   : > { %20588 = vst [vmem:[#allocation139_spill] sm:$0xff] %v16572_v12  ;;  %v3544_v6 = vsel %vm3333_vm4, %v3535_v62, %v20592_v49  ;;  %20594 = vst [vmem:[#allocation94_spill] sm:$0xff] %v16588_v5  ;;  %v3559_v62 = vsel %vm3333_vm4, %v3550_v42, %v3558_v57  ;;  %v16600_v22 = vpack.c.bf16 %v20503_v13, %v20599_v10  ;;  %v11071_v13 = vpop.f32.mrb[36].mxu0  ;;  %v14036_v42 = vld [vmem:[#allocation4 + $0x1d0] sm:$0xff]   ;;  %11450 = vmatprep.subr.bf16.mxu0 %v14035_v7 }
 0x233   : > { %v16586_v3 = vpack.c.bf16 %v3544_v6, %v3536_v19  ;;  %v16596_v49 = vpack.c.bf16 %v3559_v62, %v3551_v20  ;;  %v20600_v19 = vld [vmem:[#allocation134_spill] sm:$0xff]  ;;  %v11072_v57 = vpop.f32.mrb[37].mxu0  ;;  %3952 = vmatmul.mubr.bf16.gmra.mrb[112].mxu0 %v16302_v38  ;;  %v20634_v38 = vld [vmem:[#allocation93_spill] sm:$0xff] }
 0x234   : > { %v931_v55 = vadd.f32 %v20600_v19, %v892_v56  ;;  %v932_v6 = vadd.f32 %v20600_v19, %v893_v28  ;;  %10186 = vmatmul.mubr.msk.bf16.gmra.mrb[128].mxu1 %vm15964_vm7, %v16600_v22  ;;  %v16616_v37 = vadd.f32 %v11072_v57, %v11071_v13  ;;  %v11074_v15 = vpop.f32.mrb[38].mxu0  ;;  %v16622_v28 = vpack.c.bf16 %v15764_v58, %v20602_v54 }
 0x235   : > { %20593 = vst [vmem:[#allocation146_spill] sm:$0xff] %v16586_v3  ;;  %20598 = vst [vmem:[#allocation191_spill] sm:$0xff] %v16596_v49  ;;  %10190 = vmatprep.mubr.msk.bf16.mxu1 %vm15964_vm7, %v16607_v60  ;;  %v11075_v47 = vpop.f32.mrb[39].mxu0  ;;  %11451 = vmatpush3.bf16.msra.mxu0 %v14036_v42 }
 0x236   : > { %v963_v20 = vmax.f32 %v931_v55, 0.0  ;;  %v964_v26 = vmax.f32 %v932_v6, 0.0  ;;  %v16618_v56 = vadd.f32 %v11075_v47, %v11074_v15  ;;  %11565 = vmatprep.subr.bf16.mxu0 %v14037_v1  ;;  %3959 = vmatprep.mubr.bf16.mxu0 %v16314_v35  ;;  %v20633_v35 = vld [vmem:[#allocation107_spill] sm:$0xff] }
 0x238   : > { %v1562_v62 = vrot.slane %v963_v20, 7  ;;  %v1567_v10 = vrot.slane %v964_v26, 7 }
 0x23a   : > { %v16633_v50 = vsel %vm1422_vm2, 0.0, %v1562_v62  ;;  %v1812_v58 = vsel %vm1422_vm2, %v1567_v10, 0.0  ;;  %v16638_v55 = vsel %vm1422_vm2, %v1562_v62, %v1567_v10 }
 0x23b   : > { %20603 = vst [vmem:[#allocation34_spill] sm:$0xff] %v16633_v50  ;;  %v4750_v7 = vrot.slane %v16633_v50, 1  ;;  %v4757_v19 = vrot.slane %v1812_v58, 1  ;;  %20604 = vst [vmem:[#allocation169_spill] sm:$0xff] %v16638_v55  ;;  %v5268_v6 = vrot.slane %v16633_v50, 2  ;;  %v5275_v59 = vrot.slane %v1812_v58, 2  ;;  %3960 = vmatmul.mubr.bf16.gmra.mrb[116].mxu0 %v16336_v44 }
 0x23c   : > { %10194 = vmatmul.mubr.msk.bf16.gmra.mrb[132].mxu1 %vm15964_vm7, %v16622_v28  ;;  %3967 = vmatprep.mubr.bf16.mxu0 %v16345_v27  ;;  %v4751_v13 = vrot.slane %v16638_v55, 1  ;;  %v5269_v57 = vrot.slane %v16638_v55, 2  ;;  %v11077_v54 = vpop.f32.mrb[40].mxu0  ;;  %v20643_v55 = vld [vmem:[#allocation72_spill] sm:$0xff]  ;;  %v1565_v50 = vrot.slane %v16529_v23, 7 }
 0x23d   : > { %10198 = vmatprep.mubr.msk.bf16.mxu1 %vm15964_vm7, %v16296_v51  ;;  %v11078_v62 = vpop.f32.mrb[41].mxu0 }
 0x23e   : > { %v4752_v42 = vsel %vm1985_vm3, %v4750_v7, %v4751_v13  ;;  %v4758_v15 = vsel %vm1985_vm3, %v4751_v13, %v4757_v19  ;;  %v5270_v20 = vsel %vm3333_vm4, %v5268_v6, %v5269_v57  ;;  %v5276_v26 = vsel %vm3333_vm4, %v5269_v57, %v5275_v59  ;;  %v11080_v58 = vpop.f32.mrb[42].mxu0 }
 0x23f   : > { %v16653_v1 = vpack.c.bf16 %v4758_v15, %v4752_v42  ;;  %v16657_v47 = vpack.c.bf16 %v5276_v26, %v5270_v20  ;;  %v16664_v10 = vadd.f32 %v11078_v62, %v11077_v54  ;;  %v11081_v7 = vpop.f32.mrb[43].mxu0 }
 0x240   : > { %v16669_v19 = vadd.f32 %v11081_v7, %v11080_v58  ;;  %v20607_v58 = vld [vmem:[#allocation10_spill] sm:$0xff]  ;;  %v20608_v7 = vld [vmem:[#allocation9_spill] sm:$0xff] }
 0x241   : > { %20605 = vst [vmem:[#allocation170_spill] sm:$0xff] %v16653_v1  ;;  %20606 = vst [vmem:[#allocation158_spill] sm:$0xff] %v16657_v47  ;;  %v20612_v47 = vld [vmem:[#allocation101_spill] sm:$0xff] }
 0x243   : > { %3968 = vmatmul.mubr.bf16.gmra.mrb[120].mxu0 %v16357_v39  ;;  %v20630_v39 = vld [vmem:[#allocation62_spill] sm:$0xff] }
 0x244   : > { %10202 = vmatmul.mubr.msk.bf16.gmra.mrb[136].mxu1 %vm15964_vm7, %v16318_v8  ;;  %3975 = vmatprep.mubr.bf16.mxu0 %v16366_v2 }
 0x245   : > { %10206 = vmatprep.mubr.msk.bf16.mxu1 %vm15964_vm7, %v16323_v46 }
 0x24b   : > { %3976 = vmatmul.mubr.bf16.gmra.mrb[124].mxu0 %v16392_v29 }
 0x24c   : > { %10210 = vmatmul.mubr.msk.bf16.gmra.mrb[140].mxu1 %vm15964_vm7, %v16334_v25  ;;  %3983 = vmatprep.mubr.bf16.mxu0 %v16405_v18  ;;  %v20623_v18 = vld [vmem:[#allocation40_spill] sm:$0xff] }
 0x24d   : > { %10214 = vmatprep.mubr.msk.bf16.mxu1 %vm15964_vm7, %v16355_v31  ;;  %v20662_v31 = vld [vmem:[#allocation59_spill] sm:$0xff] }
 0x250   : > { %v11083_v6 = vpop.f32.mrb[44].mxu0 }
 0x251   : > { %v11084_v59 = vpop.f32.mrb[45].mxu0 }
 0x252   : > { %v16679_v13 = vadd.f32 %v11084_v59, %v11083_v6  ;;  %v11086_v57 = vpop.f32.mrb[46].mxu0  ;;  %v16703_v6 = vpack.c.bf16 %v20608_v7, %v20607_v58  ;;  %v20614_v58 = vld [vmem:[#allocation28_spill] sm:$0xff] }
 0x253   : > { %3984 = vmatmul.mubr.bf16.gmra.mrb[128].mxu0 %v16416_v21  ;;  %v11087_v42 = vpop.f32.mrb[47].mxu0 }
 0x254   : > { %10218 = vmatmul.mubr.msk.bf16.gmra.mrb[144].mxu1 %vm15964_vm7, %v16370_v45  ;;  %3991 = vmatprep.mubr.bf16.mxu0 %v16428_v34  ;;  %v16686_v15 = vadd.f32 %v11087_v42, %v11086_v57  ;;  %20609 = vst [vmem:[#allocation50_spill] sm:$0xff] %v16703_v6  ;;  %v20611_v42 = vld [vmem:[#allocation90_spill] sm:$0xff] }
 0x255   : > { %10222 = vmatprep.mubr.msk.bf16.mxu1 %vm15964_vm7, %v16375_v16  ;;  %v20660_v16 = vld [vmem:[#allocation117_spill] sm:$0xff] }
 0x25b   : > { %3992 = vmatmul.mubr.bf16.gmra.mrb[132].mxu0 %v16441_v9  ;;  %v20620_v9 = vld [vmem:[#allocation44_spill] sm:$0xff] }
 0x25c   : > { %10226 = vmatmul.mubr.msk.bf16.gmra.mrb[148].mxu1 %vm15964_vm7, %v16387_v48  ;;  %3999 = vmatprep.mubr.bf16.mxu0 %v16475_v32  ;;  %v20619_v32 = vld [vmem:[#allocation66_spill] sm:$0xff] }
 0x25d   : > { %10230 = vmatprep.mubr.msk.bf16.mxu1 %vm15964_vm7, %v16426_v61  ;;  %v16732_v34 = vpack.c.bf16 %v20620_v9, %v20619_v32 }
 0x25f   : > { %v11089_v20 = vpop.f32.mrb[48].mxu0  ;;  %20621 = vst [vmem:[#allocation163_spill] sm:$0xff] %v16732_v34 }
 0x260   : > { %v11090_v26 = vpop.f32.mrb[49].mxu0 }
 0x261   : > { %v16699_v54 = vadd.f32 %v11090_v26, %v11089_v20  ;;  %v11092_v62 = vpop.f32.mrb[50].mxu0  ;;  %v16714_v20 = vld [vmem:[#allocation4 + $0x218] sm:$0xff]   ;;  %v20613_v26 = vld [vmem:[#allocation56_spill] sm:$0xff] }
 0x262   : > { %v11093_v59 = vpop.f32.mrb[51].mxu0  ;;  %v16719_v7 = vpack.c.bf16 %v20614_v58, %v20613_v26 }
 0x263   : > { %v16705_v57 = vadd.f32 %v11093_v59, %v11092_v62  ;;  %4000 = vmatmul.mubr.bf16.gmra.mrb[136].mxu0 %v16477_v14  ;;  %v20616_v62 = vld [vmem:[#allocation29_spill] sm:$0xff] }
 0x264   : > { %10234 = vmatmul.mubr.msk.bf16.gmra.mrb[152].mxu1 %vm15964_vm7, %v16438_v17  ;;  %4007 = vmatprep.mubr.bf16.mxu0 %v20612_v47  ;;  %20615 = vst [vmem:[#allocation95_spill] sm:$0xff] %v16719_v7  ;;  %v20617_v59 = vld [vmem:[#allocation37_spill] sm:$0xff]  ;;  %v20654_v17 = vld [vmem:[#allocation71_spill] sm:$0xff] }
 0x265   : > { %10238 = vmatprep.mubr.msk.bf16.mxu1 %vm15964_vm7, %v16446_v40  ;;  %20610 = vst [vmem:[#allocation154_spill] sm:$0xff] %v16705_v57  ;;  %v20651_v40 = vld [vmem:[#allocation55_spill] sm:$0xff]  ;;  %v14040_v57 = vld [vmem:[#allocation4 + $0x268] sm:$0xff]  }
 0x26b   : > { %4008 = vmatmul.mubr.bf16.gmra.mrb[140].mxu0 %v16519_v11 }
 0x26c   : > { %10242 = vmatmul.mubr.msk.bf16.gmra.mrb[156].mxu1 %vm15964_vm7, %v20611_v42  ;;  %4015 = vmatprep.mubr.bf16.mxu0 %v16521_v0  ;;  %v20622_v0 = vld [vmem:[#allocation82_spill] sm:$0xff] }
 0x26d   : > { %12718 = vmatprep.mubr.msk.bf16.mxu1 %vm1083_vm0, %v16703_v6  ;;  %v11095_v6 = vpop.f32.mrb[52].mxu0  ;;  %v16737_v29 = vpack.c.bf16 %v20623_v18, %v20622_v0 }
 0x26e   : > { %v11096_v47 = vpop.f32.mrb[53].mxu0 }
 0x26f   : > { %v16728_v14 = vadd.f32 %v11096_v47, %v11095_v6  ;;  %v11098_v11 = vpop.f32.mrb[54].mxu0  ;;  %20624 = vst [vmem:[#allocation186_spill] sm:$0xff] %v16737_v29  ;;  %v20626_v47 = vld [vmem:[#allocation88_spill] sm:$0xff] }
 0x270   : > { %v11099_v21 = vpop.f32.mrb[55].mxu0  ;;  %v20627_v6 = vld [vmem:[#allocation68_spill] sm:$0xff] }
 0x271   : > { %20618 = vst [vmem:[#allocation162_spill] sm:$0xff] %v16728_v14  ;;  %v16739_v2 = vadd.f32 %v11099_v21, %v11098_v11 }
 0x273   : > { %4016 = vmatmul.mubr.bf16.gmra.mrb[144].mxu0 %v16532_v30  ;;  %20625 = vst [vmem:[#allocation192_spill] sm:$0xff] %v16739_v2  ;;  %v20629_v30 = vld [vmem:[#allocation99_spill] sm:$0xff] }
 0x274   : > { %12719 = vmatmul.mubr.msk.bf16.vlgmr.msra.gmra.mrb[64].mxu1 %vm1083_vm0, %v20616_v62  ;;  %4023 = vmatprep.mubr.bf16.mxu0 %v16541_v41  ;;  %v16753_v27 = vpack.c.bf16 %v20630_v39, %v20629_v30 }
 0x275   : > { %12722 = vmatprep.mubr.msk.bf16.mxu1 %vm1083_vm0, %v16719_v7  ;;  %12751 = vmatpush3.bf16.msra.mxu1 %v20617_v59  ;;  %v16748_v59 = vpack.c.bf16 %v20627_v6, %v20626_v47  ;;  %v20659_v7 = vld [vmem:[#allocation132_spill] sm:$0xff] }
 0x276   : > { %12784 = vmatprep.subr.bf16.mxu1 %v16714_v20  ;;  %20631 = vst [vmem:[#allocation161_spill] sm:$0xff] %v16753_v27  ;;  %v16828_v45 = vpack.c.bf16 %v20660_v16, %v20659_v7 }
 0x277   : > { %20628 = vst [vmem:[#allocation193_spill] sm:$0xff] %v16748_v59 }
 0x278   : > { %20661 = vst [vmem:[#allocation189_spill] sm:$0xff] %v16828_v45 }
 0x27a   : > { %v11101_v21 = vpop.f32.mrb[56].mxu0 }
 0x27b   : > { %4024 = vmatmul.mubr.bf16.gmra.mrb[148].mxu0 %v16570_v63  ;;  %v11102_v11 = vpop.f32.mrb[57].mxu0  ;;  %v16764_v63 = vpack.c.bf16 %v20634_v38, %v20633_v35 }
 0x27c   : > { %12723 = vmatmul.mubr.msk.bf16.gmra.mrb[68].mxu1 %vm1083_vm0, %v16732_v34  ;;  %4031 = vmatprep.mubr.bf16.mxu0 %v16572_v12  ;;  %v16760_v41 = vadd.f32 %v11102_v11, %v11101_v21  ;;  %v11104_v44 = vpop.f32.mrb[58].mxu0  ;;  %v20640_v21 = vld [vmem:[#allocation121_spill] sm:$0xff] }
 0x27d   : > { %12726 = vmatprep.mubr.msk.bf16.mxu1 %vm1083_vm0, %v16737_v29  ;;  %20635 = vst [vmem:[#allocation172_spill] sm:$0xff] %v16764_v63  ;;  %v11105_v36 = vpop.f32.mrb[59].mxu0  ;;  %v20641_v11 = vld [vmem:[#allocation105_spill] sm:$0xff] }
 0x27e   : > { %20632 = vst [vmem:[#allocation166_spill] sm:$0xff] %v16760_v41  ;;  %v16771_v12 = vadd.f32 %v11105_v36, %v11104_v44  ;;  %v16780_v1 = vpack.c.bf16 %v20641_v11, %v20640_v21  ;;  %v20645_v36 = vld [vmem:[#allocation115_spill] sm:$0xff]  ;;  %v20646_v44 = vld [vmem:[#allocation102_spill] sm:$0xff] }
 0x27f   : > { %v16789_v42 = vpack.c.bf16 %v20646_v44, %v20645_v36 }
 0x280   : > { %20639 = vst [vmem:[#allocation171_spill] sm:$0xff] %v16771_v12  ;;  %20642 = vst [vmem:[#allocation175_spill] sm:$0xff] %v16780_v1 }
 0x281   : > { %20647 = vst [vmem:[#allocation182_spill] sm:$0xff] %v16789_v42 }
 0x283   : > { %4032 = vmatmul.mubr.bf16.gmra.mrb[152].mxu0 %v16586_v3  ;;  %v16783_v3 = vrot.slane %v20643_v55, 7  ;;  %v1811_v55 = vsel %vm1422_vm2, %v1565_v50, 0.0 }
 0x284   : > { %12727 = vmatmul.mubr.msk.bf16.gmra.mrb[72].mxu1 %vm1083_vm0, %v16748_v59  ;;  %4039 = vmatprep.mubr.bf16.mxu0 %v16588_v5  ;;  %v20655_v59 = vld [vmem:[#allocation125_spill] sm:$0xff]  ;;  %v4755_v34 = vrot.slane %v1811_v55, 1 }
 0x285   : > { %12730 = vmatprep.mubr.msk.bf16.mxu1 %vm1083_vm0, %v16753_v27  ;;  %20644 = vst [vmem:[#allocation39_spill] sm:$0xff] %v16783_v3  ;;  %v20650_v27 = vld [vmem:[#allocation141_spill] sm:$0xff]  ;;  %v1762_v23 = vsel %vm1422_vm2, 0.0, %v16783_v3  ;;  %v16822_v29 = vsel %vm1422_vm2, %v16783_v3, %v1565_v50 }
 0x286   : > { %20658 = vst [vmem:[#allocation179_spill] sm:$0xff] %v16822_v29  ;;  %v4747_v61 = vrot.slane %v1762_v23, 1  ;;  %v5265_v48 = vrot.slane %v1762_v23, 2  ;;  %v5266_v23 = vrot.slane %v16822_v29, 2 }
 0x28b   : > { %4040 = vmatmul.mubr.bf16.gmra.mrb[156].mxu0 %v16596_v49 }
 0x28c   : > { %12731 = vmatmul.mubr.msk.bf16.gmra.mrb[76].mxu1 %vm1083_vm0, %v16764_v63  ;;  %v20648_v63 = vld [vmem:[#allocation118_spill] sm:$0xff]  ;;  %10312 = vmatprep.mubr.msk.bf16.mxu0 %vm15964_vm7, %v20651_v40  ;;  %v16814_v40 = vpack.c.bf16 %v20655_v59, %v20654_v17 }
 0x28d   : > { %12734 = vmatprep.mubr.msk.bf16.mxu1 %vm1083_vm0, %v16769_v24  ;;  %v16792_v5 = vrot.slane %v20648_v63, 7  ;;  %v1563_v24 = vrot.slane %v20650_v27, 7  ;;  %v11107_v27 = vpop.f32.mrb[60].mxu0 }
 0x28e   : > { %20656 = vst [vmem:[#allocation70_spill] sm:$0xff] %v16814_v40  ;;  %v11108_v12 = vpop.f32.mrb[61].mxu0 }
 0x28f   : > { %20649 = vst [vmem:[#allocation180_spill] sm:$0xff] %v16792_v5  ;;  %v16807_v63 = vsel %vm1422_vm2, 0.0, %v16792_v5  ;;  %v16810_v49 = vsel %vm1422_vm2, %v1563_v24, 0.0  ;;  %v16824_v41 = vadd.f32 %v11108_v12, %v11107_v27  ;;  %v11110_v2 = vpop.f32.mrb[62].mxu0  ;;  %v4748_v12 = vrot.slane %v16822_v29, 1 }
 0x290   : > { %20652 = vst [vmem:[#allocation194_spill] sm:$0xff] %v16807_v63  ;;  %20653 = vst [vmem:[#allocation116_spill] sm:$0xff] %v16810_v49  ;;  %v5262_v14 = vrot.slane %v16807_v63, 2  ;;  %v11111_v62 = vpop.f32.mrb[63].mxu0  ;;  %v5267_v63 = vsel %vm3333_vm4, %v5265_v48, %v5266_v23  ;;  %v14044_v48 = vld [vmem:[#allocation4 + $0x278] sm:$0xff]  }
 0x291   : > { %v16835_v50 = vadd.f32 %v11111_v62, %v11110_v2  ;;  %v4749_v2 = vsel %vm1985_vm3, %v4747_v61, %v4748_v12  ;;  %v4756_v62 = vsel %vm1985_vm3, %v4748_v12, %v4755_v34  ;;  %v14043_v61 = vld [vmem:[#allocation4 + $0x230] sm:$0xff]   ;;  %v20668_v34 = vld [vmem:[#allocation143_spill] sm:$0xff] }
 0x293   : > { %10316 = vmatmul.mubr.msk.bf16.vlgmr.msra.gmra.mrb[160].mxu0 %vm15964_vm7, %v20662_v31  ;;  %v14042_v31 = vld [vmem:[#allocation4 + $0x270] sm:$0xff]  }
 0x294   : > { %12735 = vmatmul.mubr.msk.bf16.gmra.mrb[80].mxu1 %vm1083_vm0, %v16780_v1  ;;  %v14038_v1 = vld [vmem:[#allocation4 + $0x220] sm:$0xff]  }
 0x295   : > { %12738 = vmatprep.mubr.msk.bf16.mxu1 %vm1083_vm0, %v16789_v42  ;;  %v16818_v42 = vsel %vm1422_vm2, %v16792_v5, %v1563_v24  ;;  %v5271_v24 = vrot.slane %v16810_v49, 2  ;;  %v5273_v5 = vrot.slane %v1811_v55, 2  ;;  %11566 = vmatpush3.bf16.msra.mxu0 %v14038_v1  ;;  %v14041_v49 = vld [vmem:[#allocation4 + $0x228] sm:$0xff]   ;;  %v20663_v55 = vld [vmem:[#allocation79_spill] sm:$0xff]  ;;  %v16850_v1 = vpack.c.bf16 %v4756_v62, %v4749_v2  ;;  %v20675_v2 = vld [vmem:[#allocation152_spill] sm:$0xff] }
 0x296   : > { %20657 = vst [vmem:[#allocation181_spill] sm:$0xff] %v16818_v42  ;;  %v5263_v27 = vrot.slane %v16818_v42, 2  ;;  %10320 = vmatprep.mubr.msk.bf16.mxu0 %vm15964_vm7, %v20663_v55  ;;  %11567 = vmatprep.subr.bf16.mxu0 %v14040_v57  ;;  %v20670_v57 = vld [vmem:[#allocation22_spill] sm:$0xff]  ;;  %v20676_v62 = vld [vmem:[#allocation153_spill] sm:$0xff] }
 0x297   : > { %20664 = vst [vmem:[#allocation187_spill] sm:$0xff] %v16850_v1  ;;  %v20682_v1 = vld [vmem:[#allocation21_spill] sm:$0xff] }
 0x298   : > { %v5264_v42 = vsel %vm3333_vm4, %v5262_v14, %v5263_v27  ;;  %v5272_v29 = vsel %vm3333_vm4, %v5263_v27, %v5271_v24  ;;  %v20672_v14 = vld [vmem:[#allocation136_spill] sm:$0xff] }
 0x299   : > { %v16857_v3 = vpack.c.bf16 %v5272_v29, %v5264_v42  ;;  %11568 = vmatpush3.bf16.msra.mxu0 %v14041_v49  ;;  %v20674_v29 = vld [vmem:[#allocation25_spill] sm:$0xff]  ;;  %v14045_v49 = vld [vmem:[#allocation4 + $0x238] sm:$0xff]   ;;  %v14046_v42 = vld [vmem:[#allocation4 + $0x280] sm:$0xff]  }
 0x29a   : > { %11569 = vmatprep.subr.bf16.mxu0 %v14042_v31  ;;  %v14047_v31 = vld [vmem:[#allocation4 + $0x240] sm:$0xff]  }
 0x29b   : > { %20666 = vst [vmem:[#allocation80_spill] sm:$0xff] %v16857_v3  ;;  %10324 = vmatmul.mubr.msk.bf16.gmra.mrb[164].mxu0 %vm15964_vm7, %v20670_v57  ;;  %v16881_v3 = vpack.c.bf16 %v20676_v62, %v20675_v2  ;;  %v20678_v57 = vld [vmem:[#allocation35_spill] sm:$0xff] }
 0x29c   : > { %12739 = vmatmul.mubr.msk.bf16.gmra.mrb[84].mxu1 %vm1083_vm0, %v16814_v40  ;;  %v5274_v40 = vsel %vm3333_vm4, %v5266_v23, %v5273_v5  ;;  %v20671_v5 = vld [vmem:[#allocation144_spill] sm:$0xff]  ;;  %10328 = vmatprep.mubr.msk.bf16.mxu0 %vm15964_vm7, %v20674_v29  ;;  %v14049_v29 = vld [vmem:[#allocation4 + $0x288] sm:$0xff]  }
 0x29d   : > { %12742 = vmatprep.mubr.msk.bf16.mxu1 %vm1083_vm0, %v16828_v45  ;;  %v16855_v55 = vpack.c.bf16 %v5274_v40, %v5267_v63  ;;  %v20667_v45 = vld [vmem:[#allocation145_spill] sm:$0xff]  ;;  %v16868_v23 = vpack.c.bf16 %v20672_v14, %v20671_v5  ;;  %11570 = vmatpush3.bf16.msra.mxu0 %v14043_v61  ;;  %v11113_v63 = vpop.f32.mrb[64].mxu0  ;;  %20677 = vst [vmem:[#allocation69_spill] sm:$0xff] %v16881_v3 }
 0x29e   : > { %v16861_v12 = vpack.c.bf16 %v20668_v34, %v20667_v45  ;;  %11571 = vmatprep.subr.bf16.mxu0 %v14044_v48  ;;  %v11114_v40 = vpop.f32.mrb[65].mxu0  ;;  %v3360_v48 = vrot.slane %v20613_v26, 2 }
 0x29f   : > { %20665 = vst [vmem:[#allocation185_spill] sm:$0xff] %v16855_v55  ;;  %20673 = vst [vmem:[#allocation85_spill] sm:$0xff] %v16868_v23  ;;  %v16877_v24 = vadd.f32 %v11114_v40, %v11113_v63  ;;  %v11116_v27 = vpop.f32.mrb[66].mxu0  ;;  %v20680_v63 = vld [vmem:[#allocation57_spill] sm:$0xff] }
 0x2a0   : > { %20669 = vst [vmem:[#allocation131_spill] sm:$0xff] %v16861_v12  ;;  %v11117_v55 = vpop.f32.mrb[67].mxu0  ;;  %v3367_v40 = vrot.slane %v20680_v63, 2  ;;  %v14052_v63 = vld [vmem:[#allocation4 + $0x250] sm:$0xff]  }
 0x2a1   : > { %11572 = vmatpush3.bf16.msra.mxu0 %v14045_v49  ;;  %v16886_v61 = vadd.f32 %v11117_v55, %v11116_v27  ;;  %v20681_v49 = vld [vmem:[#allocation54_spill] sm:$0xff] }
 0x2a2   : > { %11573 = vmatprep.subr.bf16.mxu0 %v14046_v42  ;;  %v3361_v42 = vrot.slane %v20614_v58, 2  ;;  %v14051_v55 = vld [vmem:[#allocation4 + $0x290] sm:$0xff]  }
 0x2a3   : > { %10332 = vmatmul.mubr.msk.bf16.gmra.mrb[168].mxu0 %vm15964_vm7, %v20678_v57  ;;  %20679 = vst [vmem:[#allocation134_spill] sm:$0xff] %v16886_v61  ;;  %v14050_v57 = vld [vmem:[#allocation4 + $0x248] sm:$0xff]  }
 0x2a4   : > { %12743 = vmatmul.mubr.msk.bf16.gmra.mrb[88].mxu1 %vm1083_vm0, %v16861_v12  ;;  %10336 = vmatprep.mubr.msk.bf16.mxu0 %vm15964_vm7, %v20681_v49  ;;  %v3362_v26 = vsel %vm3333_vm4, %v3360_v48, %v3361_v42  ;;  %v3368_v27 = vsel %vm3333_vm4, %v3361_v42, %v3367_v40  ;;  %v3375_v49 = vrot.slane %v20619_v32, 2  ;;  %v20684_v12 = vld [vmem:[#allocation65_spill] sm:$0xff]  ;;  %v14053_v48 = vld [vmem:[#allocation4 + $0x298] sm:$0xff]   ;;  %v3390_v40 = vrot.slane %v20622_v0, 2 }
 0x2a5   : > { %12746 = vmatprep.mubr.msk.bf16.mxu1 %vm1083_vm0, %v16868_v23  ;;  %11574 = vmatpush3.bf16.msra.mxu0 %v14047_v31  ;;  %v20683_v23 = vld [vmem:[#allocation67_spill] sm:$0xff]  ;;  %v16907_v31 = vpack.c.bf16 %v3368_v27, %v3362_v26  ;;  %v3391_v32 = vrot.slane %v20623_v18, 2  ;;  %v14055_v18 = vld [vmem:[#allocation4 + $0x370] sm:$0xff]   ;;  %v20692_v61 = vld [vmem:[#allocation17_spill] sm:$0xff] }
 0x2a6   : > { %11575 = vmatprep.subr.bf16.mxu0 %v14049_v29  ;;  %v3382_v58 = vrot.slane %v20683_v23, 2  ;;  %v3376_v29 = vrot.slane %v20620_v9, 2  ;;  %v11119_v23 = vpop.f32.mrb[68].mxu0  ;;  %v14054_v0 = vld [vmem:[#allocation4 + $0x258] sm:$0xff]  }
 0x2a7   : > { %20685 = vst [vmem:[#allocation147_spill] sm:$0xff] %v16907_v31  ;;  %v11120_v9 = vpop.f32.mrb[69].mxu0 }
 0x2a8   : > { %v16922_v26 = vadd.f32 %v11120_v9, %v11119_v23  ;;  %v11122_v27 = vpop.f32.mrb[70].mxu0  ;;  %v3405_v23 = vrot.slane %v20626_v47, 2  ;;  %v20691_v9 = vld [vmem:[#allocation89_spill] sm:$0xff]  ;;  %v3421_v47 = vrot.slane %v20630_v39, 2 }
 0x2a9   : > { %11576 = vmatpush3.bf16.msra.mxu0 %v14050_v57  ;;  %v20686_v57 = vld [vmem:[#allocation83_spill] sm:$0xff] }
 0x2aa   : > { %11577 = vmatprep.subr.bf16.mxu0 %v14051_v55  ;;  %v3397_v42 = vrot.slane %v20686_v57, 2  ;;  %v20687_v55 = vld [vmem:[#allocation31_spill] sm:$0xff]  ;;  %20689 = vst [vmem:[#allocation142_spill] sm:$0xff] %v16922_v26  ;;  %v3377_v57 = vsel %vm3333_vm4, %v3375_v49, %v3376_v29  ;;  %v3412_v26 = vrot.slane %v20691_v9, 2  ;;  %v20697_v9 = vld [vmem:[#allocation109_spill] sm:$0xff] }
 0x2ab   : > { %10340 = vmatmul.mubr.msk.bf16.gmra.mrb[172].mxu0 %vm15964_vm7, %v20684_v12 }
 0x2ac   : > { %12747 = vmatmul.mubr.msk.bf16.gmra.mrb[92].mxu1 %vm1083_vm0, %v16881_v3  ;;  %v16900_v3 = vld [vmem:[#allocation4 + $0x2a0] sm:$0xff]   ;;  %v3398_v12 = vsel %vm3333_vm4, %v3391_v32, %v3397_v42 }
 0x2ad   : > { %12752 = vmatprep.mubr.msk.bf16.mxu1 %vm1083_vm0, %v20682_v1  ;;  %v20688_v1 = vld [vmem:[#allocation11_spill] sm:$0xff]  ;;  %11578 = vmatpush3.bf16.msra.mxu0 %v14052_v63 }
 0x2ae   : > { %10344 = vmatprep.mubr.msk.bf16.mxu0 %vm15964_vm7, %v20688_v1  ;;  %11579 = vmatprep.subr.bf16.mxu0 %v14053_v48  ;;  %v11123_v1 = vpop.f32.mrb[71].mxu0 }
 0x2b1   : > { %11580 = vmatpush3.bf16.msra.mxu0 %v14054_v0 }
 0x2b2   : > { %11823 = vmatprep.subr.bf16.mxu0 %v14055_v18  ;;  %v3435_v18 = vrot.slane %v20633_v35, 2  ;;  %v3451_v35 = vrot.slane %v20637_v52, 2 }
 0x2b3   : > { %10348 = vmatmul.mubr.msk.bf16.gmra.mrb[176].mxu0 %vm15964_vm7, %v20692_v61 }
 0x2b4   : > { %12753 = vmatmul.mubr.msk.bf16.vlgmr.msra.gmra.mrb[64].mxu1 %vm1083_vm0, %v20687_v55  ;;  %v3383_v55 = vsel %vm3333_vm4, %v3376_v29, %v3382_v58  ;;  %v3406_v58 = vrot.slane %v20627_v6, 2  ;;  %v3420_v29 = vrot.slane %v20629_v30, 2 }
 0x2b5   : > { %12756 = vmatprep.mubr.msk.bf16.mxu1 %vm1083_vm0, %v16907_v31  ;;  %12785 = vmatpush3.bf16.msra.mxu1 %v16714_v20  ;;  %v3392_v31 = vsel %vm3333_vm4, %v3390_v40, %v3391_v32  ;;  %v16928_v20 = vadd.f32 %v11123_v1, %v11122_v27  ;;  %v16930_v63 = vpack.c.bf16 %v3383_v55, %v3377_v57  ;;  %v20694_v1 = vld [vmem:[#allocation45_spill] sm:$0xff]  ;;  %v20695_v40 = vld [vmem:[#allocation64_spill] sm:$0xff] }
 0x2b6   : > { %12818 = vmatprep.subr.bf16.mxu1 %v16900_v3  ;;  %v16937_v49 = vpack.c.bf16 %v3398_v12, %v3392_v31  ;;  %v3427_v48 = vrot.slane %v20694_v1, 2  ;;  %10352 = vmatprep.mubr.msk.bf16.mxu0 %vm15964_vm7, %v20695_v40  ;;  %v11125_v12 = vpop.f32.mrb[72].mxu0  ;;  %v3407_v6 = vsel %vm3333_vm4, %v3405_v23, %v3406_v58  ;;  %v3413_v30 = vsel %vm3333_vm4, %v3406_v58, %v3412_v26 }
 0x2b7   : > { %20690 = vst [vmem:[#allocation10_spill] sm:$0xff] %v16930_v63  ;;  %v11126_v31 = vpop.f32.mrb[73].mxu0  ;;  %v3422_v32 = vsel %vm3333_vm4, %v3420_v29, %v3421_v47  ;;  %v16958_v39 = vpack.c.bf16 %v3413_v30, %v3407_v6  ;;  %v3442_v1 = vrot.slane %v20697_v9, 2  ;;  %v3436_v23 = vrot.slane %v20634_v38, 2  ;;  %v20700_v29 = vld [vmem:[#allocation114_spill] sm:$0xff] }
 0x2b8   : > { %20693 = vst [vmem:[#allocation9_spill] sm:$0xff] %v16937_v49  ;;  %v16952_v42 = vadd.f32 %v11126_v31, %v11125_v12  ;;  %v11128_v55 = vpop.f32.mrb[74].mxu0  ;;  %v3428_v0 = vsel %vm3333_vm4, %v3421_v47, %v3427_v48  ;;  %v3450_v58 = vrot.slane %v20636_v33, 2  ;;  %v3457_v48 = vrot.slane %v20700_v29, 2  ;;  %v20701_v47 = vld [vmem:[#allocation14_spill] sm:$0xff]  ;;  %v11194_v6 = vpop.f32.mrb[96].mxu1 }
 0x2b9   : > { %v11129_v27 = vpop.f32.mrb[75].mxu0  ;;  %20696 = vst [vmem:[#allocation56_spill] sm:$0xff] %v16958_v39  ;;  %v16965_v26 = vpack.c.bf16 %v3428_v0, %v3422_v32  ;;  %v3437_v38 = vsel %vm3333_vm4, %v3435_v18, %v3436_v23  ;;  %v3443_v33 = vsel %vm3333_vm4, %v3436_v23, %v3442_v1  ;;  %v11195_v32 = vpop.f32.mrb[97].mxu1  ;;  %v20704_v1 = vld [vmem:[#allocation84_spill] sm:$0xff] }
 0x2ba   : > { %v16956_v57 = vadd.f32 %v11129_v27, %v11128_v55  ;;  %v11131_v12 = vpop.f32.mrb[76].mxu0  ;;  %v3452_v0 = vsel %vm3333_vm4, %v3450_v58, %v3451_v35  ;;  %v3458_v27 = vsel %vm3333_vm4, %v3451_v35, %v3457_v48  ;;  %v11196_v9 = vadd.f32 %v11195_v32, %v11194_v6  ;;  %v11197_v29 = vpop.f32.mrb[98].mxu1  ;;  %v20707_v6 = vld [vmem:[#allocation100_spill] sm:$0xff] }
 0x2bb   : > { %20699 = vst [vmem:[#allocation28_spill] sm:$0xff] %v16965_v26  ;;  %v11132_v31 = vpop.f32.mrb[77].mxu0  ;;  %v11198_v18 = vpop.f32.mrb[99].mxu1  ;;  %v16996_v58 = vpack.c.bf16 %v3458_v27, %v3452_v0  ;;  %v3466_v48 = vrot.slane %v20641_v11, 2 }
 0x2bc   : > { %12757 = vmatmul.mubr.msk.bf16.gmra.mrb[68].mxu1 %vm1083_vm0, %v16930_v63  ;;  %v16980_v30 = vadd.f32 %v11132_v31, %v11131_v12  ;;  %v11134_v55 = vpop.f32.mrb[78].mxu0  ;;  %v16991_v23 = vadd.f32 %v11196_v9, %v20704_v1  ;;  %v11199_v12 = vadd.f32 %v11198_v18, %v11197_v29  ;;  %v3481_v31 = vrot.slane %v20646_v44, 2 }
 0x2bd   : > { %12760 = vmatprep.mubr.msk.bf16.mxu1 %vm1083_vm0, %v16937_v49  ;;  %v20698_v49 = vld [vmem:[#allocation76_spill] sm:$0xff]  ;;  %v11135_v52 = vpop.f32.mrb[79].mxu0  ;;  %20705 = vst [vmem:[#allocation66_spill] sm:$0xff] %v16996_v58 }
 0x2be   : > { %10356 = vmatmul.mubr.msk.bf16.gmra.mrb[180].mxu0 %vm15964_vm7, %v20698_v49  ;;  %v16988_v49 = vpack.c.bf16 %v3443_v33, %v3437_v38  ;;  %v17008_v38 = vadd.f32 %v11199_v12, %v20707_v6  ;;  %v11137_v11 = vpop.f32.mrb[80].mxu0  ;;  %v3495_v12 = vrot.slane %v20654_v17, 2  ;;  %v3510_v17 = vrot.slane %v20659_v7, 2 }
 0x2bf   : > { %10360 = vmatprep.mubr.msk.bf16.mxu0 %vm15964_vm7, %v20701_v47  ;;  %v16986_v47 = vadd.f32 %v11135_v52, %v11134_v55  ;;  %v11138_v33 = vpop.f32.mrb[81].mxu0 }
 0x2c0   : > { %20703 = vst [vmem:[#allocation37_spill] sm:$0xff] %v16988_v49  ;;  %v17014_v0 = vadd.f32 %v11138_v33, %v11137_v11  ;;  %v11140_v27 = vpop.f32.mrb[82].mxu0 }
 0x2c1   : > { %v11141_v18 = vpop.f32.mrb[83].mxu0 }
 0x2c4   : > { %12761 = vmatmul.mubr.msk.bf16.gmra.mrb[72].mxu1 %vm1083_vm0, %v16958_v39  ;;  %v20702_v39 = vld [vmem:[#allocation124_spill] sm:$0xff] }
 0x2c5   : > { %12764 = vmatprep.mubr.msk.bf16.mxu1 %vm1083_vm0, %v16965_v26  ;;  %v3465_v26 = vrot.slane %v20640_v21, 2  ;;  %v3472_v63 = vrot.slane %v20702_v39, 2  ;;  %v3480_v21 = vrot.slane %v20645_v36, 2  ;;  %v20706_v39 = vld [vmem:[#allocation126_spill] sm:$0xff]  ;;  %v11200_v36 = vpop.f32.mrb[100].mxu1 }
 0x2c6   : > { %10364 = vmatmul.mubr.msk.bf16.gmra.mrb[184].mxu0 %vm15964_vm7, %v16547_v4  ;;  %v3487_v35 = vrot.slane %v20706_v39, 2  ;;  %v11201_v9 = vpop.f32.mrb[101].mxu1  ;;  %v20708_v39 = vld [vmem:[#allocation138_spill] sm:$0xff] }
 0x2c7   : > { %10368 = vmatprep.mubr.msk.bf16.mxu0 %vm15964_vm7, %v16551_v53  ;;  %v3467_v55 = vsel %vm3333_vm4, %v3465_v26, %v3466_v48  ;;  %v3473_v32 = vsel %vm3333_vm4, %v3466_v48, %v3472_v63  ;;  %v3482_v52 = vsel %vm3333_vm4, %v3480_v21, %v3481_v31  ;;  %v11202_v29 = vadd.f32 %v11201_v9, %v11200_v36  ;;  %v11203_v1 = vpop.f32.mrb[102].mxu1 }
 0x2c8   : > { %v3488_v44 = vsel %vm3333_vm4, %v3481_v31, %v3487_v35  ;;  %v3502_v6 = vrot.slane %v20708_v39, 2  ;;  %v11204_v26 = vpop.f32.mrb[103].mxu1  ;;  %v3496_v35 = vrot.slane %v20655_v59, 2  ;;  %v20711_v31 = vld [vmem:[#allocation133_spill] sm:$0xff]  ;;  %v11143_v59 = vpop.f32.mrb[84].mxu0 }
 0x2c9   : > { %v17025_v63 = vadd.f32 %v11202_v29, %v16616_v37  ;;  %v11205_v48 = vadd.f32 %v11204_v26, %v11203_v1  ;;  %v17030_v21 = vpack.c.bf16 %v3488_v44, %v3482_v52  ;;  %v3517_v11 = vrot.slane %v20711_v31, 2  ;;  %v11144_v36 = vpop.f32.mrb[85].mxu0  ;;  %v11206_v7 = vpop.f32.mrb[104].mxu1  ;;  %v20712_v39 = vld [vmem:[#allocation49_spill] sm:$0xff] }
 0x2ca   : > { %v3511_v37 = vrot.slane %v20660_v16, 2  ;;  %v11146_v9 = vpop.f32.mrb[86].mxu0  ;;  %v11207_v52 = vpop.f32.mrb[105].mxu1  ;;  %v3525_v1 = vrot.slane %v20667_v45, 2  ;;  %v3532_v26 = vrot.slane %v20712_v39, 2  ;;  %v3540_v45 = vrot.slane %v20671_v5, 2 }
 0x2cb   : > { %20710 = vst [vmem:[#allocation82_spill] sm:$0xff] %v17030_v21  ;;  %v17042_v33 = vadd.f32 %v11205_v48, %v16618_v56  ;;  %v11208_v56 = vadd.f32 %v11207_v52, %v11206_v7  ;;  %v11147_v29 = vpop.f32.mrb[87].mxu0  ;;  %v20716_v39 = vld [vmem:[#allocation157_spill] sm:$0xff] }
 0x2cc   : > { %12765 = vmatmul.mubr.msk.bf16.gmra.mrb[76].mxu1 %vm1083_vm0, %v16988_v49  ;;  %v17022_v49 = vpack.c.bf16 %v3473_v32, %v3467_v55  ;;  %v3497_v55 = vsel %vm3333_vm4, %v3495_v12, %v3496_v35  ;;  %v3503_v32 = vsel %vm3333_vm4, %v3496_v35, %v3502_v6  ;;  %v3512_v44 = vsel %vm3333_vm4, %v3510_v17, %v3511_v37 }
 0x2cd   : > { %12768 = vmatprep.mubr.msk.bf16.mxu1 %vm1083_vm0, %v16996_v58  ;;  %v17020_v58 = vadd.f32 %v11141_v18, %v11140_v27  ;;  %v17048_v27 = vadd.f32 %v11144_v36, %v11143_v59  ;;  %v3518_v16 = vsel %vm3333_vm4, %v3511_v37, %v3517_v11  ;;  %v11209_v18 = vpop.f32.mrb[106].mxu1  ;;  %v17054_v48 = vadd.f32 %v11147_v29, %v11146_v9  ;;  %v20715_v37 = vld [vmem:[#allocation150_spill] sm:$0xff] }
 0x2ce   : > { %20709 = vst [vmem:[#allocation44_spill] sm:$0xff] %v17022_v49  ;;  %10372 = vmatmul.mubr.msk.bf16.gmra.mrb[188].mxu0 %vm15964_vm7, %v16600_v22  ;;  %v11210_v12 = vpop.f32.mrb[107].mxu1  ;;  %v17056_v31 = vpack.c.bf16 %v3503_v32, %v3497_v55  ;;  %v17059_v6 = vadd.f32 %v11208_v56, %v16664_v10  ;;  %v17064_v17 = vpack.c.bf16 %v3518_v16, %v3512_v44  ;;  %v3526_v11 = vrot.slane %v20668_v34, 2  ;;  %v11149_v34 = vpop.f32.mrb[88].mxu0 }
 0x2cf   : > { %10376 = vmatprep.mubr.msk.bf16.mxu0 %vm15964_vm7, %v16607_v60  ;;  %v11211_v35 = vadd.f32 %v11210_v12, %v11209_v18  ;;  %v3547_v59 = vrot.slane %v20715_v37, 2  ;;  %v3541_v10 = vrot.slane %v20672_v14, 2  ;;  %v11150_v7 = vpop.f32.mrb[89].mxu0  ;;  %v3555_v18 = vrot.slane %v20675_v2, 2 }
 0x2d0   : > { %20713 = vst [vmem:[#allocation40_spill] sm:$0xff] %v17056_v31  ;;  %20714 = vst [vmem:[#allocation88_spill] sm:$0xff] %v17064_v17  ;;  %v11212_v5 = vpop.f32.mrb[108].mxu1  ;;  %v3527_v55 = vsel %vm3333_vm4, %v3525_v1, %v3526_v11  ;;  %v3533_v32 = vsel %vm3333_vm4, %v3526_v11, %v3532_v26  ;;  %v17082_v9 = vadd.f32 %v11150_v7, %v11149_v34  ;;  %v11152_v52 = vpop.f32.mrb[90].mxu0  ;;  %v3562_v12 = vrot.slane %v20716_v39, 2  ;;  %v20721_v39 = vld [vmem:[#allocation154_spill] sm:$0xff] }
 0x2d1   : > { %v17076_v36 = vadd.f32 %v11211_v35, %v16669_v19  ;;  %v11213_v44 = vpop.f32.mrb[109].mxu1  ;;  %v3542_v16 = vsel %vm3333_vm4, %v3540_v45, %v3541_v10  ;;  %v3548_v14 = vsel %vm3333_vm4, %v3541_v10, %v3547_v59  ;;  %v11153_v56 = vpop.f32.mrb[91].mxu0  ;;  %v17090_v37 = vpack.c.bf16 %v3533_v32, %v3527_v55 }
 0x2d2   : > { %v11214_v19 = vadd.f32 %v11213_v44, %v11212_v5  ;;  %v11215_v29 = vpop.f32.mrb[110].mxu1  ;;  %v17088_v35 = vadd.f32 %v11153_v56, %v11152_v52  ;;  %v17098_v45 = vpack.c.bf16 %v3548_v14, %v3542_v16  ;;  %v3556_v59 = vrot.slane %v20676_v62, 2 }
 0x2d3   : > { %v11216_v1 = vpop.f32.mrb[111].mxu1  ;;  %20717 = vst [vmem:[#allocation68_spill] sm:$0xff] %v17090_v37 }
 0x2d4   : > { %12769 = vmatmul.mubr.msk.bf16.gmra.mrb[80].mxu1 %vm1083_vm0, %v17022_v49  ;;  %v17093_v26 = vadd.f32 %v11214_v19, %v16679_v13  ;;  %v11217_v11 = vadd.f32 %v11216_v1, %v11215_v29  ;;  %20718 = vst [vmem:[#allocation99_spill] sm:$0xff] %v17098_v45  ;;  %v3557_v7 = vsel %vm3333_vm4, %v3555_v18, %v3556_v59  ;;  %v20720_v18 = vld [vmem:[#allocation26_spill] sm:$0xff]  ;;  %v20722_v1 = vld [vmem:[#allocation29_spill] sm:$0xff] }
 0x2d5   : > { %12772 = vmatprep.mubr.msk.bf16.mxu1 %vm1083_vm0, %v17030_v21  ;;  %v11155_v13 = vpop.f32.mrb[92].mxu0  ;;  %v3563_v62 = vsel %vm3333_vm4, %v3556_v59, %v3562_v12  ;;  %v20735_v21 = vld [vmem:[#allocation61_spill] sm:$0xff] }
 0x2d6   : > { %10380 = vmatmul.mubr.msk.bf16.gmra.mrb[192].mxu0 %vm15964_vm7, %v16622_v28  ;;  %v17107_v2 = vadd.f32 %v11217_v11, %v16686_v15  ;;  %v11156_v10 = vpop.f32.mrb[93].mxu0  ;;  %v17117_v19 = vpack.c.bf16 %v3563_v62, %v3557_v7 }
 0x2d7   : > { %10384 = vmatprep.mubr.msk.bf16.mxu0 %vm15964_vm7, %v16296_v51  ;;  %v17113_v5 = vadd.f32 %v11156_v10, %v11155_v13  ;;  %v11158_v55 = vpop.f32.mrb[94].mxu0 }
 0x2d8   : > { %v11218_v34 = vpop.f32.mrb[112].mxu1  ;;  %v11159_v44 = vpop.f32.mrb[95].mxu0  ;;  %20719 = vst [vmem:[#allocation62_spill] sm:$0xff] %v17117_v19 }
 0x2d9   : > { %v11219_v32 = vpop.f32.mrb[113].mxu1  ;;  %v17115_v14 = vadd.f32 %v11159_v44, %v11158_v55 }
 0x2da   : > { %v11220_v52 = vadd.f32 %v11219_v32, %v11218_v34  ;;  %v11221_v16 = vpop.f32.mrb[114].mxu1 }
 0x2db   : > { %v11222_v15 = vpop.f32.mrb[115].mxu1 }
 0x2dc   : > { %12773 = vmatmul.mubr.msk.bf16.gmra.mrb[84].mxu1 %vm1083_vm0, %v17056_v31  ;;  %v17120_v56 = vadd.f32 %v11220_v52, %v16699_v54  ;;  %v11223_v29 = vadd.f32 %v11222_v15, %v11221_v16  ;;  %v14064_v16 = vld [vmem:[#allocation4 + $0x2e8] sm:$0xff]   ;;  %v20723_v15 = vld [vmem:[#allocation162_spill] sm:$0xff] }
 0x2dd   : > { %12776 = vmatprep.mubr.msk.bf16.mxu1 %vm1083_vm0, %v17064_v17  ;;  %v11323_v54 = vpop.f32.mrb[96].mxu0 }
 0x2de   : > { %10388 = vmatmul.mubr.msk.bf16.gmra.mrb[196].mxu0 %vm15964_vm7, %v16318_v8  ;;  %v17131_v12 = vadd.f32 %v11223_v29, %v20721_v39  ;;  %v11324_v59 = vpop.f32.mrb[97].mxu0 }
 0x2df   : > { %10392 = vmatprep.mubr.msk.bf16.mxu0 %vm15964_vm7, %v16323_v46  ;;  %v11325_v13 = vadd.f32 %v11324_v59, %v11323_v54  ;;  %v11326_v34 = vpop.f32.mrb[98].mxu0  ;;  %v20727_v59 = vld [vmem:[#allocation192_spill] sm:$0xff] }
 0x2e0   : > { %v11224_v11 = vpop.f32.mrb[116].mxu1  ;;  %v11327_v55 = vpop.f32.mrb[99].mxu0 }
 0x2e1   : > { %v11225_v10 = vpop.f32.mrb[117].mxu1  ;;  %v17136_v32 = vadd.f32 %v16991_v23, %v11325_v13  ;;  %v11328_v52 = vadd.f32 %v11327_v55, %v11326_v34  ;;  %v20726_v23 = vld [vmem:[#allocation95_spill] sm:$0xff] }
 0x2e2   : > { %v11226_v7 = vadd.f32 %v11225_v10, %v11224_v11  ;;  %v11227_v62 = vpop.f32.mrb[118].mxu1  ;;  %v20725_v11 = vld [vmem:[#allocation103_spill] sm:$0xff] }
 0x2e3   : > { %v11228_v44 = vpop.f32.mrb[119].mxu1  ;;  %v17145_v54 = vadd.f32 %v17008_v38, %v11328_v52  ;;  %v20728_v10 = vld [vmem:[#allocation163_spill] sm:$0xff] }
 0x2e4   : > { %12777 = vmatmul.mubr.msk.bf16.gmra.mrb[88].mxu1 %vm1083_vm0, %v17090_v37  ;;  %v17139_v29 = vadd.f32 %v11226_v7, %v20723_v15  ;;  %v11229_v39 = vadd.f32 %v11228_v44, %v11227_v62 }
 0x2e5   : > { %12780 = vmatprep.mubr.msk.bf16.mxu1 %vm1083_vm0, %v17098_v45  ;;  %v20729_v45 = vld [vmem:[#allocation166_spill] sm:$0xff] }
 0x2e6   : > { %10396 = vmatmul.mubr.msk.bf16.gmra.mrb[200].mxu0 %vm15964_vm7, %v16334_v25  ;;  %v17153_v13 = vadd.f32 %v11229_v39, %v20727_v59  ;;  %v11329_v34 = vpop.f32.mrb[100].mxu0 }
 0x2e7   : > { %10400 = vmatprep.mubr.msk.bf16.mxu0 %vm15964_vm7, %v20720_v18  ;;  %v11330_v38 = vpop.f32.mrb[101].mxu0  ;;  %v20757_v18 = vld [vmem:[#allocation33_spill] sm:$0xff] }
 0x2e8   : > { %v11230_v7 = vpop.f32.mrb[120].mxu1  ;;  %v11331_v62 = vadd.f32 %v11330_v38, %v11329_v34  ;;  %v11332_v52 = vpop.f32.mrb[102].mxu0  ;;  %v20731_v34 = vld [vmem:[#allocation58_spill] sm:$0xff] }
 0x2e9   : > { %v11231_v55 = vpop.f32.mrb[121].mxu1 }
 0x2ea   : > { %v11232_v44 = vadd.f32 %v11231_v55, %v11230_v7  ;;  %v11233_v15 = vpop.f32.mrb[122].mxu1  ;;  %v20732_v7 = vld [vmem:[#allocation186_spill] sm:$0xff] }
 0x2eb   : > { %v11234_v59 = vpop.f32.mrb[123].mxu1 }
 0x2ec   : > { %12781 = vmatmul.mubr.msk.bf16.gmra.mrb[92].mxu1 %vm1083_vm0, %v17117_v19  ;;  %v11333_v19 = vpop.f32.mrb[103].mxu0  ;;  %v17162_v37 = vadd.f32 %v11232_v44, %v20729_v45  ;;  %v20734_v45 = vld [vmem:[#allocation193_spill] sm:$0xff] }
 0x2ed   : > { %12786 = vmatprep.mubr.msk.bf16.mxu1 %vm1083_vm0, %v20722_v1  ;;  %v20724_v1 = vld [vmem:[#allocation46_spill] sm:$0xff]  ;;  %v11334_v39 = vadd.f32 %v11333_v19, %v11332_v52 }
 0x2ee   : > { %10404 = vmatmul.mubr.msk.bf16.gmra.mrb[204].mxu0 %vm15964_vm7, %v20724_v1  ;;  %v11335_v38 = vpop.f32.mrb[104].mxu0 }
 0x2ef   : > { %10408 = vmatprep.mubr.msk.bf16.mxu0 %vm15964_vm7, %v20725_v11  ;;  %v11336_v55 = vpop.f32.mrb[105].mxu0  ;;  %v20753_v11 = vld [vmem:[#allocation20_spill] sm:$0xff] }
 0x2f0   : > { %v11337_v52 = vadd.f32 %v11336_v55, %v11335_v38  ;;  %v20736_v55 = vld [vmem:[#allocation87_spill] sm:$0xff] }
 0x2f2   : > { %v17181_v17 = vadd.f32 %v17059_v6, %v11337_v52 }
 0x2f4   : > { %12787 = vmatmul.mubr.msk.bf16.vlgmr.msra.gmra.mrb[64].mxu1 %vm1083_vm0, %v20726_v23  ;;  %v17159_v23 = vadd.f32 %v17025_v63, %v11331_v62  ;;  %v20733_v63 = vld [vmem:[#allocation171_spill] sm:$0xff] }
 0x2f5   : > { %12790 = vmatprep.mubr.msk.bf16.mxu1 %vm1083_vm0, %v20728_v10  ;;  %12819 = vmatpush3.bf16.msra.mxu1 %v16900_v3  ;;  %v11235_v10 = vadd.f32 %v11234_v59, %v11233_v15  ;;  %v20730_v3 = vld [vmem:[#allocation111_spill] sm:$0xff] }
 0x2f6   : > { %11694 = vmatprep.subr.bf16.mxu1 %v14064_v16  ;;  %10412 = vmatmul.mubr.msk.bf16.gmra.mrb[208].mxu0 %vm15964_vm7, %v20730_v3  ;;  %v17168_v16 = vadd.f32 %v17042_v33, %v11334_v39  ;;  %v11338_v33 = vpop.f32.mrb[106].mxu0 }
 0x2f7   : > { %10416 = vmatprep.mubr.msk.bf16.mxu0 %vm15964_vm7, %v20731_v34  ;;  %v17176_v19 = vadd.f32 %v11235_v10, %v20733_v63  ;;  %v11339_v59 = vpop.f32.mrb[107].mxu0  ;;  %v20742_v34 = vld [vmem:[#allocation90_spill] sm:$0xff] }
 0x2f8   : > { %v11340_v31 = vadd.f32 %v11339_v59, %v11338_v33 }
 0x2fa   : > { %v17190_v38 = vadd.f32 %v17076_v36, %v11340_v31 }
 0x2fc   : > { %12791 = vmatmul.mubr.msk.bf16.gmra.mrb[68].mxu1 %vm1083_vm0, %v20732_v7 }
 0x2fd   : > { %12794 = vmatprep.mubr.msk.bf16.mxu1 %vm1083_vm0, %v20734_v45 }
 0x2fe   : > { %10420 = vmatmul.mubr.msk.bf16.gmra.mrb[212].mxu0 %vm15964_vm7, %v20735_v21 }
 0x2ff   : > { %v11236_v62 = vpop.f32.mrb[124].mxu1  ;;  %10424 = vmatprep.mubr.msk.bf16.mxu0 %vm15964_vm7, %v20736_v55  ;;  %v20739_v55 = vld [vmem:[#allocation39_spill] sm:$0xff] }
 0x300   : > { %v11237_v44 = vpop.f32.mrb[125].mxu1 }
 0x301   : > { %v11238_v15 = vadd.f32 %v11237_v44, %v11236_v62  ;;  %v11239_v39 = vpop.f32.mrb[126].mxu1  ;;  %v20737_v62 = vld [vmem:[#allocation161_spill] sm:$0xff] }
 0x302   : > { %v11240_v7 = vpop.f32.mrb[127].mxu1 }
 0x303   : > { %v17184_v10 = vadd.f32 %v11238_v15, %v16824_v41  ;;  %v11241_v63 = vadd.f32 %v11240_v7, %v11239_v39  ;;  %v20738_v41 = vld [vmem:[#allocation172_spill] sm:$0xff]  ;;  %v11341_v7 = vpop.f32.mrb[108].mxu0 }
 0x304   : > { %12795 = vmatmul.mubr.msk.bf16.gmra.mrb[72].mxu1 %vm1083_vm0, %v20737_v62  ;;  %v11342_v44 = vpop.f32.mrb[109].mxu0 }
 0x305   : > { %v17198_v6 = vadd.f32 %v11241_v63, %v16835_v50  ;;  %12798 = vmatprep.mubr.msk.bf16.mxu1 %vm1083_vm0, %v20738_v41  ;;  %v11343_v33 = vadd.f32 %v11342_v44, %v11341_v7  ;;  %v11344_v31 = vpop.f32.mrb[110].mxu0  ;;  %v20740_v50 = vld [vmem:[#allocation179_spill] sm:$0xff] }
 0x306   : > { %v11345_v59 = vpop.f32.mrb[111].mxu0  ;;  %v17207_v63 = vpack.c.bf16 %v20740_v50, %v20739_v55  ;;  %10428 = vmatmul.mubr.msk.bf16.gmra.mrb[216].mxu0 %vm15964_vm7, %v20742_v34  ;;  %v20744_v55 = vld [vmem:[#allocation134_spill] sm:$0xff]  ;;  %v20747_v50 = vld [vmem:[#allocation181_spill] sm:$0xff] }
 0x307   : > { %v11242_v52 = vpop.f32.mrb[128].mxu1  ;;  %v17203_v45 = vadd.f32 %v17093_v26, %v11343_v33  ;;  %v11346_v49 = vadd.f32 %v11345_v59, %v11344_v31  ;;  %v20743_v26 = vld [vmem:[#allocation173_spill] sm:$0xff]  ;;  %v20746_v59 = vld [vmem:[#allocation180_spill] sm:$0xff]  ;;  %v20749_v34 = vld [vmem:[#allocation142_spill] sm:$0xff] }
 0x308   : > { %v11243_v15 = vpop.f32.mrb[129].mxu1  ;;  %20741 = vst [vmem:[#allocation107_spill] sm:$0xff] %v17207_v63  ;;  %10432 = vmatprep.mubr.msk.bf16.mxu0 %vm15964_vm7, %v17207_v63  ;;  %v17230_v63 = vpack.c.bf16 %v20747_v50, %v20746_v59  ;;  %v14056_v59 = vld [vmem:[#allocation4 + $0x330] sm:$0xff]  }
 0x309   : > { %v11244_v36 = vadd.f32 %v11243_v15, %v11242_v52  ;;  %v11245_v39 = vpop.f32.mrb[130].mxu1  ;;  %v17216_v7 = vadd.f32 %v17107_v2, %v11346_v49 }
 0x30a   : > { %v11246_v62 = vpop.f32.mrb[131].mxu1  ;;  %20748 = vst [vmem:[#allocation93_spill] sm:$0xff] %v17230_v63 }
 0x30b   : > { %v17210_v41 = vadd.f32 %v11244_v36, %v16877_v24  ;;  %v11247_v21 = vadd.f32 %v11246_v62, %v11245_v39  ;;  %v20745_v24 = vld [vmem:[#allocation175_spill] sm:$0xff]  ;;  %v11347_v62 = vpop.f32.mrb[112].mxu0 }
 0x30c   : > { %12799 = vmatmul.mubr.msk.bf16.gmra.mrb[76].mxu1 %vm1083_vm0, %v20743_v26  ;;  %v11348_v33 = vpop.f32.mrb[113].mxu0 }
 0x30d   : > { %v17224_v52 = vadd.f32 %v11247_v21, %v20744_v55  ;;  %12802 = vmatprep.mubr.msk.bf16.mxu1 %vm1083_vm0, %v20745_v24  ;;  %v11349_v15 = vadd.f32 %v11348_v33, %v11347_v62  ;;  %v11350_v49 = vpop.f32.mrb[114].mxu0  ;;  %v20751_v33 = vld [vmem:[#allocation19_spill] sm:$0xff] }
 0x30e   : > { %v11351_v39 = vpop.f32.mrb[115].mxu0  ;;  %10436 = vmatmul.mubr.msk.bf16.gmra.mrb[220].mxu0 %vm15964_vm7, %v17230_v63 }
 0x30f   : > { %v11248_v44 = vpop.f32.mrb[132].mxu1  ;;  %v17233_v26 = vadd.f32 %v17120_v56, %v11349_v15  ;;  %v11352_v21 = vadd.f32 %v11351_v39, %v11350_v49  ;;  %4940 = vmatprep.mubr.bf16.mxu0 %v20751_v33  ;;  %v20752_v15 = vld [vmem:[#allocation70_spill] sm:$0xff] }
 0x310   : > { %v11249_v31 = vpop.f32.mrb[133].mxu1 }
 0x311   : > { %v11250_v2 = vadd.f32 %v11249_v31, %v11248_v44  ;;  %v11251_v36 = vpop.f32.mrb[134].mxu1  ;;  %v17242_v62 = vadd.f32 %v17131_v12, %v11352_v21  ;;  %v20750_v44 = vld [vmem:[#allocation182_spill] sm:$0xff] }
 0x312   : > { %v11252_v55 = vpop.f32.mrb[135].mxu1 }
 0x313   : > { %v17236_v24 = vadd.f32 %v11250_v2, %v20749_v34  ;;  %v11253_v3 = vadd.f32 %v11252_v55, %v11251_v36  ;;  %v11353_v34 = vpop.f32.mrb[116].mxu0 }
 0x314   : > { %12803 = vmatmul.mubr.msk.bf16.gmra.mrb[80].mxu1 %vm1083_vm0, %v20750_v44  ;;  %v11354_v49 = vpop.f32.mrb[117].mxu0 }
 0x315   : > { %v17248_v56 = vadd.f32 %v11253_v3, %v16928_v20  ;;  %12806 = vmatprep.mubr.msk.bf16.mxu1 %vm1083_vm0, %v20752_v15  ;;  %v11355_v2 = vadd.f32 %v11354_v49, %v11353_v34  ;;  %v11356_v39 = vpop.f32.mrb[118].mxu0  ;;  %v14058_v20 = vld [vmem:[#allocation4 + $0x378] sm:$0xff]   ;;  %v20754_v49 = vld [vmem:[#allocation189_spill] sm:$0xff] }
 0x316   : > { %v11357_v55 = vpop.f32.mrb[119].mxu0  ;;  %4941 = vmatmul.mubr.bf16.vlgmr.msra.gmra.mrb[224].mxu0 %v20753_v11 }
 0x317   : > { %v11254_v31 = vpop.f32.mrb[136].mxu1  ;;  %v17253_v44 = vadd.f32 %v17139_v29, %v11355_v2  ;;  %v11358_v33 = vadd.f32 %v11357_v55, %v11356_v39  ;;  %11824 = vmatpush3.bf16.msra.mxu0 %v14056_v59  ;;  %v20755_v2 = vld [vmem:[#allocation32_spill] sm:$0xff] }
 0x318   : > { %v11255_v36 = vpop.f32.mrb[137].mxu1  ;;  %4948 = vmatprep.mubr.bf16.mxu0 %v20755_v2  ;;  %11825 = vmatprep.subr.bf16.mxu0 %v14058_v20 }
 0x319   : > { %v11256_v12 = vadd.f32 %v11255_v36, %v11254_v31  ;;  %v11257_v21 = vpop.f32.mrb[138].mxu1  ;;  %v17260_v34 = vadd.f32 %v17153_v13, %v11358_v33  ;;  %v14059_v31 = vld [vmem:[#allocation4 + $0x338] sm:$0xff]  }
 0x31a   : > { %v11258_v63 = vpop.f32.mrb[139].mxu1  ;;  %v20756_v36 = vld [vmem:[#allocation131_spill] sm:$0xff] }
 0x31b   : > { %v17256_v3 = vadd.f32 %v11256_v12, %v16952_v42  ;;  %v11259_v15 = vadd.f32 %v11258_v63, %v11257_v21  ;;  %v14060_v42 = vld [vmem:[#allocation4 + $0x380] sm:$0xff]   ;;  %v11359_v63 = vpop.f32.mrb[120].mxu0  ;;  %11826 = vmatpush3.bf16.msra.mxu0 %v14059_v31  ;;  %v20758_v31 = vld [vmem:[#allocation85_spill] sm:$0xff] }
 0x31c   : > { %12807 = vmatmul.mubr.msk.bf16.gmra.mrb[84].mxu1 %vm1083_vm0, %v20754_v49  ;;  %v11360_v39 = vpop.f32.mrb[121].mxu0  ;;  %11827 = vmatprep.subr.bf16.mxu0 %v14060_v42  ;;  %v20759_v42 = vld [vmem:[#allocation51_spill] sm:$0xff] }
 0x31d   : > { %v17265_v29 = vadd.f32 %v11259_v15, %v16956_v57  ;;  %12810 = vmatprep.mubr.msk.bf16.mxu1 %vm1083_vm0, %v20756_v36  ;;  %v11361_v13 = vadd.f32 %v11360_v39, %v11359_v63  ;;  %v11362_v59 = vpop.f32.mrb[122].mxu0  ;;  %v14061_v57 = vld [vmem:[#allocation4 + $0x340] sm:$0xff]   ;;  %v14062_v36 = vld [vmem:[#allocation4 + $0x388] sm:$0xff]  }
 0x31e   : > { %v11363_v33 = vpop.f32.mrb[123].mxu0  ;;  %4949 = vmatmul.mubr.bf16.gmra.mrb[228].mxu0 %v20757_v18 }
 0x31f   : > { %v11260_v11 = vpop.f32.mrb[140].mxu1  ;;  %v17271_v15 = vadd.f32 %v17162_v37, %v11361_v13  ;;  %v11364_v49 = vadd.f32 %v11363_v33, %v11362_v59  ;;  %4956 = vmatprep.mubr.bf16.mxu0 %v20759_v42  ;;  %11828 = vmatpush3.bf16.msra.mxu0 %v14061_v57  ;;  %v11365_v39 = vpop.f32.mrb[124].mxu0  ;;  %v20761_v57 = vld [vmem:[#allocation34_spill] sm:$0xff]  ;;  %v20762_v42 = vld [vmem:[#allocation169_spill] sm:$0xff] }
 0x320   : > { %v11261_v12 = vpop.f32.mrb[141].mxu1  ;;  %11829 = vmatprep.subr.bf16.mxu0 %v14062_v36  ;;  %v17293_v18 = vpack.c.bf16 %v20762_v42, %v20761_v57  ;;  %v14078_v36 = vld [vmem:[#allocation4 + $0x398] sm:$0xff]   ;;  %v20766_v42 = vld [vmem:[#allocation30_spill] sm:$0xff] }
 0x321   : > { %v11262_v21 = vadd.f32 %v11261_v12, %v11260_v11  ;;  %v11263_v55 = vpop.f32.mrb[142].mxu1  ;;  %v17278_v63 = vadd.f32 %v17176_v19, %v11364_v49  ;;  %v20760_v11 = vld [vmem:[#allocation69_spill] sm:$0xff]  ;;  %v11366_v12 = vpop.f32.mrb[125].mxu0 }
 0x322   : > { %v11264_v2 = vpop.f32.mrb[143].mxu1  ;;  %v11367_v19 = vadd.f32 %v11366_v12, %v11365_v39  ;;  %v11368_v59 = vpop.f32.mrb[126].mxu0  ;;  %20763 = vst [vmem:[#allocation108_spill] sm:$0xff] %v17293_v18 }
 0x323   : > { %v17274_v1 = vadd.f32 %v11262_v21, %v16980_v30  ;;  %v11265_v20 = vadd.f32 %v11264_v2, %v11263_v55  ;;  %v14063_v30 = vld [vmem:[#allocation4 + $0x348] sm:$0xff]   ;;  %v14068_v2 = vld [vmem:[#allocation4 + $0x390] sm:$0xff]   ;;  %v11369_v33 = vpop.f32.mrb[127].mxu0 }
 0x324   : > { %12811 = vmatmul.mubr.msk.bf16.gmra.mrb[88].mxu1 %vm1083_vm0, %v20758_v31  ;;  %11830 = vmatpush3.bf16.msra.mxu0 %v14063_v30  ;;  %v14069_v31 = vld [vmem:[#allocation4 + $0x350] sm:$0xff]  }
 0x325   : > { %v17284_v37 = vadd.f32 %v11265_v20, %v16986_v47  ;;  %12814 = vmatprep.mubr.msk.bf16.mxu1 %vm1083_vm0, %v20760_v11  ;;  %v17289_v47 = vadd.f32 %v17184_v10, %v11367_v19  ;;  %v11370_v20 = vadd.f32 %v11369_v33, %v11368_v59  ;;  %11831 = vmatprep.subr.bf16.mxu0 %v14068_v2  ;;  %v20765_v10 = vld [vmem:[#allocation73_spill] sm:$0xff] }
 0x326   : > { %v11371_v2 = vpop.f32.mrb[128].mxu0 }
 0x327   : > { %v11266_v13 = vpop.f32.mrb[144].mxu1  ;;  %v17300_v30 = vadd.f32 %v17198_v6, %v11370_v20  ;;  %v11372_v59 = vpop.f32.mrb[129].mxu0 }
 0x328   : > { %v11267_v49 = vpop.f32.mrb[145].mxu1  ;;  %11832 = vmatpush3.bf16.msra.mxu0 %v14069_v31  ;;  %v11373_v6 = vadd.f32 %v11372_v59, %v11371_v2  ;;  %v14066_v31 = vld [vmem:[#allocation4 + $0x2f0] sm:$0xff]   ;;  %v14086_v59 = vld [vmem:[#allocation4 + $0x3a8] sm:$0xff]  }
 0x329   : > { %v11268_v21 = vadd.f32 %v11267_v49, %v11266_v13  ;;  %v11269_v55 = vpop.f32.mrb[146].mxu1  ;;  %v20764_v13 = vld [vmem:[#allocation52_spill] sm:$0xff]  ;;  %11833 = vmatprep.subr.bf16.mxu0 %v14078_v36  ;;  %v20767_v2 = vld [vmem:[#allocation74_spill] sm:$0xff] }
 0x32a   : > { %v11270_v11 = vpop.f32.mrb[147].mxu1  ;;  %4957 = vmatmul.mubr.bf16.gmra.mrb[232].mxu0 %v20764_v13 }
 0x32b   : > { %v17296_v39 = vadd.f32 %v11268_v21, %v17014_v0  ;;  %v11271_v12 = vadd.f32 %v11270_v11, %v11269_v55  ;;  %4964 = vmatprep.mubr.bf16.mxu0 %v20765_v10  ;;  %v14079_v0 = vld [vmem:[#allocation4 + $0x358] sm:$0xff]   ;;  %v14084_v11 = vld [vmem:[#allocation4 + $0x3a0] sm:$0xff]   ;;  %v11374_v55 = vpop.f32.mrb[130].mxu0 }
 0x32c   : > { %12815 = vmatmul.mubr.msk.bf16.gmra.mrb[92].mxu1 %vm1083_vm0, %v17293_v18  ;;  %v11375_v57 = vpop.f32.mrb[131].mxu0  ;;  %v14065_v18 = vld [vmem:[#allocation4 + $0x2a8] sm:$0xff]   ;;  %11834 = vmatpush3.bf16.msra.mxu0 %v14079_v0  ;;  %v14085_v10 = vld [vmem:[#allocation4 + $0x360] sm:$0xff]   ;;  %v20769_v0 = vld [vmem:[#allocation75_spill] sm:$0xff] }
 0x32d   : > { %v17306_v19 = vadd.f32 %v11271_v12, %v17020_v58  ;;  %12820 = vmatprep.mubr.msk.bf16.mxu1 %vm1083_vm0, %v20766_v42  ;;  %v17311_v58 = vadd.f32 %v17210_v41, %v11373_v6  ;;  %v11376_v12 = vadd.f32 %v11375_v57, %v11374_v55  ;;  %11835 = vmatprep.subr.bf16.mxu0 %v14084_v11  ;;  %v20770_v11 = vld [vmem:[#allocation78_spill] sm:$0xff]  ;;  %v14070_v55 = vld [vmem:[#allocation4 + $0x2f8] sm:$0xff]  }
 0x32e   : > { %v11377_v6 = vpop.f32.mrb[132].mxu0  ;;  %v14088_v57 = vld [vmem:[#allocation4 + $0x3f8] sm:$0xff]  }
 0x32f   : > { %v11272_v49 = vpop.f32.mrb[148].mxu1 }
 0x330   : > { %v11273_v21 = vpop.f32.mrb[149].mxu1  ;;  %11836 = vmatpush3.bf16.msra.mxu0 %v14085_v10  ;;  %v14072_v10 = vld [vmem:[#allocation4 + $0x300] sm:$0xff]  }
 0x331   : > { %v11274_v33 = vadd.f32 %v11273_v21, %v11272_v49  ;;  %v11275_v20 = vpop.f32.mrb[150].mxu1  ;;  %v17318_v49 = vadd.f32 %v17224_v52, %v11376_v12  ;;  %v20768_v21 = vld [vmem:[#allocation96_spill] sm:$0xff]  ;;  %11837 = vmatprep.subr.bf16.mxu0 %v14086_v59 }
 0x332   : > { %v11276_v42 = vpop.f32.mrb[151].mxu1  ;;  %4965 = vmatmul.mubr.bf16.gmra.mrb[236].mxu0 %v20767_v2  ;;  %v14071_v2 = vld [vmem:[#allocation4 + $0x2b8] sm:$0xff]  }
 0x333   : > { %v17314_v36 = vadd.f32 %v11274_v33, %v17048_v27  ;;  %v11277_v13 = vadd.f32 %v11276_v42, %v11275_v20  ;;  %4972 = vmatprep.mubr.bf16.mxu0 %v20768_v21  ;;  %v14067_v27 = vld [vmem:[#allocation4 + $0x2b0] sm:$0xff]   ;;  %v14087_v33 = vld [vmem:[#allocation4 + $0x368] sm:$0xff]   ;;  %v11378_v20 = vpop.f32.mrb[133].mxu0 }
 0x334   : > { %12821 = vmatmul.mubr.msk.bf16.vlgmr.msra.gmra.mrb[64].mxu1 %vm1083_vm0, %v20769_v0  ;;  %v11379_v12 = vadd.f32 %v11378_v20, %v11377_v6  ;;  %v11380_v0 = vpop.f32.mrb[134].mxu0  ;;  %11838 = vmatpush3.bf16.msra.mxu0 %v14087_v33  ;;  %v20771_v6 = vld [vmem:[#allocation97_spill] sm:$0xff]  ;;  %v20773_v20 = vld [vmem:[#allocation98_spill] sm:$0xff] }
 0x335   : > { %v17324_v41 = vadd.f32 %v11277_v13, %v17054_v48  ;;  %12824 = vmatprep.mubr.msk.bf16.mxu1 %vm1083_vm0, %v20770_v11  ;;  %11695 = vmatpush3.bf16.msra.mxu1 %v14065_v18  ;;  %v11381_v13 = vpop.f32.mrb[135].mxu0 }
 0x336   : > { %11696 = vmatprep.subr.bf16.mxu1 %v14066_v31  ;;  %v17329_v18 = vadd.f32 %v17236_v24, %v11379_v12  ;;  %v11382_v11 = vadd.f32 %v11381_v13, %v11380_v0  ;;  %11952 = vmatprep.subr.bf16.mxu0 %v14088_v57  ;;  %v20774_v0 = vld [vmem:[#allocation48_spill] sm:$0xff] }
 0x337   : > { %v11278_v52 = vpop.f32.mrb[152].mxu1 }
 0x338   : > { %v11279_v42 = vpop.f32.mrb[153].mxu1 }
 0x339   : > { %v11280_v21 = vadd.f32 %v11279_v42, %v11278_v52  ;;  %v11281_v48 = vpop.f32.mrb[154].mxu1  ;;  %11697 = vmatpush3.bf16.msra.mxu1 %v14067_v27  ;;  %v17336_v52 = vadd.f32 %v17248_v56, %v11382_v11  ;;  %v20772_v27 = vld [vmem:[#allocation110_spill] sm:$0xff] }
 0x33a   : > { %v11282_v31 = vpop.f32.mrb[155].mxu1  ;;  %11698 = vmatprep.subr.bf16.mxu1 %v14070_v55  ;;  %4973 = vmatmul.mubr.bf16.gmra.mrb[240].mxu0 %v20771_v6  ;;  %v14074_v55 = vld [vmem:[#allocation4 + $0x308] sm:$0xff]  }
 0x33b   : > { %v17332_v25 = vadd.f32 %v11280_v21, %v17082_v9  ;;  %v11283_v59 = vadd.f32 %v11282_v31, %v11281_v48  ;;  %4980 = vmatprep.mubr.bf16.mxu0 %v20772_v27  ;;  %v14073_v9 = vld [vmem:[#allocation4 + $0x2c0] sm:$0xff]   ;;  %v11383_v21 = vpop.f32.mrb[136].mxu0  ;;  %v14075_v31 = vld [vmem:[#allocation4 + $0x2c8] sm:$0xff]  }
 0x33c   : > { %12825 = vmatmul.mubr.msk.bf16.gmra.mrb[68].mxu1 %vm1083_vm0, %v20773_v20  ;;  %v11384_v57 = vpop.f32.mrb[137].mxu0  ;;  %v20775_v27 = vld [vmem:[#allocation112_spill] sm:$0xff] }
 0x33d   : > { %v17342_v24 = vadd.f32 %v11283_v59, %v17088_v35  ;;  %12828 = vmatprep.mubr.msk.bf16.mxu1 %vm1083_vm0, %v20774_v0  ;;  %11699 = vmatpush3.bf16.msra.mxu1 %v14071_v2  ;;  %v11385_v56 = vadd.f32 %v11384_v57, %v11383_v21  ;;  %v11386_v12 = vpop.f32.mrb[138].mxu0  ;;  %v14076_v2 = vld [vmem:[#allocation4 + $0x310] sm:$0xff]   ;;  %v20778_v57 = vld [vmem:[#allocation119_spill] sm:$0xff] }
 0x33e   : > { %11700 = vmatprep.subr.bf16.mxu1 %v14072_v10  ;;  %v11387_v13 = vpop.f32.mrb[139].mxu0 }
 0x33f   : > { %v11284_v33 = vpop.f32.mrb[156].mxu1  ;;  %v17347_v35 = vadd.f32 %v17256_v3, %v11385_v56  ;;  %v11388_v59 = vadd.f32 %v11387_v13, %v11386_v12 }
 0x340   : > { %v11285_v11 = vpop.f32.mrb[157].mxu1 }
 0x341   : > { %v11286_v42 = vadd.f32 %v11285_v11, %v11284_v33  ;;  %v11287_v48 = vpop.f32.mrb[158].mxu1  ;;  %11701 = vmatpush3.bf16.msra.mxu1 %v14073_v9  ;;  %v17354_v21 = vadd.f32 %v17265_v29, %v11388_v59  ;;  %v20776_v33 = vld [vmem:[#allocation127_spill] sm:$0xff]  ;;  %v20777_v9 = vld [vmem:[#allocation113_spill] sm:$0xff]  ;;  %v20780_v59 = vld [vmem:[#allocation148_spill] sm:$0xff] }
 0x342   : > { %v11288_v0 = vpop.f32.mrb[159].mxu1  ;;  %11702 = vmatprep.subr.bf16.mxu1 %v14074_v55  ;;  %4981 = vmatmul.mubr.bf16.gmra.mrb[244].mxu0 %v20775_v27  ;;  %v11389_v55 = vpop.f32.mrb[140].mxu0 }
 0x343   : > { %v17350_v10 = vadd.f32 %v11286_v42, %v17113_v5  ;;  %v11289_v20 = vadd.f32 %v11288_v0, %v11287_v48  ;;  %4988 = vmatprep.mubr.bf16.mxu0 %v20776_v33  ;;  %v14077_v5 = vld [vmem:[#allocation4 + $0x2d0] sm:$0xff]   ;;  %v14080_v0 = vld [vmem:[#allocation4 + $0x318] sm:$0xff]   ;;  %v11390_v56 = vpop.f32.mrb[141].mxu0 }
 0x344   : > { %12829 = vmatmul.mubr.msk.bf16.gmra.mrb[72].mxu1 %vm1083_vm0, %v20777_v9  ;;  %v11391_v11 = vadd.f32 %v11390_v56, %v11389_v55  ;;  %v11392_v29 = vpop.f32.mrb[142].mxu0  ;;  %v14081_v42 = vld [vmem:[#allocation4 + $0x2d8] sm:$0xff]   ;;  %v20782_v55 = vld [vmem:[#allocation130_spill] sm:$0xff]  ;;  %v14090_v56 = vld [vmem:[#allocation4 + $0x328] sm:$0xff]  }
 0x345   : > { %v17360_v3 = vadd.f32 %v11289_v20, %v17115_v14  ;;  %12832 = vmatprep.mubr.msk.bf16.mxu1 %vm1083_vm0, %v20778_v57  ;;  %11703 = vmatpush3.bf16.msra.mxu1 %v14075_v31  ;;  %v11393_v12 = vpop.f32.mrb[143].mxu0  ;;  %v14082_v14 = vld [vmem:[#allocation4 + $0x320] sm:$0xff]   ;;  %v20783_v57 = vld [vmem:[#allocation149_spill] sm:$0xff] }
 0x346   : > { %11704 = vmatprep.subr.bf16.mxu1 %v14076_v2  ;;  %v17365_v48 = vadd.f32 %v17274_v1, %v11391_v11  ;;  %v11394_v13 = vadd.f32 %v11393_v12, %v11392_v29  ;;  %v20779_v20 = vld [vmem:[#allocation128_spill] sm:$0xff]  ;;  %v20781_v2 = vld [vmem:[#allocation129_spill] sm:$0xff]  ;;  %v11395_v1 = vpop.f32.mrb[144].mxu0 }
 0x347   : > { %v20787_v9 = vld [vmem:[#allocation156_spill] sm:$0xff] }
 0x348   : > { %v17369_v31 = vadd.f32 %v17284_v37, %v11394_v13 }
 0x349   : > { %11705 = vmatpush3.bf16.msra.mxu1 %v14077_v5  ;;  %v14083_v5 = vld [vmem:[#allocation4 + $0x2e0] sm:$0xff]  }
 0x34a   : > { %11706 = vmatprep.subr.bf16.mxu1 %v14080_v0  ;;  %4989 = vmatmul.mubr.bf16.gmra.mrb[248].mxu0 %v20779_v20  ;;  %v11396_v0 = vpop.f32.mrb[145].mxu0 }
 0x34b   : > { %4996 = vmatprep.mubr.bf16.mxu0 %v20780_v59  ;;  %v11397_v11 = vadd.f32 %v11396_v0, %v11395_v1  ;;  %v11398_v29 = vpop.f32.mrb[146].mxu0 }
 0x34c   : > { %12833 = vmatmul.mubr.msk.bf16.gmra.mrb[76].mxu1 %vm1083_vm0, %v20781_v2  ;;  %v11399_v12 = vpop.f32.mrb[147].mxu0 }
 0x34d   : > { %12836 = vmatprep.mubr.msk.bf16.mxu1 %vm1083_vm0, %v20782_v55  ;;  %11707 = vmatpush3.bf16.msra.mxu1 %v14081_v42  ;;  %v17377_v37 = vadd.f32 %v17296_v39, %v11397_v11  ;;  %v11400_v13 = vadd.f32 %v11399_v12, %v11398_v29  ;;  %v20784_v42 = vld [vmem:[#allocation155_spill] sm:$0xff]  ;;  %v20785_v55 = vld [vmem:[#allocation81_spill] sm:$0xff] }
 0x34e   : > { %11708 = vmatprep.subr.bf16.mxu1 %v14082_v14  ;;  %v20786_v14 = vld [vmem:[#allocation151_spill] sm:$0xff]  ;;  %v11401_v1 = vpop.f32.mrb[148].mxu0 }
 0x34f   : > { %v17381_v2 = vadd.f32 %v17306_v19, %v11400_v13  ;;  %v20788_v13 = vld [vmem:[#allocation164_spill] sm:$0xff] }
 0x351   : > { %11709 = vmatpush3.bf16.msra.mxu1 %v14083_v5  ;;  %v11402_v5 = vpop.f32.mrb[149].mxu0 }
 0x352   : > { %12852 = vmatprep.subr.bf16.mxu1 %v14090_v56  ;;  %4997 = vmatmul.mubr.bf16.gmra.mrb[252].mxu0 %v20783_v57  ;;  %v11403_v0 = vadd.f32 %v11402_v5, %v11401_v1  ;;  %v11404_v39 = vpop.f32.mrb[150].mxu0 }
 0x353   : > { %5004 = vmatprep.mubr.bf16.mxu0 %v20784_v42  ;;  %v11405_v11 = vpop.f32.mrb[151].mxu0 }
 0x354   : > { %12837 = vmatmul.mubr.msk.bf16.gmra.mrb[80].mxu1 %vm1083_vm0, %v20785_v55  ;;  %v17389_v29 = vadd.f32 %v17314_v36, %v11403_v0  ;;  %v11406_v12 = vadd.f32 %v11405_v11, %v11404_v39  ;;  %v20789_v55 = vld [vmem:[#allocation159_spill] sm:$0xff]  ;;  %v20791_v11 = vld [vmem:[#allocation165_spill] sm:$0xff] }
 0x355   : > { %12840 = vmatprep.mubr.msk.bf16.mxu1 %vm1083_vm0, %v20786_v14  ;;  %v20790_v14 = vld [vmem:[#allocation160_spill] sm:$0xff] }
 0x356   : > { %v17393_v19 = vadd.f32 %v17324_v41, %v11406_v12  ;;  %v11407_v1 = vpop.f32.mrb[152].mxu0  ;;  %v20792_v12 = vld [vmem:[#allocation176_spill] sm:$0xff] }
 0x357   : > { %v11408_v5 = vpop.f32.mrb[153].mxu0 }
 0x358   : > { %v11409_v42 = vadd.f32 %v11408_v5, %v11407_v1  ;;  %v11410_v57 = vpop.f32.mrb[154].mxu0 }
 0x359   : > { %v11411_v36 = vpop.f32.mrb[155].mxu0 }
 0x35a   : > { %5005 = vmatmul.mubr.bf16.gmra.mrb[0].mxu0 %v20787_v9  ;;  %v17401_v0 = vadd.f32 %v17332_v25, %v11409_v42  ;;  %v11412_v39 = vadd.f32 %v11411_v36, %v11410_v57  ;;  %v20795_v36 = vld [vmem:[#allocation178_spill] sm:$0xff] }
 0x35b   : > { %5012 = vmatprep.mubr.bf16.mxu0 %v20788_v13 }
 0x35c   : > { %12841 = vmatmul.mubr.msk.bf16.gmra.mrb[84].mxu1 %vm1083_vm0, %v20789_v55  ;;  %v17405_v41 = vadd.f32 %v17342_v24, %v11412_v39  ;;  %v20793_v55 = vld [vmem:[#allocation167_spill] sm:$0xff] }
 0x35d   : > { %12844 = vmatprep.mubr.msk.bf16.mxu1 %vm1083_vm0, %v20790_v14  ;;  %v20794_v14 = vld [vmem:[#allocation168_spill] sm:$0xff]  ;;  %v20796_v39 = vld [vmem:[#allocation183_spill] sm:$0xff] }
 0x35e   : > { %v11413_v1 = vpop.f32.mrb[156].mxu0 }
 0x35f   : > { %v11414_v5 = vpop.f32.mrb[157].mxu0 }
 0x360   : > { %v11415_v13 = vadd.f32 %v11414_v5, %v11413_v1  ;;  %v11416_v9 = vpop.f32.mrb[158].mxu0 }
 0x361   : > { %v11417_v25 = vpop.f32.mrb[159].mxu0 }
 0x362   : > { %5013 = vmatmul.mubr.bf16.gmra.mrb[4].mxu0 %v20791_v11  ;;  %v17413_v57 = vadd.f32 %v17350_v10, %v11415_v13  ;;  %v11418_v42 = vadd.f32 %v11417_v25, %v11416_v9  ;;  %v20799_v13 = vld [vmem:[#allocation184_spill] sm:$0xff] }
 0x363   : > { %5020 = vmatprep.mubr.bf16.mxu0 %v20792_v12  ;;  %v20800_v25 = vld [vmem:[#allocation188_spill] sm:$0xff] }
 0x364   : > { %12845 = vmatmul.mubr.msk.bf16.gmra.mrb[88].mxu1 %vm1083_vm0, %v20793_v55  ;;  %v17417_v24 = vadd.f32 %v17360_v3, %v11418_v42  ;;  %v20797_v55 = vld [vmem:[#allocation170_spill] sm:$0xff]  ;;  %v20801_v42 = vld [vmem:[#allocation53_spill] sm:$0xff] }
 0x365   : > { %12848 = vmatprep.mubr.msk.bf16.mxu1 %vm1083_vm0, %v20794_v14  ;;  %v20798_v14 = vld [vmem:[#allocation15_spill] sm:$0xff] }
 0x366   : > { %v11452_v12 = vpop.f32.mrb[160].mxu0 }
 0x367   : > { %v11453_v1 = vpop.f32.mrb[161].mxu0 }
 0x368   : > { %v11454_v5 = vadd.f32 %v11453_v1, %v11452_v12  ;;  %v11455_v11 = vpop.f32.mrb[162].mxu0 }
 0x369   : > { %v11456_v59 = vpop.f32.mrb[163].mxu0 }
 0x36a   : > { %5021 = vmatmul.mubr.bf16.gmra.mrb[8].mxu0 %v20795_v36  ;;  %v17424_v10 = vadd.f32 %v17136_v32, %v11454_v5  ;;  %v11457_v9 = vadd.f32 %v11456_v59, %v11455_v11  ;;  %v20803_v11 = vld [vmem:[#allocation190_spill] sm:$0xff]  ;;  %v20804_v5 = vld [vmem:[#allocation195_spill] sm:$0xff] }
 0x36b   : > { %5028 = vmatprep.mubr.bf16.mxu0 %v20796_v39 }
 0x36c   : > { %12849 = vmatmul.mubr.msk.bf16.gmra.mrb[92].mxu1 %vm1083_vm0, %v20797_v55  ;;  %v17428_v3 = vadd.f32 %v17145_v54, %v11457_v9  ;;  %v20802_v55 = vld [vmem:[#allocation77_spill] sm:$0xff]  ;;  %v20805_v9 = vld [vmem:[#allocation91_spill] sm:$0xff] }
 0x36d   : > { %5458 = vmatprep.mubr.bf16.mxu1 %v20798_v14 }
 0x36e   : > { %v11458_v14 = vpop.f32.mrb[164].mxu0 }
 0x36f   : > { %v11459_v12 = vpop.f32.mrb[165].mxu0 }
 0x370   : > { %v11460_v1 = vadd.f32 %v11459_v12, %v11458_v14  ;;  %v11461_v39 = vpop.f32.mrb[166].mxu0 }
 0x371   : > { %v11462_v36 = vpop.f32.mrb[167].mxu0 }
 0x372   : > { %5029 = vmatmul.mubr.bf16.gmra.mrb[12].mxu0 %v20799_v13  ;;  %v17434_v32 = vadd.f32 %v17159_v23, %v11460_v1  ;;  %v11463_v59 = vadd.f32 %v11462_v36, %v11461_v39  ;;  %v20807_v39 = vld [vmem:[#allocation196_spill] sm:$0xff]  ;;  %v20808_v1 = vld [vmem:[#allocation43_spill] sm:$0xff] }
 0x373   : > { %5036 = vmatprep.mubr.bf16.mxu0 %v20800_v25 }
 0x374   : > { %5459 = vmatmul.mubr.bf16.vlgmr.msra.gmra.mrb[160].mxu1 %v20801_v42  ;;  %v17438_v54 = vadd.f32 %v17168_v16, %v11463_v59  ;;  %v20806_v42 = vld [vmem:[#allocation47_spill] sm:$0xff]  ;;  %v20809_v59 = vld [vmem:[#allocation18_spill] sm:$0xff] }
 0x375   : > { %5466 = vmatprep.mubr.bf16.mxu1 %v20802_v55  ;;  %12853 = vmatpush3.bf16.msra.mxu1 %v14090_v56 }
 0x376   : > { %v11464_v56 = vpop.f32.mrb[168].mxu0 }
 0x377   : > { %v11465_v55 = vpop.f32.mrb[169].mxu0 }
 0x378   : > { %v11466_v14 = vadd.f32 %v11465_v55, %v11464_v56  ;;  %v11467_v12 = vpop.f32.mrb[170].mxu0 }
 0x379   : > { %v11468_v25 = vpop.f32.mrb[171].mxu0 }
 0x37a   : > { %5037 = vmatmul.mubr.bf16.gmra.mrb[16].mxu0 %v20803_v11  ;;  %v17444_v23 = vadd.f32 %v17181_v17, %v11466_v14  ;;  %v11469_v36 = vadd.f32 %v11468_v25, %v11467_v12  ;;  %v20811_v11 = vld [vmem:[#allocation194_spill] sm:$0xff]  ;;  %v4745_v25 = vrot.slane %v20747_v50, 1  ;;  %v20812_v14 = vld [vmem:[#allocation116_spill] sm:$0xff] }
 0x37b   : > { %5044 = vmatprep.mubr.bf16.mxu0 %v20804_v5  ;;  %v4744_v13 = vrot.slane %v20811_v11, 1  ;;  %v4753_v12 = vrot.slane %v20812_v14, 1 }
 0x37c   : > { %5467 = vmatmul.mubr.bf16.gmra.mrb[164].mxu1 %v20805_v9  ;;  %v17448_v16 = vadd.f32 %v17190_v38, %v11469_v36  ;;  %v20810_v9 = vld [vmem:[#allocation13_spill] sm:$0xff] }
 0x37d   : > { %5474 = vmatprep.mubr.bf16.mxu1 %v20806_v42  ;;  %v4746_v11 = vsel %vm1985_vm3, %v4744_v13, %v4745_v25  ;;  %v4754_v50 = vsel %vm1985_vm3, %v4745_v25, %v4753_v12  ;;  %v20819_v13 = vld [vmem:[#allocation79_spill] sm:$0xff] }
 0x37e   : > { %v11470_v42 = vpop.f32.mrb[172].mxu0 }
 0x37f   : > { %v11471_v5 = vpop.f32.mrb[173].mxu0 }
 0x380   : > { %v11472_v55 = vadd.f32 %v11471_v5, %v11470_v42  ;;  %v11473_v56 = vpop.f32.mrb[174].mxu0  ;;  %v20815_v5 = vld [vmem:[#allocation16_spill] sm:$0xff]  ;;  %v20816_v42 = vld [vmem:[#allocation23_spill] sm:$0xff] }
 0x381   : > { %v11474_v17 = vpop.f32.mrb[175].mxu0 }
 0x382   : > { %5045 = vmatmul.mubr.bf16.gmra.mrb[20].mxu0 %v20807_v39  ;;  %v17457_v38 = vadd.f32 %v17203_v45, %v11472_v55  ;;  %v11475_v36 = vadd.f32 %v11474_v17, %v11473_v56  ;;  %v17468_v56 = vpack.c.bf16 %v4754_v50, %v4746_v11 }
 0x383   : > { %5052 = vmatprep.mubr.bf16.mxu0 %v20808_v1  ;;  %v20813_v1 = vld [vmem:[#allocation197_spill] sm:$0xff] }
 0x384   : > { %5475 = vmatmul.mubr.bf16.gmra.mrb[168].mxu1 %v20809_v59  ;;  %v17461_v59 = vadd.f32 %v17216_v7, %v11475_v36  ;;  %20817 = vst [vmem:[#allocation92_spill] sm:$0xff] %v17468_v56 }
 0x385   : > { %5482 = vmatprep.mubr.bf16.mxu1 %v20810_v9  ;;  %v20814_v9 = vld [vmem:[#allocation187_spill] sm:$0xff] }
 0x386   : > { %v11476_v14 = vpop.f32.mrb[176].mxu0 }
 0x387   : > { %v11477_v39 = vpop.f32.mrb[177].mxu0 }
 0x388   : > { %v11478_v45 = vadd.f32 %v11477_v39, %v11476_v14  ;;  %v11479_v55 = vpop.f32.mrb[178].mxu0  ;;  %v20820_v39 = vld [vmem:[#allocation24_spill] sm:$0xff] }
 0x389   : > { %v11480_v17 = vpop.f32.mrb[179].mxu0 }
 0x38a   : > { %5053 = vmatmul.mubr.bf16.gmra.mrb[24].mxu0 %v20813_v1  ;;  %v17471_v7 = vadd.f32 %v17233_v26, %v11478_v45  ;;  %v11481_v36 = vadd.f32 %v11480_v17, %v11479_v55  ;;  %v14089_v26 = vld [vmem:[#allocation4 + $0x3b8] sm:$0xff]   ;;  %v20821_v17 = vld [vmem:[#allocation22_spill] sm:$0xff] }
 0x38b   : > { %5060 = vmatprep.mubr.bf16.mxu0 %v20814_v9  ;;  %v14099_v9 = vld [vmem:[#allocation4 + $0x420] sm:$0xff]  }
 0x38c   : > { %5483 = vmatmul.mubr.bf16.gmra.mrb[172].mxu1 %v20815_v5  ;;  %v17475_v5 = vadd.f32 %v17242_v62, %v11481_v36  ;;  %v14091_v62 = vld [vmem:[#allocation4 + $0x400] sm:$0xff]  }
 0x38d   : > { %5490 = vmatprep.mubr.bf16.mxu1 %v20816_v42  ;;  %v20818_v42 = vld [vmem:[#allocation104_spill] sm:$0xff] }
 0x391   : > { %v11482_v25 = vpop.f32.mrb[180].mxu0 }
 0x392   : > { %5061 = vmatmul.mubr.bf16.gmra.mrb[28].mxu0 %v17468_v56  ;;  %v11483_v12 = vpop.f32.mrb[181].mxu0  ;;  %v20826_v56 = vld [vmem:[#allocation120_spill] sm:$0xff] }
 0x393   : > { %10539 = vmatprep.mubr.msk.bf16.mxu0 %vm15964_vm7, %v20819_v13  ;;  %v11484_v11 = vadd.f32 %v11483_v12, %v11482_v25  ;;  %v11485_v50 = vpop.f32.mrb[182].mxu0  ;;  %v20822_v13 = vld [vmem:[#allocation38_spill] sm:$0xff]  ;;  %v20823_v25 = vld [vmem:[#allocation25_spill] sm:$0xff]  ;;  %v20824_v12 = vld [vmem:[#allocation36_spill] sm:$0xff] }
 0x394   : > { %5491 = vmatmul.mubr.bf16.gmra.mrb[176].mxu1 %v20818_v42  ;;  %v11486_v14 = vpop.f32.mrb[183].mxu0  ;;  %v14095_v42 = vld [vmem:[#allocation4 + $0x410] sm:$0xff]  }
 0x395   : > { %5498 = vmatprep.mubr.bf16.mxu1 %v20820_v39  ;;  %v17483_v45 = vadd.f32 %v17253_v44, %v11484_v11  ;;  %v11487_v55 = vadd.f32 %v11486_v14, %v11485_v50  ;;  %v14092_v39 = vld [vmem:[#allocation4 + $0x3c0] sm:$0xff]   ;;  %v14093_v44 = vld [vmem:[#allocation4 + $0x408] sm:$0xff]   ;;  %v17496_v11 = vld [vmem:[#allocation4 + $0x3b0] sm:$0xff]  }
 0x396   : > { %12886 = vmatprep.subr.bf16.mxu1 %v17496_v11 }
 0x397   : > { %v17489_v36 = vadd.f32 %v17260_v34, %v11487_v55 }
 0x399   : > { %v11488_v50 = vpop.f32.mrb[184].mxu0 }
 0x39a   : > { %10543 = vmatmul.mubr.msk.bf16.vlgmr.msra.gmra.mrb[32].mxu0 %vm15964_vm7, %v20821_v17  ;;  %v11489_v14 = vpop.f32.mrb[185].mxu0  ;;  %v14094_v17 = vld [vmem:[#allocation4 + $0x3c8] sm:$0xff]  }
 0x39b   : > { %11953 = vmatpush3.bf16.msra.mxu0 %v14089_v26  ;;  %10547 = vmatprep.mubr.msk.bf16.mxu0 %vm15964_vm7, %v20823_v25  ;;  %v11490_v34 = vadd.f32 %v11489_v14, %v11488_v50  ;;  %v11491_v55 = vpop.f32.mrb[186].mxu0  ;;  %v20827_v50 = vld [vmem:[#allocation54_spill] sm:$0xff]  ;;  %v14097_v14 = vld [vmem:[#allocation4 + $0x418] sm:$0xff]  }
 0x39c   : > { %5499 = vmatmul.mubr.bf16.gmra.mrb[180].mxu1 %v20822_v13  ;;  %11954 = vmatprep.subr.bf16.mxu0 %v14091_v62  ;;  %v11492_v26 = vpop.f32.mrb[187].mxu0 }
 0x39d   : > { %5506 = vmatprep.mubr.bf16.mxu1 %v20824_v12  ;;  %v17500_v13 = vadd.f32 %v17271_v15, %v11490_v34  ;;  %v11493_v25 = vadd.f32 %v11492_v26, %v11491_v55  ;;  %v20825_v12 = vld [vmem:[#allocation35_spill] sm:$0xff]  ;;  %v14096_v15 = vld [vmem:[#allocation4 + $0x3d0] sm:$0xff]  }
 0x39f   : > { %11955 = vmatpush3.bf16.msra.mxu0 %v14092_v39  ;;  %v17506_v62 = vadd.f32 %v17278_v63, %v11493_v25  ;;  %v20828_v39 = vld [vmem:[#allocation42_spill] sm:$0xff]  ;;  %v14098_v63 = vld [vmem:[#allocation4 + $0x3d8] sm:$0xff]  }
 0x3a0   : > { %11956 = vmatprep.subr.bf16.mxu0 %v14093_v44 }
 0x3a1   : > { %v11494_v44 = vpop.f32.mrb[188].mxu0 }
 0x3a2   : > { %10551 = vmatmul.mubr.msk.bf16.gmra.mrb[36].mxu0 %vm15964_vm7, %v20825_v12  ;;  %v11495_v34 = vpop.f32.mrb[189].mxu0 }
 0x3a3   : > { %10555 = vmatprep.mubr.msk.bf16.mxu0 %vm15964_vm7, %v20827_v50  ;;  %11957 = vmatpush3.bf16.msra.mxu0 %v14094_v17  ;;  %v11496_v55 = vadd.f32 %v11495_v34, %v11494_v44  ;;  %v11497_v26 = vpop.f32.mrb[190].mxu0  ;;  %v20829_v50 = vld [vmem:[#allocation65_spill] sm:$0xff]  ;;  %v20831_v44 = vld [vmem:[#allocation11_spill] sm:$0xff] }
 0x3a4   : > { %5507 = vmatmul.mubr.bf16.gmra.mrb[184].mxu1 %v20826_v56  ;;  %11958 = vmatprep.subr.bf16.mxu0 %v14095_v42  ;;  %v11498_v12 = vpop.f32.mrb[191].mxu0  ;;  %v20830_v42 = vld [vmem:[#allocation63_spill] sm:$0xff] }
 0x3a5   : > { %5514 = vmatprep.mubr.bf16.mxu1 %v20828_v39  ;;  %v17514_v25 = vadd.f32 %v17289_v47, %v11496_v55  ;;  %v11499_v56 = vadd.f32 %v11498_v12, %v11497_v26  ;;  %v14100_v47 = vld [vmem:[#allocation4 + $0x3e0] sm:$0xff]   ;;  %v14103_v39 = vld [vmem:[#allocation4 + $0x430] sm:$0xff]  }
 0x3a7   : > { %11959 = vmatpush3.bf16.msra.mxu0 %v14096_v15  ;;  %v17520_v17 = vadd.f32 %v17300_v30, %v11499_v56  ;;  %v20832_v15 = vld [vmem:[#allocation60_spill] sm:$0xff]  ;;  %v14102_v30 = vld [vmem:[#allocation4 + $0x3e8] sm:$0xff]  }
 0x3a8   : > { %11960 = vmatprep.subr.bf16.mxu0 %v14097_v14  ;;  %v14101_v14 = vld [vmem:[#allocation4 + $0x428] sm:$0xff]  }
 0x3a9   : > { %v11500_v34 = vpop.f32.mrb[192].mxu0 }
 0x3aa   : > { %10559 = vmatmul.mubr.msk.bf16.gmra.mrb[40].mxu0 %vm15964_vm7, %v20829_v50  ;;  %v11501_v55 = vpop.f32.mrb[193].mxu0 }
 0x3ab   : > { %10563 = vmatprep.mubr.msk.bf16.mxu0 %vm15964_vm7, %v20831_v44  ;;  %11961 = vmatpush3.bf16.msra.mxu0 %v14098_v63  ;;  %v11502_v26 = vadd.f32 %v11501_v55, %v11500_v34  ;;  %v11503_v12 = vpop.f32.mrb[194].mxu0  ;;  %v20834_v44 = vld [vmem:[#allocation41_spill] sm:$0xff]  ;;  %v14105_v34 = vld [vmem:[#allocation4 + $0x480] sm:$0xff]  }
 0x3ac   : > { %5515 = vmatmul.mubr.bf16.gmra.mrb[188].mxu1 %v20830_v42  ;;  %11962 = vmatprep.subr.bf16.mxu0 %v14099_v9  ;;  %v11504_v50 = vpop.f32.mrb[195].mxu0  ;;  %v20833_v9 = vld [vmem:[#allocation86_spill] sm:$0xff] }
 0x3ad   : > { %5522 = vmatprep.mubr.bf16.mxu1 %v20832_v15  ;;  %v17528_v56 = vadd.f32 %v17311_v58, %v11502_v26  ;;  %v11505_v42 = vadd.f32 %v11504_v50, %v11503_v12  ;;  %v14104_v58 = vld [vmem:[#allocation4 + $0x3f0] sm:$0xff]   ;;  %v20835_v12 = vld [vmem:[#allocation76_spill] sm:$0xff] }
 0x3ae   : > { %v20836_v50 = vld [vmem:[#allocation106_spill] sm:$0xff] }
 0x3af   : > { %11963 = vmatpush3.bf16.msra.mxu0 %v14100_v47  ;;  %v17534_v63 = vadd.f32 %v17318_v49, %v11505_v42 }
 0x3b0   : > { %11964 = vmatprep.subr.bf16.mxu0 %v14101_v14 }
 0x3b1   : > { %v11506_v47 = vpop.f32.mrb[196].mxu0 }
 0x3b2   : > { %10567 = vmatmul.mubr.msk.bf16.gmra.mrb[44].mxu0 %vm15964_vm7, %v20692_v61  ;;  %v11507_v14 = vpop.f32.mrb[197].mxu0 }
 0x3b3   : > { %10571 = vmatprep.mubr.msk.bf16.mxu0 %vm15964_vm7, %v20695_v40  ;;  %11965 = vmatpush3.bf16.msra.mxu0 %v14102_v30  ;;  %v11508_v55 = vadd.f32 %v11507_v14, %v11506_v47  ;;  %v11509_v26 = vpop.f32.mrb[198].mxu0  ;;  %v20838_v30 = vld [vmem:[#allocation101_spill] sm:$0xff] }
 0x3b4   : > { %5523 = vmatmul.mubr.bf16.gmra.mrb[192].mxu1 %v20833_v9  ;;  %11966 = vmatprep.subr.bf16.mxu0 %v14103_v39  ;;  %v11510_v61 = vpop.f32.mrb[199].mxu0  ;;  %v20837_v39 = vld [vmem:[#allocation14_spill] sm:$0xff] }
 0x3b5   : > { %5530 = vmatprep.mubr.bf16.mxu1 %v20834_v44  ;;  %v17542_v49 = vadd.f32 %v17329_v18, %v11508_v55  ;;  %v11511_v42 = vadd.f32 %v11510_v61, %v11509_v26  ;;  %v20839_v61 = vld [vmem:[#allocation122_spill] sm:$0xff]  ;;  %v20877_v44 = vld [vmem:[#allocation68_spill] sm:$0xff] }
 0x3b7   : > { %11967 = vmatpush3.bf16.msra.mxu0 %v14104_v58  ;;  %v17548_v40 = vadd.f32 %v17336_v52, %v11511_v42  ;;  %v20840_v42 = vld [vmem:[#allocation123_spill] sm:$0xff] }
 0x3b8   : > { %12081 = vmatprep.subr.bf16.mxu0 %v14105_v34 }
 0x3b9   : > { %v11512_v58 = vpop.f32.mrb[200].mxu0 }
 0x3ba   : > { %10575 = vmatmul.mubr.msk.bf16.gmra.mrb[48].mxu0 %vm15964_vm7, %v20835_v12  ;;  %v11513_v18 = vpop.f32.mrb[201].mxu0 }
 0x3bb   : > { %10579 = vmatprep.mubr.msk.bf16.mxu0 %vm15964_vm7, %v20837_v39  ;;  %v11514_v47 = vadd.f32 %v11513_v18, %v11512_v58  ;;  %v11515_v14 = vpop.f32.mrb[202].mxu0 }
 0x3bc   : > { %5531 = vmatmul.mubr.bf16.gmra.mrb[196].mxu1 %v20836_v50  ;;  %v11516_v34 = vpop.f32.mrb[203].mxu0  ;;  %v20874_v50 = vld [vmem:[#allocation33_spill] sm:$0xff] }
 0x3bd   : > { %5538 = vmatprep.mubr.bf16.mxu1 %v20838_v30  ;;  %v17556_v55 = vadd.f32 %v17347_v35, %v11514_v47  ;;  %v11517_v26 = vadd.f32 %v11516_v34, %v11515_v14  ;;  %v20841_v14 = vld [vmem:[#allocation140_spill] sm:$0xff]  ;;  %v14108_v30 = vld [vmem:[#allocation4 + $0x488] sm:$0xff]  }
 0x3bf   : > { %v17562_v52 = vadd.f32 %v17354_v21, %v11517_v26 }
 0x3c1   : > { %v11518_v12 = vpop.f32.mrb[204].mxu0 }
 0x3c2   : > { %10583 = vmatmul.mubr.msk.bf16.gmra.mrb[52].mxu0 %vm15964_vm7, %v16547_v4  ;;  %v11519_v39 = vpop.f32.mrb[205].mxu0 }
 0x3c3   : > { %10587 = vmatprep.mubr.msk.bf16.mxu0 %vm15964_vm7, %v16551_v53  ;;  %v11520_v35 = vadd.f32 %v11519_v39, %v11518_v12  ;;  %v11521_v58 = vpop.f32.mrb[206].mxu0  ;;  %v20842_v53 = vld [vmem:[#allocation137_spill] sm:$0xff] }
 0x3c4   : > { %5539 = vmatmul.mubr.bf16.gmra.mrb[200].mxu1 %v20839_v61  ;;  %v11522_v18 = vpop.f32.mrb[207].mxu0  ;;  %v20873_v61 = vld [vmem:[#allocation40_spill] sm:$0xff] }
 0x3c5   : > { %5546 = vmatprep.mubr.bf16.mxu1 %v20840_v42  ;;  %v17570_v47 = vadd.f32 %v17365_v48, %v11520_v35  ;;  %v11523_v4 = vadd.f32 %v11522_v18, %v11521_v58  ;;  %v20843_v58 = vld [vmem:[#allocation135_spill] sm:$0xff]  ;;  %v20871_v42 = vld [vmem:[#allocation82_spill] sm:$0xff] }
 0x3c7   : > { %v17576_v21 = vadd.f32 %v17369_v31, %v11523_v4 }
 0x3c9   : > { %v11524_v34 = vpop.f32.mrb[208].mxu0 }
 0x3ca   : > { %10591 = vmatmul.mubr.msk.bf16.gmra.mrb[56].mxu0 %vm15964_vm7, %v16600_v22  ;;  %v11525_v26 = vpop.f32.mrb[209].mxu0 }
 0x3cb   : > { %10595 = vmatprep.mubr.msk.bf16.mxu0 %vm15964_vm7, %v16607_v60  ;;  %v11526_v48 = vadd.f32 %v11525_v26, %v11524_v34  ;;  %v11527_v12 = vpop.f32.mrb[210].mxu0  ;;  %v20844_v60 = vld [vmem:[#allocation139_spill] sm:$0xff] }
 0x3cc   : > { %5547 = vmatmul.mubr.bf16.gmra.mrb[204].mxu1 %v20841_v14  ;;  %v11528_v39 = vpop.f32.mrb[211].mxu0 }
 0x3cd   : > { %5554 = vmatprep.mubr.bf16.mxu1 %v20842_v53  ;;  %v17584_v35 = vadd.f32 %v17377_v37, %v11526_v48  ;;  %v11529_v22 = vadd.f32 %v11528_v39, %v11527_v12  ;;  %v20845_v12 = vld [vmem:[#allocation146_spill] sm:$0xff]  ;;  %v20867_v53 = vld [vmem:[#allocation93_spill] sm:$0xff] }
 0x3cf   : > { %v17590_v31 = vadd.f32 %v17381_v2, %v11529_v22 }
 0x3d1   : > { %v11530_v18 = vpop.f32.mrb[212].mxu0 }
 0x3d2   : > { %10599 = vmatmul.mubr.msk.bf16.gmra.mrb[60].mxu0 %vm15964_vm7, %v16622_v28  ;;  %v11531_v4 = vpop.f32.mrb[213].mxu0 }
 0x3d3   : > { %10603 = vmatprep.mubr.msk.bf16.mxu0 %vm15964_vm7, %v16296_v51  ;;  %v11532_v37 = vadd.f32 %v11531_v4, %v11530_v18  ;;  %v11533_v34 = vpop.f32.mrb[214].mxu0  ;;  %v20846_v51 = vld [vmem:[#allocation94_spill] sm:$0xff] }
 0x3d4   : > { %5555 = vmatmul.mubr.bf16.gmra.mrb[208].mxu1 %v20843_v58  ;;  %v11534_v26 = vpop.f32.mrb[215].mxu0 }
 0x3d5   : > { %5562 = vmatprep.mubr.bf16.mxu1 %v20844_v60  ;;  %v17598_v48 = vadd.f32 %v17389_v29, %v11532_v37  ;;  %v11535_v28 = vadd.f32 %v11534_v26, %v11533_v34  ;;  %v20847_v34 = vld [vmem:[#allocation27_spill] sm:$0xff]  ;;  %v20863_v60 = vld [vmem:[#allocation90_spill] sm:$0xff] }
 0x3d6   : > { %v20848_v26 = vld [vmem:[#allocation191_spill] sm:$0xff] }
 0x3d7   : > { %v17604_v2 = vadd.f32 %v17393_v19, %v11535_v28  ;;  %v20850_v28 = vld [vmem:[#allocation185_spill] sm:$0xff] }
 0x3d9   : > { %v11536_v39 = vpop.f32.mrb[216].mxu0 }
 0x3da   : > { %10607 = vmatmul.mubr.msk.bf16.gmra.mrb[64].mxu0 %vm15964_vm7, %v16318_v8  ;;  %v11537_v22 = vpop.f32.mrb[217].mxu0 }
 0x3db   : > { %10611 = vmatprep.mubr.msk.bf16.mxu0 %vm15964_vm7, %v16323_v46  ;;  %v11538_v29 = vadd.f32 %v11537_v22, %v11536_v39  ;;  %v11539_v18 = vpop.f32.mrb[218].mxu0  ;;  %v20849_v46 = vld [vmem:[#allocation26_spill] sm:$0xff] }
 0x3dc   : > { %5563 = vmatmul.mubr.bf16.gmra.mrb[212].mxu1 %v20845_v12  ;;  %v11540_v4 = vpop.f32.mrb[219].mxu0 }
 0x3dd   : > { %5570 = vmatprep.mubr.bf16.mxu1 %v20846_v51  ;;  %v17612_v37 = vadd.f32 %v17401_v0, %v11538_v29  ;;  %v11541_v8 = vadd.f32 %v11540_v4, %v11539_v18  ;;  %v20851_v51 = vld [vmem:[#allocation46_spill] sm:$0xff] }
 0x3df   : > { %v17618_v19 = vadd.f32 %v17405_v41, %v11541_v8  ;;  %v20852_v8 = vld [vmem:[#allocation80_spill] sm:$0xff] }
 0x3e1   : > { %v11542_v39 = vpop.f32.mrb[220].mxu0 }
 0x3e2   : > { %10615 = vmatmul.mubr.msk.bf16.gmra.mrb[68].mxu0 %vm15964_vm7, %v20847_v34  ;;  %v11543_v22 = vpop.f32.mrb[221].mxu0 }
 0x3e3   : > { %10619 = vmatprep.mubr.msk.bf16.mxu0 %vm15964_vm7, %v20849_v46  ;;  %v11544_v0 = vadd.f32 %v11543_v22, %v11542_v39  ;;  %v11545_v29 = vpop.f32.mrb[222].mxu0  ;;  %v20853_v46 = vld [vmem:[#allocation103_spill] sm:$0xff] }
 0x3e4   : > { %5571 = vmatmul.mubr.bf16.gmra.mrb[216].mxu1 %v20848_v26  ;;  %v11546_v18 = vpop.f32.mrb[223].mxu0  ;;  %v20854_v39 = vld [vmem:[#allocation31_spill] sm:$0xff] }
 0x3e5   : > { %5578 = vmatprep.mubr.bf16.mxu1 %v20850_v28  ;;  %v17626_v4 = vadd.f32 %v17413_v57, %v11544_v0  ;;  %v11547_v34 = vadd.f32 %v11546_v18, %v11545_v29 }
 0x3e7   : > { %v17632_v41 = vadd.f32 %v17417_v24, %v11547_v34  ;;  %v17643_v24 = vld [vmem:[#allocation4 + $0x438] sm:$0xff]  }
 0x3e8   : > { %v20855_v34 = vld [vmem:[#allocation111_spill] sm:$0xff] }
 0x3e9   : > { %v11581_v22 = vpop.f32.mrb[224].mxu0 }
 0x3ea   : > { %10623 = vmatmul.mubr.msk.bf16.gmra.mrb[72].mxu0 %vm15964_vm7, %v20851_v51  ;;  %v11582_v57 = vpop.f32.mrb[225].mxu0 }
 0x3eb   : > { %10627 = vmatprep.mubr.msk.bf16.mxu0 %vm15964_vm7, %v20853_v46  ;;  %v11584_v0 = vpop.f32.mrb[226].mxu0  ;;  %v11583_v29 = vadd.f32 %v11582_v57, %v11581_v22  ;;  %v20857_v46 = vld [vmem:[#allocation58_spill] sm:$0xff] }
 0x3ec   : > { %5579 = vmatmul.mubr.bf16.gmra.mrb[220].mxu1 %v20852_v8  ;;  %v11585_v18 = vpop.f32.mrb[227].mxu0  ;;  %v20856_v8 = vld [vmem:[#allocation147_spill] sm:$0xff]  ;;  %v20858_v22 = vld [vmem:[#allocation10_spill] sm:$0xff] }
 0x3ed   : > { %12854 = vmatprep.mubr.msk.bf16.mxu1 %vm1083_vm0, %v20854_v39  ;;  %v17641_v28 = vadd.f32 %v17424_v10, %v11583_v29  ;;  %v11586_v51 = vadd.f32 %v11585_v18, %v11584_v0 }
 0x3ef   : > { %v17654_v39 = vadd.f32 %v17428_v3, %v11586_v51  ;;  %v20860_v3 = vld [vmem:[#allocation9_spill] sm:$0xff]  ;;  %v20861_v51 = vld [vmem:[#allocation87_spill] sm:$0xff] }
 0x3f1   : > { %v11587_v10 = vpop.f32.mrb[228].mxu0 }
 0x3f2   : > { %10631 = vmatmul.mubr.msk.bf16.gmra.mrb[76].mxu0 %vm15964_vm7, %v20855_v34  ;;  %v11588_v57 = vpop.f32.mrb[229].mxu0 }
 0x3f3   : > { %10635 = vmatprep.mubr.msk.bf16.mxu0 %vm15964_vm7, %v20857_v46  ;;  %v11590_v0 = vpop.f32.mrb[230].mxu0  ;;  %v11589_v29 = vadd.f32 %v11588_v57, %v11587_v10  ;;  %v20859_v46 = vld [vmem:[#allocation61_spill] sm:$0xff]  ;;  %v20862_v10 = vld [vmem:[#allocation56_spill] sm:$0xff] }
 0x3f4   : > { %12855 = vmatmul.mubr.msk.bf16.vlgmr.msra.gmra.mrb[64].mxu1 %vm1083_vm0, %v20856_v8  ;;  %v11591_v18 = vpop.f32.mrb[231].mxu0 }
 0x3f5   : > { %12858 = vmatprep.mubr.msk.bf16.mxu1 %vm1083_vm0, %v20858_v22  ;;  %12887 = vmatpush3.bf16.msra.mxu1 %v17496_v11  ;;  %v17661_v34 = vadd.f32 %v17434_v32, %v11589_v29  ;;  %v11592_v26 = vadd.f32 %v11591_v18, %v11590_v0 }
 0x3f6   : > { %12920 = vmatprep.subr.bf16.mxu1 %v17643_v24 }
 0x3f7   : > { %v17672_v11 = vadd.f32 %v17438_v54, %v11592_v26  ;;  %v20865_v54 = vld [vmem:[#allocation107_spill] sm:$0xff] }
 0x3fa   : > { %10639 = vmatmul.mubr.msk.bf16.gmra.mrb[80].mxu0 %vm15964_vm7, %v20859_v46 }
 0x3fb   : > { %10643 = vmatprep.mubr.msk.bf16.mxu0 %vm15964_vm7, %v20861_v51  ;;  %v20864_v51 = vld [vmem:[#allocation28_spill] sm:$0xff] }
 0x3fc   : > { %12859 = vmatmul.mubr.msk.bf16.gmra.mrb[68].mxu1 %vm1083_vm0, %v20860_v3 }
 0x3fd   : > { %12862 = vmatprep.mubr.msk.bf16.mxu1 %vm1083_vm0, %v20862_v10  ;;  %v11593_v32 = vpop.f32.mrb[232].mxu0 }
 0x3fe   : > { %v11594_v57 = vpop.f32.mrb[233].mxu0 }
 0x3ff   : > { %v11596_v0 = vpop.f32.mrb[234].mxu0  ;;  %v11595_v29 = vadd.f32 %v11594_v57, %v11593_v32  ;;  %v20866_v32 = vld [vmem:[#allocation37_spill] sm:$0xff] }
 0x400   : > { %v11597_v18 = vpop.f32.mrb[235].mxu0 }
 0x401   : > { %v17677_v46 = vadd.f32 %v17444_v23, %v11595_v29  ;;  %v11598_v12 = vadd.f32 %v11597_v18, %v11596_v0 }
 0x402   : > { %10647 = vmatmul.mubr.msk.bf16.gmra.mrb[84].mxu0 %vm15964_vm7, %v20863_v60 }
 0x403   : > { %10651 = vmatprep.mubr.msk.bf16.mxu0 %vm15964_vm7, %v20865_v54  ;;  %v17688_v26 = vadd.f32 %v17448_v16, %v11598_v12  ;;  %v20868_v54 = vld [vmem:[#allocation66_spill] sm:$0xff]  ;;  %v20869_v16 = vld [vmem:[#allocation177_spill] sm:$0xff] }
 0x404   : > { %12863 = vmatmul.mubr.msk.bf16.gmra.mrb[72].mxu1 %vm1083_vm0, %v20864_v51 }
 0x405   : > { %12866 = vmatprep.mubr.msk.bf16.mxu1 %vm1083_vm0, %v20866_v32  ;;  %v11599_v23 = vpop.f32.mrb[236].mxu0 }
 0x406   : > { %v11600_v57 = vpop.f32.mrb[237].mxu0 }
 0x407   : > { %v11602_v0 = vpop.f32.mrb[238].mxu0  ;;  %v11601_v29 = vadd.f32 %v11600_v57, %v11599_v23  ;;  %v20870_v23 = vld [vmem:[#allocation44_spill] sm:$0xff] }
 0x408   : > { %v11603_v18 = vpop.f32.mrb[239].mxu0 }
 0x409   : > { %v17693_v60 = vadd.f32 %v17457_v38, %v11601_v29  ;;  %v11604_v58 = vadd.f32 %v11603_v18, %v11602_v0 }
 0x40a   : > { %10655 = vmatmul.mubr.msk.bf16.gmra.mrb[88].mxu0 %vm15964_vm7, %v20867_v53 }
 0x40b   : > { %10659 = vmatprep.mubr.msk.bf16.mxu0 %vm15964_vm7, %v20869_v16  ;;  %v17704_v12 = vadd.f32 %v17461_v59, %v11604_v58  ;;  %v20872_v59 = vld [vmem:[#allocation32_spill] sm:$0xff] }
 0x40c   : > { %12867 = vmatmul.mubr.msk.bf16.gmra.mrb[76].mxu1 %vm1083_vm0, %v20868_v54 }
 0x40d   : > { %12870 = vmatprep.mubr.msk.bf16.mxu1 %vm1083_vm0, %v20870_v23  ;;  %v11605_v38 = vpop.f32.mrb[240].mxu0 }
 0x40e   : > { %v11606_v57 = vpop.f32.mrb[241].mxu0 }
 0x40f   : > { %v11608_v0 = vpop.f32.mrb[242].mxu0  ;;  %v11607_v29 = vadd.f32 %v11606_v57, %v11605_v38 }
 0x410   : > { %v11609_v18 = vpop.f32.mrb[243].mxu0 }
 0x411   : > { %v17709_v53 = vadd.f32 %v17471_v7, %v11607_v29  ;;  %v11610_v14 = vadd.f32 %v11609_v18, %v11608_v0  ;;  %v14106_v29 = vld [vmem:[#allocation4 + $0x440] sm:$0xff]  }
 0x412   : > { %10663 = vmatmul.mubr.msk.bf16.gmra.mrb[92].mxu0 %vm15964_vm7, %v20869_v16 }
 0x413   : > { %6440 = vmatprep.mubr.bf16.mxu0 %v20872_v59  ;;  %v17718_v58 = vadd.f32 %v17475_v5, %v11610_v14  ;;  %v20875_v59 = vld [vmem:[#allocation88_spill] sm:$0xff]  ;;  %v14109_v5 = vld [vmem:[#allocation4 + $0x448] sm:$0xff]  }
 0x414   : > { %12871 = vmatmul.mubr.msk.bf16.gmra.mrb[80].mxu1 %vm1083_vm0, %v20871_v42 }
 0x415   : > { %12874 = vmatprep.mubr.msk.bf16.mxu1 %vm1083_vm0, %v20873_v61  ;;  %v11611_v38 = vpop.f32.mrb[244].mxu0  ;;  %v20876_v61 = vld [vmem:[#allocation51_spill] sm:$0xff] }
 0x416   : > { %v11612_v57 = vpop.f32.mrb[245].mxu0 }
 0x417   : > { %v11614_v7 = vpop.f32.mrb[246].mxu0  ;;  %v11613_v0 = vadd.f32 %v11612_v57, %v11611_v38  ;;  %v14110_v38 = vld [vmem:[#allocation4 + $0x490] sm:$0xff]  }
 0x418   : > { %v11615_v18 = vpop.f32.mrb[247].mxu0 }
 0x419   : > { %v17723_v16 = vadd.f32 %v17483_v45, %v11613_v0  ;;  %v11616_v43 = vadd.f32 %v11615_v18, %v11614_v7  ;;  %v14111_v0 = vld [vmem:[#allocation4 + $0x450] sm:$0xff]   ;;  %v14112_v18 = vld [vmem:[#allocation4 + $0x498] sm:$0xff]  }
 0x41a   : > { %6441 = vmatmul.mubr.bf16.vlgmr.msra.gmra.mrb[96].mxu0 %v20874_v50 }
 0x41b   : > { %12082 = vmatpush3.bf16.msra.mxu0 %v14106_v29  ;;  %v17729_v14 = vadd.f32 %v17489_v36, %v11616_v43  ;;  %6448 = vmatprep.mubr.bf16.mxu0 %v20876_v61  ;;  %v20878_v36 = vld [vmem:[#allocation52_spill] sm:$0xff]  ;;  %v20879_v61 = vld [vmem:[#allocation99_spill] sm:$0xff] }
 0x41c   : > { %12875 = vmatmul.mubr.msk.bf16.gmra.mrb[84].mxu1 %vm1083_vm0, %v20875_v59  ;;  %12083 = vmatprep.subr.bf16.mxu0 %v14108_v30 }
 0x41d   : > { %12878 = vmatprep.mubr.msk.bf16.mxu1 %vm1083_vm0, %v20877_v44  ;;  %v11617_v57 = vpop.f32.mrb[248].mxu0  ;;  %v20880_v44 = vld [vmem:[#allocation73_spill] sm:$0xff] }
 0x41e   : > { %v11618_v45 = vpop.f32.mrb[249].mxu0 }
 0x41f   : > { %v11620_v7 = vpop.f32.mrb[250].mxu0  ;;  %12084 = vmatpush3.bf16.msra.mxu0 %v14109_v5  ;;  %v11619_v50 = vadd.f32 %v11618_v45, %v11617_v57  ;;  %v20881_v5 = vld [vmem:[#allocation62_spill] sm:$0xff] }
 0x420   : > { %v11621_v29 = vpop.f32.mrb[251].mxu0  ;;  %12085 = vmatprep.subr.bf16.mxu0 %v14110_v38  ;;  %v14113_v38 = vld [vmem:[#allocation4 + $0x458] sm:$0xff]  }
 0x421   : > { %v17735_v59 = vadd.f32 %v17500_v13, %v11619_v50  ;;  %v11622_v43 = vadd.f32 %v11621_v29, %v11620_v7  ;;  %v14114_v13 = vld [vmem:[#allocation4 + $0x4a0] sm:$0xff]  }
 0x422   : > { %6449 = vmatmul.mubr.bf16.gmra.mrb[100].mxu0 %v20878_v36  ;;  %v14115_v36 = vld [vmem:[#allocation4 + $0x460] sm:$0xff]  }
 0x423   : > { %6456 = vmatprep.mubr.bf16.mxu0 %v20880_v44  ;;  %v17742_v30 = vadd.f32 %v17506_v62, %v11622_v43  ;;  %12086 = vmatpush3.bf16.msra.mxu0 %v14111_v0  ;;  %v20882_v43 = vld [vmem:[#allocation74_spill] sm:$0xff]  ;;  %v20884_v0 = vld [vmem:[#allocation96_spill] sm:$0xff] }
 0x424   : > { %12879 = vmatmul.mubr.msk.bf16.gmra.mrb[88].mxu1 %vm1083_vm0, %v20879_v61  ;;  %12087 = vmatprep.subr.bf16.mxu0 %v14112_v18  ;;  %v14117_v61 = vld [vmem:[#allocation4 + $0x4a8] sm:$0xff]  }
 0x425   : > { %12882 = vmatprep.mubr.msk.bf16.mxu1 %vm1083_vm0, %v20881_v5  ;;  %v11623_v57 = vpop.f32.mrb[252].mxu0  ;;  %v20883_v5 = vld [vmem:[#allocation158_spill] sm:$0xff] }
 0x426   : > { %v11624_v45 = vpop.f32.mrb[253].mxu0 }
 0x427   : > { %v11626_v7 = vpop.f32.mrb[254].mxu0  ;;  %v11625_v50 = vadd.f32 %v11624_v45, %v11623_v57  ;;  %12088 = vmatpush3.bf16.msra.mxu0 %v14113_v38  ;;  %v20885_v57 = vld [vmem:[#allocation95_spill] sm:$0xff]  ;;  %v14118_v38 = vld [vmem:[#allocation4 + $0x468] sm:$0xff]  }
 0x428   : > { %v11627_v29 = vpop.f32.mrb[255].mxu0  ;;  %12089 = vmatprep.subr.bf16.mxu0 %v14114_v13 }
 0x429   : > { %v17747_v44 = vadd.f32 %v17514_v25, %v11625_v50  ;;  %v11628_v62 = vadd.f32 %v11627_v29, %v11626_v7  ;;  %v14119_v25 = vld [vmem:[#allocation4 + $0x4b0] sm:$0xff]  }
 0x42a   : > { %6457 = vmatmul.mubr.bf16.gmra.mrb[104].mxu0 %v20882_v43 }
 0x42b   : > { %6464 = vmatprep.mubr.bf16.mxu0 %v20884_v0  ;;  %v17754_v18 = vadd.f32 %v17520_v17, %v11628_v62  ;;  %12090 = vmatpush3.bf16.msra.mxu0 %v14115_v36  ;;  %v17761_v17 = vld [vmem:[#allocation4 + $0x4c0] sm:$0xff]   ;;  %v14121_v36 = vld [vmem:[#allocation4 + $0x4b8] sm:$0xff]  }
 0x42c   : > { %12883 = vmatmul.mubr.msk.bf16.gmra.mrb[92].mxu1 %vm1083_vm0, %v20883_v5  ;;  %12091 = vmatprep.subr.bf16.mxu0 %v14117_v61  ;;  %v14120_v5 = vld [vmem:[#allocation4 + $0x470] sm:$0xff]   ;;  %v20886_v62 = vld [vmem:[#allocation163_spill] sm:$0xff] }
 0x42d   : > { %12888 = vmatprep.mubr.msk.bf16.mxu1 %vm1083_vm0, %v20885_v57  ;;  %v11629_v13 = vpop.f32.mrb[0].mxu0  ;;  %v20887_v61 = vld [vmem:[#allocation110_spill] sm:$0xff] }
 0x42e   : > { %v11630_v45 = vpop.f32.mrb[1].mxu0 }
 0x42f   : > { %v11631_v7 = vadd.f32 %v11630_v45, %v11629_v13  ;;  %v11632_v50 = vpop.f32.mrb[2].mxu0  ;;  %12092 = vmatpush3.bf16.msra.mxu0 %v14118_v38  ;;  %v20888_v38 = vld [vmem:[#allocation186_spill] sm:$0xff]  ;;  %v14122_v13 = vld [vmem:[#allocation4 + $0x478] sm:$0xff]  }
 0x430   : > { %v11633_v29 = vpop.f32.mrb[3].mxu0  ;;  %12093 = vmatprep.subr.bf16.mxu0 %v14119_v25 }
 0x431   : > { %v11634_v43 = vadd.f32 %v11633_v29, %v11632_v50  ;;  %v17759_v0 = vadd.f32 %v17528_v56, %v11631_v7  ;;  %v20889_v29 = vld [vmem:[#allocation193_spill] sm:$0xff] }
 0x432   : > { %6465 = vmatmul.mubr.bf16.gmra.mrb[108].mxu0 %v20771_v6 }
 0x433   : > { %6472 = vmatprep.mubr.bf16.mxu0 %v20887_v61  ;;  %v17768_v57 = vadd.f32 %v17534_v63, %v11634_v43  ;;  %12094 = vmatpush3.bf16.msra.mxu0 %v14120_v5  ;;  %v20890_v5 = vld [vmem:[#allocation161_spill] sm:$0xff] }
 0x434   : > { %12889 = vmatmul.mubr.msk.bf16.vlgmr.msra.gmra.mrb[64].mxu1 %vm1083_vm0, %v20886_v62  ;;  %12095 = vmatprep.subr.bf16.mxu0 %v14121_v36 }
 0x435   : > { %12892 = vmatprep.mubr.msk.bf16.mxu1 %vm1083_vm0, %v20888_v38  ;;  %12921 = vmatpush3.bf16.msra.mxu1 %v17643_v24  ;;  %v11635_v56 = vpop.f32.mrb[4].mxu0 }
 0x436   : > { %12954 = vmatprep.subr.bf16.mxu1 %v17761_v17  ;;  %v11636_v6 = vpop.f32.mrb[5].mxu0 }
 0x437   : > { %v11637_v25 = vadd.f32 %v11636_v6, %v11635_v56  ;;  %v11638_v45 = vpop.f32.mrb[6].mxu0  ;;  %12096 = vmatpush3.bf16.msra.mxu0 %v14122_v13  ;;  %v20893_v13 = vld [vmem:[#allocation173_spill] sm:$0xff] }
 0x438   : > { %v11639_v7 = vpop.f32.mrb[7].mxu0 }
 0x439   : > { %v11640_v50 = vadd.f32 %v11639_v7, %v11638_v45  ;;  %v17775_v63 = vadd.f32 %v17542_v49, %v11637_v25 }
 0x43a   : > { %6473 = vmatmul.mubr.bf16.gmra.mrb[112].mxu0 %v20775_v27  ;;  %v20891_v27 = vld [vmem:[#allocation172_spill] sm:$0xff] }
 0x43b   : > { %6480 = vmatprep.mubr.bf16.mxu0 %v20776_v33  ;;  %v17782_v24 = vadd.f32 %v17548_v40, %v11640_v50  ;;  %v20892_v33 = vld [vmem:[#allocation148_spill] sm:$0xff] }
 0x43c   : > { %12893 = vmatmul.mubr.msk.bf16.gmra.mrb[68].mxu1 %vm1083_vm0, %v20889_v29 }
 0x43d   : > { %12896 = vmatprep.mubr.msk.bf16.mxu1 %vm1083_vm0, %v20890_v5  ;;  %v11641_v43 = vpop.f32.mrb[8].mxu0 }
 0x43e   : > { %v11642_v36 = vpop.f32.mrb[9].mxu0 }
 0x43f   : > { %v11643_v62 = vadd.f32 %v11642_v36, %v11641_v43  ;;  %v11644_v61 = vpop.f32.mrb[10].mxu0 }
 0x440   : > { %v11645_v38 = vpop.f32.mrb[11].mxu0 }
 0x441   : > { %v11646_v49 = vadd.f32 %v11645_v38, %v11644_v61  ;;  %v17787_v56 = vadd.f32 %v17556_v55, %v11643_v62  ;;  %v20894_v38 = vld [vmem:[#allocation149_spill] sm:$0xff] }
 0x442   : > { %6481 = vmatmul.mubr.bf16.gmra.mrb[116].mxu0 %v20779_v20 }
 0x443   : > { %6488 = vmatprep.mubr.bf16.mxu0 %v20892_v33  ;;  %v17794_v40 = vadd.f32 %v17562_v52, %v11646_v49  ;;  %v20895_v49 = vld [vmem:[#allocation175_spill] sm:$0xff] }
 0x444   : > { %12897 = vmatmul.mubr.msk.bf16.gmra.mrb[72].mxu1 %vm1083_vm0, %v20891_v27  ;;  %v20896_v27 = vld [vmem:[#allocation155_spill] sm:$0xff] }
 0x445   : > { %12900 = vmatprep.mubr.msk.bf16.mxu1 %vm1083_vm0, %v20893_v13  ;;  %v11647_v6 = vpop.f32.mrb[12].mxu0 }
 0x446   : > { %v11648_v25 = vpop.f32.mrb[13].mxu0 }
 0x447   : > { %v11710_v45 = vpop.f32.mrb[160].mxu1  ;;  %v11649_v7 = vadd.f32 %v11648_v25, %v11647_v6  ;;  %v11650_v50 = vpop.f32.mrb[14].mxu0  ;;  %v20897_v6 = vld [vmem:[#allocation182_spill] sm:$0xff] }
 0x448   : > { %v11711_v55 = vpop.f32.mrb[161].mxu1  ;;  %v11651_v5 = vpop.f32.mrb[15].mxu0 }
 0x449   : > { %v11712_v29 = vadd.f32 %v11711_v55, %v11710_v45  ;;  %v11713_v20 = vpop.f32.mrb[162].mxu1  ;;  %v11652_v43 = vadd.f32 %v11651_v5, %v11650_v50  ;;  %v17799_v62 = vadd.f32 %v17570_v47, %v11649_v7 }
 0x44a   : > { %v11714_v36 = vpop.f32.mrb[163].mxu1  ;;  %6489 = vmatmul.mubr.bf16.gmra.mrb[120].mxu0 %v20894_v38  ;;  %v20899_v38 = vld [vmem:[#allocation70_spill] sm:$0xff] }
 0x44b   : > { %v17802_v52 = vadd.f32 %v17641_v28, %v11712_v29  ;;  %v11715_v61 = vadd.f32 %v11714_v36, %v11713_v20  ;;  %6496 = vmatprep.mubr.bf16.mxu0 %v20896_v27  ;;  %v17809_v33 = vadd.f32 %v17576_v21, %v11652_v43 }
 0x44c   : > { %12901 = vmatmul.mubr.msk.bf16.gmra.mrb[76].mxu1 %vm1083_vm0, %v20895_v49  ;;  %v20900_v49 = vld [vmem:[#allocation164_spill] sm:$0xff] }
 0x44d   : > { %v17812_v13 = vadd.f32 %v17654_v39, %v11715_v61  ;;  %12904 = vmatprep.mubr.msk.bf16.mxu1 %vm1083_vm0, %v20897_v6  ;;  %v11653_v47 = vpop.f32.mrb[16].mxu0  ;;  %v20898_v61 = vld [vmem:[#allocation156_spill] sm:$0xff] }
 0x44e   : > { %v11654_v28 = vpop.f32.mrb[17].mxu0 }
 0x44f   : > { %v11716_v25 = vpop.f32.mrb[164].mxu1  ;;  %v11655_v45 = vadd.f32 %v11654_v28, %v11653_v47  ;;  %v11656_v7 = vpop.f32.mrb[18].mxu0  ;;  %v20901_v47 = vld [vmem:[#allocation189_spill] sm:$0xff] }
 0x450   : > { %v11717_v50 = vpop.f32.mrb[165].mxu1  ;;  %v11657_v29 = vpop.f32.mrb[19].mxu0 }
 0x451   : > { %v11718_v55 = vadd.f32 %v11717_v50, %v11716_v25  ;;  %v11719_v5 = vpop.f32.mrb[166].mxu1  ;;  %v11658_v20 = vadd.f32 %v11657_v29, %v11656_v7  ;;  %v17817_v21 = vadd.f32 %v17584_v35, %v11655_v45 }
 0x452   : > { %v11720_v36 = vpop.f32.mrb[167].mxu1  ;;  %6497 = vmatmul.mubr.bf16.gmra.mrb[124].mxu0 %v20898_v61  ;;  %v20903_v61 = vld [vmem:[#allocation131_spill] sm:$0xff] }
 0x453   : > { %v17820_v39 = vadd.f32 %v17661_v34, %v11718_v55  ;;  %v11721_v43 = vadd.f32 %v11720_v36, %v11719_v5  ;;  %6504 = vmatprep.mubr.bf16.mxu0 %v20900_v49  ;;  %v17827_v27 = vadd.f32 %v17590_v31, %v11658_v20 }
 0x454   : > { %12905 = vmatmul.mubr.msk.bf16.gmra.mrb[80].mxu1 %vm1083_vm0, %v20899_v38  ;;  %v20904_v38 = vld [vmem:[#allocation176_spill] sm:$0xff] }
 0x455   : > { %v17830_v6 = vadd.f32 %v17672_v11, %v11721_v43  ;;  %12908 = vmatprep.mubr.msk.bf16.mxu1 %vm1083_vm0, %v20901_v47  ;;  %v11659_v35 = vpop.f32.mrb[20].mxu0  ;;  %v20902_v43 = vld [vmem:[#allocation165_spill] sm:$0xff] }
 0x456   : > { %v11660_v34 = vpop.f32.mrb[21].mxu0 }
 0x457   : > { %v11722_v28 = vpop.f32.mrb[168].mxu1  ;;  %v11661_v25 = vadd.f32 %v11660_v34, %v11659_v35  ;;  %v11662_v45 = vpop.f32.mrb[22].mxu0  ;;  %v20905_v35 = vld [vmem:[#allocation85_spill] sm:$0xff] }
 0x458   : > { %v11723_v7 = vpop.f32.mrb[169].mxu1  ;;  %v11663_v55 = vpop.f32.mrb[23].mxu0 }
 0x459   : > { %v11724_v50 = vadd.f32 %v11723_v7, %v11722_v28  ;;  %v11725_v29 = vpop.f32.mrb[170].mxu1  ;;  %v11664_v5 = vadd.f32 %v11663_v55, %v11662_v45  ;;  %v17835_v31 = vadd.f32 %v17598_v48, %v11661_v25 }
 0x45a   : > { %v11726_v36 = vpop.f32.mrb[171].mxu1  ;;  %6505 = vmatmul.mubr.bf16.gmra.mrb[128].mxu0 %v20902_v43  ;;  %v20907_v43 = vld [vmem:[#allocation69_spill] sm:$0xff] }
 0x45b   : > { %v17838_v11 = vadd.f32 %v17677_v46, %v11724_v50  ;;  %v11727_v20 = vadd.f32 %v11726_v36, %v11725_v29  ;;  %6512 = vmatprep.mubr.bf16.mxu0 %v20904_v38  ;;  %v17845_v49 = vadd.f32 %v17604_v2, %v11664_v5 }
 0x45c   : > { %12909 = vmatmul.mubr.msk.bf16.gmra.mrb[84].mxu1 %vm1083_vm0, %v20903_v61  ;;  %v20908_v61 = vld [vmem:[#allocation183_spill] sm:$0xff] }
 0x45d   : > { %v17848_v47 = vadd.f32 %v17688_v26, %v11727_v20  ;;  %12912 = vmatprep.mubr.msk.bf16.mxu1 %vm1083_vm0, %v20905_v35  ;;  %v11665_v48 = vpop.f32.mrb[24].mxu0  ;;  %v20906_v20 = vld [vmem:[#allocation178_spill] sm:$0xff] }
 0x45e   : > { %v11666_v46 = vpop.f32.mrb[25].mxu0 }
 0x45f   : > { %v11728_v34 = vpop.f32.mrb[172].mxu1  ;;  %v11667_v28 = vadd.f32 %v11666_v46, %v11665_v48  ;;  %v11668_v25 = vpop.f32.mrb[26].mxu0  ;;  %v20909_v48 = vld [vmem:[#allocation108_spill] sm:$0xff] }
 0x460   : > { %v11729_v45 = vpop.f32.mrb[173].mxu1  ;;  %v11669_v50 = vpop.f32.mrb[27].mxu0 }
 0x461   : > { %v11730_v7 = vadd.f32 %v11729_v45, %v11728_v34  ;;  %v11731_v55 = vpop.f32.mrb[174].mxu1  ;;  %v11670_v29 = vadd.f32 %v11669_v50, %v11668_v25  ;;  %v17853_v2 = vadd.f32 %v17612_v37, %v11667_v28 }
 0x462   : > { %v11732_v36 = vpop.f32.mrb[175].mxu1  ;;  %6513 = vmatmul.mubr.bf16.gmra.mrb[132].mxu0 %v20906_v20  ;;  %v20911_v20 = vld [vmem:[#allocation50_spill] sm:$0xff] }
 0x463   : > { %v17856_v26 = vadd.f32 %v17693_v60, %v11730_v7  ;;  %v11733_v5 = vadd.f32 %v11732_v36, %v11731_v55  ;;  %6520 = vmatprep.mubr.bf16.mxu0 %v20908_v61  ;;  %v17863_v38 = vadd.f32 %v17618_v19, %v11670_v29 }
 0x464   : > { %12913 = vmatmul.mubr.msk.bf16.gmra.mrb[88].mxu1 %vm1083_vm0, %v20907_v43  ;;  %v20912_v43 = vld [vmem:[#allocation188_spill] sm:$0xff] }
 0x465   : > { %v17866_v35 = vadd.f32 %v17704_v12, %v11733_v5  ;;  %12916 = vmatprep.mubr.msk.bf16.mxu1 %vm1083_vm0, %v20909_v48  ;;  %v11671_v37 = vpop.f32.mrb[28].mxu0  ;;  %v20910_v5 = vld [vmem:[#allocation184_spill] sm:$0xff] }
 0x466   : > { %v11672_v60 = vpop.f32.mrb[29].mxu0 }
 0x467   : > { %v11734_v46 = vpop.f32.mrb[176].mxu1  ;;  %v11673_v34 = vadd.f32 %v11672_v60, %v11671_v37  ;;  %v11674_v28 = vpop.f32.mrb[30].mxu0  ;;  %v20913_v37 = vld [vmem:[#allocation75_spill] sm:$0xff] }
 0x468   : > { %v11735_v25 = vpop.f32.mrb[177].mxu1  ;;  %v11675_v7 = vpop.f32.mrb[31].mxu0 }
 0x469   : > { %v11736_v45 = vadd.f32 %v11735_v25, %v11734_v46  ;;  %v11737_v50 = vpop.f32.mrb[178].mxu1  ;;  %v11676_v55 = vadd.f32 %v11675_v7, %v11674_v28  ;;  %v17871_v19 = vadd.f32 %v17626_v4, %v11673_v34 }
 0x46a   : > { %v11738_v36 = vpop.f32.mrb[179].mxu1  ;;  %6521 = vmatmul.mubr.bf16.gmra.mrb[136].mxu0 %v20910_v5  ;;  %v20915_v5 = vld [vmem:[#allocation195_spill] sm:$0xff] }
 0x46b   : > { %v17874_v12 = vadd.f32 %v17709_v53, %v11736_v45  ;;  %v11739_v29 = vadd.f32 %v11738_v36, %v11737_v50  ;;  %6528 = vmatprep.mubr.bf16.mxu0 %v20912_v43  ;;  %v17881_v61 = vadd.f32 %v17632_v41, %v11676_v55 }
 0x46c   : > { %12917 = vmatmul.mubr.msk.bf16.gmra.mrb[92].mxu1 %vm1083_vm0, %v20911_v20  ;;  %v20916_v20 = vld [vmem:[#allocation78_spill] sm:$0xff] }
 0x46d   : > { %v17884_v48 = vadd.f32 %v17718_v58, %v11739_v29  ;;  %12922 = vmatprep.mubr.msk.bf16.mxu1 %vm1083_vm0, %v20913_v37  ;;  %v11839_v4 = vpop.f32.mrb[32].mxu0  ;;  %v20914_v29 = vld [vmem:[#allocation190_spill] sm:$0xff] }
 0x46e   : > { %v11840_v60 = vpop.f32.mrb[33].mxu0 }
 0x46f   : > { %v11740_v53 = vpop.f32.mrb[180].mxu1  ;;  %v11841_v46 = vadd.f32 %v11840_v60, %v11839_v4  ;;  %v11842_v28 = vpop.f32.mrb[34].mxu0  ;;  %v20917_v4 = vld [vmem:[#allocation98_spill] sm:$0xff] }
 0x470   : > { %v11741_v34 = vpop.f32.mrb[181].mxu1  ;;  %v11843_v7 = vpop.f32.mrb[35].mxu0 }
 0x471   : > { %v11742_v25 = vadd.f32 %v11741_v34, %v11740_v53  ;;  %v11743_v45 = vpop.f32.mrb[182].mxu1  ;;  %v11844_v50 = vadd.f32 %v11843_v7, %v11842_v28  ;;  %v17889_v41 = vadd.f32 %v17802_v52, %v11841_v46 }
 0x472   : > { %v11744_v36 = vpop.f32.mrb[183].mxu1  ;;  %6529 = vmatmul.mubr.bf16.gmra.mrb[140].mxu0 %v20914_v29  ;;  %v20920_v29 = vld [vmem:[#allocation48_spill] sm:$0xff] }
 0x473   : > { %v17892_v58 = vadd.f32 %v17723_v16, %v11742_v25  ;;  %v11745_v55 = vadd.f32 %v11744_v36, %v11743_v45  ;;  %6536 = vmatprep.mubr.bf16.mxu0 %v20915_v5  ;;  %v17899_v43 = vadd.f32 %v17812_v13, %v11844_v50 }
 0x474   : > { %12923 = vmatmul.mubr.msk.bf16.vlgmr.msra.gmra.mrb[64].mxu1 %vm1083_vm0, %v20916_v20 }
 0x475   : > { %v17902_v37 = vadd.f32 %v17729_v14, %v11745_v55  ;;  %12926 = vmatprep.mubr.msk.bf16.mxu1 %vm1083_vm0, %v20917_v4  ;;  %12955 = vmatpush3.bf16.msra.mxu1 %v17761_v17  ;;  %v11845_v16 = vpop.f32.mrb[36].mxu0  ;;  %v20918_v55 = vld [vmem:[#allocation196_spill] sm:$0xff]  ;;  %v20919_v17 = vld [vmem:[#allocation43_spill] sm:$0xff]  ;;  %v20921_v4 = vld [vmem:[#allocation113_spill] sm:$0xff] }
 0x476   : > { %v11846_v53 = vpop.f32.mrb[37].mxu0 }
 0x477   : > { %v11746_v52 = vpop.f32.mrb[184].mxu1  ;;  %v11847_v60 = vadd.f32 %v11846_v53, %v11845_v16  ;;  %v11848_v34 = vpop.f32.mrb[38].mxu0 }
 0x478   : > { %v11747_v46 = vpop.f32.mrb[185].mxu1  ;;  %v11849_v45 = vpop.f32.mrb[39].mxu0 }
 0x479   : > { %v11748_v28 = vadd.f32 %v11747_v46, %v11746_v52  ;;  %v11749_v25 = vpop.f32.mrb[186].mxu1  ;;  %v11850_v7 = vadd.f32 %v11849_v45, %v11848_v34  ;;  %v17908_v50 = vadd.f32 %v17820_v39, %v11847_v60 }
 0x47a   : > { %v11750_v13 = vpop.f32.mrb[187].mxu1  ;;  %6537 = vmatmul.mubr.bf16.gmra.mrb[144].mxu0 %v20918_v55 }
 0x47b   : > { %v17911_v14 = vadd.f32 %v17735_v59, %v11748_v28  ;;  %v11751_v36 = vadd.f32 %v11750_v13, %v11749_v25  ;;  %6544 = vmatprep.mubr.bf16.mxu0 %v20919_v17  ;;  %v17918_v5 = vadd.f32 %v17830_v6, %v11850_v7  ;;  %v20922_v13 = vld [vmem:[#allocation187_spill] sm:$0xff] }
 0x47c   : > { %12927 = vmatmul.mubr.msk.bf16.gmra.mrb[68].mxu1 %vm1083_vm0, %v20920_v29  ;;  %v20924_v29 = vld [vmem:[#allocation129_spill] sm:$0xff] }
 0x47d   : > { %v17921_v20 = vadd.f32 %v17742_v30, %v11751_v36  ;;  %12930 = vmatprep.mubr.msk.bf16.mxu1 %vm1083_vm0, %v20921_v4  ;;  %v11851_v39 = vpop.f32.mrb[40].mxu0  ;;  %v20923_v36 = vld [vmem:[#allocation119_spill] sm:$0xff] }
 0x47e   : > { %v11852_v16 = vpop.f32.mrb[41].mxu0 }
 0x47f   : > { %v11752_v59 = vpop.f32.mrb[188].mxu1  ;;  %v11853_v52 = vadd.f32 %v11852_v16, %v11851_v39  ;;  %v11854_v60 = vpop.f32.mrb[42].mxu0 }
 0x480   : > { %v11753_v53 = vpop.f32.mrb[189].mxu1  ;;  %v11855_v28 = vpop.f32.mrb[43].mxu0 }
 0x481   : > { %v11754_v46 = vadd.f32 %v11753_v53, %v11752_v59  ;;  %v11755_v34 = vpop.f32.mrb[190].mxu1  ;;  %v11856_v25 = vadd.f32 %v11855_v28, %v11854_v60  ;;  %v17926_v6 = vadd.f32 %v17838_v11, %v11853_v52  ;;  %v20925_v28 = vld [vmem:[#allocation92_spill] sm:$0xff] }
 0x482   : > { %v11756_v45 = vpop.f32.mrb[191].mxu1  ;;  %6545 = vmatmul.mubr.bf16.gmra.mrb[148].mxu0 %v20813_v1 }
 0x483   : > { %v17929_v30 = vadd.f32 %v17747_v44, %v11754_v46  ;;  %v11757_v7 = vadd.f32 %v11756_v45, %v11755_v34  ;;  %6552 = vmatprep.mubr.bf16.mxu0 %v20922_v13  ;;  %v17936_v55 = vadd.f32 %v17848_v47, %v11856_v25  ;;  %v20926_v25 = vld [vmem:[#allocation130_spill] sm:$0xff]  ;;  %v20927_v45 = vld [vmem:[#allocation12_spill] sm:$0xff] }
 0x484   : > { %12931 = vmatmul.mubr.msk.bf16.gmra.mrb[72].mxu1 %vm1083_vm0, %v20923_v36  ;;  %v20928_v36 = vld [vmem:[#allocation81_spill] sm:$0xff] }
 0x485   : > { %v17939_v17 = vadd.f32 %v17754_v18, %v11757_v7  ;;  %12934 = vmatprep.mubr.msk.bf16.mxu1 %vm1083_vm0, %v20924_v29  ;;  %v11857_v11 = vpop.f32.mrb[44].mxu0 }
 0x486   : > { %v11858_v4 = vpop.f32.mrb[45].mxu0 }
 0x487   : > { %v11758_v44 = vpop.f32.mrb[192].mxu1  ;;  %v11859_v39 = vadd.f32 %v11858_v4, %v11857_v11  ;;  %v11860_v1 = vpop.f32.mrb[46].mxu0 }
 0x488   : > { %v11759_v59 = vpop.f32.mrb[193].mxu1  ;;  %v11861_v53 = vpop.f32.mrb[47].mxu0 }
 0x489   : > { %v11760_v16 = vadd.f32 %v11759_v59, %v11758_v44  ;;  %v11761_v52 = vpop.f32.mrb[194].mxu1  ;;  %v11862_v60 = vadd.f32 %v11861_v53, %v11860_v1  ;;  %v17944_v47 = vadd.f32 %v17856_v26, %v11859_v39 }
 0x48a   : > { %v11762_v46 = vpop.f32.mrb[195].mxu1  ;;  %6553 = vmatmul.mubr.bf16.gmra.mrb[152].mxu0 %v20925_v28 }
 0x48b   : > { %v17947_v18 = vadd.f32 %v17759_v0, %v11760_v16  ;;  %v11763_v34 = vadd.f32 %v11762_v46, %v11761_v52  ;;  %6560 = vmatprep.mubr.bf16.mxu0 %v20927_v45  ;;  %v17954_v7 = vadd.f32 %v17866_v35, %v11862_v60  ;;  %v20929_v60 = vld [vmem:[#allocation151_spill] sm:$0xff]  ;;  %v20930_v46 = vld [vmem:[#allocation77_spill] sm:$0xff] }
 0x48c   : > { %12935 = vmatmul.mubr.msk.bf16.gmra.mrb[76].mxu1 %vm1083_vm0, %v20926_v25  ;;  %v20931_v25 = vld [vmem:[#allocation159_spill] sm:$0xff] }
 0x48d   : > { %v17957_v13 = vadd.f32 %v17768_v57, %v11763_v34  ;;  %12938 = vmatprep.mubr.msk.bf16.mxu1 %vm1083_vm0, %v20928_v36  ;;  %v11863_v26 = vpop.f32.mrb[48].mxu0 }
 0x48e   : > { %v11864_v29 = vpop.f32.mrb[49].mxu0 }
 0x48f   : > { %v11764_v0 = vpop.f32.mrb[196].mxu1  ;;  %v11865_v11 = vadd.f32 %v11864_v29, %v11863_v26  ;;  %v11866_v4 = vpop.f32.mrb[50].mxu0 }
 0x490   : > { %v11765_v44 = vpop.f32.mrb[197].mxu1  ;;  %v11867_v1 = vpop.f32.mrb[51].mxu0 }
 0x491   : > { %v11766_v39 = vadd.f32 %v11765_v44, %v11764_v0  ;;  %v11767_v59 = vpop.f32.mrb[198].mxu1  ;;  %v11868_v16 = vadd.f32 %v11867_v1, %v11866_v4  ;;  %v17962_v35 = vadd.f32 %v17874_v12, %v11865_v11 }
 0x492   : > { %v11768_v52 = vpop.f32.mrb[199].mxu1  ;;  %6561 = vmatmul.mubr.bf16.gmra.mrb[156].mxu0 %v20927_v45 }
 0x493   : > { %v17965_v57 = vadd.f32 %v17775_v63, %v11766_v39  ;;  %v11769_v53 = vadd.f32 %v11768_v52, %v11767_v59  ;;  %6931 = vmatprep.mubr.bf16.mxu0 %v20930_v46  ;;  %v17972_v34 = vadd.f32 %v17884_v48, %v11868_v16  ;;  %v20932_v16 = vld [vmem:[#allocation91_spill] sm:$0xff]  ;;  %v20933_v52 = vld [vmem:[#allocation160_spill] sm:$0xff] }
 0x494   : > { %12939 = vmatmul.mubr.msk.bf16.gmra.mrb[80].mxu1 %vm1083_vm0, %v20929_v60 }
 0x495   : > { %v17975_v28 = vadd.f32 %v17782_v24, %v11769_v53  ;;  %12942 = vmatprep.mubr.msk.bf16.mxu1 %vm1083_vm0, %v20931_v25  ;;  %v11869_v12 = vpop.f32.mrb[52].mxu0  ;;  %v20934_v53 = vld [vmem:[#allocation47_spill] sm:$0xff] }
 0x496   : > { %v11870_v36 = vpop.f32.mrb[53].mxu0  ;;  %v20935_v25 = vld [vmem:[#allocation167_spill] sm:$0xff] }
 0x497   : > { %v11770_v63 = vpop.f32.mrb[200].mxu1  ;;  %v11871_v26 = vadd.f32 %v11870_v36, %v11869_v12  ;;  %v11872_v29 = vpop.f32.mrb[54].mxu0 }
 0x498   : > { %v11771_v0 = vpop.f32.mrb[201].mxu1  ;;  %v11873_v4 = vpop.f32.mrb[55].mxu0 }
 0x499   : > { %v11772_v11 = vadd.f32 %v11771_v0, %v11770_v63  ;;  %v11773_v44 = vpop.f32.mrb[202].mxu1  ;;  %v11874_v39 = vadd.f32 %v11873_v4, %v11872_v29  ;;  %v17980_v48 = vadd.f32 %v17892_v58, %v11871_v26 }
 0x49a   : > { %v11774_v59 = vpop.f32.mrb[203].mxu1  ;;  %6932 = vmatmul.mubr.bf16.vlgmr.msra.gmra.mrb[160].mxu0 %v20932_v16  ;;  %v20938_v16 = vld [vmem:[#allocation13_spill] sm:$0xff] }
 0x49b   : > { %v17983_v24 = vadd.f32 %v17787_v56, %v11772_v11  ;;  %v11775_v1 = vadd.f32 %v11774_v59, %v11773_v44  ;;  %6939 = vmatprep.mubr.bf16.mxu0 %v20934_v53  ;;  %v17990_v60 = vadd.f32 %v17902_v37, %v11874_v39  ;;  %v20936_v59 = vld [vmem:[#allocation18_spill] sm:$0xff] }
 0x49c   : > { %12943 = vmatmul.mubr.msk.bf16.gmra.mrb[84].mxu1 %vm1083_vm0, %v20933_v52 }
 0x49d   : > { %v17993_v46 = vadd.f32 %v17794_v40, %v11775_v1  ;;  %12946 = vmatprep.mubr.msk.bf16.mxu1 %vm1083_vm0, %v20935_v25  ;;  %v11875_v58 = vpop.f32.mrb[56].mxu0  ;;  %v20937_v1 = vld [vmem:[#allocation168_spill] sm:$0xff]  ;;  %v20939_v25 = vld [vmem:[#allocation170_spill] sm:$0xff] }
 0x49e   : > { %v11876_v12 = vpop.f32.mrb[57].mxu0 }
 0x49f   : > { %v11776_v56 = vpop.f32.mrb[204].mxu1  ;;  %v11877_v63 = vadd.f32 %v11876_v12, %v11875_v58  ;;  %v11878_v26 = vpop.f32.mrb[58].mxu0 }
 0x4a0   : > { %v11777_v36 = vpop.f32.mrb[205].mxu1  ;;  %v11879_v11 = vpop.f32.mrb[59].mxu0 }
 0x4a1   : > { %v11778_v0 = vadd.f32 %v11777_v36, %v11776_v56  ;;  %v11779_v29 = vpop.f32.mrb[206].mxu1  ;;  %v11880_v44 = vadd.f32 %v11879_v11, %v11878_v26  ;;  %v17998_v37 = vadd.f32 %v17911_v14, %v11877_v63 }
 0x4a2   : > { %v11780_v4 = vpop.f32.mrb[207].mxu1  ;;  %6940 = vmatmul.mubr.bf16.gmra.mrb[164].mxu0 %v20936_v59 }
 0x4a3   : > { %v18001_v40 = vadd.f32 %v17799_v62, %v11778_v0  ;;  %v11781_v39 = vadd.f32 %v11780_v4, %v11779_v29  ;;  %6947 = vmatprep.mubr.bf16.mxu0 %v20938_v16  ;;  %v18008_v52 = vadd.f32 %v17921_v20, %v11880_v44  ;;  %v20940_v4 = vld [vmem:[#allocation16_spill] sm:$0xff] }
 0x4a4   : > { %12947 = vmatmul.mubr.msk.bf16.gmra.mrb[88].mxu1 %vm1083_vm0, %v20937_v1 }
 0x4a5   : > { %v18011_v53 = vadd.f32 %v17809_v33, %v11781_v39  ;;  %12950 = vmatprep.mubr.msk.bf16.mxu1 %vm1083_vm0, %v20939_v25  ;;  %v11881_v14 = vpop.f32.mrb[60].mxu0  ;;  %v20941_v39 = vld [vmem:[#allocation23_spill] sm:$0xff] }
 0x4a6   : > { %v11882_v58 = vpop.f32.mrb[61].mxu0 }
 0x4a7   : > { %v11782_v62 = vpop.f32.mrb[208].mxu1  ;;  %v11883_v56 = vadd.f32 %v11882_v58, %v11881_v14  ;;  %v11884_v63 = vpop.f32.mrb[62].mxu0 }
 0x4a8   : > { %v11783_v12 = vpop.f32.mrb[209].mxu1  ;;  %v11885_v0 = vpop.f32.mrb[63].mxu0 }
 0x4a9   : > { %v11784_v36 = vadd.f32 %v11783_v12, %v11782_v62  ;;  %v11785_v26 = vpop.f32.mrb[210].mxu1  ;;  %v11886_v29 = vadd.f32 %v11885_v0, %v11884_v63  ;;  %v18016_v20 = vadd.f32 %v17929_v30, %v11883_v56  ;;  %v20942_v0 = vld [vmem:[#allocation104_spill] sm:$0xff] }
 0x4aa   : > { %v11786_v11 = vpop.f32.mrb[211].mxu1  ;;  %6948 = vmatmul.mubr.bf16.gmra.mrb[168].mxu0 %v20940_v4 }
 0x4ab   : > { %v18019_v33 = vadd.f32 %v17817_v21, %v11784_v36  ;;  %v11787_v44 = vadd.f32 %v11786_v11, %v11785_v26  ;;  %6955 = vmatprep.mubr.bf16.mxu0 %v20941_v39  ;;  %v18026_v59 = vadd.f32 %v17939_v17, %v11886_v29  ;;  %v20943_v29 = vld [vmem:[#allocation24_spill] sm:$0xff] }
 0x4ac   : > { %12951 = vmatmul.mubr.msk.bf16.gmra.mrb[92].mxu1 %vm1083_vm0, %v20927_v45 }
 0x4ad   : > { %v18029_v1 = vadd.f32 %v17827_v27, %v11787_v44  ;;  %12956 = vmatprep.mubr.msk.bf16.mxu1 %vm1083_vm0, %v20856_v8  ;;  %v11887_v30 = vpop.f32.mrb[64].mxu0 }
 0x4ae   : > { %v11888_v16 = vpop.f32.mrb[65].mxu0 }
 0x4af   : > { %v11788_v21 = vpop.f32.mrb[212].mxu1  ;;  %v11889_v25 = vadd.f32 %v11888_v16, %v11887_v30  ;;  %v11890_v62 = vpop.f32.mrb[66].mxu0 }
 0x4b0   : > { %v11789_v14 = vpop.f32.mrb[213].mxu1  ;;  %v11891_v12 = vpop.f32.mrb[67].mxu0 }
 0x4b1   : > { %v11790_v58 = vadd.f32 %v11789_v14, %v11788_v21  ;;  %v11791_v56 = vpop.f32.mrb[214].mxu1  ;;  %v18034_v63 = vadd.f32 %v17947_v18, %v11889_v25  ;;  %v11892_v17 = vadd.f32 %v11891_v12, %v11890_v62 }
 0x4b2   : > { %v11792_v36 = vpop.f32.mrb[215].mxu1  ;;  %6956 = vmatmul.mubr.bf16.gmra.mrb[172].mxu0 %v20942_v0 }
 0x4b3   : > { %v18037_v27 = vadd.f32 %v17835_v31, %v11790_v58  ;;  %v11793_v26 = vadd.f32 %v11792_v36, %v11791_v56  ;;  %v18041_v8 = vadd.f32 %v17957_v13, %v11892_v17  ;;  %6963 = vmatprep.mubr.bf16.mxu0 %v20943_v29  ;;  %v20944_v58 = vld [vmem:[#allocation38_spill] sm:$0xff]  ;;  %v20945_v56 = vld [vmem:[#allocation36_spill] sm:$0xff] }
 0x4b4   : > { %12957 = vmatmul.mubr.msk.bf16.vlgmr.msra.gmra.mrb[64].mxu1 %vm1083_vm0, %v20858_v22 }
 0x4b5   : > { %v18047_v11 = vadd.f32 %v17845_v49, %v11793_v26  ;;  %12960 = vmatprep.mubr.msk.bf16.mxu1 %vm1083_vm0, %v20860_v3  ;;  %v11893_v18 = vpop.f32.mrb[68].mxu0 }
 0x4b6   : > { %v11894_v44 = vpop.f32.mrb[69].mxu0 }
 0x4b7   : > { %v11794_v31 = vpop.f32.mrb[216].mxu1  ;;  %v11895_v4 = vadd.f32 %v11894_v44, %v11893_v18  ;;  %v11896_v30 = vpop.f32.mrb[70].mxu0 }
 0x4b8   : > { %v11795_v39 = vpop.f32.mrb[217].mxu1  ;;  %v11897_v16 = vpop.f32.mrb[71].mxu0 }
 0x4b9   : > { %v11796_v21 = vadd.f32 %v11795_v39, %v11794_v31  ;;  %v11797_v13 = vpop.f32.mrb[218].mxu1  ;;  %v18052_v25 = vadd.f32 %v17965_v57, %v11895_v4  ;;  %v11898_v14 = vadd.f32 %v11897_v16, %v11896_v30  ;;  %v20946_v39 = vld [vmem:[#allocation120_spill] sm:$0xff]  ;;  %v20947_v30 = vld [vmem:[#allocation42_spill] sm:$0xff] }
 0x4ba   : > { %v11798_v22 = vpop.f32.mrb[219].mxu1  ;;  %6964 = vmatmul.mubr.bf16.gmra.mrb[176].mxu0 %v20944_v58  ;;  %v20948_v58 = vld [vmem:[#allocation63_spill] sm:$0xff] }
 0x4bb   : > { %v18055_v49 = vadd.f32 %v17853_v2, %v11796_v21  ;;  %v11799_v62 = vadd.f32 %v11798_v22, %v11797_v13  ;;  %v18059_v3 = vadd.f32 %v17975_v28, %v11898_v14  ;;  %6971 = vmatprep.mubr.bf16.mxu0 %v20945_v56  ;;  %v14124_v21 = vld [vmem:[#allocation6 + $0x140] sm:$0xff]  }
 0x4bc   : > { %12961 = vmatmul.mubr.msk.bf16.gmra.mrb[68].mxu1 %vm1083_vm0, %v20862_v10  ;;  %12988 = vmatprep.subr.bf16.mxu0 %v14124_v21 }
 0x4bd   : > { %v18065_v12 = vadd.f32 %v17863_v38, %v11799_v62  ;;  %12964 = vmatprep.mubr.msk.bf16.mxu1 %vm1083_vm0, %v20864_v51  ;;  %v11899_v57 = vpop.f32.mrb[72].mxu0  ;;  %12989 = vmatpush3.bf16.msra.mxu0 %v14124_v21 }
 0x4be   : > { %v11900_v17 = vpop.f32.mrb[73].mxu0 }
 0x4bf   : > { %v11800_v2 = vpop.f32.mrb[220].mxu1  ;;  %v11901_v36 = vadd.f32 %v11900_v17, %v11899_v57  ;;  %v11902_v0 = vpop.f32.mrb[74].mxu0 }
 0x4c0   : > { %v11801_v26 = vpop.f32.mrb[221].mxu1  ;;  %v11903_v18 = vpop.f32.mrb[75].mxu0 }
 0x4c1   : > { %v11802_v29 = vadd.f32 %v11801_v26, %v11800_v2  ;;  %v11803_v28 = vpop.f32.mrb[222].mxu1  ;;  %v18070_v31 = vadd.f32 %v17983_v24, %v11901_v36  ;;  %v11904_v44 = vadd.f32 %v11903_v18, %v11902_v0  ;;  %v20951_v36 = vld [vmem:[#allocation88_spill] sm:$0xff]  ;;  %v20952_v18 = vld [vmem:[#allocation106_spill] sm:$0xff] }
 0x4c2   : > { %v11804_v10 = vpop.f32.mrb[223].mxu1  ;;  %6972 = vmatmul.mubr.bf16.gmra.mrb[180].mxu0 %v20946_v39  ;;  %v20955_v39 = vld [vmem:[#allocation99_spill] sm:$0xff] }
 0x4c3   : > { %v18073_v38 = vadd.f32 %v17871_v19, %v11802_v29  ;;  %v11805_v4 = vadd.f32 %v11804_v10, %v11803_v28  ;;  %v18077_v51 = vadd.f32 %v17993_v46, %v11904_v44  ;;  %6979 = vmatprep.mubr.bf16.mxu0 %v20947_v30  ;;  %v20953_v10 = vld [vmem:[#allocation101_spill] sm:$0xff] }
 0x4c4   : > { %12965 = vmatmul.mubr.msk.bf16.gmra.mrb[72].mxu1 %vm1083_vm0, %v20866_v32 }
 0x4c5   : > { %v18083_v24 = vadd.f32 %v17881_v61, %v11805_v4  ;;  %12968 = vmatprep.mubr.msk.bf16.mxu1 %vm1083_vm0, %v20868_v54  ;;  %v11905_v19 = vpop.f32.mrb[76].mxu0  ;;  %v20954_v4 = vld [vmem:[#allocation68_spill] sm:$0xff] }
 0x4c6   : > { %v11906_v13 = vpop.f32.mrb[77].mxu0 }
 0x4c7   : > { %v11907_v16 = vadd.f32 %v11906_v13, %v11905_v19  ;;  %v11908_v14 = vpop.f32.mrb[78].mxu0 }
 0x4c8   : > { %v11909_v46 = vpop.f32.mrb[79].mxu0 }
 0x4c9   : > { %v18088_v22 = vadd.f32 %v18001_v40, %v11907_v16  ;;  %v11910_v62 = vadd.f32 %v11909_v46, %v11908_v14  ;;  %v20956_v46 = vld [vmem:[#allocation122_spill] sm:$0xff] }
 0x4ca   : > { %6980 = vmatmul.mubr.bf16.gmra.mrb[184].mxu0 %v20948_v58  ;;  %v20958_v58 = vld [vmem:[#allocation62_spill] sm:$0xff] }
 0x4cb   : > { %v18092_v32 = vadd.f32 %v18011_v53, %v11910_v62  ;;  %6987 = vmatprep.mubr.bf16.mxu0 %v20832_v15  ;;  %v20949_v15 = vld [vmem:[#allocation41_spill] sm:$0xff]  ;;  %v20957_v62 = vld [vmem:[#allocation123_spill] sm:$0xff] }
 0x4cc   : > { %12969 = vmatmul.mubr.msk.bf16.gmra.mrb[76].mxu1 %vm1083_vm0, %v20870_v23  ;;  %v20950_v23 = vld [vmem:[#allocation40_spill] sm:$0xff] }
 0x4cd   : > { %12972 = vmatprep.mubr.msk.bf16.mxu1 %vm1083_vm0, %v20871_v42  ;;  %v11911_v54 = vpop.f32.mrb[80].mxu0  ;;  %v14125_v42 = vld [vmem:[#allocation6 + $0x148] sm:$0xff]  }
 0x4ce   : > { %v11912_v61 = vpop.f32.mrb[81].mxu0  ;;  %12990 = vmatprep.subr.bf16.mxu0 %v14125_v42 }
 0x4cf   : > { %v11913_v56 = vadd.f32 %v11912_v61, %v11911_v54  ;;  %v11914_v57 = vpop.f32.mrb[82].mxu0  ;;  %12991 = vmatpush3.bf16.msra.mxu0 %v14125_v42  ;;  %v14126_v54 = vld [vmem:[#allocation6 + $0x150] sm:$0xff]   ;;  %v20959_v61 = vld [vmem:[#allocation158_spill] sm:$0xff] }
 0x4d0   : > { %v11915_v40 = vpop.f32.mrb[83].mxu0  ;;  %12992 = vmatprep.subr.bf16.mxu0 %v14126_v54 }
 0x4d1   : > { %v18100_v2 = vadd.f32 %v18019_v33, %v11913_v56  ;;  %v11916_v17 = vadd.f32 %v11915_v40, %v11914_v57 }
 0x4d2   : > { %6988 = vmatmul.mubr.bf16.gmra.mrb[188].mxu0 %v20833_v9 }
 0x4d3   : > { %v18104_v53 = vadd.f32 %v18029_v1, %v11916_v17  ;;  %6995 = vmatprep.mubr.bf16.mxu0 %v20949_v15  ;;  %12993 = vmatpush3.bf16.msra.mxu0 %v14126_v54  ;;  %v20966_v54 = vld [vmem:[#allocation94_spill] sm:$0xff] }
 0x4d4   : > { %12973 = vmatmul.mubr.msk.bf16.gmra.mrb[80].mxu1 %vm1083_vm0, %v20950_v23  ;;  %v20960_v23 = vld [vmem:[#allocation140_spill] sm:$0xff] }
 0x4d5   : > { %12976 = vmatprep.mubr.msk.bf16.mxu1 %vm1083_vm0, %v20951_v36  ;;  %v11917_v26 = vpop.f32.mrb[84].mxu0  ;;  %v20961_v36 = vld [vmem:[#allocation137_spill] sm:$0xff] }
 0x4d6   : > { %v11918_v0 = vpop.f32.mrb[85].mxu0 }
 0x4d7   : > { %v11919_v33 = vadd.f32 %v11918_v0, %v11917_v26  ;;  %v11920_v29 = vpop.f32.mrb[86].mxu0  ;;  %v20962_v26 = vld [vmem:[#allocation21_spill] sm:$0xff] }
 0x4d8   : > { %v11921_v28 = vpop.f32.mrb[87].mxu0 }
 0x4d9   : > { %v18112_v9 = vadd.f32 %v18037_v27, %v11919_v33  ;;  %v11922_v1 = vadd.f32 %v11921_v28, %v11920_v29 }
 0x4da   : > { %6996 = vmatmul.mubr.bf16.gmra.mrb[192].mxu0 %v20952_v18 }
 0x4db   : > { %v18116_v44 = vadd.f32 %v18047_v11, %v11922_v1  ;;  %7003 = vmatprep.mubr.bf16.mxu0 %v20953_v10  ;;  %v14127_v10 = vld [vmem:[#allocation6 + $0x158] sm:$0xff]  }
 0x4dc   : > { %12977 = vmatmul.mubr.msk.bf16.gmra.mrb[84].mxu1 %vm1083_vm0, %v20954_v4  ;;  %v20963_v4 = vld [vmem:[#allocation135_spill] sm:$0xff]  ;;  %12994 = vmatprep.subr.bf16.mxu0 %v14127_v10 }
 0x4dd   : > { %12980 = vmatprep.mubr.msk.bf16.mxu1 %vm1083_vm0, %v20955_v39  ;;  %v11923_v30 = vpop.f32.mrb[88].mxu0  ;;  %v20964_v39 = vld [vmem:[#allocation139_spill] sm:$0xff]  ;;  %12995 = vmatpush3.bf16.msra.mxu0 %v14127_v10 }
 0x4de   : > { %v11924_v21 = vpop.f32.mrb[89].mxu0 }
 0x4df   : > { %v11925_v19 = vadd.f32 %v11924_v21, %v11923_v30  ;;  %v11926_v13 = vpop.f32.mrb[90].mxu0 }
 0x4e0   : > { %v11927_v27 = vpop.f32.mrb[91].mxu0 }
 0x4e1   : > { %v18124_v16 = vadd.f32 %v18055_v49, %v11925_v19  ;;  %v11928_v14 = vadd.f32 %v11927_v27, %v11926_v13 }
 0x4e2   : > { %7004 = vmatmul.mubr.bf16.gmra.mrb[196].mxu0 %v20956_v46  ;;  %v14128_v46 = vld [vmem:[#allocation6 + $0x100] sm:$0xff]  }
 0x4e3   : > { %v18128_v11 = vadd.f32 %v18065_v12, %v11928_v14  ;;  %7011 = vmatprep.mubr.bf16.mxu0 %v20957_v62  ;;  %v14129_v62 = vld [vmem:[#allocation6 + $0xc0] sm:$0xff]   ;;  %12210 = vmatprep.subr.bf16.mxu1 %v14128_v46 }
 0x4e4   : > { %12981 = vmatmul.mubr.msk.bf16.gmra.mrb[88].mxu1 %vm1083_vm0, %v20958_v58  ;;  %v20965_v58 = vld [vmem:[#allocation146_spill] sm:$0xff] }
 0x4e5   : > { %12984 = vmatprep.mubr.msk.bf16.mxu1 %vm1083_vm0, %v20959_v61  ;;  %v11929_v56 = vpop.f32.mrb[92].mxu0  ;;  %12211 = vmatpush3.bf16.msra.mxu1 %v14129_v62 }
 0x4e6   : > { %v11930_v57 = vpop.f32.mrb[93].mxu0 }
 0x4e7   : > { %v11931_v49 = vadd.f32 %v11930_v57, %v11929_v56  ;;  %v11932_v40 = vpop.f32.mrb[94].mxu0 }
 0x4e8   : > { %v11933_v17 = vpop.f32.mrb[95].mxu0 }
 0x4e9   : > { %v18136_v15 = vadd.f32 %v18073_v38, %v11931_v49  ;;  %v11934_v12 = vadd.f32 %v11933_v17, %v11932_v40  ;;  %v14130_v40 = vld [vmem:[#allocation6 + $0x108] sm:$0xff]  }
 0x4ea   : > { %7012 = vmatmul.mubr.bf16.gmra.mrb[200].mxu0 %v20960_v23  ;;  %12212 = vmatprep.subr.bf16.mxu1 %v14130_v40  ;;  %v14131_v23 = vld [vmem:[#allocation6 + $0xc8] sm:$0xff]   ;;  %v14137_v40 = vld [vmem:[#allocation6 + $0x120] sm:$0xff]  }
 0x4eb   : > { %v18140_v42 = vadd.f32 %v18083_v24, %v11934_v12  ;;  %7019 = vmatprep.mubr.bf16.mxu0 %v20961_v36  ;;  %v14132_v36 = vld [vmem:[#allocation6 + $0x110] sm:$0xff]   ;;  %12213 = vmatpush3.bf16.msra.mxu1 %v14131_v23  ;;  %v14138_v23 = vld [vmem:[#allocation6 + $0xe0] sm:$0xff]  }
 0x4ec   : > { %12985 = vmatmul.mubr.msk.bf16.gmra.mrb[92].mxu1 %vm1083_vm0, %v20962_v26  ;;  %12214 = vmatprep.subr.bf16.mxu1 %v14132_v36 }
 0x4ed   : > { %v11968_v0 = vpop.f32.mrb[96].mxu0 }
 0x4ee   : > { %v11969_v33 = vpop.f32.mrb[97].mxu0 }
 0x4ef   : > { %v11970_v29 = vadd.f32 %v11969_v33, %v11968_v0  ;;  %v11971_v28 = vpop.f32.mrb[98].mxu0  ;;  %v20967_v0 = vld [vmem:[#allocation191_spill] sm:$0xff] }
 0x4f0   : > { %v11972_v1 = vpop.f32.mrb[99].mxu0 }
 0x4f1   : > { %v18146_v18 = vadd.f32 %v17889_v41, %v11970_v29  ;;  %v11973_v38 = vadd.f32 %v11972_v1, %v11971_v28  ;;  %v20968_v29 = vld [vmem:[#allocation185_spill] sm:$0xff]  ;;  %v14133_v28 = vld [vmem:[#allocation6 + $0xd0] sm:$0xff]  }
 0x4f2   : > { %7020 = vmatmul.mubr.bf16.gmra.mrb[204].mxu0 %v20963_v4  ;;  %12215 = vmatpush3.bf16.msra.mxu1 %v14133_v28 }
 0x4f3   : > { %v18150_v24 = vadd.f32 %v17899_v43, %v11973_v38  ;;  %7027 = vmatprep.mubr.bf16.mxu0 %v20964_v39 }
 0x4f5   : > { %v11974_v30 = vpop.f32.mrb[100].mxu0 }
 0x4f6   : > { %v11975_v21 = vpop.f32.mrb[101].mxu0 }
 0x4f7   : > { %v11976_v19 = vadd.f32 %v11975_v21, %v11974_v30  ;;  %v11977_v13 = vpop.f32.mrb[102].mxu0  ;;  %v20969_v21 = vld [vmem:[#allocation80_spill] sm:$0xff] }
 0x4f8   : > { %v11978_v27 = vpop.f32.mrb[103].mxu0 }
 0x4f9   : > { %v18154_v14 = vadd.f32 %v17908_v50, %v11976_v19  ;;  %v11979_v41 = vadd.f32 %v11978_v27, %v11977_v13 }
 0x4fa   : > { %7028 = vmatmul.mubr.bf16.gmra.mrb[208].mxu0 %v20965_v58 }
 0x4fb   : > { %v18158_v43 = vadd.f32 %v17918_v5, %v11979_v41  ;;  %7035 = vmatprep.mubr.bf16.mxu0 %v20966_v54  ;;  %v14134_v5 = vld [vmem:[#allocation6 + $0x160] sm:$0xff]  }
 0x4fc   : > { %12996 = vmatprep.subr.bf16.mxu0 %v14134_v5 }
 0x4fd   : > { %v11980_v61 = vpop.f32.mrb[104].mxu0  ;;  %12997 = vmatpush3.bf16.msra.mxu0 %v14134_v5 }
 0x4fe   : > { %v11981_v56 = vpop.f32.mrb[105].mxu0 }
 0x4ff   : > { %v11982_v57 = vadd.f32 %v11981_v56, %v11980_v61  ;;  %v11983_v49 = vpop.f32.mrb[106].mxu0 }
 0x500   : > { %v11984_v17 = vpop.f32.mrb[107].mxu0 }
 0x501   : > { %v18162_v50 = vadd.f32 %v17926_v6, %v11982_v57  ;;  %v11985_v12 = vadd.f32 %v11984_v17, %v11983_v49  ;;  %v14136_v49 = vld [vmem:[#allocation6 + $0xd8] sm:$0xff]  }
 0x502   : > { %7036 = vmatmul.mubr.bf16.gmra.mrb[212].mxu0 %v20967_v0  ;;  %v14140_v0 = vld [vmem:[#allocation6 + $0x168] sm:$0xff]  }
 0x503   : > { %v18166_v33 = vadd.f32 %v17936_v55, %v11985_v12  ;;  %7043 = vmatprep.mubr.bf16.mxu0 %v20968_v29  ;;  %12998 = vmatprep.subr.bf16.mxu0 %v14140_v0 }
 0x504   : > { %12999 = vmatpush3.bf16.msra.mxu0 %v14140_v0 }
 0x505   : > { %v11986_v1 = vpop.f32.mrb[108].mxu0 }
 0x506   : > { %v11987_v6 = vpop.f32.mrb[109].mxu0 }
 0x507   : > { %v11988_v38 = vadd.f32 %v11987_v6, %v11986_v1  ;;  %v11989_v10 = vpop.f32.mrb[110].mxu0 }
 0x508   : > { %v11990_v4 = vpop.f32.mrb[111].mxu0 }
 0x509   : > { %v18170_v39 = vadd.f32 %v17944_v47, %v11988_v38  ;;  %v11991_v30 = vadd.f32 %v11990_v4, %v11989_v10  ;;  %v14135_v47 = vld [vmem:[#allocation6 + $0x118] sm:$0xff]   ;;  %v14142_v4 = vld [vmem:[#allocation6 + $0x130] sm:$0xff]  }
 0x50a   : > { %7044 = vmatmul.mubr.bf16.gmra.mrb[216].mxu0 %v20969_v21  ;;  %12216 = vmatprep.subr.bf16.mxu1 %v14135_v47 }
 0x50b   : > { %v18174_v55 = vadd.f32 %v17954_v7, %v11991_v30  ;;  %7051 = vmatprep.mubr.bf16.mxu0 %v20962_v26  ;;  %12217 = vmatpush3.bf16.msra.mxu1 %v14136_v49  ;;  %v14143_v30 = vld [vmem:[#allocation6 + $0x170] sm:$0xff]  }
 0x50c   : > { %12218 = vmatprep.subr.bf16.mxu1 %v14137_v40  ;;  %13000 = vmatprep.subr.bf16.mxu0 %v14143_v30 }
 0x50d   : > { %v11992_v19 = vpop.f32.mrb[112].mxu0  ;;  %13001 = vmatpush3.bf16.msra.mxu0 %v14143_v30 }
 0x50e   : > { %v11993_v13 = vpop.f32.mrb[113].mxu0 }
 0x50f   : > { %v11994_v27 = vadd.f32 %v11993_v13, %v11992_v19  ;;  %v11995_v41 = vpop.f32.mrb[114].mxu0  ;;  %12219 = vmatpush3.bf16.msra.mxu1 %v14138_v23  ;;  %v14144_v19 = vld [vmem:[#allocation6 + $0xf0] sm:$0xff]  }
 0x510   : > { %v11996_v46 = vpop.f32.mrb[115].mxu0 }
 0x511   : > { %v18178_v62 = vadd.f32 %v17962_v35, %v11994_v27  ;;  %v11997_v58 = vadd.f32 %v11996_v46, %v11995_v41 }
 0x512   : > { %7052 = vmatmul.mubr.bf16.gmra.mrb[220].mxu0 %v20962_v26 }
 0x513   : > { %v18182_v54 = vadd.f32 %v17972_v34, %v11997_v58  ;;  %v14139_v34 = vld [vmem:[#allocation6 + $0x128] sm:$0xff]   ;;  %v14145_v58 = vld [vmem:[#allocation6 + $0x138] sm:$0xff]  }
 0x514   : > { %12220 = vmatprep.subr.bf16.mxu1 %v14139_v34 }
 0x515   : > { %v11998_v7 = vpop.f32.mrb[116].mxu0 }
 0x516   : > { %v11999_v61 = vpop.f32.mrb[117].mxu0 }
 0x517   : > { %v12000_v56 = vadd.f32 %v11999_v61, %v11998_v7  ;;  %v12001_v57 = vpop.f32.mrb[118].mxu0  ;;  %v14147_v61 = vld [vmem:[#allocation6 + $0xf8] sm:$0xff]  }
 0x518   : > { %v12002_v17 = vpop.f32.mrb[119].mxu0 }
 0x519   : > { %v18185_v12 = vadd.f32 %v17980_v48, %v12000_v56  ;;  %v12003_v35 = vadd.f32 %v12002_v17, %v12001_v57 }
 0x51b   : > { %v18188_v36 = vadd.f32 %v17990_v60, %v12003_v35  ;;  %v14141_v60 = vld [vmem:[#allocation6 + $0xe8] sm:$0xff]  }
 0x51c   : > { %12221 = vmatpush3.bf16.msra.mxu1 %v14141_v60 }
 0x51d   : > { %v12004_v5 = vpop.f32.mrb[120].mxu0  ;;  %12222 = vmatprep.subr.bf16.mxu1 %v14142_v4 }
 0x51e   : > { %v12005_v29 = vpop.f32.mrb[121].mxu0 }
 0x51f   : > { %v12006_v28 = vadd.f32 %v12005_v29, %v12004_v5  ;;  %v12007_v1 = vpop.f32.mrb[122].mxu0 }
 0x520   : > { %v12008_v6 = vpop.f32.mrb[123].mxu0  ;;  %12223 = vmatpush3.bf16.msra.mxu1 %v14144_v19 }
 0x521   : > { %v18191_v48 = vadd.f32 %v17998_v37, %v12006_v28  ;;  %v12009_v38 = vadd.f32 %v12008_v6, %v12007_v1  ;;  %v14146_v37 = vld [vmem:[#allocation6 + $0x178] sm:$0xff]   ;;  %12224 = vmatprep.subr.bf16.mxu1 %v14145_v58 }
 0x522   : > { %13002 = vmatprep.subr.bf16.mxu0 %v14146_v37 }
 0x523   : > { %v18194_v10 = vadd.f32 %v18008_v52, %v12009_v38  ;;  %13003 = vmatpush3.bf16.msra.mxu0 %v14146_v37 }
 0x524   : > { %12225 = vmatpush3.bf16.msra.mxu1 %v14147_v61 }
 0x525   : > { %v12010_v21 = vpop.f32.mrb[124].mxu0 }
 0x526   : > { %v12011_v13 = vpop.f32.mrb[125].mxu0 }
 0x527   : > { %v12012_v27 = vadd.f32 %v12011_v13, %v12010_v21  ;;  %v12013_v41 = vpop.f32.mrb[126].mxu0 }
 0x528   : > { %v12014_v46 = vpop.f32.mrb[127].mxu0 }
 0x529   : > { %v18197_v47 = vadd.f32 %v18016_v20, %v12012_v27  ;;  %v12015_v52 = vadd.f32 %v12014_v46, %v12013_v41 }
 0x52b   : > { %v18200_v7 = vadd.f32 %v18026_v59, %v12015_v52 }
 0x52d   : > { %v12016_v56 = vpop.f32.mrb[128].mxu0 }
 0x52e   : > { %v12017_v57 = vpop.f32.mrb[129].mxu0 }
 0x52f   : > { %v12018_v49 = vadd.f32 %v12017_v57, %v12016_v56  ;;  %v12019_v40 = vpop.f32.mrb[130].mxu0 }
 0x530   : > { %v12020_v17 = vpop.f32.mrb[131].mxu0 }
 0x531   : > { %v18203_v35 = vadd.f32 %v18034_v63, %v12018_v49  ;;  %v12021_v20 = vadd.f32 %v12020_v17, %v12019_v40  ;;  %v14148_v17 = vld [vmem:[#allocation6 + $0x40] sm:$0xff]  }
 0x532   : > { %12346 = vmatprep.subr.bf16.mxu0 %v14148_v17 }
 0x533   : > { %v18206_v23 = vadd.f32 %v18041_v8, %v12021_v20 }
 0x535   : > { %v12022_v34 = vpop.f32.mrb[132].mxu0 }
 0x536   : > { %v12023_v0 = vpop.f32.mrb[133].mxu0 }
 0x537   : > { %v12024_v5 = vadd.f32 %v12023_v0, %v12022_v34  ;;  %v12025_v59 = vpop.f32.mrb[134].mxu0 }
 0x538   : > { %v12026_v29 = vpop.f32.mrb[135].mxu0 }
 0x539   : > { %v18209_v28 = vadd.f32 %v18052_v25, %v12024_v5  ;;  %v12027_v1 = vadd.f32 %v12026_v29, %v12025_v59 }
 0x53b   : > { %v18212_v6 = vadd.f32 %v18059_v3, %v12027_v1 }
 0x53d   : > { %v12028_v38 = vpop.f32.mrb[136].mxu0 }
 0x53e   : > { %v12029_v60 = vpop.f32.mrb[137].mxu0 }
 0x53f   : > { %v12030_v63 = vadd.f32 %v12029_v60, %v12028_v38  ;;  %v12031_v4 = vpop.f32.mrb[138].mxu0 }
 0x540   : > { %v12032_v30 = vpop.f32.mrb[139].mxu0 }
 0x541   : > { %v18215_v8 = vadd.f32 %v18070_v31, %v12030_v63  ;;  %v12033_v21 = vadd.f32 %v12032_v30, %v12031_v4 }
 0x543   : > { %20970 = vst [vmem:[#allocation121_spill] sm:$0xff] %v18215_v8  ;;  %v18218_v19 = vadd.f32 %v18077_v51, %v12033_v21 }
 0x545   : > { %20971 = vst [vmem:[#allocation105_spill] sm:$0xff] %v18218_v19  ;;  %v12034_v13 = vpop.f32.mrb[140].mxu0 }
 0x546   : > { %v12035_v27 = vpop.f32.mrb[141].mxu0 }
 0x547   : > { %v12036_v25 = vadd.f32 %v12035_v27, %v12034_v13  ;;  %v12037_v41 = vpop.f32.mrb[142].mxu0 }
 0x548   : > { %v12038_v46 = vpop.f32.mrb[143].mxu0 }
 0x549   : > { %v18221_v3 = vadd.f32 %v18088_v22, %v12036_v25  ;;  %v12039_v58 = vadd.f32 %v12038_v46, %v12037_v41 }
 0x54b   : > { %20972 = vst [vmem:[#allocation72_spill] sm:$0xff] %v18221_v3  ;;  %v18224_v37 = vadd.f32 %v18092_v32, %v12039_v58 }
 0x54d   : > { %20973 = vst [vmem:[#allocation115_spill] sm:$0xff] %v18224_v37  ;;  %v12040_v52 = vpop.f32.mrb[144].mxu0 }
 0x54e   : > { %v12041_v61 = vpop.f32.mrb[145].mxu0 }
 0x54f   : > { %v12042_v31 = vadd.f32 %v12041_v61, %v12040_v52  ;;  %v12043_v56 = vpop.f32.mrb[146].mxu0 }
 0x550   : > { %v12044_v57 = vpop.f32.mrb[147].mxu0 }
 0x551   : > { %v18227_v51 = vadd.f32 %v18100_v2, %v12042_v31  ;;  %v12045_v49 = vadd.f32 %v12044_v57, %v12043_v56 }
 0x553   : > { %20974 = vst [vmem:[#allocation102_spill] sm:$0xff] %v18227_v51  ;;  %v18230_v40 = vadd.f32 %v18104_v53, %v12045_v49 }
 0x555   : > { %20975 = vst [vmem:[#allocation118_spill] sm:$0xff] %v18230_v40  ;;  %v12046_v20 = vpop.f32.mrb[148].mxu0 }
 0x556   : > { %v12047_v22 = vpop.f32.mrb[149].mxu0 }
 0x557   : > { %v12048_v34 = vadd.f32 %v12047_v22, %v12046_v20  ;;  %v12049_v0 = vpop.f32.mrb[150].mxu0 }
 0x558   : > { %v12050_v32 = vpop.f32.mrb[151].mxu0 }
 0x559   : > { %v18233_v5 = vadd.f32 %v18112_v9, %v12048_v34  ;;  %v12051_v59 = vadd.f32 %v12050_v32, %v12049_v0 }
 0x55b   : > { %20976 = vst [vmem:[#allocation141_spill] sm:$0xff] %v18233_v5  ;;  %v18236_v29 = vadd.f32 %v18116_v44, %v12051_v59 }
 0x55d   : > { %20977 = vst [vmem:[#allocation55_spill] sm:$0xff] %v18236_v29  ;;  %v12052_v2 = vpop.f32.mrb[152].mxu0 }
 0x55e   : > { %v12053_v1 = vpop.f32.mrb[153].mxu0 }
 0x55f   : > { %v12054_v38 = vadd.f32 %v12053_v1, %v12052_v2  ;;  %v12055_v60 = vpop.f32.mrb[154].mxu0 }
 0x560   : > { %v12056_v53 = vpop.f32.mrb[155].mxu0 }
 0x561   : > { %v18239_v63 = vadd.f32 %v18124_v16, %v12054_v38  ;;  %v12057_v4 = vadd.f32 %v12056_v53, %v12055_v60 }
 0x563   : > { %20978 = vst [vmem:[#allocation71_spill] sm:$0xff] %v18239_v63  ;;  %v18242_v30 = vadd.f32 %v18128_v11, %v12057_v4  ;;  %v14164_v63 = vld [vmem:[#allocation6 + $0x180] sm:$0xff]  }
 0x565   : > { %20979 = vst [vmem:[#allocation125_spill] sm:$0xff] %v18242_v30  ;;  %v12058_v21 = vpop.f32.mrb[156].mxu0 }
 0x566   : > { %v12059_v13 = vpop.f32.mrb[157].mxu0 }
 0x567   : > { %v12060_v9 = vadd.f32 %v12059_v13, %v12058_v21  ;;  %v12061_v27 = vpop.f32.mrb[158].mxu0 }
 0x568   : > { %v12062_v25 = vpop.f32.mrb[159].mxu0 }
 0x569   : > { %v18245_v44 = vadd.f32 %v18136_v15, %v12060_v9  ;;  %v12063_v41 = vadd.f32 %v12062_v25, %v12061_v27  ;;  %v18266_v25 = vld [vmem:[%s19661_s8] ss:$0 sm:$0xff] }
 0x56b   : > { %20980 = vst [vmem:[#allocation132_spill] sm:$0xff] %v18245_v44  ;;  %v18248_v46 = vadd.f32 %v18140_v42, %v12063_v41 }
 0x56d   : > { %20981 = vst [vmem:[#allocation117_spill] sm:$0xff] %v18248_v46  ;;  %v12097_v58 = vpop.f32.mrb[160].mxu0 }
 0x56e   : > { %v12098_v52 = vpop.f32.mrb[161].mxu0 }
 0x56f   : > { %v12099_v16 = vadd.f32 %v12098_v52, %v12097_v58  ;;  %v12100_v61 = vpop.f32.mrb[162].mxu0 }
 0x570   : > { %v12101_v31 = vpop.f32.mrb[163].mxu0 }
 0x571   : > { %v12102_v56 = vadd.f32 %v12101_v31, %v12100_v61  ;;  %v13196_v11 = vadd.f32 %v18146_v18, %v12099_v16 }
 0x573   : > { %v13214_v57 = vadd.f32 %v18150_v24, %v12102_v56 }
 0x575   : > { %v12103_v49 = vpop.f32.mrb[164].mxu0 }
 0x576   : > { %v12104_v17 = vpop.f32.mrb[165].mxu0 }
 0x577   : > { %v12105_v20 = vadd.f32 %v12104_v17, %v12103_v49  ;;  %v12106_v22 = vpop.f32.mrb[166].mxu0  ;;  %v14162_v17 = vld [vmem:[#allocation6 + $0x1c0] sm:$0xff]  }
 0x578   : > { %v12107_v15 = vpop.f32.mrb[167].mxu0  ;;  %12482 = vmatprep.subr.bf16.mxu1 %v14162_v17 }
 0x579   : > { %v12108_v34 = vadd.f32 %v12107_v15, %v12106_v22  ;;  %v13187_v0 = vadd.f32 %v18154_v14, %v12105_v20  ;;  %v18261_v14 = vld [vmem:[%s19660_s7] ss:$0 sm:$0xff] }
 0x57b   : > { %v13205_v42 = vadd.f32 %v18158_v43, %v12108_v34 }
 0x57d   : > { %v12109_v32 = vpop.f32.mrb[168].mxu0 }
 0x57e   : > { %v12110_v59 = vpop.f32.mrb[169].mxu0 }
 0x57f   : > { %v12111_v2 = vadd.f32 %v12110_v59, %v12109_v32  ;;  %v12112_v1 = vpop.f32.mrb[170].mxu0 }
 0x580   : > { %v12113_v38 = vpop.f32.mrb[171].mxu0 }
 0x581   : > { %v12114_v60 = vadd.f32 %v12113_v38, %v12112_v1  ;;  %v13232_v18 = vadd.f32 %v18162_v50, %v12111_v2 }
 0x583   : > { %v18256_v24 = vadd.f32 %v18166_v33, %v12114_v60 }
 0x585   : > { %v12115_v53 = vpop.f32.mrb[172].mxu0 }
 0x586   : > { %v12116_v4 = vpop.f32.mrb[173].mxu0 }
 0x587   : > { %v12958_v21 = vpop.f32.mrb[64].mxu1  ;;  %v12117_v43 = vadd.f32 %v12116_v4, %v12115_v53  ;;  %v12118_v9 = vpop.f32.mrb[174].mxu0 }
 0x588   : > { %v13188_v13 = vadd.f32 %v13187_v0, %v12958_v21  ;;  %v7094_v27 = vpop.f32.mrb[65].mxu1  ;;  %v12119_v33 = vpop.f32.mrb[175].mxu0 }
 0x589   : > { %v13197_v50 = vadd.f32 %v13196_v11, %v7094_v27  ;;  %v12959_v41 = vpop.f32.mrb[66].mxu1  ;;  %v12120_v52 = vadd.f32 %v12119_v33, %v12118_v9  ;;  %v13223_v31 = vadd.f32 %v18170_v39, %v12117_v43 }
 0x58a   : > { %v7262_v58 = vmul.f32 %v13188_v13, %v18261_v14  ;;  %v13206_v16 = vadd.f32 %v13205_v42, %v12959_v41  ;;  %v7097_v61 = vpop.f32.mrb[67].mxu1 }
 0x58b   : > { %v7260_v56 = vmul.f32 %v13197_v50, %v18261_v14  ;;  %v13215_v49 = vadd.f32 %v13214_v57, %v7097_v61  ;;  %v13241_v15 = vadd.f32 %v18174_v55, %v12120_v52 }
 0x58c   : > { %v7301_v20 = vadd.f32 %v18266_v25, %v7262_v58  ;;  %v7263_v22 = vmul.f32 %v13206_v16, %v18261_v14 }
 0x58d   : > { %v7299_v11 = vadd.f32 %v18266_v25, %v7260_v56  ;;  %v7261_v34 = vmul.f32 %v13215_v49, %v18261_v14  ;;  %v12121_v32 = vpop.f32.mrb[176].mxu0 }
 0x58e   : > { %v7333_v0 = vmax.f32 %v7301_v20, 0.0  ;;  %v7302_v42 = vadd.f32 %v18266_v25, %v7263_v22  ;;  %v12122_v57 = vpop.f32.mrb[177].mxu0 }
 0x58f   : > { %v7331_v39 = vmax.f32 %v7299_v11, 0.0  ;;  %v7300_v59 = vadd.f32 %v18266_v25, %v7261_v34  ;;  %v12962_v2 = vpop.f32.mrb[68].mxu1  ;;  %v12123_v60 = vadd.f32 %v12122_v57, %v12121_v32  ;;  %v12124_v55 = vpop.f32.mrb[178].mxu0 }
 0x590   : > { %v18278_v1 = vrot.slane %v7333_v0, 7  ;;  %v7334_v38 = vmax.f32 %v7302_v42, 0.0  ;;  %v13224_v53 = vadd.f32 %v13223_v31, %v12962_v2  ;;  %v7110_v4 = vpop.f32.mrb[69].mxu1  ;;  %v12125_v9 = vpop.f32.mrb[179].mxu0 }
 0x591   : > { %v7395_v21 = vrot.slane %v7331_v39, 7  ;;  %v7332_v43 = vmax.f32 %v7300_v59, 0.0  ;;  %v13233_v13 = vadd.f32 %v13232_v18, %v7110_v4  ;;  %v12963_v27 = vpop.f32.mrb[70].mxu1  ;;  %v12126_v58 = vadd.f32 %v12125_v9, %v12124_v55 }
 0x592   : > { %v18282_v50 = vsel %vm1422_vm2, 0.0, %v18278_v1  ;;  %v7399_v33 = vrot.slane %v7334_v38, 7  ;;  %v7266_v41 = vmul.f32 %v13224_v53, %v18261_v14  ;;  %v7113_v52 = vpop.f32.mrb[71].mxu1  ;;  %v13242_v20 = vadd.f32 %v13241_v15, %v12963_v27 }
 0x593   : > { %v7663_v16 = vrot.slane %v18282_v50, 2  ;;  %v18287_v61 = vsel %vm1422_vm2, 0.0, %v7395_v21  ;;  %v7396_v31 = vrot.slane %v7332_v43, 7  ;;  %v7264_v56 = vmul.f32 %v13233_v13, %v18261_v14 }
 0x594   : > { %v18292_v18 = vsel %vm1422_vm2, %v18278_v1, %v7399_v33  ;;  %v18295_v49 = vsel %vm1422_vm2, %v7399_v33, 0.0  ;;  %v7305_v17 = vadd.f32 %v18266_v25, %v7266_v41  ;;  %v7267_v9 = vmul.f32 %v13242_v20, %v18261_v14 }
 0x595   : > { %v7664_v11 = vrot.slane %v18292_v18, 2  ;;  %v7666_v34 = vrot.slane %v18295_v49, 2  ;;  %v18302_v0 = vsel %vm1422_vm2, %v7395_v21, %v7396_v31  ;;  %v18305_v42 = vsel %vm1422_vm2, %v7396_v31, 0.0  ;;  %v12127_v57 = vpop.f32.mrb[180].mxu0 }
 0x596   : > { %v18308_v32 = vpack.c.bf16 %v18302_v0, %v7395_v21  ;;  %v7337_v39 = vmax.f32 %v7305_v17, 0.0  ;;  %v7303_v59 = vadd.f32 %v18266_v25, %v7264_v56  ;;  %v12128_v55 = vpop.f32.mrb[181].mxu0  ;;  %v13251_v41 = vadd.f32 %v18256_v24, %v7113_v52 }
 0x597   : > { %v7665_v15 = vsel %vm3333_vm4, %v7663_v16, %v7664_v11  ;;  %v7667_v2 = vsel %vm3333_vm4, %v7664_v11, %v7666_v34  ;;  %v12966_v4 = vpop.f32.mrb[72].mxu1  ;;  %v12130_v27 = vpop.f32.mrb[182].mxu0  ;;  %v12129_v16 = vadd.f32 %v12128_v55, %v12127_v57  ;;  %v13268_v31 = vadd.f32 %v18178_v62, %v12123_v60 }
 0x598   : > { %20982 = vst [vmem:[#allocation59_spill] sm:$0xff] %v18308_v32  ;;  %v18315_v43 = vpack.c.bf16 %v7667_v2, %v7665_v15  ;;  %v18317_v13 = vrot.slane %v7337_v39, 7  ;;  %v7335_v21 = vmax.f32 %v7303_v59, 0.0  ;;  %v7126_v33 = vpop.f32.mrb[73].mxu1  ;;  %v12131_v56 = vpop.f32.mrb[183].mxu0  ;;  %v13286_v11 = vadd.f32 %v18182_v54, %v12126_v58 }
 0x599   : > { %v12967_v17 = vpop.f32.mrb[74].mxu1  ;;  %v7306_v59 = vadd.f32 %v18266_v25, %v7267_v9  ;;  %v12132_v20 = vadd.f32 %v12131_v56, %v12130_v27  ;;  %v7265_v24 = vmul.f32 %v13251_v41, %v18261_v14  ;;  %v13259_v62 = vadd.f32 %v18185_v12, %v12129_v16 }
 0x59a   : > { %20983 = vst [vmem:[#allocation145_spill] sm:$0xff] %v18315_v43  ;;  %v18325_v34 = vsel %vm1422_vm2, 0.0, %v18317_v13  ;;  %v18327_v39 = vrot.slane %v7335_v21, 7  ;;  %v7129_v15 = vpop.f32.mrb[75].mxu1  ;;  %v13269_v60 = vadd.f32 %v13268_v31, %v7126_v33  ;;  %v7553_v27 = vrot.slane %v18287_v61, 1 }
 0x59b   : > { %v7673_v2 = vrot.slane %v18325_v34, 2  ;;  %v7338_v58 = vmax.f32 %v7306_v59, 0.0  ;;  %v13277_v52 = vadd.f32 %v18188_v36, %v12132_v20  ;;  %v13287_v57 = vadd.f32 %v13286_v11, %v7129_v15 }
 0x59c   : > { %v18335_v54 = vsel %vm1422_vm2, 0.0, %v18327_v39  ;;  %v7304_v55 = vadd.f32 %v18266_v25, %v7265_v24  ;;  %v13260_v21 = vadd.f32 %v13259_v62, %v12966_v4  ;;  %v7268_v9 = vmul.f32 %v13269_v60, %v18261_v14 }
 0x59d   : > { %v7405_v56 = vrot.slane %v7338_v58, 7  ;;  %v13278_v41 = vadd.f32 %v13277_v52, %v12967_v17  ;;  %v7269_v12 = vmul.f32 %v13287_v57, %v18261_v14  ;;  %v7554_v33 = vrot.slane %v18302_v0, 1  ;;  %v18343_v16 = vpop.f32.mrb[184].mxu0 }
 0x59e   : > { %v7336_v31 = vmax.f32 %v7304_v55, 0.0  ;;  %v7270_v59 = vmul.f32 %v13260_v21, %v18261_v14  ;;  %v7307_v36 = vadd.f32 %v18266_v25, %v7268_v9  ;;  %v7658_v11 = vrot.slane %v18287_v61, 2  ;;  %v18348_v4 = vpop.f32.mrb[185].mxu0 }
 0x59f   : > { %v18350_v20 = vpop.f32.mrb[76].mxu1  ;;  %v18354_v17 = vsel %vm1422_vm2, %v18317_v13, %v7405_v56  ;;  %v18357_v15 = vsel %vm1422_vm2, %v7405_v56, 0.0  ;;  %v7271_v24 = vmul.f32 %v13278_v41, %v18261_v14  ;;  %v7308_v62 = vadd.f32 %v18266_v25, %v7269_v12  ;;  %v12136_v60 = vpop.f32.mrb[186].mxu0 }
 0x5a0   : > { %v18361_v58 = vpop.f32.mrb[77].mxu1  ;;  %v7674_v52 = vrot.slane %v18354_v17, 2  ;;  %v7676_v57 = vrot.slane %v18357_v15, 2  ;;  %v7402_v55 = vrot.slane %v7336_v31, 7  ;;  %v12137_v21 = vpop.f32.mrb[187].mxu0  ;;  %v7309_v56 = vadd.f32 %v18266_v25, %v7270_v59 }
 0x5a1   : > { %v18366_v9 = vpop.f32.mrb[78].mxu1  ;;  %v7339_v22 = vmax.f32 %v7307_v36, 0.0  ;;  %v7310_v41 = vadd.f32 %v18266_v25, %v7271_v24  ;;  %v7340_v53 = vmax.f32 %v7308_v62, 0.0  ;;  %v20986_v44 = vrot.slane %v18305_v42, 1 }
 0x5a2   : > { %v18370_v12 = vpop.f32.mrb[79].mxu1  ;;  %v7675_v38 = vsel %vm3333_vm4, %v7673_v2, %v7674_v52  ;;  %v7677_v61 = vsel %vm3333_vm4, %v7674_v52, %v7676_v57  ;;  %v18376_v26 = vsel %vm1422_vm2, %v18327_v39, %v7402_v55  ;;  %v18379_v31 = vsel %vm1422_vm2, %v7402_v55, 0.0 }
 0x5a3   : > { %v18381_v45 = vpack.c.bf16 %v7677_v61, %v7675_v38  ;;  %v7671_v36 = vrot.slane %v18379_v31, 2  ;;  %v7341_v24 = vmax.f32 %v7309_v56, 0.0  ;;  %v18385_v62 = vrot.slane %v7339_v22, 7 }
 0x5a4   : > { %v7342_v46 = vmax.f32 %v7310_v41, 0.0  ;;  %v7408_v2 = vrot.slane %v7340_v53, 7  ;;  %v7555_v52 = vsel %vm1985_vm3, %v7553_v27, %v7554_v33  ;;  %v7557_v55 = vsel %vm1985_vm3, %v7554_v33, %v20986_v44 }
 0x5a5   : > { %20984 = vst [vmem:[#allocation143_spill] sm:$0xff] %v18381_v45  ;;  %v18388_v57 = vrot.slane %v7341_v24, 7  ;;  %v7659_v38 = vrot.slane %v18302_v0, 2  ;;  %v7558_v61 = vrot.slane %v18282_v50, 1  ;;  %v18395_v59 = vpop.f32.mrb[188].mxu0  ;;  %v18399_v22 = vsel %vm1422_vm2, 0.0, %v18385_v62 }
 0x5a6   : > { %v7411_v56 = vrot.slane %v7342_v46, 7  ;;  %v18403_v53 = vsel %vm1422_vm2, %v18385_v62, %v7408_v2  ;;  %v18406_v27 = vsel %vm1422_vm2, %v7408_v2, 0.0  ;;  %v12140_v41 = vpop.f32.mrb[189].mxu0  ;;  %v18416_v24 = vpack.c.bf16 %v7557_v55, %v7555_v52 }
 0x5a7   : > { %20985 = vst [vmem:[#allocation144_spill] sm:$0xff] %v18388_v57  ;;  %v18408_v44 = vpop.f32.mrb[80].mxu1  ;;  %v18412_v50 = vsel %vm1422_vm2, 0.0, %v18388_v57  ;;  %v12142_v46 = vpop.f32.mrb[190].mxu0  ;;  %v7660_v40 = vsel %vm3333_vm4, %v7658_v11, %v7659_v38  ;;  %v20990_v37 = vrot.slane %v18305_v42, 2  ;;  %v7559_v52 = vrot.slane %v18292_v18, 1 }
 0x5a8   : > { %20987 = vst [vmem:[#allocation136_spill] sm:$0xff] %v18416_v24  ;;  %v18418_v30 = vpop.f32.mrb[81].mxu1  ;;  %v7683_v2 = vrot.slane %v18412_v50, 2  ;;  %v18423_v29 = vsel %vm1422_vm2, %v18388_v57, %v7411_v56  ;;  %v18426_v5 = vsel %vm1422_vm2, %v7411_v56, 0.0  ;;  %v12143_v0 = vpop.f32.mrb[191].mxu0  ;;  %8100 = vmatprep.mubr.bf16.mxu1 %v18416_v24  ;;  %v12138_v8 = vadd.f32 %v12137_v21, %v12136_v60  ;;  %v14166_v24 = vld [vmem:[#allocation6 + $0x1c8] sm:$0xff]  }
 0x5a9   : > { %20988 = vst [vmem:[#allocation152_spill] sm:$0xff] %v18426_v5  ;;  %v18429_v51 = vpop.f32.mrb[82].mxu1  ;;  %v7684_v55 = vrot.slane %v18423_v29, 2  ;;  %v7686_v33 = vrot.slane %v18426_v5, 2  ;;  %v7662_v3 = vsel %vm3333_vm4, %v7659_v38, %v20990_v37  ;;  %10775 = vmatmul.mubr.msk.bf16.vlgmr.msra.gmra.mrb[224].mxu1 %vm15964_vm7, %v18308_v32  ;;  %v14149_v5 = vld [vmem:[#allocation6] sm:$0xff]   ;;  %v7668_v38 = vrot.slane %v18335_v54, 2 }
 0x5aa   : > { %20989 = vst [vmem:[#allocation153_spill] sm:$0xff] %v18429_v51  ;;  %v18438_v19 = vpop.f32.mrb[83].mxu1  ;;  %v18440_v56 = vpack.c.bf16 %v7662_v3, %v7660_v40  ;;  %v12135_v51 = vadd.f32 %v18348_v4, %v18343_v16  ;;  %v7669_v3 = vrot.slane %v18376_v26, 2  ;;  %v14150_v40 = vld [vmem:[#allocation6 + $0x48] sm:$0xff]   ;;  %12483 = vmatpush3.bf16.msra.mxu1 %v14164_v63  ;;  %v7560_v32 = vsel %vm1985_vm3, %v7558_v61, %v7559_v52 }
 0x5ab   : > { %v7685_v42 = vsel %vm3333_vm4, %v7683_v2, %v7684_v55  ;;  %v7687_v37 = vsel %vm3333_vm4, %v7684_v55, %v7686_v33  ;;  %v20994_v16 = vrot.slane %v18295_v49, 1  ;;  %v14167_v21 = vld [vmem:[#allocation6 + $0x188] sm:$0xff]   ;;  %v13322_v2 = vadd.f32 %v18194_v10, %v12138_v8  ;;  %12484 = vmatprep.subr.bf16.mxu1 %v14166_v24 }
 0x5ac   : > { %20991 = vst [vmem:[#allocation57_spill] sm:$0xff] %v18440_v56  ;;  %v18452_v57 = vpack.c.bf16 %v7687_v37, %v7685_v42  ;;  %13004 = vmatprep.mubr.bf16.mxu0 %v18440_v56  ;;  %v13304_v60 = vadd.f32 %v18191_v48, %v12135_v51  ;;  %v7670_v63 = vsel %vm3333_vm4, %v7668_v38, %v7669_v3  ;;  %v14168_v37 = vld [vmem:[#allocation6 + $0x1d0] sm:$0xff]   ;;  %v7563_v51 = vrot.slane %v18335_v54, 1  ;;  %v14159_v56 = vld [vmem:[#allocation6 + $0x28] sm:$0xff]  }
 0x5ad   : > { %v7562_v4 = vsel %vm1985_vm3, %v7559_v52, %v20994_v16  ;;  %13005 = vmatmul.mubr.bf16.vlgmr.msra.gmra.mrb[224].mxu0 %v18315_v43  ;;  %v7672_v55 = vsel %vm3333_vm4, %v7669_v3, %v7671_v36  ;;  %v12145_v42 = vpop.f32.mrb[192].mxu0  ;;  %v18471_v48 = vpack.c.bf16 %v18292_v18, %v18278_v1  ;;  %v13323_v10 = vadd.f32 %v13322_v2, %v18370_v12  ;;  %v14151_v1 = vld [vmem:[#allocation6 + $0x8] sm:$0xff]  }
 0x5ae   : > { %20993 = vst [vmem:[#allocation67_spill] sm:$0xff] %v18452_v57  ;;  %v18461_v33 = vpack.c.bf16 %v7562_v4, %v7560_v32  ;;  %v13305_v61 = vadd.f32 %v13304_v60, %v18361_v58  ;;  %v18467_v49 = vpack.c.bf16 %v7672_v55, %v7670_v63  ;;  %v12146_v32 = vpop.f32.mrb[193].mxu0  ;;  %12347 = vmatpush3.bf16.msra.mxu0 %v14149_v5  ;;  %v7564_v8 = vrot.slane %v18376_v26, 1  ;;  %v14171_v63 = vld [vmem:[#allocation6 + $0x1d8] sm:$0xff]  }
 0x5af   : > { %v18474_v52 = vpop.f32.mrb[84].mxu1  ;;  %v12141_v58 = vadd.f32 %v12140_v41, %v18395_v59  ;;  %v12144_v36 = vadd.f32 %v12143_v0, %v12142_v46  ;;  %v12148_v38 = vpop.f32.mrb[194].mxu0  ;;  %12348 = vmatprep.subr.bf16.mxu0 %v14150_v40  ;;  %v7678_v5 = vrot.slane %v18399_v22, 2  ;;  %v7679_v54 = vrot.slane %v18403_v53, 2  ;;  %v14152_v41 = vld [vmem:[#allocation6 + $0x50] sm:$0xff]   ;;  %12485 = vmatpush3.bf16.msra.mxu1 %v14167_v21 }
 0x5b0   : > { %20995 = vst [vmem:[#allocation83_spill] sm:$0xff] %v18467_v49  ;;  %8108 = vmatprep.mubr.bf16.mxu1 %v18461_v33  ;;  %v18480_v3 = vpop.f32.mrb[85].mxu1  ;;  %v7272_v18 = vmul.f32 %v13305_v61, %v18261_v14  ;;  %13008 = vmatprep.mubr.bf16.mxu0 %v18467_v49  ;;  %v18488_v12 = vpack.c.bf16 %v18376_v26, %v18327_v39  ;;  %v12149_v24 = vpop.f32.mrb[195].mxu0  ;;  %v20996_v40 = vrot.slane %v18379_v31, 1  ;;  %v14170_v26 = vld [vmem:[#allocation6 + $0x190] sm:$0xff]  }
 0x5b1   : > { %v18490_v59 = vpop.f32.mrb[86].mxu1  ;;  %v7273_v0 = vmul.f32 %v13323_v10, %v18261_v14  ;;  %v7565_v46 = vsel %vm1985_vm3, %v7563_v51, %v7564_v8  ;;  %v13295_v4 = vadd.f32 %v18197_v47, %v12141_v58  ;;  %12486 = vmatprep.subr.bf16.mxu1 %v14168_v37  ;;  %10779 = vmatmul.mubr.msk.bf16.gmra.mrb[228].mxu1 %vm15964_vm7, %v18471_v48  ;;  %v20997_v37 = vrot.slane %v18406_v27, 2  ;;  %v14153_v10 = vld [vmem:[#allocation6 + $0x10] sm:$0xff]  }
 0x5b2   : > { %v7567_v16 = vsel %vm1985_vm3, %v7564_v8, %v20996_v40  ;;  %v18498_v60 = vpop.f32.mrb[87].mxu1  ;;  %v7311_v39 = vadd.f32 %v18266_v25, %v7272_v18  ;;  %v13313_v2 = vadd.f32 %v18200_v7, %v12144_v36  ;;  %v7680_v31 = vsel %vm3333_vm4, %v7678_v5, %v7679_v54  ;;  %12349 = vmatpush3.bf16.msra.mxu0 %v14151_v1  ;;  %v14154_v18 = vld [vmem:[#allocation6 + $0x58] sm:$0xff]  }
 0x5b3   : > { %v18504_v21 = vpack.c.bf16 %v7567_v16, %v7565_v46  ;;  %v7312_v55 = vadd.f32 %v18266_v25, %v7273_v0  ;;  %v13296_v47 = vadd.f32 %v13295_v4, %v18350_v20  ;;  %v7682_v61 = vsel %vm3333_vm4, %v7679_v54, %v20997_v37  ;;  %12350 = vmatprep.subr.bf16.mxu0 %v14152_v41  ;;  %v14172_v0 = vld [vmem:[#allocation6 + $0x198] sm:$0xff]  }
 0x5b4   : > { %v7568_v51 = vrot.slane %v18325_v34, 1  ;;  %v7343_v8 = vmax.f32 %v7311_v39, 0.0  ;;  %v13314_v7 = vadd.f32 %v13313_v2, %v18366_v9  ;;  %v18516_v58 = vpack.c.bf16 %v7682_v61, %v7680_v31  ;;  %12487 = vmatpush3.bf16.msra.mxu1 %v14170_v26 }
 0x5b5   : > { %8116 = vmatprep.mubr.bf16.mxu1 %v18504_v21  ;;  %v7569_v36 = vrot.slane %v18354_v17, 1  ;;  %v7344_v20 = vmax.f32 %v7312_v55, 0.0  ;;  %13009 = vmatmul.mubr.bf16.gmra.mrb[228].mxu0 %v18381_v45  ;;  %v7274_v5 = vmul.f32 %v13296_v47, %v18261_v14  ;;  %v12147_v54 = vadd.f32 %v12146_v32, %v12145_v42  ;;  %v18521_v1 = vpop.f32.mrb[196].mxu0  ;;  %v14173_v32 = vld [vmem:[#allocation6 + $0x1e0] sm:$0xff]  }
 0x5b6   : > { %20998 = vst [vmem:[#allocation89_spill] sm:$0xff] %v18516_v58  ;;  %v12150_v34 = vadd.f32 %v12149_v24, %v12148_v38  ;;  %v18523_v46 = vrot.slane %v7343_v8, 7  ;;  %v7275_v9 = vmul.f32 %v13314_v7, %v18261_v14  ;;  %13012 = vmatprep.mubr.bf16.mxu0 %v18516_v58  ;;  %v20999_v40 = vrot.slane %v18357_v15, 1  ;;  %v18531_v4 = vpop.f32.mrb[197].mxu0  ;;  %12488 = vmatprep.subr.bf16.mxu1 %v14171_v63  ;;  %v14155_v15 = vld [vmem:[#allocation6 + $0x18] sm:$0xff]  }
 0x5b7   : > { %v7570_v41 = vsel %vm1985_vm3, %v7568_v51, %v7569_v36  ;;  %v18533_v42 = vpop.f32.mrb[88].mxu1  ;;  %v7414_v38 = vrot.slane %v7344_v20, 7  ;;  %v7313_v24 = vadd.f32 %v18266_v25, %v7274_v5  ;;  %v13340_v39 = vadd.f32 %v18203_v35, %v12147_v54  ;;  %v18539_v2 = vpop.f32.mrb[198].mxu0  ;;  %12351 = vmatpush3.bf16.msra.mxu0 %v14153_v10  ;;  %v14156_v51 = vld [vmem:[#allocation6 + $0x60] sm:$0xff]   ;;  %v14175_v54 = vld [vmem:[#allocation6 + $0x1e8] sm:$0xff]  }
 0x5b8   : > { %v7572_v16 = vsel %vm1985_vm3, %v7569_v36, %v20999_v40  ;;  %v18541_v31 = vpop.f32.mrb[89].mxu1  ;;  %v18545_v55 = vsel %vm1422_vm2, 0.0, %v18523_v46  ;;  %v7314_v63 = vadd.f32 %v18266_v25, %v7275_v9  ;;  %v13358_v47 = vadd.f32 %v18206_v23, %v12150_v34  ;;  %v18553_v61 = vpop.f32.mrb[199].mxu0  ;;  %12352 = vmatprep.subr.bf16.mxu0 %v14154_v18  ;;  %12489 = vmatpush3.bf16.msra.mxu1 %v14172_v0 }
 0x5b9   : > { %v18536_v26 = vpack.c.bf16 %v7572_v16, %v7570_v41  ;;  %v18551_v37 = vpack.c.bf16 %v18354_v17, %v18317_v13  ;;  %v18555_v35 = vpop.f32.mrb[90].mxu1  ;;  %v18559_v10 = vsel %vm1422_vm2, %v18523_v46, %v7414_v38  ;;  %v18562_v8 = vsel %vm1422_vm2, %v7414_v38, 0.0  ;;  %v14174_v13 = vld [vmem:[#allocation6 + $0x1a0] sm:$0xff]   ;;  %10783 = vmatmul.mubr.msk.bf16.gmra.mrb[232].mxu1 %vm15964_vm7, %v18488_v12  ;;  %12490 = vmatprep.subr.bf16.mxu1 %v14173_v32  ;;  %v14158_v32 = vld [vmem:[#allocation6 + $0x68] sm:$0xff]  }
 0x5ba   : > { %v7345_v7 = vmax.f32 %v7313_v24, 0.0  ;;  %v13341_v23 = vadd.f32 %v13340_v39, %v18418_v30  ;;  %v18565_v36 = vpop.f32.mrb[91].mxu1  ;;  %v7691_v20 = vrot.slane %v18562_v8, 2  ;;  %v7346_v18 = vmax.f32 %v7314_v63, 0.0  ;;  %v14157_v41 = vld [vmem:[#allocation6 + $0x20] sm:$0xff]  }
 0x5bb   : > { %v13359_v5 = vadd.f32 %v13358_v47, %v18438_v19  ;;  %8124 = vmatprep.mubr.bf16.mxu1 %v18536_v26  ;;  %v7573_v0 = vrot.slane %v18399_v22, 1  ;;  %v7574_v9 = vrot.slane %v18403_v53, 1  ;;  %12353 = vmatpush3.bf16.msra.mxu0 %v14155_v15  ;;  %v7688_v38 = vrot.slane %v18545_v55, 2 }
 0x5bc   : > { %v18573_v34 = vrot.slane %v7345_v7, 7  ;;  %v7276_v30 = vmul.f32 %v13341_v23, %v18261_v14  ;;  %v7417_v40 = vrot.slane %v7346_v18, 7  ;;  %v7689_v19 = vrot.slane %v18559_v10, 2  ;;  %12354 = vmatprep.subr.bf16.mxu0 %v14156_v51  ;;  %12491 = vmatpush3.bf16.msra.mxu1 %v14174_v13  ;;  %v14176_v7 = vld [vmem:[#allocation6 + $0x1a8] sm:$0xff]  }
 0x5bd   : > { %v7277_v16 = vmul.f32 %v13359_v5, %v18261_v14  ;;  %13013 = vmatmul.mubr.bf16.gmra.mrb[232].mxu0 %v18452_v57  ;;  %v7575_v39 = vsel %vm1985_vm3, %v7573_v0, %v7574_v9  ;;  %v21000_v15 = vrot.slane %v18406_v27, 1  ;;  %v12157_v47 = vpop.f32.mrb[200].mxu0  ;;  %12492 = vmatprep.subr.bf16.mxu1 %v14175_v54  ;;  %v14177_v27 = vld [vmem:[#allocation6 + $0x1f0] sm:$0xff]   ;;  %v12153_v54 = vadd.f32 %v18531_v4, %v18521_v1 }
 0x5be   : > { %v18584_v24 = vsel %vm1422_vm2, 0.0, %v18573_v34  ;;  %v7315_v22 = vadd.f32 %v18266_v25, %v7276_v30  ;;  %v18595_v23 = vsel %vm1422_vm2, %v18573_v34, %v7417_v40  ;;  %v18598_v18 = vsel %vm1422_vm2, %v7417_v40, 0.0  ;;  %v12158_v30 = vpop.f32.mrb[201].mxu0 }
 0x5bf   : > { %v7577_v63 = vsel %vm1985_vm3, %v7574_v9, %v21000_v15  ;;  %v7693_v51 = vrot.slane %v18584_v24, 2  ;;  %v7316_v5 = vadd.f32 %v18266_v25, %v7277_v16  ;;  %v18601_v0 = vpop.f32.mrb[92].mxu1  ;;  %v7694_v9 = vrot.slane %v18595_v23, 2  ;;  %v12160_v57 = vpop.f32.mrb[202].mxu0  ;;  %12355 = vmatpush3.bf16.msra.mxu0 %v14157_v41 }
 0x5c0   : > { %v7696_v13 = vrot.slane %v18598_v18, 2  ;;  %v7347_v15 = vmax.f32 %v7315_v22, 0.0  ;;  %v18605_v17 = vpack.c.bf16 %v7577_v63, %v7575_v39  ;;  %v18607_v58 = vpop.f32.mrb[93].mxu1  ;;  %v7690_v45 = vsel %vm3333_vm4, %v7688_v38, %v7689_v19  ;;  %v12161_v49 = vpop.f32.mrb[203].mxu0  ;;  %12356 = vmatprep.subr.bf16.mxu0 %v14158_v32  ;;  %v14160_v38 = vld [vmem:[#allocation6 + $0x70] sm:$0xff]   ;;  %12493 = vmatpush3.bf16.msra.mxu1 %v14176_v7 }
 0x5c1   : > { %v7348_v40 = vmax.f32 %v7316_v5, 0.0  ;;  %v7692_v16 = vsel %vm3333_vm4, %v7689_v19, %v7691_v20  ;;  %v18613_v43 = vpop.f32.mrb[94].mxu1  ;;  %v7695_v22 = vsel %vm3333_vm4, %v7693_v51, %v7694_v9  ;;  %10787 = vmatmul.mubr.msk.bf16.gmra.mrb[236].mxu1 %vm15964_vm7, %v18551_v37  ;;  %v13331_v4 = vadd.f32 %v18209_v28, %v12153_v54  ;;  %12494 = vmatprep.subr.bf16.mxu1 %v14177_v27  ;;  %v14179_v32 = vld [vmem:[#allocation6 + $0x1b0] sm:$0xff]   ;;  %v21001_v27 = vld [vmem:[#allocation144_spill] sm:$0xff] }
 0x5c2   : > { %v7697_v39 = vsel %vm3333_vm4, %v7694_v9, %v7696_v13  ;;  %v18617_v63 = vrot.slane %v7347_v15, 7  ;;  %v18619_v41 = vpack.c.bf16 %v7692_v16, %v7690_v45  ;;  %v18621_v5 = vpop.f32.mrb[95].mxu1  ;;  %v12156_v19 = vadd.f32 %v18553_v61, %v18539_v2  ;;  %8132 = vmatprep.mubr.bf16.mxu1 %v18605_v17  ;;  %v14180_v13 = vld [vmem:[#allocation6 + $0x1f8] sm:$0xff]  }
 0x5c3   : > { %v18623_v20 = vpack.c.bf16 %v7697_v39, %v7695_v22  ;;  %v7420_v1 = vrot.slane %v7348_v40, 7  ;;  %v18635_v45 = vpack.c.bf16 %v18403_v53, %v18385_v62  ;;  %v7578_v7 = vrot.slane %v18412_v50, 1  ;;  %12357 = vmatpush3.bf16.msra.mxu0 %v14159_v56  ;;  %v14161_v40 = vld [vmem:[#allocation6 + $0x30] sm:$0xff]   ;;  %v21002_v53 = vld [vmem:[#allocation152_spill] sm:$0xff]  ;;  %v21006_v22 = vld [vmem:[#allocation105_spill] sm:$0xff] }
 0x5c4   : > { %13016 = vmatprep.mubr.bf16.mxu0 %v18619_v41  ;;  %v7579_v51 = vrot.slane %v18423_v29, 1  ;;  %v12159_v9 = vadd.f32 %v12158_v30, %v12157_v47  ;;  %v13332_v28 = vadd.f32 %v13331_v4, %v18408_v44  ;;  %v13349_v2 = vadd.f32 %v18212_v6, %v12156_v19  ;;  %v21004_v47 = vld [vmem:[#allocation121_spill] sm:$0xff]  ;;  %12358 = vmatprep.subr.bf16.mxu0 %v14160_v38 }
 0x5c5   : > { %v12162_v61 = vadd.f32 %v12161_v49, %v12160_v57  ;;  %v18643_v15 = vpack.c.bf16 %v18423_v29, %v21001_v27  ;;  %v21003_v16 = vrot.slane %v21002_v53, 1  ;;  %13017 = vmatmul.mubr.bf16.gmra.mrb[236].mxu0 %v18623_v20  ;;  %v7583_v44 = vrot.slane %v18545_v55, 1  ;;  %v12163_v6 = vpop.f32.mrb[204].mxu0  ;;  %v14163_v57 = vld [vmem:[#allocation6 + $0x78] sm:$0xff]   ;;  %v21005_v49 = vld [vmem:[#allocation153_spill] sm:$0xff]  ;;  %12495 = vmatpush3.bf16.msra.mxu1 %v14179_v32 }
 0x5c6   : > { %v7580_v62 = vsel %vm1985_vm3, %v7578_v7, %v7579_v51  ;;  %v13376_v30 = vadd.f32 %v21004_v47, %v12159_v9  ;;  %v7278_v29 = vmul.f32 %v13332_v28, %v18261_v14  ;;  %v13350_v56 = vadd.f32 %v13349_v2, %v21005_v49  ;;  %v12164_v4 = vpop.f32.mrb[205].mxu0  ;;  %12496 = vmatprep.subr.bf16.mxu1 %v14180_v13  ;;  %v14181_v9 = vld [vmem:[#allocation6 + $0x1b8] sm:$0xff]   ;;  %v18679_v47 = vld [vmem:[#allocation6 + $0x80] sm:$0xff]  }
 0x5c7   : > { %v7582_v50 = vsel %vm1985_vm3, %v7579_v51, %v21003_v16  ;;  %v13394_v39 = vadd.f32 %v21006_v22, %v12162_v61  ;;  %v7584_v7 = vrot.slane %v18559_v10, 1  ;;  %v18661_v55 = vsel %vm1422_vm2, %v18617_v63, %v7420_v1  ;;  %v12166_v51 = vpop.f32.mrb[206].mxu0  ;;  %12359 = vmatpush3.bf16.msra.mxu0 %v14161_v40  ;;  %v14165_v27 = vld [vmem:[#allocation6 + $0x38] sm:$0xff]  }
 0x5c8   : > { %v18654_v54 = vpack.c.bf16 %v7582_v50, %v7580_v62  ;;  %v13377_v19 = vadd.f32 %v13376_v30, %v18480_v3  ;;  %v18665_v38 = vsel %vm1422_vm2, 0.0, %v18617_v63  ;;  %v7317_v28 = vadd.f32 %v18266_v25, %v7278_v29  ;;  %v12167_v61 = vpop.f32.mrb[207].mxu0  ;;  %12360 = vmatprep.subr.bf16.mxu0 %v14163_v57 }
 0x5c9   : > { %v7279_v2 = vmul.f32 %v13350_v56, %v18261_v14  ;;  %v13395_v32 = vadd.f32 %v13394_v39, %v18498_v60  ;;  %v18671_v3 = vsel %vm1422_vm2, %v7420_v1, 0.0  ;;  %v7585_v53 = vsel %vm1985_vm3, %v7583_v44, %v7584_v7  ;;  %10791 = vmatmul.mubr.msk.bf16.gmra.mrb[240].mxu1 %vm15964_vm7, %v18635_v45 }
 0x5ca   : > { %v7280_v62 = vmul.f32 %v13377_v19, %v18261_v14  ;;  %v21007_v16 = vrot.slane %v18562_v8, 1  ;;  %v7698_v50 = vrot.slane %v18665_v38, 2  ;;  %v7349_v60 = vmax.f32 %v7317_v28, 0.0  ;;  %8140 = vmatprep.mubr.bf16.mxu1 %v18654_v54  ;;  %12497 = vmatpush3.bf16.msra.mxu1 %v14181_v9 }
 0x5cb   : > { %v7318_v1 = vadd.f32 %v18266_v25, %v7279_v2  ;;  %v7281_v40 = vmul.f32 %v13395_v32, %v18261_v14  ;;  %v7699_v44 = vrot.slane %v18661_v55, 2  ;;  %v7701_v57 = vrot.slane %v18671_v3, 2  ;;  %12361 = vmatpush3.bf16.msra.mxu0 %v14165_v27  ;;  %v21009_v27 = vld [vmem:[#allocation72_spill] sm:$0xff] }
 0x5cc   : > { %v7587_v13 = vsel %vm1985_vm3, %v7584_v7, %v21007_v16  ;;  %v7319_v8 = vadd.f32 %v18266_v25, %v7280_v62  ;;  %v18694_v29 = vpack.c.bf16 %v18661_v55, %v18617_v63  ;;  %v7422_v49 = vrot.slane %v7349_v60, 7  ;;  %13036 = vmatprep.subr.bf16.mxu0 %v18679_v47 }
 0x5cd   : > { %v18686_v30 = vpack.c.bf16 %v7587_v13, %v7585_v53  ;;  %v7350_v56 = vmax.f32 %v7318_v1, 0.0  ;;  %v7320_v22 = vadd.f32 %v18266_v25, %v7281_v40  ;;  %v12165_v39 = vadd.f32 %v12164_v4, %v12163_v6  ;;  %v12169_v32 = vpop.f32.mrb[208].mxu0 }
 0x5ce   : > { %v7351_v19 = vmax.f32 %v7319_v8, 0.0  ;;  %v7700_v7 = vsel %vm3333_vm4, %v7698_v50, %v7699_v44  ;;  %v7702_v28 = vsel %vm3333_vm4, %v7699_v44, %v7701_v57  ;;  %v12168_v2 = vadd.f32 %v12167_v61, %v12166_v51  ;;  %v12170_v16 = vpop.f32.mrb[209].mxu0  ;;  %v21010_v50 = vld [vmem:[#allocation115_spill] sm:$0xff] }
 0x5cf   : > { %v18701_v62 = vsel %vm1422_vm2, 0.0, %v7422_v49  ;;  %v7423_v63 = vrot.slane %v7350_v56, 7  ;;  %v7352_v9 = vmax.f32 %v7320_v22, 0.0  ;;  %v18703_v53 = vpack.c.bf16 %v7702_v28, %v7700_v7  ;;  %v12172_v51 = vpop.f32.mrb[210].mxu0 }
 0x5d0   : > { %v7703_v6 = vrot.slane %v18701_v62, 2  ;;  %v18706_v4 = vrot.slane %v7351_v19, 7  ;;  %v13367_v13 = vadd.f32 %v21009_v27, %v12165_v39  ;;  %v13385_v60 = vadd.f32 %v21010_v50, %v12168_v2  ;;  %v12173_v44 = vpop.f32.mrb[211].mxu0 }
 0x5d1   : > { %21008 = vst [vmem:[#allocation17_spill] sm:$0xff] %v18703_v53  ;;  %v18711_v61 = vsel %vm1422_vm2, %v7422_v49, %v7423_v63  ;;  %v18714_v1 = vsel %vm1422_vm2, %v7423_v63, 0.0  ;;  %v7426_v40 = vrot.slane %v7352_v9, 7  ;;  %13020 = vmatprep.mubr.bf16.mxu0 %v18703_v53  ;;  %v18719_v8 = vpack.c.bf16 %v18559_v10, %v18523_v46  ;;  %10795 = vmatmul.mubr.msk.bf16.gmra.mrb[244].mxu1 %vm15964_vm7, %v18643_v15 }
 0x5d2   : > { %v7704_v57 = vrot.slane %v18711_v61, 2  ;;  %v7706_v56 = vrot.slane %v18714_v1, 2  ;;  %v18724_v22 = vpack.c.bf16 %v18711_v61, %v7422_v49  ;;  %v13368_v39 = vadd.f32 %v13367_v13, %v18474_v52  ;;  %8148 = vmatprep.mubr.bf16.mxu1 %v18686_v30 }
 0x5d3   : > { %v13386_v19 = vadd.f32 %v13385_v60, %v18490_v59  ;;  %v7588_v7 = vrot.slane %v18584_v24, 1  ;;  %v7589_v46 = vrot.slane %v18595_v23, 1  ;;  %v7591_v10 = vrot.slane %v18598_v18, 1 }
 0x5d4   : > { %v7705_v28 = vsel %vm3333_vm4, %v7703_v6, %v7704_v57  ;;  %v7707_v2 = vsel %vm3333_vm4, %v7704_v57, %v7706_v56  ;;  %v7282_v52 = vmul.f32 %v13368_v39, %v18261_v14  ;;  %v12171_v49 = vadd.f32 %v12170_v16, %v12169_v32  ;;  %v21012_v6 = vld [vmem:[#allocation102_spill] sm:$0xff] }
 0x5d5   : > { %v18738_v63 = vpack.c.bf16 %v7707_v2, %v7705_v28  ;;  %v7283_v9 = vmul.f32 %v13386_v19, %v18261_v14  ;;  %v7590_v59 = vsel %vm1985_vm3, %v7588_v7, %v7589_v46  ;;  %v7592_v24 = vsel %vm1985_vm3, %v7589_v46, %v7591_v10  ;;  %v12175_v60 = vpop.f32.mrb[212].mxu0  ;;  %v21013_v46 = vld [vmem:[#allocation118_spill] sm:$0xff] }
 0x5d6   : > { %v7321_v27 = vadd.f32 %v18266_v25, %v7282_v52  ;;  %v18744_v18 = vpack.c.bf16 %v7592_v24, %v7590_v59  ;;  %v13412_v13 = vadd.f32 %v21012_v6, %v12171_v49  ;;  %v12174_v50 = vadd.f32 %v12173_v44, %v12172_v51  ;;  %v12176_v39 = vpop.f32.mrb[213].mxu0 }
 0x5d7   : > { %21011 = vst [vmem:[#allocation45_spill] sm:$0xff] %v18738_v63  ;;  %v7322_v57 = vadd.f32 %v18266_v25, %v7283_v9  ;;  %13021 = vmatmul.mubr.bf16.gmra.mrb[240].mxu0 %v18738_v63  ;;  %v18751_v32 = vpack.c.bf16 %v18595_v23, %v18573_v34  ;;  %v7593_v16 = vrot.slane %v18665_v38, 1  ;;  %v7594_v56 = vrot.slane %v18661_v55, 1  ;;  %v12178_v44 = vpop.f32.mrb[214].mxu0 }
 0x5d8   : > { %v7353_v19 = vmax.f32 %v7321_v27, 0.0  ;;  %v13413_v7 = vadd.f32 %v13412_v13, %v18541_v31  ;;  %v13430_v10 = vadd.f32 %v21013_v46, %v12174_v50  ;;  %v7596_v51 = vrot.slane %v18671_v3, 1  ;;  %v12179_v55 = vpop.f32.mrb[215].mxu0 }
 0x5d9   : > { %v7354_v28 = vmax.f32 %v7322_v57, 0.0  ;;  %v7595_v2 = vsel %vm1985_vm3, %v7593_v16, %v7594_v56  ;;  %v18761_v34 = vsel %vm1422_vm2, %v18706_v4, %v7426_v40  ;;  %v18765_v23 = vsel %vm1422_vm2, 0.0, %v18706_v4  ;;  %10799 = vmatmul.mubr.msk.bf16.gmra.mrb[248].mxu1 %vm15964_vm7, %v18719_v8 }
 0x5da   : > { %v7428_v38 = vrot.slane %v7353_v19, 7  ;;  %v7284_v31 = vmul.f32 %v13413_v7, %v18261_v14  ;;  %v13431_v52 = vadd.f32 %v13430_v10, %v18565_v36  ;;  %v7597_v3 = vsel %vm1985_vm3, %v7594_v56, %v7596_v51  ;;  %8156 = vmatprep.mubr.bf16.mxu1 %v18744_v18 }
 0x5db   : > { %v7429_v49 = vrot.slane %v7354_v28, 7  ;;  %v18773_v9 = vpack.c.bf16 %v7597_v3, %v7595_v2  ;;  %v18776_v59 = vsel %vm1422_vm2, %v7426_v40, 0.0  ;;  %v7708_v24 = vrot.slane %v18765_v23, 2 }
 0x5dc   : > { %v18780_v27 = vsel %vm1422_vm2, 0.0, %v7428_v38  ;;  %v7323_v36 = vadd.f32 %v18266_v25, %v7284_v31  ;;  %v7285_v6 = vmul.f32 %v13431_v52, %v18261_v14  ;;  %v7709_v13 = vrot.slane %v18761_v34, 2 }
 0x5dd   : > { %v7713_v50 = vrot.slane %v18780_v27, 2  ;;  %v18788_v57 = vsel %vm1422_vm2, %v7428_v38, %v7429_v49  ;;  %v18791_v40 = vsel %vm1422_vm2, %v7429_v49, 0.0  ;;  %v7711_v16 = vrot.slane %v18776_v59, 2  ;;  %v12181_v46 = vpop.f32.mrb[216].mxu0 }
 0x5de   : > { %v7714_v56 = vrot.slane %v18788_v57, 2  ;;  %v7716_v19 = vrot.slane %v18791_v40, 2  ;;  %v18797_v7 = vpack.c.bf16 %v18788_v57, %v7428_v38  ;;  %v7355_v14 = vmax.f32 %v7323_v36, 0.0  ;;  %v12182_v31 = vpop.f32.mrb[217].mxu0 }
 0x5df   : > { %v7324_v10 = vadd.f32 %v18266_v25, %v7285_v6  ;;  %v7710_v51 = vsel %vm3333_vm4, %v7708_v24, %v7709_v13  ;;  %v7712_v28 = vsel %vm3333_vm4, %v7709_v13, %v7711_v16  ;;  %v18804_v2 = vpack.c.bf16 %v18761_v34, %v18706_v4  ;;  %v12184_v36 = vpop.f32.mrb[218].mxu0 }
 0x5e0   : > { %v7715_v52 = vsel %vm3333_vm4, %v7713_v50, %v7714_v56  ;;  %v7717_v3 = vsel %vm3333_vm4, %v7714_v56, %v7716_v19  ;;  %v7431_v49 = vrot.slane %v7355_v14, 7  ;;  %v18808_v38 = vpack.c.bf16 %v7712_v28, %v7710_v51  ;;  %v12185_v53 = vpop.f32.mrb[219].mxu0  ;;  %v21014_v19 = vld [vmem:[#allocation141_spill] sm:$0xff] }
 0x5e1   : > { %v18810_v63 = vpack.c.bf16 %v7717_v3, %v7715_v52  ;;  %v7356_v25 = vmax.f32 %v7324_v10, 0.0  ;;  %v12177_v6 = vadd.f32 %v12176_v39, %v12175_v60  ;;  %v12180_v24 = vadd.f32 %v12179_v55, %v12178_v44  ;;  %10803 = vmatmul.mubr.msk.bf16.gmra.mrb[252].mxu1 %vm15964_vm7, %v18751_v32  ;;  %v21015_v10 = vld [vmem:[#allocation55_spill] sm:$0xff] }
 0x5e2   : > { %13024 = vmatprep.mubr.bf16.mxu0 %v18808_v38  ;;  %v7598_v4 = vrot.slane %v18701_v62, 1  ;;  %v7599_v13 = vrot.slane %v18711_v61, 1  ;;  %v7601_v50 = vrot.slane %v18714_v1, 1  ;;  %v12183_v16 = vadd.f32 %v12182_v31, %v12181_v46  ;;  %8164 = vmatprep.mubr.bf16.mxu1 %v18773_v9  ;;  %v21016_v1 = vld [vmem:[#allocation71_spill] sm:$0xff]  ;;  %v21017_v31 = vld [vmem:[#allocation125_spill] sm:$0xff] }
 0x5e3   : > { %v7432_v56 = vrot.slane %v7356_v25, 7  ;;  %v13403_v14 = vadd.f32 %v21014_v19, %v12177_v6  ;;  %v13421_v60 = vadd.f32 %v21015_v10, %v12180_v24  ;;  %13025 = vmatmul.mubr.bf16.gmra.mrb[244].mxu0 %v18810_v63  ;;  %v12186_v39 = vadd.f32 %v12185_v53, %v12184_v36  ;;  %v18856_v19 = vld [vmem:[%s19661_s8] ss:$0 sm:$0xff] }
 0x5e4   : > { %v7600_v62 = vsel %vm1985_vm3, %v7598_v4, %v7599_v13  ;;  %v7602_v61 = vsel %vm1985_vm3, %v7599_v13, %v7601_v50  ;;  %v13448_v44 = vadd.f32 %v21016_v1, %v12183_v16  ;;  %v7603_v55 = vrot.slane %v18765_v23, 1 }
 0x5e5   : > { %v13404_v46 = vadd.f32 %v13403_v14, %v18533_v42  ;;  %v13422_v51 = vadd.f32 %v13421_v60, %v18555_v35  ;;  %v18829_v28 = vpack.c.bf16 %v7602_v61, %v7600_v62  ;;  %v13466_v52 = vadd.f32 %v21017_v31, %v12186_v39  ;;  %v12187_v25 = vpop.f32.mrb[220].mxu0  ;;  %v18841_v42 = vld [vmem:[%s19660_s7] ss:$0 sm:$0xff] }
 0x5e6   : > { %v13449_v53 = vadd.f32 %v13448_v44, %v18607_v58  ;;  %v7604_v3 = vrot.slane %v18761_v34, 1  ;;  %v7606_v36 = vrot.slane %v18776_v59, 1  ;;  %v18836_v6 = vsel %vm1422_vm2, %v7431_v49, %v7432_v56  ;;  %v12188_v34 = vpop.f32.mrb[221].mxu0 }
 0x5e7   : > { %v7286_v35 = vmul.f32 %v18841_v42, %v13404_v46  ;;  %v7287_v23 = vmul.f32 %v18841_v42, %v13422_v51  ;;  %v13467_v24 = vadd.f32 %v13466_v52, %v18621_v5  ;;  %v7503_v58 = vsel %vm1422_vm2, 0.0, %v7431_v49  ;;  %v12190_v16 = vpop.f32.mrb[222].mxu0 }
 0x5e8   : > { %v7288_v59 = vmul.f32 %v18841_v42, %v13449_v53  ;;  %v7605_v4 = vsel %vm1985_vm3, %v7603_v55, %v7604_v3  ;;  %v7607_v13 = vsel %vm1985_vm3, %v7604_v3, %v7606_v36  ;;  %v18851_v50 = vsel %vm1422_vm2, %v7432_v56, 0.0  ;;  %v12191_v39 = vpop.f32.mrb[223].mxu0 }
 0x5e9   : > { %v7325_v5 = vadd.f32 %v18856_v19, %v7286_v35  ;;  %v7326_v14 = vadd.f32 %v18856_v19, %v7287_v23  ;;  %v7289_v10 = vmul.f32 %v18841_v42, %v13467_v24  ;;  %v18861_v60 = vpack.c.bf16 %v7607_v13, %v7605_v4  ;;  %10807 = vmatmul.mubr.msk.bf16.gmra.mrb[0].mxu1 %vm15964_vm7, %v18694_v29  ;;  %v21018_v4 = vld [vmem:[#allocation132_spill] sm:$0xff] }
 0x5ea   : > { %v7327_v62 = vadd.f32 %v18856_v19, %v7288_v59  ;;  %v7718_v61 = vrot.slane %v7503_v58, 2  ;;  %v7719_v56 = vrot.slane %v18836_v6, 2  ;;  %v7721_v1 = vrot.slane %v18851_v50, 2  ;;  %8172 = vmatprep.mubr.bf16.mxu1 %v18829_v28 }
 0x5eb   : > { %v7357_v44 = vmax.f32 %v7325_v5, 0.0  ;;  %v7358_v55 = vmax.f32 %v7326_v14, 0.0  ;;  %v7328_v46 = vadd.f32 %v18856_v19, %v7289_v10  ;;  %v18871_v51 = vpack.c.bf16 %v18836_v6, %v7431_v49 }
 0x5ec   : > { %v7359_v31 = vmax.f32 %v7327_v62, 0.0  ;;  %v7720_v52 = vsel %vm3333_vm4, %v7718_v61, %v7719_v56  ;;  %v7722_v53 = vsel %vm3333_vm4, %v7719_v56, %v7721_v1  ;;  %v12189_v3 = vadd.f32 %v12188_v34, %v12187_v25 }
 0x5ed   : > { %v7434_v36 = vrot.slane %v7357_v44, 7  ;;  %v7435_v35 = vrot.slane %v7358_v55, 7  ;;  %v7360_v23 = vmax.f32 %v7328_v46, 0.0  ;;  %v18876_v24 = vpack.c.bf16 %v7722_v53, %v7720_v52  ;;  %v21019_v55 = vld [vmem:[#allocation117_spill] sm:$0xff] }
 0x5ee   : > { %v7437_v59 = vrot.slane %v7359_v31, 7  ;;  %v13439_v13 = vadd.f32 %v21018_v4, %v12189_v3  ;;  %v12192_v5 = vadd.f32 %v12191_v39, %v12190_v16  ;;  %v7608_v49 = vrot.slane %v18780_v27, 1 }
 0x5ef   : > { %v7504_v14 = vsel %vm1422_vm2, 0.0, %v7434_v36  ;;  %v7436_v10 = vsel %vm1422_vm2, %v7434_v36, %v7435_v35  ;;  %v7520_v62 = vsel %vm1422_vm2, %v7435_v35, 0.0  ;;  %v7438_v61 = vrot.slane %v7360_v23, 7  ;;  %13028 = vmatprep.mubr.bf16.mxu0 %v18876_v24 }
 0x5f0   : > { %v7723_v25 = vrot.slane %v7504_v14, 2  ;;  %v7724_v34 = vrot.slane %v7436_v10, 2  ;;  %v7726_v56 = vrot.slane %v7520_v62, 2  ;;  %v18884_v1 = vpack.c.bf16 %v7436_v10, %v7434_v36 }
 0x5f1   : > { %v13440_v44 = vadd.f32 %v13439_v13, %v18601_v0  ;;  %v13457_v16 = vadd.f32 %v21019_v55, %v12192_v5  ;;  %v7609_v27 = vrot.slane %v18788_v57, 1  ;;  %v7611_v39 = vrot.slane %v18791_v40, 1  ;;  %10811 = vmatmul.mubr.msk.bf16.gmra.mrb[4].mxu1 %vm15964_vm7, %v18724_v22 }
 0x5f2   : > { %v7725_v46 = vsel %vm3333_vm4, %v7723_v25, %v7724_v34  ;;  %v7727_v31 = vsel %vm3333_vm4, %v7724_v34, %v7726_v56  ;;  %v7613_v52 = vrot.slane %v7503_v58, 1  ;;  %v7614_v53 = vrot.slane %v18836_v6, 1  ;;  %8180 = vmatprep.mubr.bf16.mxu1 %v18861_v60 }
 0x5f3   : > { %v18893_v3 = vpack.c.bf16 %v7727_v31, %v7725_v46  ;;  %v7290_v0 = vmul.f32 %v18841_v42, %v13440_v44  ;;  %v13458_v36 = vadd.f32 %v13457_v16, %v18613_v43  ;;  %v7610_v57 = vsel %vm1985_vm3, %v7608_v49, %v7609_v27 }
 0x5f4   : > { %v7612_v40 = vsel %vm1985_vm3, %v7609_v27, %v7611_v39  ;;  %v7615_v58 = vsel %vm1985_vm3, %v7613_v52, %v7614_v53  ;;  %v7616_v6 = vrot.slane %v18851_v50, 1  ;;  %v7439_v35 = vsel %vm1422_vm2, %v7437_v59, %v7438_v61 }
 0x5f5   : > { %v7329_v23 = vadd.f32 %v18856_v19, %v7290_v0  ;;  %v7291_v4 = vmul.f32 %v18841_v42, %v13458_v36  ;;  %v18908_v13 = vpack.c.bf16 %v7612_v40, %v7610_v57  ;;  %13029 = vmatmul.mubr.bf16.gmra.mrb[248].mxu0 %v18893_v3  ;;  %v7505_v43 = vsel %vm1422_vm2, 0.0, %v7437_v59 }
 0x5f6   : > { %v7617_v5 = vsel %vm1985_vm3, %v7614_v53, %v7616_v6  ;;  %v7521_v49 = vsel %vm1422_vm2, %v7438_v61, 0.0  ;;  %v7728_v25 = vrot.slane %v7505_v43, 2  ;;  %v7729_v34 = vrot.slane %v7439_v35, 2 }
 0x5f7   : > { %v7361_v56 = vmax.f32 %v7329_v23, 0.0  ;;  %v7330_v50 = vadd.f32 %v18856_v19, %v7291_v4  ;;  %v18915_v44 = vpack.c.bf16 %v7617_v5, %v7615_v58  ;;  %v7731_v55 = vrot.slane %v7521_v49, 2 }
 0x5f8   : > { %v7730_v42 = vsel %vm3333_vm4, %v7728_v25, %v7729_v34  ;;  %v18918_v16 = vpack.c.bf16 %v7439_v35, %v7437_v59  ;;  %v7618_v27 = vrot.slane %v7504_v14, 1  ;;  %v7619_v39 = vrot.slane %v7436_v10, 1 }
 0x5f9   : > { %v7440_v46 = vrot.slane %v7361_v56, 7  ;;  %v7362_v31 = vmax.f32 %v7330_v50, 0.0  ;;  %v7732_v52 = vsel %vm3333_vm4, %v7729_v34, %v7731_v55  ;;  %v7621_v53 = vrot.slane %v7520_v62, 1  ;;  %10815 = vmatmul.mubr.msk.bf16.gmra.mrb[8].mxu1 %vm15964_vm7, %v18804_v2 }
 0x5fa   : > { %v18921_v61 = vpack.c.bf16 %v7732_v52, %v7730_v42  ;;  %v7620_v0 = vsel %vm1985_vm3, %v7618_v27, %v7619_v39  ;;  %v7623_v36 = vrot.slane %v7505_v43, 1  ;;  %v7624_v19 = vrot.slane %v7439_v35, 1  ;;  %8188 = vmatprep.mubr.bf16.mxu1 %v18908_v13  ;;  %v14178_v52 = vld [vmem:[#allocation6 + $0x88] sm:$0xff]  }
 0x5fb   : > { %v7506_v57 = vsel %vm1422_vm2, 0.0, %v7440_v46  ;;  %v7441_v40 = vrot.slane %v7362_v31, 7  ;;  %v7622_v59 = vsel %vm1985_vm3, %v7619_v39, %v7621_v53  ;;  %v7626_v14 = vrot.slane %v7521_v49, 1  ;;  %v21021_v53 = vld [vmem:[#allocation177_spill] sm:$0xff] }
 0x5fc   : > { %13032 = vmatprep.mubr.bf16.mxu0 %v18921_v61  ;;  %v18931_v10 = vpack.c.bf16 %v7622_v59, %v7620_v0  ;;  %v7625_v62 = vsel %vm1985_vm3, %v7623_v36, %v7624_v19  ;;  %v7865_v58 = vrot.slane %v7506_v57, 2  ;;  %v7858_v25 = vrot.slane %v7506_v57, 1  ;;  %v21022_v0 = vld [vmem:[#allocation136_spill] sm:$0xff]  ;;  %v14182_v36 = vld [vmem:[#allocation6 + $0x90] sm:$0xff]  }
 0x5fd   : > { %v7442_v6 = vsel %vm1422_vm2, %v7440_v46, %v7441_v40  ;;  %v7522_v35 = vsel %vm1422_vm2, %v7441_v40, 0.0  ;;  %v7627_v23 = vsel %vm1985_vm3, %v7624_v19, %v7626_v14  ;;  %v14183_v19 = vld [vmem:[#allocation6 + $0x98] sm:$0xff]   ;;  %v21023_v57 = vld [vmem:[#allocation59_spill] sm:$0xff]  ;;  %v14185_v40 = vld [vmem:[#allocation6 + $0xa8] sm:$0xff]  }
 0x5fe   : > { %v7866_v4 = vrot.slane %v7442_v6, 2  ;;  %v7868_v43 = vrot.slane %v7522_v35, 2  ;;  %v18937_v5 = vpack.c.bf16 %v7442_v6, %v7440_v46  ;;  %v18939_v49 = vpack.c.bf16 %v7627_v23, %v7625_v62  ;;  %v21020_v46 = vld [vmem:[#allocation12_spill] sm:$0xff]  ;;  %v14186_v59 = vld [vmem:[#allocation6 + $0xb0] sm:$0xff]   ;;  %v18988_v62 = vld [vmem:[#allocation6 + $0x200] sm:$0xff]  }
 0x5ff   : > { %v7859_v34 = vrot.slane %v7442_v6, 1  ;;  %v7861_v56 = vrot.slane %v7522_v35, 1  ;;  %v14187_v14 = vld [vmem:[#allocation6 + $0xb8] sm:$0xff]   ;;  %v14192_v6 = vld [vmem:[#allocation6 + $0x220] sm:$0xff]  }
 0x600   : > { %v7867_v50 = vsel %vm3333_vm4, %v7865_v58, %v7866_v4  ;;  %v7869_v55 = vsel %vm3333_vm4, %v7866_v4, %v7868_v43 }
 0x601   : > { %v18943_v42 = vpack.c.bf16 %v7869_v55, %v7867_v50  ;;  %v7860_v27 = vsel %vm1985_vm3, %v7858_v25, %v7859_v34  ;;  %v7862_v39 = vsel %vm1985_vm3, %v7859_v34, %v7861_v56  ;;  %10819 = vmatmul.mubr.msk.bf16.gmra.mrb[12].mxu1 %vm15964_vm7, %v18797_v7  ;;  %v21029_v25 = vld [vmem:[#allocation89_spill] sm:$0xff]  ;;  %v21030_v34 = vld [vmem:[#allocation67_spill] sm:$0xff] }
 0x602   : > { %v18947_v31 = vpack.c.bf16 %v7862_v39, %v7860_v27  ;;  %8196 = vmatprep.mubr.bf16.mxu1 %v18915_v44  ;;  %v14194_v50 = vld [vmem:[#allocation6 + $0x230] sm:$0xff]  }
 0x603   : > { %13033 = vmatmul.mubr.bf16.gmra.mrb[252].mxu0 %v18943_v42 }
 0x604   : > { %8566 = vmatprep.mubr.bf16.mxu0 %v21020_v46 }
 0x609   : > { %10823 = vmatmul.mubr.msk.bf16.gmra.mrb[16].mxu1 %vm15964_vm7, %v18871_v51 }
 0x60a   : > { %8204 = vmatprep.mubr.bf16.mxu1 %v18931_v10 }
 0x60b   : > { %10863 = vmatmul.mubr.msk.bf16.vlgmr.msra.gmra.mrb[0].mxu0 %vm15964_vm7, %v21021_v53 }
 0x60c   : > { %13037 = vmatpush3.bf16.msra.mxu0 %v18679_v47  ;;  %8574 = vmatprep.mubr.bf16.mxu0 %v21022_v0  ;;  %v14184_v47 = vld [vmem:[#allocation6 + $0xa0] sm:$0xff]  }
 0x60d   : > { %13038 = vmatprep.subr.bf16.mxu0 %v14178_v52 }
 0x610   : > { %13039 = vmatpush3.bf16.msra.mxu0 %v14178_v52 }
 0x611   : > { %13040 = vmatprep.subr.bf16.mxu0 %v14182_v36  ;;  %10827 = vmatmul.mubr.msk.bf16.gmra.mrb[20].mxu1 %vm15964_vm7, %v18884_v1 }
 0x612   : > { %8212 = vmatprep.mubr.bf16.mxu1 %v18939_v49 }
 0x613   : > { %10867 = vmatmul.mubr.msk.bf16.gmra.mrb[4].mxu0 %vm15964_vm7, %v21023_v57 }
 0x614   : > { %8582 = vmatprep.mubr.bf16.mxu0 %v18461_v33  ;;  %13041 = vmatpush3.bf16.msra.mxu0 %v14182_v36 }
 0x615   : > { %13042 = vmatprep.subr.bf16.mxu0 %v14183_v19 }
 0x618   : > { %13043 = vmatpush3.bf16.msra.mxu0 %v14183_v19 }
 0x619   : > { %13044 = vmatprep.subr.bf16.mxu0 %v14184_v47  ;;  %10831 = vmatmul.mubr.msk.bf16.gmra.mrb[24].mxu1 %vm15964_vm7, %v18918_v16 }
 0x61a   : > { %8220 = vmatprep.mubr.bf16.mxu1 %v18947_v31 }
 0x61b   : > { %10871 = vmatmul.mubr.msk.bf16.gmra.mrb[8].mxu0 %vm15964_vm7, %v18471_v48 }
 0x61c   : > { %8590 = vmatprep.mubr.bf16.mxu0 %v18504_v21  ;;  %13045 = vmatpush3.bf16.msra.mxu0 %v14184_v47 }
 0x61d   : > { %13046 = vmatprep.subr.bf16.mxu0 %v14185_v40 }
 0x620   : > { %13047 = vmatpush3.bf16.msra.mxu0 %v14185_v40  ;;  %v21031_v40 = vld [vmem:[#allocation17_spill] sm:$0xff] }
 0x621   : > { %13048 = vmatprep.subr.bf16.mxu0 %v14186_v59  ;;  %10835 = vmatmul.mubr.msk.bf16.gmra.mrb[28].mxu1 %vm15964_vm7, %v18937_v5 }
 0x622   : > { %9081 = vmatprep.mubr.bf16.mxu1 %v18461_v33 }
 0x623   : > { %10875 = vmatmul.mubr.msk.bf16.gmra.mrb[12].mxu0 %vm15964_vm7, %v18488_v12 }
 0x624   : > { %8598 = vmatprep.mubr.bf16.mxu0 %v18536_v26  ;;  %13049 = vmatpush3.bf16.msra.mxu0 %v14186_v59  ;;  %v21032_v59 = vld [vmem:[#allocation45_spill] sm:$0xff] }
 0x625   : > { %13050 = vmatprep.subr.bf16.mxu0 %v14187_v14 }
 0x628   : > { %13051 = vmatpush3.bf16.msra.mxu0 %v14187_v14 }
 0x629   : > { %13084 = vmatprep.subr.bf16.mxu0 %v18988_v62  ;;  %10951 = vmatmul.mubr.msk.bf16.vlgmr.msra.gmra.mrb[32].mxu1 %vm15964_vm7, %v18471_v48 }
 0x62a   : > { %9089 = vmatprep.mubr.bf16.mxu1 %v18504_v21 }
 0x62b   : > { %10879 = vmatmul.mubr.msk.bf16.gmra.mrb[16].mxu0 %vm15964_vm7, %v18551_v37 }
 0x62c   : > { %8606 = vmatprep.mubr.bf16.mxu0 %v18605_v17 }
 0x631   : > { %10955 = vmatmul.mubr.msk.bf16.gmra.mrb[36].mxu1 %vm15964_vm7, %v18488_v12 }
 0x632   : > { %9097 = vmatprep.mubr.bf16.mxu1 %v18536_v26 }
 0x633   : > { %10883 = vmatmul.mubr.msk.bf16.gmra.mrb[20].mxu0 %vm15964_vm7, %v18635_v45 }
 0x634   : > { %8614 = vmatprep.mubr.bf16.mxu0 %v18654_v54 }
 0x639   : > { %10959 = vmatmul.mubr.msk.bf16.gmra.mrb[40].mxu1 %vm15964_vm7, %v18551_v37 }
 0x63a   : > { %9105 = vmatprep.mubr.bf16.mxu1 %v18605_v17  ;;  %v21024_v17 = vld [vmem:[#allocation21_spill] sm:$0xff] }
 0x63b   : > { %10887 = vmatmul.mubr.msk.bf16.gmra.mrb[24].mxu0 %vm15964_vm7, %v18643_v15 }
 0x63c   : > { %8622 = vmatprep.mubr.bf16.mxu0 %v18686_v30 }
 0x641   : > { %10963 = vmatmul.mubr.msk.bf16.gmra.mrb[44].mxu1 %vm15964_vm7, %v18635_v45 }
 0x642   : > { %9113 = vmatprep.mubr.bf16.mxu1 %v18654_v54 }
 0x643   : > { %10891 = vmatmul.mubr.msk.bf16.gmra.mrb[28].mxu0 %vm15964_vm7, %v18719_v8 }
 0x644   : > { %8630 = vmatprep.mubr.bf16.mxu0 %v18744_v18 }
 0x649   : > { %10967 = vmatmul.mubr.msk.bf16.gmra.mrb[48].mxu1 %vm15964_vm7, %v18643_v15 }
 0x64a   : > { %9121 = vmatprep.mubr.bf16.mxu1 %v18686_v30 }
 0x64b   : > { %10895 = vmatmul.mubr.msk.bf16.gmra.mrb[32].mxu0 %vm15964_vm7, %v18751_v32 }
 0x64c   : > { %8638 = vmatprep.mubr.bf16.mxu0 %v18773_v9 }
 0x651   : > { %10971 = vmatmul.mubr.msk.bf16.gmra.mrb[52].mxu1 %vm15964_vm7, %v18719_v8  ;;  %v14189_v8 = vld [vmem:[#allocation6 + $0x208] sm:$0xff]  }
 0x652   : > { %9129 = vmatprep.mubr.bf16.mxu1 %v18744_v18  ;;  %v21025_v18 = vld [vmem:[#allocation57_spill] sm:$0xff] }
 0x653   : > { %10899 = vmatmul.mubr.msk.bf16.gmra.mrb[36].mxu0 %vm15964_vm7, %v18694_v29 }
 0x654   : > { %8646 = vmatprep.mubr.bf16.mxu0 %v18829_v28 }
 0x659   : > { %10975 = vmatmul.mubr.msk.bf16.gmra.mrb[56].mxu1 %vm15964_vm7, %v18751_v32  ;;  %v21026_v32 = vld [vmem:[#allocation145_spill] sm:$0xff] }
 0x65a   : > { %9137 = vmatprep.mubr.bf16.mxu1 %v18773_v9  ;;  %v14190_v9 = vld [vmem:[#allocation6 + $0x210] sm:$0xff]  }
 0x65b   : > { %10903 = vmatmul.mubr.msk.bf16.gmra.mrb[40].mxu0 %vm15964_vm7, %v18724_v22 }
 0x65c   : > { %8654 = vmatprep.mubr.bf16.mxu0 %v18861_v60 }
 0x661   : > { %10979 = vmatmul.mubr.msk.bf16.gmra.mrb[60].mxu1 %vm15964_vm7, %v18694_v29 }
 0x662   : > { %9145 = vmatprep.mubr.bf16.mxu1 %v18829_v28 }
 0x663   : > { %10907 = vmatmul.mubr.msk.bf16.gmra.mrb[44].mxu0 %vm15964_vm7, %v18804_v2 }
 0x664   : > { %8662 = vmatprep.mubr.bf16.mxu0 %v18908_v13 }
 0x669   : > { %10983 = vmatmul.mubr.msk.bf16.gmra.mrb[96].mxu1 %vm15964_vm7, %v18724_v22 }
 0x66a   : > { %9153 = vmatprep.mubr.bf16.mxu1 %v18861_v60 }
 0x66b   : > { %10911 = vmatmul.mubr.msk.bf16.gmra.mrb[48].mxu0 %vm15964_vm7, %v18797_v7 }
 0x66c   : > { %8670 = vmatprep.mubr.bf16.mxu0 %v18915_v44 }
 0x671   : > { %10987 = vmatmul.mubr.msk.bf16.gmra.mrb[100].mxu1 %vm15964_vm7, %v18804_v2 }
 0x672   : > { %9161 = vmatprep.mubr.bf16.mxu1 %v18908_v13 }
 0x673   : > { %10915 = vmatmul.mubr.msk.bf16.gmra.mrb[52].mxu0 %vm15964_vm7, %v18871_v51 }
 0x674   : > { %8678 = vmatprep.mubr.bf16.mxu0 %v18931_v10 }
 0x679   : > { %10991 = vmatmul.mubr.msk.bf16.gmra.mrb[104].mxu1 %vm15964_vm7, %v18797_v7 }
 0x67a   : > { %9169 = vmatprep.mubr.bf16.mxu1 %v18915_v44  ;;  %v21027_v44 = vld [vmem:[#allocation83_spill] sm:$0xff] }
 0x67b   : > { %10919 = vmatmul.mubr.msk.bf16.gmra.mrb[56].mxu0 %vm15964_vm7, %v18884_v1 }
 0x67c   : > { %8686 = vmatprep.mubr.bf16.mxu0 %v18939_v49  ;;  %v12226_v33 = vpop.f32.mrb[224].mxu1 }
 0x67d   : > { %v12227_v48 = vpop.f32.mrb[225].mxu1 }
 0x67e   : > { %v19079_v12 = vadd.f32 %v12227_v48, %v12226_v33  ;;  %v12229_v21 = vpop.f32.mrb[226].mxu1 }
 0x67f   : > { %v12230_v26 = vpop.f32.mrb[227].mxu1 }
 0x680   : > { %v19081_v37 = vadd.f32 %v12230_v26, %v12229_v21  ;;  %v14196_v26 = vld [vmem:[%s19665_s12] sm:$0xff]  }
 0x681   : > { %10995 = vmatmul.mubr.msk.bf16.gmra.mrb[108].mxu1 %vm15964_vm7, %v18871_v51  ;;  %13132 = vmatprep.subr.bf16.mxu1 %v14196_v26 }
 0x682   : > { %9177 = vmatprep.mubr.bf16.mxu1 %v18931_v10  ;;  %v21028_v10 = vld [vmem:[#allocation143_spill] sm:$0xff]  ;;  %13133 = vmatpush3.bf16.msra.mxu1 %v14196_v26 }
 0x683   : > { %10923 = vmatmul.mubr.msk.bf16.gmra.mrb[60].mxu0 %vm15964_vm7, %v18918_v16 }
 0x684   : > { %13052 = vmatprep.mubr.bf16.mxu0 %v21024_v17  ;;  %v12232_v45 = vpop.f32.mrb[228].mxu1 }
 0x685   : > { %v12233_v15 = vpop.f32.mrb[229].mxu1 }
 0x686   : > { %v19091_v54 = vadd.f32 %v12233_v15, %v12232_v45  ;;  %v12235_v30 = vpop.f32.mrb[230].mxu1 }
 0x687   : > { %v12236_v29 = vpop.f32.mrb[231].mxu1 }
 0x688   : > { %v19093_v22 = vadd.f32 %v12236_v29, %v12235_v30 }
 0x689   : > { %10999 = vmatmul.mubr.msk.bf16.gmra.mrb[112].mxu1 %vm15964_vm7, %v18884_v1  ;;  %v14191_v1 = vld [vmem:[#allocation6 + $0x218] sm:$0xff]  }
 0x68a   : > { %9185 = vmatprep.mubr.bf16.mxu1 %v18939_v49 }
 0x68b   : > { %13053 = vmatmul.mubr.bf16.vlgmr.msra.gmra.mrb[224].mxu0 %v21025_v18 }
 0x68c   : > { %13085 = vmatpush3.bf16.msra.mxu0 %v18988_v62  ;;  %13056 = vmatprep.mubr.bf16.mxu0 %v21026_v32  ;;  %v12238_v7 = vpop.f32.mrb[232].mxu1 }
 0x68d   : > { %13086 = vmatprep.subr.bf16.mxu0 %v14189_v8  ;;  %v12239_v2 = vpop.f32.mrb[233].mxu1 }
 0x68e   : > { %v19102_v28 = vadd.f32 %v12239_v2, %v12238_v7  ;;  %v12241_v60 = vpop.f32.mrb[234].mxu1 }
 0x68f   : > { %v12242_v51 = vpop.f32.mrb[235].mxu1 }
 0x690   : > { %13087 = vmatpush3.bf16.msra.mxu0 %v14189_v8  ;;  %v19104_v13 = vadd.f32 %v12242_v51, %v12241_v60 }
 0x691   : > { %13088 = vmatprep.subr.bf16.mxu0 %v14190_v9  ;;  %11003 = vmatmul.mubr.msk.bf16.gmra.mrb[116].mxu1 %vm15964_vm7, %v18918_v16  ;;  %v14193_v16 = vld [vmem:[#allocation6 + $0x228] sm:$0xff]  }
 0x692   : > { %9193 = vmatprep.mubr.bf16.mxu1 %v18947_v31 }
 0x693   : > { %13057 = vmatmul.mubr.bf16.gmra.mrb[228].mxu0 %v21027_v44 }
 0x694   : > { %13060 = vmatprep.mubr.bf16.mxu0 %v21028_v10  ;;  %13089 = vmatpush3.bf16.msra.mxu0 %v14190_v9  ;;  %v12244_v58 = vpop.f32.mrb[236].mxu1 }
 0x695   : > { %13090 = vmatprep.subr.bf16.mxu0 %v14191_v1  ;;  %v12245_v35 = vpop.f32.mrb[237].mxu1 }
 0x696   : > { %v19112_v23 = vadd.f32 %v12245_v35, %v12244_v58  ;;  %v12247_v4 = vpop.f32.mrb[238].mxu1  ;;  %v14197_v58 = vld [vmem:[%s19665_s12 + $0x8] sm:$0xff]  }
 0x697   : > { %v12248_v43 = vpop.f32.mrb[239].mxu1  ;;  %13134 = vmatprep.subr.bf16.mxu1 %v14197_v58 }
 0x698   : > { %13091 = vmatpush3.bf16.msra.mxu0 %v14191_v1  ;;  %v19114_v49 = vadd.f32 %v12248_v43, %v12247_v4  ;;  %13135 = vmatpush3.bf16.msra.mxu1 %v14197_v58 }
 0x699   : > { %13092 = vmatprep.subr.bf16.mxu0 %v14192_v6  ;;  %11007 = vmatmul.mubr.msk.bf16.gmra.mrb[120].mxu1 %vm15964_vm7, %v18937_v5  ;;  %v14195_v5 = vld [vmem:[#allocation6 + $0x238] sm:$0xff]  }
 0x69a   : > { %9201 = vmatprep.mubr.bf16.mxu1 %v21020_v46 }
 0x69b   : > { %13061 = vmatmul.mubr.bf16.gmra.mrb[232].mxu0 %v21029_v25 }
 0x69c   : > { %13064 = vmatprep.mubr.bf16.mxu0 %v21030_v34  ;;  %13093 = vmatpush3.bf16.msra.mxu0 %v14192_v6  ;;  %v12250_v56 = vpop.f32.mrb[240].mxu1 }
 0x69d   : > { %13094 = vmatprep.subr.bf16.mxu0 %v14193_v16  ;;  %v12251_v55 = vpop.f32.mrb[241].mxu1 }
 0x69e   : > { %v19122_v27 = vadd.f32 %v12251_v55, %v12250_v56  ;;  %v12253_v39 = vpop.f32.mrb[242].mxu1 }
 0x69f   : > { %v12254_v31 = vpop.f32.mrb[243].mxu1 }
 0x6a0   : > { %13095 = vmatpush3.bf16.msra.mxu0 %v14193_v16  ;;  %v19124_v52 = vadd.f32 %v12254_v31, %v12253_v39 }
 0x6a1   : > { %13096 = vmatprep.subr.bf16.mxu0 %v14194_v50  ;;  %11011 = vmatmul.mubr.msk.bf16.gmra.mrb[124].mxu1 %vm15964_vm7, %v21021_v53 }
 0x6a3   : > { %13065 = vmatmul.mubr.bf16.gmra.mrb[236].mxu0 %v18619_v41 }
 0x6a4   : > { %13068 = vmatprep.mubr.bf16.mxu0 %v18623_v20  ;;  %13097 = vmatpush3.bf16.msra.mxu0 %v14194_v50  ;;  %v12256_v46 = vpop.f32.mrb[244].mxu1 }
 0x6a5   : > { %13098 = vmatprep.subr.bf16.mxu0 %v14195_v5  ;;  %v12257_v0 = vpop.f32.mrb[245].mxu1 }
 0x6a6   : > { %v19131_v36 = vadd.f32 %v12257_v0, %v12256_v46  ;;  %v12259_v19 = vpop.f32.mrb[246].mxu1  ;;  %v14198_v46 = vld [vmem:[%s19665_s12 + $0x10] sm:$0xff]  }
 0x6a7   : > { %v12260_v57 = vpop.f32.mrb[247].mxu1  ;;  %13136 = vmatprep.subr.bf16.mxu1 %v14198_v46 }
 0x6a8   : > { %13099 = vmatpush3.bf16.msra.mxu0 %v14195_v5  ;;  %v19133_v47 = vadd.f32 %v12260_v57, %v12259_v19  ;;  %13137 = vmatpush3.bf16.msra.mxu1 %v14198_v46 }
 0x6ab   : > { %13069 = vmatmul.mubr.bf16.gmra.mrb[240].mxu0 %v21031_v40 }
 0x6ac   : > { %13072 = vmatprep.mubr.bf16.mxu0 %v21032_v59  ;;  %v12262_v11 = vpop.f32.mrb[248].mxu1 }
 0x6ad   : > { %v12263_v53 = vpop.f32.mrb[249].mxu1 }
 0x6ae   : > { %v19137_v14 = vadd.f32 %v12263_v53, %v12262_v11  ;;  %v12265_v62 = vpop.f32.mrb[250].mxu1 }
 0x6af   : > { %v12266_v33 = vpop.f32.mrb[251].mxu1 }
 0x6b0   : > { %v19139_v48 = vadd.f32 %v12266_v33, %v12265_v62 }
 0x6b3   : > { %13073 = vmatmul.mubr.bf16.gmra.mrb[244].mxu0 %v18808_v38 }
 0x6b4   : > { %13076 = vmatprep.mubr.bf16.mxu0 %v18810_v63  ;;  %v12268_v21 = vpop.f32.mrb[252].mxu1 }
 0x6b5   : > { %v12269_v45 = vpop.f32.mrb[253].mxu1 }
 0x6b6   : > { %v19146_v15 = vadd.f32 %v12269_v45, %v12268_v21  ;;  %v12271_v30 = vpop.f32.mrb[254].mxu1 }
 0x6b7   : > { %v12272_v29 = vpop.f32.mrb[255].mxu1 }
 0x6b8   : > { %v19148_v8 = vadd.f32 %v12272_v29, %v12271_v30 }
 0x6bb   : > { %13077 = vmatmul.mubr.bf16.gmra.mrb[248].mxu0 %v18876_v24 }
 0x6bc   : > { %13080 = vmatprep.mubr.bf16.mxu0 %v18893_v3  ;;  %v12274_v18 = vpop.f32.mrb[0].mxu1 }
 0x6bd   : > { %v12275_v9 = vpop.f32.mrb[1].mxu1 }
 0x6be   : > { %v19152_v7 = vadd.f32 %v12275_v9, %v12274_v18  ;;  %v12277_v2 = vpop.f32.mrb[2].mxu1 }
 0x6bf   : > { %v12278_v60 = vpop.f32.mrb[3].mxu1 }
 0x6c0   : > { %v19154_v51 = vadd.f32 %v12278_v60, %v12277_v2  ;;  %v14199_v60 = vld [vmem:[%s19665_s12 + $0x18] sm:$0xff]  }
 0x6c1   : > { %13138 = vmatprep.subr.bf16.mxu1 %v14199_v60 }
 0x6c2   : > { %13139 = vmatpush3.bf16.msra.mxu1 %v14199_v60 }
 0x6c3   : > { %13081 = vmatmul.mubr.bf16.gmra.mrb[252].mxu0 %v18921_v61 }
 0x6c4   : > { %13100 = vmatprep.mubr.bf16.mxu0 %v21026_v32  ;;  %v12280_v1 = vpop.f32.mrb[4].mxu1 }
 0x6c5   : > { %v12281_v6 = vpop.f32.mrb[5].mxu1 }
 0x6c6   : > { %v19161_v35 = vadd.f32 %v12281_v6, %v12280_v1  ;;  %v12283_v4 = vpop.f32.mrb[6].mxu1 }
 0x6c7   : > { %v12284_v43 = vpop.f32.mrb[7].mxu1 }
 0x6c8   : > { %v19163_v16 = vadd.f32 %v12284_v43, %v12283_v4 }
 0x6cb   : > { %13101 = vmatmul.mubr.bf16.vlgmr.msra.gmra.mrb[224].mxu0 %v21027_v44 }
 0x6cc   : > { %13104 = vmatprep.mubr.bf16.mxu0 %v21028_v10  ;;  %v12286_v56 = vpop.f32.mrb[8].mxu1 }
 0x6cd   : > { %v12287_v32 = vpop.f32.mrb[9].mxu1 }
 0x6ce   : > { %v19167_v50 = vadd.f32 %v12287_v32, %v12286_v56  ;;  %v12289_v55 = vpop.f32.mrb[10].mxu1 }
 0x6cf   : > { %v12290_v39 = vpop.f32.mrb[11].mxu1 }
 0x6d0   : > { %v19169_v31 = vadd.f32 %v12290_v39, %v12289_v55 }
 0x6d3   : > { %13105 = vmatmul.mubr.bf16.gmra.mrb[228].mxu0 %v21029_v25 }
 0x6d4   : > { %13108 = vmatprep.mubr.bf16.mxu0 %v21030_v34  ;;  %v12292_v5 = vpop.f32.mrb[12].mxu1 }
 0x6d5   : > { %v12293_v44 = vpop.f32.mrb[13].mxu1 }
 0x6d6   : > { %v19176_v0 = vadd.f32 %v12293_v44, %v12292_v5  ;;  %v12295_v10 = vpop.f32.mrb[14].mxu1 }
 0x6d7   : > { %v12296_v19 = vpop.f32.mrb[15].mxu1 }
 0x6d8   : > { %v19178_v57 = vadd.f32 %v12296_v19, %v12295_v10 }
 0x6db   : > { %13109 = vmatmul.mubr.bf16.gmra.mrb[232].mxu0 %v18619_v41 }
 0x6dc   : > { %13112 = vmatprep.mubr.bf16.mxu0 %v18623_v20  ;;  %v12298_v25 = vpop.f32.mrb[16].mxu1 }
 0x6dd   : > { %v12299_v11 = vpop.f32.mrb[17].mxu1 }
 0x6de   : > { %v12362_v34 = vpop.f32.mrb[0].mxu0  ;;  %v19182_v62 = vadd.f32 %v12299_v11, %v12298_v25  ;;  %v12301_v33 = vpop.f32.mrb[18].mxu1 }
 0x6df   : > { %v12363_v53 = vpop.f32.mrb[1].mxu0  ;;  %v12302_v45 = vpop.f32.mrb[19].mxu1 }
 0x6e0   : > { %v12364_v21 = vadd.f32 %v12363_v53, %v12362_v34  ;;  %v12365_v26 = vpop.f32.mrb[2].mxu0  ;;  %v19184_v29 = vadd.f32 %v12302_v45, %v12301_v33 }
 0x6e1   : > { %v12366_v30 = vpop.f32.mrb[3].mxu0 }
 0x6e2   : > { %v19187_v18 = vadd.f32 %v12364_v21, %v19079_v12  ;;  %v12367_v9 = vadd.f32 %v12366_v30, %v12365_v26  ;;  %v14200_v26 = vld [vmem:[%s19665_s12 + $0x20] sm:$0xff]  }
 0x6e3   : > { %13113 = vmatmul.mubr.bf16.gmra.mrb[236].mxu0 %v21031_v40  ;;  %13140 = vmatprep.subr.bf16.mxu1 %v14200_v26 }
 0x6e4   : > { %v19191_v41 = vadd.f32 %v12367_v9, %v19081_v37  ;;  %13116 = vmatprep.mubr.bf16.mxu0 %v21032_v59  ;;  %v12304_v20 = vpop.f32.mrb[20].mxu1  ;;  %13141 = vmatpush3.bf16.msra.mxu1 %v14200_v26 }
 0x6e5   : > { %v12305_v1 = vpop.f32.mrb[21].mxu1 }
 0x6e6   : > { %v12368_v2 = vpop.f32.mrb[4].mxu0  ;;  %v19197_v6 = vadd.f32 %v12305_v1, %v12304_v20  ;;  %v12307_v12 = vpop.f32.mrb[22].mxu1 }
 0x6e7   : > { %v12369_v58 = vpop.f32.mrb[5].mxu0  ;;  %v12308_v40 = vpop.f32.mrb[23].mxu1 }
 0x6e8   : > { %v12370_v4 = vadd.f32 %v12369_v58, %v12368_v2  ;;  %v12371_v43 = vpop.f32.mrb[6].mxu0  ;;  %v19199_v37 = vadd.f32 %v12308_v40, %v12307_v12  ;;  %v14201_v58 = vld [vmem:[%s19665_s12 + $0x28] sm:$0xff]   ;;  %v14202_v12 = vld [vmem:[%s19665_s12 + $0x30] sm:$0xff]   ;;  %v14203_v40 = vld [vmem:[%s19665_s12 + $0x38] sm:$0xff]  }
 0x6e9   : > { %v12372_v56 = vpop.f32.mrb[7].mxu0  ;;  %13142 = vmatprep.subr.bf16.mxu1 %v14201_v58 }
 0x6ea   : > { %v19202_v59 = vadd.f32 %v12370_v4, %v19091_v54  ;;  %v12373_v32 = vadd.f32 %v12372_v56, %v12371_v43  ;;  %13143 = vmatpush3.bf16.msra.mxu1 %v14201_v58 }
 0x6eb   : > { %13117 = vmatmul.mubr.bf16.gmra.mrb[240].mxu0 %v18808_v38  ;;  %13144 = vmatprep.subr.bf16.mxu1 %v14202_v12 }
 0x6ec   : > { %v19206_v55 = vadd.f32 %v12373_v32, %v19093_v22  ;;  %13120 = vmatprep.mubr.bf16.mxu0 %v18810_v63  ;;  %v12310_v39 = vpop.f32.mrb[24].mxu1 }
 0x6ed   : > { %v12311_v46 = vpop.f32.mrb[25].mxu1 }
 0x6ee   : > { %v12374_v5 = vpop.f32.mrb[8].mxu0  ;;  %v19209_v10 = vadd.f32 %v12311_v46, %v12310_v39  ;;  %v12313_v19 = vpop.f32.mrb[26].mxu1  ;;  %13145 = vmatpush3.bf16.msra.mxu1 %v14202_v12 }
 0x6ef   : > { %v12375_v44 = vpop.f32.mrb[9].mxu0  ;;  %v12314_v11 = vpop.f32.mrb[27].mxu1  ;;  %13146 = vmatprep.subr.bf16.mxu1 %v14203_v40 }
 0x6f0   : > { %v12376_v25 = vadd.f32 %v12375_v44, %v12374_v5  ;;  %v12377_v34 = vpop.f32.mrb[10].mxu0  ;;  %v19211_v53 = vadd.f32 %v12314_v11, %v12313_v19 }
 0x6f1   : > { %v12378_v54 = vpop.f32.mrb[11].mxu0 }
 0x6f2   : > { %v19214_v38 = vadd.f32 %v12376_v25, %v19102_v28  ;;  %v12379_v22 = vadd.f32 %v12378_v54, %v12377_v34  ;;  %13147 = vmatpush3.bf16.msra.mxu1 %v14203_v40 }
 0x6f3   : > { %13121 = vmatmul.mubr.bf16.gmra.mrb[244].mxu0 %v18876_v24 }
 0x6f4   : > { %v19218_v63 = vadd.f32 %v12379_v22, %v19104_v13  ;;  %13124 = vmatprep.mubr.bf16.mxu0 %v18893_v3  ;;  %v12316_v33 = vpop.f32.mrb[28].mxu1 }
 0x6f5   : > { %v12317_v45 = vpop.f32.mrb[29].mxu1 }
 0x6f6   : > { %v12380_v21 = vpop.f32.mrb[12].mxu0  ;;  %v19224_v9 = vadd.f32 %v12317_v45, %v12316_v33  ;;  %v12319_v28 = vpop.f32.mrb[30].mxu1 }
 0x6f7   : > { %v12381_v30 = vpop.f32.mrb[13].mxu0  ;;  %v12320_v24 = vpop.f32.mrb[31].mxu1 }
 0x6f8   : > { %v12382_v20 = vadd.f32 %v12381_v30, %v12380_v21  ;;  %v12383_v2 = vpop.f32.mrb[14].mxu0  ;;  %v19226_v13 = vadd.f32 %v12320_v24, %v12319_v28 }
 0x6f9   : > { %v12384_v60 = vpop.f32.mrb[15].mxu0 }
 0x6fa   : > { %v19229_v3 = vadd.f32 %v12382_v20, %v19112_v23  ;;  %v12385_v1 = vadd.f32 %v12384_v60, %v12383_v2 }
 0x6fb   : > { %13125 = vmatmul.mubr.bf16.gmra.mrb[248].mxu0 %v18921_v61 }
 0x6fc   : > { %v19239_v4 = vadd.f32 %v12385_v1, %v19114_v49  ;;  %13128 = vmatprep.mubr.bf16.mxu0 %v18943_v42  ;;  %v12498_v23 = vpop.f32.mrb[32].mxu1 }
 0x6fd   : > { %v12499_v56 = vpop.f32.mrb[33].mxu1 }
 0x6fe   : > { %v12386_v43 = vpop.f32.mrb[16].mxu0  ;;  %v12500_v39 = vadd.f32 %v12499_v56, %v12498_v23  ;;  %v12501_v5 = vpop.f32.mrb[34].mxu1 }
 0x6ff   : > { %v12387_v32 = vpop.f32.mrb[17].mxu0  ;;  %v12502_v44 = vpop.f32.mrb[35].mxu1 }
 0x700   : > { %v12388_v46 = vadd.f32 %v12387_v32, %v12386_v43  ;;  %v12389_v61 = vpop.f32.mrb[18].mxu0  ;;  %v12503_v19 = vadd.f32 %v12502_v44, %v12501_v5  ;;  %v19249_v34 = vadd.f32 %v19187_v18, %v12500_v39 }
 0x701   : > { %v12390_v49 = vpop.f32.mrb[19].mxu0 }
 0x702   : > { %v19246_v42 = vadd.f32 %v12388_v46, %v19122_v27  ;;  %v12391_v25 = vadd.f32 %v12390_v49, %v12389_v61  ;;  %v19256_v54 = vadd.f32 %v19191_v41, %v12503_v19 }
 0x703   : > { %13129 = vmatmul.mubr.bf16.gmra.mrb[252].mxu0 %v21024_v17 }
 0x704   : > { %v19253_v11 = vadd.f32 %v12391_v25, %v19124_v52  ;;  %v12504_v22 = vpop.f32.mrb[36].mxu1 }
 0x705   : > { %v12505_v21 = vpop.f32.mrb[37].mxu1 }
 0x706   : > { %v12392_v33 = vpop.f32.mrb[20].mxu0  ;;  %v12506_v27 = vadd.f32 %v12505_v21, %v12504_v22  ;;  %v12507_v45 = vpop.f32.mrb[38].mxu1 }
 0x707   : > { %v12393_v26 = vpop.f32.mrb[21].mxu0  ;;  %v12508_v20 = vpop.f32.mrb[39].mxu1 }
 0x708   : > { %v12394_v30 = vadd.f32 %v12393_v26, %v12392_v33  ;;  %v12395_v28 = vpop.f32.mrb[22].mxu0  ;;  %v12509_v2 = vadd.f32 %v12508_v20, %v12507_v45  ;;  %v19262_v24 = vadd.f32 %v19202_v59, %v12506_v27 }
 0x709   : > { %v12396_v18 = vpop.f32.mrb[23].mxu0 }
 0x70a   : > { %v19259_v17 = vadd.f32 %v12394_v30, %v19131_v36  ;;  %v12397_v52 = vadd.f32 %v12396_v18, %v12395_v28  ;;  %v19268_v60 = vadd.f32 %v19206_v55, %v12509_v2 }
 0x70c   : > { %v19265_v41 = vadd.f32 %v12397_v52, %v19133_v47  ;;  %v12510_v1 = vpop.f32.mrb[40].mxu1 }
 0x70d   : > { %v12511_v12 = vpop.f32.mrb[41].mxu1 }
 0x70e   : > { %v12398_v58 = vpop.f32.mrb[24].mxu0  ;;  %v12512_v43 = vadd.f32 %v12511_v12, %v12510_v1  ;;  %v12513_v40 = vpop.f32.mrb[42].mxu1 }
 0x70f   : > { %v12399_v23 = vpop.f32.mrb[25].mxu0  ;;  %v12514_v36 = vpop.f32.mrb[43].mxu1 }
 0x710   : > { %v12400_v56 = vadd.f32 %v12399_v23, %v12398_v58  ;;  %v12401_v32 = vpop.f32.mrb[26].mxu0  ;;  %v12515_v5 = vadd.f32 %v12514_v36, %v12513_v40  ;;  %v19274_v47 = vadd.f32 %v19214_v38, %v12512_v43 }
 0x711   : > { %v12402_v39 = vpop.f32.mrb[27].mxu0 }
 0x712   : > { %v19271_v59 = vadd.f32 %v12400_v56, %v19137_v14  ;;  %v12403_v46 = vadd.f32 %v12402_v39, %v12401_v32  ;;  %v19280_v61 = vadd.f32 %v19218_v63, %v12515_v5 }
 0x714   : > { %v19277_v55 = vadd.f32 %v12403_v46, %v19139_v48  ;;  %v12516_v44 = vpop.f32.mrb[44].mxu1 }
 0x715   : > { %v12517_v19 = vpop.f32.mrb[45].mxu1 }
 0x716   : > { %v12404_v49 = vpop.f32.mrb[28].mxu0  ;;  %v12518_v22 = vadd.f32 %v12517_v19, %v12516_v44  ;;  %v12519_v33 = vpop.f32.mrb[46].mxu1 }
 0x717   : > { %v12405_v25 = vpop.f32.mrb[29].mxu0  ;;  %v12520_v14 = vpop.f32.mrb[47].mxu1 }
 0x718   : > { %v12406_v21 = vadd.f32 %v12405_v25, %v12404_v49  ;;  %v12407_v26 = vpop.f32.mrb[30].mxu0  ;;  %v12521_v45 = vadd.f32 %v12520_v14, %v12519_v33  ;;  %v19286_v48 = vadd.f32 %v19229_v3, %v12518_v22 }
 0x719   : > { %v12408_v27 = vpop.f32.mrb[31].mxu0 }
 0x71a   : > { %v19283_v38 = vadd.f32 %v12406_v21, %v19146_v15  ;;  %v12409_v30 = vadd.f32 %v12408_v27, %v12407_v26  ;;  %v19292_v28 = vadd.f32 %v19239_v4, %v12521_v45 }
 0x71c   : > { %v19289_v63 = vadd.f32 %v12409_v30, %v19148_v8  ;;  %v12522_v20 = vpop.f32.mrb[48].mxu1 }
 0x71d   : > { %v12523_v2 = vpop.f32.mrb[49].mxu1 }
 0x71e   : > { %v12410_v18 = vpop.f32.mrb[32].mxu0  ;;  %v12524_v1 = vadd.f32 %v12523_v2, %v12522_v20  ;;  %v12525_v58 = vpop.f32.mrb[50].mxu1 }
 0x71f   : > { %v12411_v52 = vpop.f32.mrb[33].mxu0  ;;  %v12526_v15 = vpop.f32.mrb[51].mxu1 }
 0x720   : > { %v12412_v12 = vadd.f32 %v12411_v52, %v12410_v18  ;;  %v12413_v23 = vpop.f32.mrb[34].mxu0  ;;  %v12527_v40 = vadd.f32 %v12526_v15, %v12525_v58  ;;  %v19298_v8 = vadd.f32 %v19246_v42, %v12524_v1 }
 0x721   : > { %v12414_v43 = vpop.f32.mrb[35].mxu0 }
 0x722   : > { %v19295_v3 = vadd.f32 %v12412_v12, %v19152_v7  ;;  %v12415_v56 = vadd.f32 %v12414_v43, %v12413_v23  ;;  %v19304_v32 = vadd.f32 %v19253_v11, %v12527_v40 }
 0x724   : > { %v19301_v4 = vadd.f32 %v12415_v56, %v19154_v51  ;;  %v12528_v36 = vpop.f32.mrb[52].mxu1 }
 0x725   : > { %v12529_v5 = vpop.f32.mrb[53].mxu1 }
 0x726   : > { %v12416_v39 = vpop.f32.mrb[36].mxu0  ;;  %v12530_v44 = vadd.f32 %v12529_v5, %v12528_v36  ;;  %v12531_v49 = vpop.f32.mrb[54].mxu1 }
 0x727   : > { %v12417_v46 = vpop.f32.mrb[37].mxu0  ;;  %v12532_v7 = vpop.f32.mrb[55].mxu1 }
 0x728   : > { %v12418_v19 = vadd.f32 %v12417_v46, %v12416_v39  ;;  %v12419_v25 = vpop.f32.mrb[38].mxu0  ;;  %v12533_v33 = vadd.f32 %v12532_v7, %v12531_v49  ;;  %v19310_v51 = vadd.f32 %v19259_v17, %v12530_v44 }
 0x729   : > { %v12420_v22 = vpop.f32.mrb[39].mxu0 }
 0x72a   : > { %v19307_v42 = vadd.f32 %v12418_v19, %v19161_v35  ;;  %v12421_v21 = vadd.f32 %v12420_v22, %v12419_v25  ;;  %v19316_v26 = vadd.f32 %v19265_v41, %v12533_v33 }
 0x72c   : > { %v19313_v11 = vadd.f32 %v12421_v21, %v19163_v16  ;;  %v12534_v14 = vpop.f32.mrb[56].mxu1 }
 0x72d   : > { %v12535_v45 = vpop.f32.mrb[57].mxu1 }
 0x72e   : > { %v12422_v27 = vpop.f32.mrb[40].mxu0  ;;  %v12536_v20 = vadd.f32 %v12535_v45, %v12534_v14  ;;  %v12537_v18 = vpop.f32.mrb[58].mxu1 }
 0x72f   : > { %v12423_v30 = vpop.f32.mrb[41].mxu0  ;;  %v12538_v35 = vpop.f32.mrb[59].mxu1 }
 0x730   : > { %v12424_v2 = vadd.f32 %v12423_v30, %v12422_v27  ;;  %v12425_v52 = vpop.f32.mrb[42].mxu0  ;;  %v12539_v58 = vadd.f32 %v12538_v35, %v12537_v18  ;;  %v19322_v16 = vadd.f32 %v19271_v59, %v12536_v20 }
 0x731   : > { %v12426_v1 = vpop.f32.mrb[43].mxu0 }
 0x732   : > { %v19319_v17 = vadd.f32 %v12424_v2, %v19167_v50  ;;  %v12427_v12 = vadd.f32 %v12426_v1, %v12425_v52  ;;  %v19328_v23 = vadd.f32 %v19277_v55, %v12539_v58 }
 0x734   : > { %v19325_v41 = vadd.f32 %v12427_v12, %v19169_v31  ;;  %v12540_v15 = vpop.f32.mrb[60].mxu1 }
 0x735   : > { %v12541_v40 = vpop.f32.mrb[61].mxu1 }
 0x736   : > { %v12428_v43 = vpop.f32.mrb[44].mxu0  ;;  %v12542_v36 = vadd.f32 %v12541_v40, %v12540_v15  ;;  %v12543_v39 = vpop.f32.mrb[62].mxu1 }
 0x737   : > { %v12429_v56 = vpop.f32.mrb[45].mxu0  ;;  %v12544_v50 = vpop.f32.mrb[63].mxu1 }
 0x738   : > { %v12430_v5 = vadd.f32 %v12429_v56, %v12428_v43  ;;  %v12431_v46 = vpop.f32.mrb[46].mxu0  ;;  %v12545_v49 = vadd.f32 %v12544_v50, %v12543_v39  ;;  %v19334_v31 = vadd.f32 %v19283_v38, %v12542_v36 }
 0x739   : > { %v12432_v44 = vpop.f32.mrb[47].mxu0 }
 0x73a   : > { %v19331_v59 = vadd.f32 %v12430_v5, %v19176_v0  ;;  %v12433_v19 = vadd.f32 %v12432_v44, %v12431_v46  ;;  %v19340_v25 = vadd.f32 %v19289_v63, %v12545_v49 }
 0x73c   : > { %v19337_v55 = vadd.f32 %v12433_v19, %v19178_v57  ;;  %v12546_v7 = vpop.f32.mrb[96].mxu1 }
 0x73d   : > { %v12547_v33 = vpop.f32.mrb[97].mxu1 }
 0x73e   : > { %v12434_v22 = vpop.f32.mrb[48].mxu0  ;;  %v12548_v14 = vadd.f32 %v12547_v33, %v12546_v7  ;;  %v12549_v27 = vpop.f32.mrb[98].mxu1 }
 0x73f   : > { %v12435_v21 = vpop.f32.mrb[49].mxu0  ;;  %v12550_v0 = vpop.f32.mrb[99].mxu1 }
 0x740   : > { %v12436_v45 = vadd.f32 %v12435_v21, %v12434_v22  ;;  %v12437_v30 = vpop.f32.mrb[50].mxu0  ;;  %v12551_v18 = vadd.f32 %v12550_v0, %v12549_v27  ;;  %v19344_v57 = vadd.f32 %v19295_v3, %v12548_v14 }
 0x741   : > { %v12438_v20 = vpop.f32.mrb[51].mxu0 }
 0x742   : > { %v13543_v38 = vadd.f32 %v12436_v45, %v19182_v62  ;;  %v12439_v2 = vadd.f32 %v12438_v20, %v12437_v30  ;;  %v19348_v52 = vadd.f32 %v19301_v4, %v12551_v18 }
 0x744   : > { %v13549_v63 = vadd.f32 %v12439_v2, %v19184_v29  ;;  %v12552_v35 = vpop.f32.mrb[100].mxu1 }
 0x745   : > { %v12553_v58 = vpop.f32.mrb[101].mxu1 }
 0x746   : > { %v12440_v1 = vpop.f32.mrb[52].mxu0  ;;  %v12554_v15 = vadd.f32 %v12553_v58, %v12552_v35  ;;  %v12555_v43 = vpop.f32.mrb[102].mxu1 }
 0x747   : > { %v12441_v12 = vpop.f32.mrb[53].mxu0  ;;  %v12556_v36 = vpop.f32.mrb[103].mxu1 }
 0x748   : > { %v12442_v40 = vadd.f32 %v12441_v12, %v12440_v1  ;;  %v12443_v56 = vpop.f32.mrb[54].mxu0  ;;  %v12557_v62 = vadd.f32 %v12556_v36, %v12555_v43  ;;  %v19352_v46 = vadd.f32 %v19307_v42, %v12554_v15 }
 0x749   : > { %v12444_v39 = vpop.f32.mrb[55].mxu0 }
 0x74a   : > { %v13540_v5 = vadd.f32 %v12442_v40, %v19197_v6  ;;  %v12445_v3 = vadd.f32 %v12444_v39, %v12443_v56  ;;  %v19356_v4 = vadd.f32 %v19313_v11, %v12557_v62 }
 0x74c   : > { %v13546_v29 = vadd.f32 %v12445_v3, %v19199_v37  ;;  %v12558_v50 = vpop.f32.mrb[104].mxu1 }
 0x74d   : > { %v12559_v49 = vpop.f32.mrb[105].mxu1 }
 0x74e   : > { %v12446_v44 = vpop.f32.mrb[56].mxu0  ;;  %v12560_v7 = vadd.f32 %v12559_v49, %v12558_v50  ;;  %v12561_v22 = vpop.f32.mrb[106].mxu1 }
 0x74f   : > { %v12447_v19 = vpop.f32.mrb[57].mxu0  ;;  %v12562_v14 = vpop.f32.mrb[107].mxu1 }
 0x750   : > { %v12448_v33 = vadd.f32 %v12447_v19, %v12446_v44  ;;  %v12449_v21 = vpop.f32.mrb[58].mxu0  ;;  %v12563_v6 = vadd.f32 %v12562_v14, %v12561_v22  ;;  %v19360_v30 = vadd.f32 %v19319_v17, %v12560_v7 }
 0x751   : > { %v12450_v27 = vpop.f32.mrb[59].mxu0 }
 0x752   : > { %v13555_v45 = vadd.f32 %v12448_v33, %v19209_v10  ;;  %v12451_v42 = vadd.f32 %v12450_v27, %v12449_v21  ;;  %v19364_v11 = vadd.f32 %v19325_v41, %v12563_v6 }
 0x754   : > { %v13561_v37 = vadd.f32 %v12451_v42, %v19211_v53  ;;  %v12564_v0 = vpop.f32.mrb[108].mxu1 }
 0x755   : > { %v12565_v18 = vpop.f32.mrb[109].mxu1 }
 0x756   : > { %v12452_v20 = vpop.f32.mrb[60].mxu0  ;;  %v12566_v35 = vadd.f32 %v12565_v18, %v12564_v0  ;;  %v12567_v1 = vpop.f32.mrb[110].mxu1 }
 0x757   : > { %v12453_v2 = vpop.f32.mrb[61].mxu0  ;;  %v12568_v15 = vpop.f32.mrb[111].mxu1 }
 0x758   : > { %v12454_v58 = vadd.f32 %v12453_v2, %v12452_v20  ;;  %v12455_v12 = vpop.f32.mrb[62].mxu0  ;;  %v12569_v10 = vadd.f32 %v12568_v15, %v12567_v1  ;;  %v19368_v56 = vadd.f32 %v19331_v59, %v12566_v35 }
 0x759   : > { %v12456_v43 = vpop.f32.mrb[63].mxu0 }
 0x75a   : > { %v13552_v40 = vadd.f32 %v12454_v58, %v19224_v9  ;;  %v12457_v17 = vadd.f32 %v12456_v43, %v12455_v12  ;;  %v19372_v41 = vadd.f32 %v19337_v55, %v12569_v10  ;;  %v19393_v43 = vld [vmem:[%s21033_s16] ss:$0 sm:$0xff] }
 0x75b   : > { %v19399_v10 = vld [vmem:[%s21034_s29] ss:$0 sm:$0xff] }
 0x75c   : > { %v13558_v53 = vadd.f32 %v12457_v17, %v19226_v13  ;;  %v12570_v36 = vpop.f32.mrb[112].mxu1 }
 0x75d   : > { %v12571_v39 = vpop.f32.mrb[113].mxu1 }
 0x75e   : > { %v12572_v62 = vadd.f32 %v12571_v39, %v12570_v36  ;;  %v12573_v3 = vpop.f32.mrb[114].mxu1 }
 0x75f   : > { %v12574_v50 = vpop.f32.mrb[115].mxu1 }
 0x760   : > { %v12575_v44 = vadd.f32 %v12574_v50, %v12573_v3  ;;  %v19374_v49 = vadd.f32 %v13543_v38, %v12572_v62 }
 0x762   : > { %v19376_v19 = vadd.f32 %v13549_v63, %v12575_v44 }
 0x764   : > { %v12576_v9 = vpop.f32.mrb[116].mxu1 }
 0x765   : > { %v12577_v7 = vpop.f32.mrb[117].mxu1 }
 0x766   : > { %v12578_v22 = vadd.f32 %v12577_v7, %v12576_v9  ;;  %v12579_v59 = vpop.f32.mrb[118].mxu1 }
 0x767   : > { %v12580_v33 = vpop.f32.mrb[119].mxu1 }
 0x768   : > { %v12581_v21 = vadd.f32 %v12580_v33, %v12579_v59  ;;  %v19378_v13 = vadd.f32 %v13540_v5, %v12578_v22 }
 0x76a   : > { %v19380_v55 = vadd.f32 %v13546_v29, %v12581_v21 }
 0x76c   : > { %v12582_v14 = vpop.f32.mrb[120].mxu1 }
 0x76d   : > { %v12583_v27 = vpop.f32.mrb[121].mxu1 }
 0x76e   : > { %v12584_v6 = vadd.f32 %v12583_v27, %v12582_v14  ;;  %v12585_v42 = vpop.f32.mrb[122].mxu1 }
 0x76f   : > { %v12586_v0 = vpop.f32.mrb[123].mxu1 }
 0x770   : > { %v12587_v20 = vadd.f32 %v12586_v0, %v12585_v42  ;;  %v19382_v38 = vadd.f32 %v13555_v45, %v12584_v6 }
 0x772   : > { %v19384_v63 = vadd.f32 %v13561_v37, %v12587_v20 }
 0x774   : > { %v12588_v18 = vpop.f32.mrb[124].mxu1 }
 0x775   : > { %v12589_v2 = vpop.f32.mrb[125].mxu1 }
 0x776   : > { %v12590_v35 = vadd.f32 %v12589_v2, %v12588_v18  ;;  %v12591_v1 = vpop.f32.mrb[126].mxu1 }
 0x777   : > { %v12592_v58 = vpop.f32.mrb[127].mxu1 }
 0x778   : > { %v12593_v12 = vadd.f32 %v12592_v58, %v12591_v1  ;;  %v19386_v5 = vadd.f32 %v13552_v40, %v12590_v35 }
 0x77a   : > { %v19388_v29 = vadd.f32 %v13558_v53, %v12593_v12 }
 0x79e   : > { %v13102_v15 = vpop.f32.mrb[224].mxu0 }
 0x79f   : > { %v13470_v45 = vadd.f32 %v19262_v24, %v13102_v15  ;;  %v9244_v37 = vpop.f32.mrb[225].mxu0 }
 0x7a0   : > { %v13473_v17 = vadd.f32 %v19249_v34, %v9244_v37  ;;  %v13103_v40 = vpop.f32.mrb[226].mxu0 }
 0x7a1   : > { %v9412_v53 = vmul.f32 %v13470_v45, %v19393_v43  ;;  %v13476_v36 = vadd.f32 %v19268_v60, %v13103_v40  ;;  %v9247_v39 = vpop.f32.mrb[227].mxu0 }
 0x7a2   : > { %v9410_v62 = vmul.f32 %v13473_v17, %v19393_v43  ;;  %v13479_v3 = vadd.f32 %v19256_v54, %v9247_v39 }
 0x7a3   : > { %v9451_v24 = vadd.f32 %v19399_v10, %v9412_v53  ;;  %v9413_v50 = vmul.f32 %v13476_v36, %v19393_v43 }
 0x7a4   : > { %v9449_v44 = vadd.f32 %v19399_v10, %v9410_v62  ;;  %v9411_v9 = vmul.f32 %v13479_v3, %v19393_v43 }
 0x7a5   : > { %v9452_v34 = vadd.f32 %v19399_v10, %v9413_v50  ;;  %v9483_v59 = vmax.f32 %v9451_v24, 0.0 }
 0x7a6   : > { %v9450_v7 = vadd.f32 %v19399_v10, %v9411_v9  ;;  %v13106_v22 = vpop.f32.mrb[228].mxu0  ;;  %v9481_v14 = vmax.f32 %v9449_v44, 0.0 }
 0x7a7   : > { %v9484_v60 = vmax.f32 %v9452_v34, 0.0  ;;  %v13482_v33 = vadd.f32 %v19286_v48, %v13106_v22  ;;  %v9260_v21 = vpop.f32.mrb[229].mxu0 }
 0x7a8   : > { %v9482_v54 = vmax.f32 %v9450_v7, 0.0  ;;  %v13485_v27 = vadd.f32 %v19274_v47, %v9260_v21  ;;  %v13107_v6 = vpop.f32.mrb[230].mxu0 }
 0x7a9   : > { %v9514_v42 = vpack.c.bf16 %v9484_v60, %v9483_v59  ;;  %v9416_v0 = vmul.f32 %v13482_v33, %v19393_v43  ;;  %v13488_v20 = vadd.f32 %v19292_v28, %v13107_v6  ;;  %v9263_v18 = vpop.f32.mrb[231].mxu0 }
 0x7aa   : > { %v9414_v2 = vmul.f32 %v13485_v27, %v19393_v43  ;;  %v13491_v35 = vadd.f32 %v19280_v61, %v9263_v18  ;;  %v9513_v1 = vpack.c.bf16 %v9482_v54, %v9481_v14 }
 0x7ab   : > { %v9455_v58 = vadd.f32 %v19399_v10, %v9416_v0  ;;  %v9417_v48 = vmul.f32 %v13488_v20, %v19393_v43 }
 0x7ac   : > { %v9453_v12 = vadd.f32 %v19399_v10, %v9414_v2  ;;  %v9415_v47 = vmul.f32 %v13491_v35, %v19393_v43  ;;  %13148 = vmatprep.mubr.bf16.mxu1 %v9513_v1 }
 0x7ad   : > { %v9456_v15 = vadd.f32 %v19399_v10, %v9417_v48  ;;  %13149 = vmatmul.mubr.bf16.vlgmr.msra.gmra.mrb[128].mxu1 %v9514_v42  ;;  %v9487_v37 = vmax.f32 %v9455_v58, 0.0 }
 0x7ae   : > { %v9454_v28 = vadd.f32 %v19399_v10, %v9415_v47  ;;  %v13110_v45 = vpop.f32.mrb[232].mxu0  ;;  %v9485_v53 = vmax.f32 %v9453_v12, 0.0 }
 0x7af   : > { %v9488_v17 = vmax.f32 %v9456_v15, 0.0  ;;  %v13494_v61 = vadd.f32 %v19310_v51, %v13110_v45  ;;  %v9276_v40 = vpop.f32.mrb[233].mxu0 }
 0x7b0   : > { %v9486_v36 = vmax.f32 %v9454_v28, 0.0  ;;  %v13497_v39 = vadd.f32 %v19298_v8, %v9276_v40  ;;  %v13111_v62 = vpop.f32.mrb[234].mxu0 }
 0x7b1   : > { %v9516_v3 = vpack.c.bf16 %v9488_v17, %v9487_v37  ;;  %v9420_v24 = vmul.f32 %v13494_v61, %v19393_v43  ;;  %v13500_v50 = vadd.f32 %v19316_v26, %v13111_v62  ;;  %v9279_v44 = vpop.f32.mrb[235].mxu0 }
 0x7b2   : > { %v9418_v9 = vmul.f32 %v13497_v39, %v19393_v43  ;;  %v13503_v34 = vadd.f32 %v19304_v32, %v9279_v44  ;;  %v9515_v7 = vpack.c.bf16 %v9486_v36, %v9485_v53 }
 0x7b3   : > { %v9459_v22 = vadd.f32 %v19399_v10, %v9420_v24  ;;  %v9421_v51 = vmul.f32 %v13500_v50, %v19393_v43 }
 0x7b4   : > { %v9457_v59 = vadd.f32 %v19399_v10, %v9418_v9  ;;  %v9419_v8 = vmul.f32 %v13503_v34, %v19393_v43  ;;  %13152 = vmatprep.mubr.bf16.mxu1 %v9515_v7 }
 0x7b5   : > { %v9460_v60 = vadd.f32 %v19399_v10, %v9421_v51  ;;  %13153 = vmatmul.mubr.bf16.gmra.mrb[132].mxu1 %v9516_v3  ;;  %v9491_v21 = vmax.f32 %v9459_v22, 0.0 }
 0x7b6   : > { %v9458_v26 = vadd.f32 %v19399_v10, %v9419_v8  ;;  %v13114_v33 = vpop.f32.mrb[236].mxu0  ;;  %v9489_v27 = vmax.f32 %v9457_v59, 0.0 }
 0x7b7   : > { %v9492_v14 = vmax.f32 %v9460_v60, 0.0  ;;  %v13506_v32 = vadd.f32 %v19334_v31, %v13114_v33  ;;  %v9292_v54 = vpop.f32.mrb[237].mxu0 }
 0x7b8   : > { %v9490_v6 = vmax.f32 %v9458_v26, 0.0  ;;  %v13509_v42 = vadd.f32 %v19322_v16, %v9292_v54  ;;  %v13115_v0 = vpop.f32.mrb[238].mxu0 }
 0x7b9   : > { %v9518_v20 = vpack.c.bf16 %v9492_v14, %v9491_v21  ;;  %v9424_v18 = vmul.f32 %v13506_v32, %v19393_v43  ;;  %v13512_v2 = vadd.f32 %v19340_v25, %v13115_v0  ;;  %v9295_v35 = vpop.f32.mrb[239].mxu0 }
 0x7ba   : > { %v9422_v1 = vmul.f32 %v13509_v42, %v19393_v43  ;;  %v13515_v58 = vadd.f32 %v19328_v23, %v9295_v35  ;;  %v9517_v48 = vpack.c.bf16 %v9490_v6, %v9489_v27 }
 0x7bb   : > { %v9463_v12 = vadd.f32 %v19399_v10, %v9424_v18  ;;  %v9425_v31 = vmul.f32 %v13512_v2, %v19393_v43 }
 0x7bc   : > { %v9461_v47 = vadd.f32 %v19399_v10, %v9422_v1  ;;  %v9423_v16 = vmul.f32 %v13515_v58, %v19393_v43  ;;  %13156 = vmatprep.mubr.bf16.mxu1 %v9517_v48 }
 0x7bd   : > { %v9464_v15 = vadd.f32 %v19399_v10, %v9425_v31  ;;  %13157 = vmatmul.mubr.bf16.gmra.mrb[136].mxu1 %v9518_v20  ;;  %v9495_v45 = vmax.f32 %v9463_v12, 0.0 }
 0x7be   : > { %v9462_v25 = vadd.f32 %v19399_v10, %v9423_v16  ;;  %v13118_v28 = vpop.f32.mrb[240].mxu0  ;;  %v9493_v61 = vmax.f32 %v9461_v47, 0.0 }
 0x7bf   : > { %v9496_v37 = vmax.f32 %v9464_v15, 0.0  ;;  %v13518_v23 = vadd.f32 %v19352_v46, %v13118_v28  ;;  %v9308_v17 = vpop.f32.mrb[241].mxu0 }
 0x7c0   : > { %v9494_v40 = vmax.f32 %v9462_v25, 0.0  ;;  %v13521_v53 = vadd.f32 %v19344_v57, %v9308_v17  ;;  %v13119_v36 = vpop.f32.mrb[242].mxu0 }
 0x7c1   : > { %v9520_v39 = vpack.c.bf16 %v9496_v37, %v9495_v45  ;;  %v9428_v62 = vmul.f32 %v13518_v23, %v19393_v43  ;;  %v13524_v3 = vadd.f32 %v19356_v4, %v13119_v36  ;;  %v9311_v24 = vpop.f32.mrb[243].mxu0 }
 0x7c2   : > { %v9426_v50 = vmul.f32 %v13521_v53, %v19393_v43  ;;  %v13527_v44 = vadd.f32 %v19348_v52, %v9311_v24  ;;  %v9519_v9 = vpack.c.bf16 %v9494_v40, %v9493_v61 }
 0x7c3   : > { %v9467_v34 = vadd.f32 %v19399_v10, %v9428_v62  ;;  %v9429_v46 = vmul.f32 %v13524_v3, %v19393_v43 }
 0x7c4   : > { %v9465_v7 = vadd.f32 %v19399_v10, %v9426_v50  ;;  %v9427_v57 = vmul.f32 %v13527_v44, %v19393_v43  ;;  %13160 = vmatprep.mubr.bf16.mxu1 %v9519_v9 }
 0x7c5   : > { %v9468_v22 = vadd.f32 %v19399_v10, %v9429_v46  ;;  %13161 = vmatmul.mubr.bf16.gmra.mrb[140].mxu1 %v9520_v39  ;;  %v9499_v59 = vmax.f32 %v9467_v34, 0.0 }
 0x7c6   : > { %v9466_v4 = vadd.f32 %v19399_v10, %v9427_v57  ;;  %v13122_v51 = vpop.f32.mrb[244].mxu0  ;;  %v9497_v26 = vmax.f32 %v9465_v7, 0.0 }
 0x7c7   : > { %v9500_v8 = vmax.f32 %v9468_v22, 0.0  ;;  %v13530_v52 = vadd.f32 %v19368_v56, %v13122_v51  ;;  %v9324_v60 = vpop.f32.mrb[245].mxu0 }
 0x7c8   : > { %v9498_v33 = vmax.f32 %v9466_v4, 0.0  ;;  %v13533_v21 = vadd.f32 %v19360_v30, %v9324_v60  ;;  %v13123_v14 = vpop.f32.mrb[246].mxu0 }
 0x7c9   : > { %v9522_v32 = vpack.c.bf16 %v9500_v8, %v9499_v59  ;;  %v9432_v54 = vmul.f32 %v13530_v52, %v19393_v43  ;;  %v13536_v27 = vadd.f32 %v19372_v41, %v13123_v14  ;;  %v9327_v6 = vpop.f32.mrb[247].mxu0 }
 0x7ca   : > { %v9430_v42 = vmul.f32 %v13533_v21, %v19393_v43  ;;  %v13539_v0 = vadd.f32 %v19364_v11, %v9327_v6  ;;  %v9521_v20 = vpack.c.bf16 %v9498_v33, %v9497_v26 }
 0x7cb   : > { %v9471_v18 = vadd.f32 %v19399_v10, %v9432_v54  ;;  %v9433_v56 = vmul.f32 %v13536_v27, %v19393_v43  ;;  %v19499_v54 = vld [vmem:[%s21035_s27] ss:$0 sm:$0xff] }
 0x7cc   : > { %v9469_v2 = vadd.f32 %v19399_v10, %v9430_v42  ;;  %v9431_v30 = vmul.f32 %v13539_v0, %v19393_v43  ;;  %13164 = vmatprep.mubr.bf16.mxu1 %v9521_v20  ;;  %v19504_v27 = vld [vmem:[%s21036_s28] ss:$0 sm:$0xff] }
 0x7cd   : > { %v9472_v35 = vadd.f32 %v19399_v10, %v9433_v56  ;;  %13165 = vmatmul.mubr.bf16.gmra.mrb[144].mxu1 %v9522_v32  ;;  %v9503_v58 = vmax.f32 %v9471_v18, 0.0 }
 0x7ce   : > { %v9470_v41 = vadd.f32 %v19399_v10, %v9431_v30  ;;  %v13126_v1 = vpop.f32.mrb[248].mxu0  ;;  %v9501_v31 = vmax.f32 %v9469_v2, 0.0 }
 0x7cf   : > { %v9504_v48 = vmax.f32 %v9472_v35, 0.0  ;;  %v13542_v11 = vadd.f32 %v19378_v13, %v13126_v1  ;;  %v9340_v12 = vpop.f32.mrb[249].mxu0 }
 0x7d0   : > { %v9502_v47 = vmax.f32 %v9470_v41, 0.0  ;;  %v13545_v16 = vadd.f32 %v19374_v49, %v9340_v12  ;;  %v13127_v15 = vpop.f32.mrb[250].mxu0 }
 0x7d1   : > { %v9524_v25 = vpack.c.bf16 %v9504_v48, %v9503_v58  ;;  %v9436_v28 = vmul.f32 %v13542_v11, %v19393_v43  ;;  %v13548_v45 = vadd.f32 %v19380_v55, %v13127_v15  ;;  %v9343_v37 = vpop.f32.mrb[251].mxu0 }
 0x7d2   : > { %v9434_v23 = vmul.f32 %v13545_v16, %v19393_v43  ;;  %v13551_v17 = vadd.f32 %v19376_v19, %v9343_v37  ;;  %v9523_v61 = vpack.c.bf16 %v9502_v47, %v9501_v31 }
 0x7d3   : > { %v9475_v40 = vadd.f32 %v19399_v10, %v9436_v28  ;;  %v9437_v13 = vmul.f32 %v13548_v45, %v19393_v43 }
 0x7d4   : > { %v9473_v53 = vadd.f32 %v19399_v10, %v9434_v23  ;;  %v9435_v49 = vmul.f32 %v13551_v17, %v19393_v43  ;;  %13168 = vmatprep.mubr.bf16.mxu1 %v9523_v61 }
 0x7d5   : > { %v9476_v36 = vadd.f32 %v19399_v10, %v9437_v13  ;;  %13169 = vmatmul.mubr.bf16.gmra.mrb[148].mxu1 %v9524_v25  ;;  %v9507_v62 = vmax.f32 %v9475_v40, 0.0 }
 0x7d6   : > { %v9474_v55 = vadd.f32 %v19399_v10, %v9435_v49  ;;  %v13130_v39 = vpop.f32.mrb[252].mxu0  ;;  %v9505_v50 = vmax.f32 %v9473_v53, 0.0 }
 0x7d7   : > { %v9508_v3 = vmax.f32 %v9476_v36, 0.0  ;;  %v13554_v19 = vadd.f32 %v19386_v5, %v13130_v39  ;;  %v9356_v24 = vpop.f32.mrb[253].mxu0 }
 0x7d8   : > { %v9506_v44 = vmax.f32 %v9474_v55, 0.0  ;;  %v13557_v9 = vadd.f32 %v19382_v38, %v9356_v24  ;;  %v13131_v34 = vpop.f32.mrb[254].mxu0 }
 0x7d9   : > { %v9526_v46 = vpack.c.bf16 %v9508_v3, %v9507_v62  ;;  %v9440_v7 = vmul.f32 %v13554_v19, %v19393_v43  ;;  %v13560_v57 = vadd.f32 %v19388_v29, %v13131_v34  ;;  %v9359_v22 = vpop.f32.mrb[255].mxu0 }
 0x7da   : > { %v9438_v4 = vmul.f32 %v13557_v9, %v19393_v43  ;;  %v13563_v51 = vadd.f32 %v19384_v63, %v9359_v22  ;;  %v9525_v59 = vpack.c.bf16 %v9506_v44, %v9505_v50 }
 0x7db   : > { %v9479_v8 = vadd.f32 %v19399_v10, %v9440_v7  ;;  %v9441_v5 = vmul.f32 %v13560_v57, %v19393_v43 }
 0x7dc   : > { %v9477_v52 = vadd.f32 %v19399_v10, %v9438_v4  ;;  %v9439_v38 = vmul.f32 %v13563_v51, %v19393_v43  ;;  %13172 = vmatprep.mubr.bf16.mxu1 %v9525_v59 }
 0x7dd   : > { %v9480_v60 = vadd.f32 %v19399_v10, %v9441_v5  ;;  %13173 = vmatmul.mubr.bf16.gmra.mrb[152].mxu1 %v9526_v46  ;;  %v9511_v26 = vmax.f32 %v9479_v8, 0.0 }
 0x7de   : > { %v9478_v29 = vadd.f32 %v19399_v10, %v9439_v38  ;;  %v9509_v21 = vmax.f32 %v9477_v52, 0.0 }
 0x7df   : > { %v9512_v33 = vmax.f32 %v9480_v60, 0.0 }
 0x7e0   : > { %v9510_v63 = vmax.f32 %v9478_v29, 0.0 }
 0x7e1   : > { %v9528_v14 = vpack.c.bf16 %v9512_v33, %v9511_v26 }
 0x7e2   : > { %v9527_v32 = vpack.c.bf16 %v9510_v63, %v9509_v21 }
 0x7e4   : > { %13176 = vmatprep.mubr.bf16.mxu1 %v9527_v32 }
 0x7e5   : > { %13177 = vmatmul.mubr.bf16.gmra.mrb[156].mxu1 %v9528_v14 }
 0x880   : > { %v13150_v43 = vpop.f32.mrb[128].mxu1 }
 0x881   : > { %v9763_v10 = vmul.f32 %v13150_v43, %v19499_v54  ;;  %v9627_v6 = vpop.f32.mrb[129].mxu1 }
 0x882   : > { %v9761_v42 = vmul.f32 %v19499_v54, %v9627_v6  ;;  %v13151_v0 = vpop.f32.mrb[130].mxu1 }
 0x883   : > { %v9802_v20 = vadd.f32 %v19504_v27, %v9763_v10  ;;  %v9764_v18 = vmul.f32 %v13151_v0, %v19499_v54  ;;  %v9630_v56 = vpop.f32.mrb[131].mxu1 }
 0x884   : > { %v9800_v2 = vadd.f32 %v19504_v27, %v9761_v42  ;;  %v9762_v30 = vmul.f32 %v19499_v54, %v9630_v56 }
 0x885   : > { %v9834_v35 = vmax.f32 %v9802_v20, 0.0  ;;  %v9803_v41 = vadd.f32 %v19504_v27, %v9764_v18 }
 0x886   : > { %v9832_v1 = vmax.f32 %v9800_v2, 0.0  ;;  %v9801_v58 = vadd.f32 %v19504_v27, %v9762_v30 }
 0x887   : > { %9867 = vst.msk [vmem:[%s19514_s15 + $0x10] sm:$0xff] %vm9864_vm8, %v9834_v35  ;;  %v9835_v48 = vmax.f32 %v9803_v41, 0.0 }
 0x888   : > { %9865 = vst.msk [vmem:[%s19514_s15] sm:$0xff] %vm9864_vm8, %v9832_v1  ;;  %v9833_v11 = vmax.f32 %v9801_v58, 0.0  ;;  %v13154_v12 = vpop.f32.mrb[132].mxu1 }
 0x889   : > { %9868 = vst.msk [vmem:[%s19514_s15 + $0x18] sm:$0xff] %vm9864_vm8, %v9835_v48  ;;  %v9767_v31 = vmul.f32 %v13154_v12, %v19499_v54  ;;  %v9643_v47 = vpop.f32.mrb[133].mxu1 }
 0x88a   : > { %9866 = vst.msk [vmem:[%s19514_s15 + $0x8] sm:$0xff] %vm9864_vm8, %v9833_v11  ;;  %v9765_v16 = vmul.f32 %v19499_v54, %v9643_v47  ;;  %v13155_v15 = vpop.f32.mrb[134].mxu1 }
 0x88b   : > { %v9806_v25 = vadd.f32 %v19504_v27, %v9767_v31  ;;  %v9768_v28 = vmul.f32 %v13155_v15, %v19499_v54  ;;  %v9646_v45 = vpop.f32.mrb[135].mxu1 }
 0x88c   : > { %v9804_v37 = vadd.f32 %v19504_v27, %v9765_v16  ;;  %v9766_v23 = vmul.f32 %v19499_v54, %v9646_v45 }
 0x88d   : > { %v9838_v17 = vmax.f32 %v9806_v25, 0.0  ;;  %v9807_v61 = vadd.f32 %v19504_v27, %v9768_v28 }
 0x88e   : > { %v9836_v40 = vmax.f32 %v9804_v37, 0.0  ;;  %v9805_v13 = vadd.f32 %v19504_v27, %v9766_v23 }
 0x88f   : > { %9871 = vst.msk [vmem:[%s19514_s15 + $0x30] sm:$0xff] %vm9864_vm8, %v9838_v17  ;;  %v9839_v53 = vmax.f32 %v9807_v61, 0.0 }
 0x890   : > { %9869 = vst.msk [vmem:[%s19514_s15 + $0x20] sm:$0xff] %vm9864_vm8, %v9836_v40  ;;  %v9837_v49 = vmax.f32 %v9805_v13, 0.0  ;;  %v13158_v36 = vpop.f32.mrb[136].mxu1 }
 0x891   : > { %9872 = vst.msk [vmem:[%s19514_s15 + $0x38] sm:$0xff] %vm9864_vm8, %v9839_v53  ;;  %v9771_v55 = vmul.f32 %v13158_v36, %v19499_v54  ;;  %v9659_v39 = vpop.f32.mrb[137].mxu1 }
 0x892   : > { %9870 = vst.msk [vmem:[%s19514_s15 + $0x28] sm:$0xff] %vm9864_vm8, %v9837_v49  ;;  %v9769_v62 = vmul.f32 %v19499_v54, %v9659_v39  ;;  %v13159_v3 = vpop.f32.mrb[138].mxu1 }
 0x893   : > { %v9810_v19 = vadd.f32 %v19504_v27, %v9771_v55  ;;  %v9772_v24 = vmul.f32 %v13159_v3, %v19499_v54  ;;  %v9662_v50 = vpop.f32.mrb[139].mxu1 }
 0x894   : > { %v9808_v44 = vadd.f32 %v19504_v27, %v9769_v62  ;;  %v9770_v9 = vmul.f32 %v19499_v54, %v9662_v50 }
 0x895   : > { %v9842_v34 = vmax.f32 %v9810_v19, 0.0  ;;  %v9811_v46 = vadd.f32 %v19504_v27, %v9772_v24 }
 0x896   : > { %v9840_v7 = vmax.f32 %v9808_v44, 0.0  ;;  %v9809_v57 = vadd.f32 %v19504_v27, %v9770_v9 }
 0x897   : > { %9875 = vst.msk [vmem:[%s19514_s15 + $0x50] sm:$0xff] %vm9864_vm8, %v9842_v34  ;;  %v9843_v22 = vmax.f32 %v9811_v46, 0.0 }
 0x898   : > { %9873 = vst.msk [vmem:[%s19514_s15 + $0x40] sm:$0xff] %vm9864_vm8, %v9840_v7  ;;  %v9841_v4 = vmax.f32 %v9809_v57, 0.0  ;;  %v13162_v51 = vpop.f32.mrb[140].mxu1 }
 0x899   : > { %9876 = vst.msk [vmem:[%s19514_s15 + $0x58] sm:$0xff] %vm9864_vm8, %v9843_v22  ;;  %v9775_v59 = vmul.f32 %v13162_v51, %v19499_v54  ;;  %v9675_v8 = vpop.f32.mrb[141].mxu1 }
 0x89a   : > { %9874 = vst.msk [vmem:[%s19514_s15 + $0x48] sm:$0xff] %vm9864_vm8, %v9841_v4  ;;  %v9773_v5 = vmul.f32 %v19499_v54, %v9675_v8  ;;  %v13163_v52 = vpop.f32.mrb[142].mxu1 }
 0x89b   : > { %v9814_v38 = vadd.f32 %v19504_v27, %v9775_v59  ;;  %v9776_v60 = vmul.f32 %v13163_v52, %v19499_v54  ;;  %v9678_v29 = vpop.f32.mrb[143].mxu1 }
 0x89c   : > { %v9812_v26 = vadd.f32 %v19504_v27, %v9773_v5  ;;  %v9774_v33 = vmul.f32 %v19499_v54, %v9678_v29 }
 0x89d   : > { %v9846_v21 = vmax.f32 %v9814_v38, 0.0  ;;  %v9815_v63 = vadd.f32 %v19504_v27, %v9776_v60 }
 0x89e   : > { %v9844_v14 = vmax.f32 %v9812_v26, 0.0  ;;  %v9813_v32 = vadd.f32 %v19504_v27, %v9774_v33 }
 0x89f   : > { %9879 = vst.msk [vmem:[%s19514_s15 + $0x70] sm:$0xff] %vm9864_vm8, %v9846_v21  ;;  %v9847_v43 = vmax.f32 %v9815_v63, 0.0 }
 0x8a0   : > { %9877 = vst.msk [vmem:[%s19514_s15 + $0x60] sm:$0xff] %vm9864_vm8, %v9844_v14  ;;  %v9845_v10 = vmax.f32 %v9813_v32, 0.0  ;;  %v13166_v6 = vpop.f32.mrb[144].mxu1 }
 0x8a1   : > { %9880 = vst.msk [vmem:[%s19514_s15 + $0x78] sm:$0xff] %vm9864_vm8, %v9847_v43  ;;  %v9779_v42 = vmul.f32 %v13166_v6, %v19499_v54  ;;  %v9691_v0 = vpop.f32.mrb[145].mxu1 }
 0x8a2   : > { %9878 = vst.msk [vmem:[%s19514_s15 + $0x68] sm:$0xff] %vm9864_vm8, %v9845_v10  ;;  %v9777_v20 = vmul.f32 %v19499_v54, %v9691_v0  ;;  %v13167_v18 = vpop.f32.mrb[146].mxu1 }
 0x8a3   : > { %v9818_v56 = vadd.f32 %v19504_v27, %v9779_v42  ;;  %v9780_v2 = vmul.f32 %v13167_v18, %v19499_v54  ;;  %v9694_v30 = vpop.f32.mrb[147].mxu1 }
 0x8a4   : > { %v9816_v35 = vadd.f32 %v19504_v27, %v9777_v20  ;;  %v9778_v41 = vmul.f32 %v19499_v54, %v9694_v30 }
 0x8a5   : > { %v9850_v1 = vmax.f32 %v9818_v56, 0.0  ;;  %v9819_v58 = vadd.f32 %v19504_v27, %v9780_v2 }
 0x8a6   : > { %v9848_v48 = vmax.f32 %v9816_v35, 0.0  ;;  %v9817_v11 = vadd.f32 %v19504_v27, %v9778_v41 }
 0x8a7   : > { %9883 = vst.msk [vmem:[%s19514_s15 + $0x90] sm:$0xff] %vm9864_vm8, %v9850_v1  ;;  %v9851_v12 = vmax.f32 %v9819_v58, 0.0 }
 0x8a8   : > { %9881 = vst.msk [vmem:[%s19514_s15 + $0x80] sm:$0xff] %vm9864_vm8, %v9848_v48  ;;  %v9849_v31 = vmax.f32 %v9817_v11, 0.0  ;;  %v13170_v47 = vpop.f32.mrb[148].mxu1 }
 0x8a9   : > { %9884 = vst.msk [vmem:[%s19514_s15 + $0x98] sm:$0xff] %vm9864_vm8, %v9851_v12  ;;  %v9783_v16 = vmul.f32 %v13170_v47, %v19499_v54  ;;  %v9707_v15 = vpop.f32.mrb[149].mxu1 }
 0x8aa   : > { %9882 = vst.msk [vmem:[%s19514_s15 + $0x88] sm:$0xff] %vm9864_vm8, %v9849_v31  ;;  %v9781_v25 = vmul.f32 %v19499_v54, %v9707_v15  ;;  %v13171_v28 = vpop.f32.mrb[150].mxu1 }
 0x8ab   : > { %v9822_v45 = vadd.f32 %v19504_v27, %v9783_v16  ;;  %v9784_v37 = vmul.f32 %v13171_v28, %v19499_v54  ;;  %v9710_v23 = vpop.f32.mrb[151].mxu1 }
 0x8ac   : > { %v9820_v17 = vadd.f32 %v19504_v27, %v9781_v25  ;;  %v9782_v61 = vmul.f32 %v19499_v54, %v9710_v23 }
 0x8ad   : > { %v9854_v40 = vmax.f32 %v9822_v45, 0.0  ;;  %v9823_v13 = vadd.f32 %v19504_v27, %v9784_v37 }
 0x8ae   : > { %v9852_v53 = vmax.f32 %v9820_v17, 0.0  ;;  %v9821_v49 = vadd.f32 %v19504_v27, %v9782_v61 }
 0x8af   : > { %9887 = vst.msk [vmem:[%s19514_s15 + $0xb0] sm:$0xff] %vm9864_vm8, %v9854_v40  ;;  %v9855_v36 = vmax.f32 %v9823_v13, 0.0 }
 0x8b0   : > { %9885 = vst.msk [vmem:[%s19514_s15 + $0xa0] sm:$0xff] %vm9864_vm8, %v9852_v53  ;;  %v9853_v55 = vmax.f32 %v9821_v49, 0.0  ;;  %v13174_v39 = vpop.f32.mrb[152].mxu1 }
 0x8b1   : > { %9888 = vst.msk [vmem:[%s19514_s15 + $0xb8] sm:$0xff] %vm9864_vm8, %v9855_v36  ;;  %v9787_v62 = vmul.f32 %v13174_v39, %v19499_v54  ;;  %v9723_v3 = vpop.f32.mrb[153].mxu1 }
 0x8b2   : > { %9886 = vst.msk [vmem:[%s19514_s15 + $0xa8] sm:$0xff] %vm9864_vm8, %v9853_v55  ;;  %v9785_v19 = vmul.f32 %v19499_v54, %v9723_v3  ;;  %v13175_v24 = vpop.f32.mrb[154].mxu1 }
 0x8b3   : > { %v9826_v50 = vadd.f32 %v19504_v27, %v9787_v62  ;;  %v9788_v44 = vmul.f32 %v13175_v24, %v19499_v54  ;;  %v9726_v9 = vpop.f32.mrb[155].mxu1 }
 0x8b4   : > { %v9824_v34 = vadd.f32 %v19504_v27, %v9785_v19  ;;  %v9786_v46 = vmul.f32 %v19499_v54, %v9726_v9 }
 0x8b5   : > { %v9858_v7 = vmax.f32 %v9826_v50, 0.0  ;;  %v9827_v57 = vadd.f32 %v19504_v27, %v9788_v44 }
 0x8b6   : > { %v9856_v22 = vmax.f32 %v9824_v34, 0.0  ;;  %v9825_v4 = vadd.f32 %v19504_v27, %v9786_v46 }
 0x8b7   : > { %9891 = vst.msk [vmem:[%s19514_s15 + $0xd0] sm:$0xff] %vm9864_vm8, %v9858_v7  ;;  %v9859_v51 = vmax.f32 %v9827_v57, 0.0 }
 0x8b8   : > { %9889 = vst.msk [vmem:[%s19514_s15 + $0xc0] sm:$0xff] %vm9864_vm8, %v9856_v22  ;;  %v9857_v59 = vmax.f32 %v9825_v4, 0.0  ;;  %v13178_v8 = vpop.f32.mrb[156].mxu1 }
 0x8b9   : > { %9892 = vst.msk [vmem:[%s19514_s15 + $0xd8] sm:$0xff] %vm9864_vm8, %v9859_v51  ;;  %v9791_v5 = vmul.f32 %v13178_v8, %v19499_v54  ;;  %v9739_v52 = vpop.f32.mrb[157].mxu1 }
 0x8ba   : > { %9890 = vst.msk [vmem:[%s19514_s15 + $0xc8] sm:$0xff] %vm9864_vm8, %v9857_v59  ;;  %v9789_v38 = vmul.f32 %v19499_v54, %v9739_v52  ;;  %v13179_v60 = vpop.f32.mrb[158].mxu1 }
 0x8bb   : > { %v9830_v29 = vadd.f32 %v19504_v27, %v9791_v5  ;;  %v9792_v26 = vmul.f32 %v13179_v60, %v19499_v54  ;;  %v9742_v33 = vpop.f32.mrb[159].mxu1 }
 0x8bc   : > { %v9828_v21 = vadd.f32 %v19504_v27, %v9789_v38  ;;  %v9790_v63 = vmul.f32 %v19499_v54, %v9742_v33 }
 0x8bd   : > { %v9862_v14 = vmax.f32 %v9830_v29, 0.0  ;;  %v9831_v32 = vadd.f32 %v19504_v27, %v9792_v26 }
 0x8be   : > { %v9860_v43 = vmax.f32 %v9828_v21, 0.0  ;;  %v9829_v10 = vadd.f32 %v19504_v27, %v9790_v63 }
 0x8bf   : > { %9895 = vst.msk [vmem:[%s19514_s15 + $0xf0] sm:$0xff] %vm9864_vm8, %v9862_v14  ;;  %v9863_v6 = vmax.f32 %v9831_v32, 0.0 }
 0x8c0   : > { %9893 = vst.msk [vmem:[%s19514_s15 + $0xe0] sm:$0xff] %vm9864_vm8, %v9860_v43  ;;  %v9861_v42 = vmax.f32 %v9829_v10, 0.0 }
 0x8c1   : > { %9896 = vst.msk [vmem:[%s19514_s15 + $0xf8] sm:$0xff] %vm9864_vm8, %v9863_v6 }
 0x8c2   : > { %9894 = vst.msk [vmem:[%s19514_s15 + $0xe8] sm:$0xff] %vm9864_vm8, %v9861_v42 }
 0x8c3 PF: > { %p26_p9 = scmp.ge.s32.totalorder %s14517_s13, 4   ;;  %s21038_s18 = smov %s14324_s19 }
 0x8c4   : > { %s21039_s19 = smov %s14328_s20  ;;  %s21040_s20 = smov %s14528_s17 }
 0x8c5   : > { %s21041_s21 = smov %s14517_s13  ;;  %28 = sbr.rel (!%p26_p9) target bundleno = 10 (0xa), region = 141 }
 0x8cc   :  { %9918 = vsyncpa [#allocation3], 1 }
 0x8cd   :  { %9920 = vsyncpa [#allocation3 + $0x1], 1 }
 0x8ce   :  { %9921 = vsyncpa [#allocation5], 1 }

</bundles_post_ra>
